<compile_context>
chip_gen: v5e
topology: v5e:2x2
jax: 0.10.0
libtpu: 0.0.40
codegen_flags: <defaults>
</compile_context>

<pallas_src>
import functools

import jax
import jax.numpy as jnp
from jax import lax
from jax.experimental import pallas as pl
from jax.experimental.pallas import tpu as pltpu

MXU_DTYPE = jnp.bfloat16      # MXU operands; accumulation stays f32 via preferred_element_type
_EPS = 1e-5
_ARGS_PER_STAGE = 25          # weight refs per stage (see flattening order in encoder_forward)


# ----------------------------- in-kernel building blocks -----------------------------

def _identity_f32(n):
    r = lax.broadcasted_iota(jnp.int32, (n, n), 0)
    c = lax.broadcasted_iota(jnp.int32, (n, n), 1)
    return (r == c).astype(jnp.float32)


def _transpose_mxu(x):
    """(A, B) -> (B, A) via an exact one-hot f32 matmul.

    Keeps the NCL<->channels-last relayout inside the kernel (no XLA transpose / extra
    HBM copy) using only ops guaranteed to lower in Mosaic; multiplying by 1.0/0.0 with
    f32 accumulation is numerically exact up to fp rounding of the identity pass."""
    eye = _identity_f32(x.shape[1])
    return lax.dot_general(eye, x, (((1,), (1,)), ((), ())),
                           preferred_element_type=jnp.float32)


def _conv_taps(x, w_ref, *, K, pad_left, pad_right, n_out):
    """K-tap 1-D conv (channels-last) as K accumulated C-deep MXU matmuls over
    sublane-shifted slices of the zero-padded activation (no lane-offset im2col concat).
    w_ref rows are ordered (k*Cin + ci); no bias."""
    L, C = x.shape
    pieces = []
    if pad_left:
        pieces.append(jnp.zeros((pad_left, C), jnp.float32))
    pieces.append(x)
    if pad_right:
        pieces.append(jnp.zeros((pad_right, C), jnp.float32))
    xp = jnp.concatenate(pieces, axis=0) if len(pieces) > 1 else x
    acc = None
    for k in range(K):
        xk = xp[k:k + n_out, :]                       # static sublane-shifted slice
        wk = w_ref[pl.ds(k * C, C), :]                # static row-slice of the weight
        t = jnp.dot(xk.astype(MXU_DTYPE), wk.astype(MXU_DTYPE),
                    preferred_element_type=jnp.float32)
        acc = t if acc is None else acc + t
    return acc


def _gn_silu(h, g_ref, be_ref, m_ref, mt_ref, count):
    """Two-pass GroupNorm (group stats via tiny one-hot matmuls, all f32) + SiLU."""
    inv = 1.0 / count
    s1 = jnp.dot(jnp.sum(h, axis=0, keepdims=True), m_ref[...],
                 preferred_element_type=jnp.float32)                  # (1, G)
    mean_c = jnp.dot(s1 * inv, mt_ref[...], preferred_element_type=jnp.float32)
    d = h - mean_c
    s2 = jnp.dot(jnp.sum(d * d, axis=0, keepdims=True), m_ref[...],
                 preferred_element_type=jnp.float32)
    inv_std = jnp.dot(lax.rsqrt(s2 * inv + _EPS), mt_ref[...],
                      preferred_element_type=jnp.float32)
    y = d * inv_std * g_ref[...] + be_ref[...]
    return y * jax.nn.sigmoid(y)                                      # SiLU


def _resnet_block(x, refs, m_ref, mt_ref, *, K, pad_left, groups):
    """conv(k=K) -> GN -> SiLU -> conv(k=K) -> GN -> SiLU -> + residual (all in VMEM)."""
    w1, b1, g1, be1, w2, b2, g2, be2 = refs
    L, C = x.shape
    count = float(L * (C // groups))
    pr = K - 1 - pad_left
    h = _conv_taps(x, w1, K=K, pad_left=pad_left, pad_right=pr, n_out=L) + b1[...]
    h = _gn_silu(h, g1, be1, m_ref, mt_ref, count)
    h = _conv_taps(h, w2, K=K, pad_left=pad_left, pad_right=pr, n_out=L) + b2[...]
    h = _gn_silu(h, g2, be2, m_ref, mt_ref, count)
    return h + x


def _attn_residual(x, gng, gnb, wqkv_ref, wout_ref, bout_ref, *, heads, dim_head, causal):
    """Residual(PreNorm(ConvAttention)) for one (L, C) sample."""
    L, C = x.shape
    hidden = heads * dim_head

    # PreNorm = GroupNorm(num_groups=1): stats over the whole (L, C) sample, f32.
    n_inv = 1.0 / float(L * C)
    mean = jnp.sum(jnp.sum(x, axis=0, keepdims=True), axis=1, keepdims=True) * n_inv
    d = x - mean
    var = jnp.sum(jnp.sum(d * d, axis=0, keepdims=True), axis=1, keepdims=True) * n_inv
    xn = d * lax.rsqrt(var + _EPS) * gng[...] + gnb[...]

    # 1x1 conv to qkv (no bias); heads split with static lane slices.
    qkv = jnp.dot(xn.astype(MXU_DTYPE), wqkv_ref[...].astype(MXU_DTYPE),
                  preferred_element_type=jnp.float32)                 # (L, 3*hidden)
    scale = float(dim_head) ** -0.5

    acc = jnp.zeros((L, C), jnp.float32)
    for h in range(heads):
        lo = h * dim_head
        q = qkv[:, lo:lo + dim_head] * scale
        k = qkv[:, hidden + lo:hidden + lo + dim_head]
        v = qkv[:, 2 * hidden + lo:2 * hidden + lo + dim_head]
        s = lax.dot_general(q.astype(MXU_DTYPE), k.astype(MXU_DTYPE),
                            (((1,), (1,)), ((), ())),
                            preferred_element_type=jnp.float32)       # (L, L) f32
        if causal:
            row = lax.broadcasted_iota(jnp.int32, (L, L), 0)
            col = lax.broadcasted_iota(jnp.int32, (L, L), 1)
            s = jnp.where(col <= row, s, jnp.float32(-1e30))          # mask on f32 scores
        s = s - jnp.max(s, axis=-1, keepdims=True)
        p = jnp.exp(s)
        p = p * pl.reciprocal(jnp.sum(p, axis=-1, keepdims=True), approx=True)
        oh = jnp.dot(p.astype(MXU_DTYPE), v.astype(MXU_DTYPE),
                     preferred_element_type=jnp.float32)              # (L, dh)
        wo_h = wout_ref[pl.ds(lo, dim_head), :]                       # fold out-proj per head
        acc = acc + jnp.dot(oh.astype(MXU_DTYPE), wo_h.astype(MXU_DTYPE),
                            preferred_element_type=jnp.float32)
    return x + acc + bout_ref[...]                                    # Residual(...)


def _downsample(y, wd_ref, bd_ref, *, stride2):
    """Downsample Conv1d(k=4, s=2, p=1) or final Conv1d(ins, outs, 1)."""
    L, C = y.shape
    if stride2:
        L_out = L // 2
        # stride-1 conv at all positions p in [0, L-2], then pick even rows with an
        # exact one-hot selection matmul (keeps all work on the MXU, no strided reads).
        # NOTE: keeps the reference's symmetric (1,1) padding even in causal mode.
        full = _conv_taps(y, wd_ref, K=4, pad_left=1, pad_right=1, n_out=L - 1)
        rows = lax.broadcasted_iota(jnp.int32, (L_out, L - 1), 0)
        cols = lax.broadcasted_iota(jnp.int32, (L_out, L - 1), 1)
        sel = (cols == 2 * rows).astype(jnp.float32)
        return jnp.dot(sel, full, preferred_element_type=jnp.float32) + bd_ref[...]
    # final 1x1 conv
    return jnp.dot(y.astype(MXU_DTYPE), wd_ref[...].astype(MXU_DTYPE),
                   preferred_element_type=jnp.float32) + bd_ref[...]


# ------------------------------ fused whole-encoder kernel ------------------------------

def _make_encoder_kernel(stage_meta, *, heads, dim_head, causal, groups, pad_left):
    """stage_meta: list of {'is_last': bool} (static).  Kernel processes ONE batch
    element through every stage; all intermediates live in VMEM/vregs."""

    def kernel(x_ref, *rest):
        o_ref = rest[-1]
        wrefs = rest[:-1]

        # (1, C0, L0) NCL block -> channels-last (L0, C0): L on sublanes so the K-tap
        # conv shifts are cheap sublane shifts, C feeds the MXU contraction.
        x = _transpose_mxu(x_ref[0].astype(jnp.float32))

        off = 0
        for meta in stage_meta:
            r = wrefs[off:off + _ARGS_PER_STAGE]
            off += _ARGS_PER_STAGE
            rb1, rb2 = r[0:8], r[8:16]
            m_ref, mt_ref = r[16], r[17]
            gng, gnb, wqkv, wout, bout = r[18], r[19], r[20], r[21], r[22]
            wd, bd = r[23], r[24]

            x = _resnet_block(x, rb1, m_ref, mt_ref, K=9, pad_left=pad_left, groups=groups)
            x = _resnet_block(x, rb2, m_ref, mt_ref, K=9, pad_left=pad_left, groups=groups)
            x = _attn_residual(x, gng, gnb, wqkv, wout, bout,
                               heads=heads, dim_head=dim_head, causal=causal)
            x = _downsample(x, wd, bd, stride2=not meta["is_last"])

        # channels-last (L_f, C_f) -> NCL (C_f, L_f); single tiny HBM store per sample.
        o_ref[0] = _transpose_mxu(x).astype(o_ref.dtype)

    return kernel


# ------------------------------ pallas_call wrapper ------------------------------

def encoder_forward(x_bcl, params, *, resnet_block_groups=4, heads=2, dim_head=8,
                    causal=False):
    """x_bcl: (B, C, L) in PyTorch NCL layout. Returns (B, C_out, L_out) NCL."""
    B, C0, L0 = x_bcl.shape
    pad_left = 8 if causal else 4                       # k=9 'same' / causal padding

    # Flatten per-stage weights in the exact order the kernel unpacks them, and derive
    # the (static) stage metadata / output shape from weight shapes.
    flat, stage_meta = [], []
    L, C = L0, C0
    for stage in params:
        wd = stage["down"]["w"]
        is_last = wd.shape[0] == C                      # (C, Cout) 1x1  vs  (4C, Cout) k=4 s=2
        c_out = stage["down"]["b"].shape[1]
        stage_meta.append({"is_last": is_last})
        for rb in (stage["rb1"], stage["rb2"]):
            flat += [rb["w1"], rb["b1"], rb["g1"], rb["be1"],
                     rb["w2"], rb["b2"], rb["g2"], rb["be2"]]
        flat += [stage["M"], stage["MT"]]
        a = stage["attn"]
        flat += [a["norm_gamma"], a["norm_beta"], a["to_qkv_w"], a["to_out_w"], a["to_out_b"]]
        flat += [stage["down"]["w"], stage["down"]["b"]]
        C = c_out
        L = L if is_last else L // 2
    L_f, C_f = L, C

    kern = _make_encoder_kernel(stage_meta, heads=heads, dim_head=dim_head,
                                causal=causal, groups=resnet_block_groups,
                                pad_left=pad_left)

    rep = lambda i: (0, 0)                              # all weights are rank-2, replicated
    in_specs = [pl.BlockSpec((1, C0, L0), lambda i: (i, 0, 0))] + \
               [pl.BlockSpec(w.shape, rep) for w in flat]

    return pl.pallas_call(
        kern,
        out_shape=jax.ShapeDtypeStruct((B, C_f, L_f), jnp.float32),
        grid=(B,),
        in_specs=in_specs,
        out_specs=pl.BlockSpec((1, C_f, L_f), lambda i: (i, 0, 0)),
        compiler_params=pltpu.CompilerParams(dimension_semantics=("parallel",)),
    )(x_bcl.astype(jnp.float32), *flat)


# ------------------------------ params (kernel-ready layouts) ------------------------------

def _conv_weight(key, cout, cin, k, scale=0.05):
    return jax.random.normal(key, (cout, cin, k), jnp.float32) * scale


def _tap_weight(w):
    # (Cout, Cin, K) torch layout -> (K*Cin, Cout), rows ordered (k*Cin + ci) so that
    # tap-k weights are the contiguous row-slice [k*Cin, (k+1)*Cin).
    cout, cin, k = w.shape
    return jnp.transpose(w, (2, 1, 0)).reshape(k * cin, cout)


def init_encoder_params(key, dims, resnet_block_groups=4, heads=2, dim_head=8):
    ins_outs = list(zip(dims[:-1], dims[1:]))
    n = len(ins_outs)
    hidden = heads * dim_head
    stages = []
    for idx, (ins, outs) in enumerate(ins_outs):
        is_last = idx >= n - 1
        key, k1, k2, k3, k4, k5, k6, k7 = jax.random.split(key, 8)

        def resblock_params(kk, dim):
            ka, kb, kc, kd = jax.random.split(kk, 4)
            w1 = _conv_weight(ka, dim, dim, 9)
            b1 = jax.random.normal(kb, (1, dim), jnp.float32) * 0.05
            w2 = _conv_weight(kc, dim, dim, 9)
            b2 = jax.random.normal(kd, (1, dim), jnp.float32) * 0.05
            ones = jnp.ones((1, dim), jnp.float32)
            zeros = jnp.zeros((1, dim), jnp.float32)
            return {"w1": _tap_weight(w1), "b1": b1, "g1": ones, "be1": zeros,
                    "w2": _tap_weight(w2), "b2": b2, "g2": ones, "be2": zeros}

        # GroupNorm one-hot group-membership matrices, hoisted to init (shared by both RBs)
        cg = ins // resnet_block_groups
        M = jnp.zeros((ins, resnet_block_groups), jnp.float32).at[
            jnp.arange(ins), jnp.arange(ins) // cg].set(1.0)
        MT = jnp.asarray(M.T)

        wq = _conv_weight(k3, 3 * hidden, ins, 1)            # to_qkv (no bias)
        wo = _conv_weight(k4, ins, hidden, 1)                # to_out
        bo = jax.random.normal(k5, (1, ins), jnp.float32) * 0.05
        attn = {"norm_gamma": jnp.ones((1, ins), jnp.float32),
                "norm_beta": jnp.zeros((1, ins), jnp.float32),
                "to_qkv_w": jnp.transpose(wq[:, :, 0], (1, 0)),   # (ins, 3*hidden)
                "to_out_w": jnp.transpose(wo[:, :, 0], (1, 0)),   # (hidden, ins)
                "to_out_b": bo}

        if not is_last:
            wd = _conv_weight(k6, outs, ins, 4)              # Downsample Conv1d(4, 2, 1)
            down_w = _tap_weight(wd)                         # (4*ins, outs)
        else:
            wd = _conv_weight(k6, outs, ins, 1)              # final Conv1d(ins, outs, 1)
            down_w = jnp.transpose(wd[:, :, 0], (1, 0))      # (ins, outs)
        down = {"w": down_w,
                "b": jax.random.normal(k7, (1, outs), jnp.float32) * 0.05}

        stages.append({"rb1": resblock_params(k1, ins), "rb2": resblock_params(k2, ins),
                       "M": M, "MT": MT, "attn": attn, "down": down})
    return stages


# --------------------------------- main -------------------------------------

if __name__ == "__main__":
    key = jax.random.PRNGKey(0)
    kx, kp = jax.random.split(key)

    dims = (4, 8, 16)            # two stages: Downsample(k=4,s=2) then final 1x1 conv
    B, C, L = 2, dims[0], 16
    x = jax.random.normal(kx, (B, C, L), jnp.float32)
    params = init_encoder_params(kp, dims, resnet_block_groups=4, heads=2, dim_head=8)

    fwd = jax.jit(functools.partial(encoder_forward, resnet_block_groups=4,
                                    heads=2, dim_head=8, causal=False))
    y = jax.block_until_ready(fwd(x, params))

    assert y.shape == (B, dims[-1], L // 2), y.shape
    assert bool(jnp.all(jnp.isfinite(y)))
    print("KERNEL_OK")
</pallas_src>

<mosaic_0001>
module attributes {stable_mosaic.version = 11 : i64} {
  func.func @kernel(%arg0: i32, %arg1: memref<1x4x16xf32, #tpu.memory_space<vmem>>, %arg2: memref<36x4xf32, #tpu.memory_space<vmem>>, %arg3: memref<1x4xf32, #tpu.memory_space<vmem>>, %arg4: memref<1x4xf32, #tpu.memory_space<vmem>>, %arg5: memref<1x4xf32, #tpu.memory_space<vmem>>, %arg6: memref<36x4xf32, #tpu.memory_space<vmem>>, %arg7: memref<1x4xf32, #tpu.memory_space<vmem>>, %arg8: memref<1x4xf32, #tpu.memory_space<vmem>>, %arg9: memref<1x4xf32, #tpu.memory_space<vmem>>, %arg10: memref<36x4xf32, #tpu.memory_space<vmem>>, %arg11: memref<1x4xf32, #tpu.memory_space<vmem>>, %arg12: memref<1x4xf32, #tpu.memory_space<vmem>>, %arg13: memref<1x4xf32, #tpu.memory_space<vmem>>, %arg14: memref<36x4xf32, #tpu.memory_space<vmem>>, %arg15: memref<1x4xf32, #tpu.memory_space<vmem>>, %arg16: memref<1x4xf32, #tpu.memory_space<vmem>>, %arg17: memref<1x4xf32, #tpu.memory_space<vmem>>, %arg18: memref<4x4xf32, #tpu.memory_space<vmem>>, %arg19: memref<4x4xf32, #tpu.memory_space<vmem>>, %arg20: memref<1x4xf32, #tpu.memory_space<vmem>>, %arg21: memref<1x4xf32, #tpu.memory_space<vmem>>, %arg22: memref<4x48xf32, #tpu.memory_space<vmem>>, %arg23: memref<16x4xf32, #tpu.memory_space<vmem>>, %arg24: memref<1x4xf32, #tpu.memory_space<vmem>>, %arg25: memref<16x8xf32, #tpu.memory_space<vmem>>, %arg26: memref<1x8xf32, #tpu.memory_space<vmem>>, %arg27: memref<72x8xf32, #tpu.memory_space<vmem>>, %arg28: memref<1x8xf32, #tpu.memory_space<vmem>>, %arg29: memref<1x8xf32, #tpu.memory_space<vmem>>, %arg30: memref<1x8xf32, #tpu.memory_space<vmem>>, %arg31: memref<72x8xf32, #tpu.memory_space<vmem>>, %arg32: memref<1x8xf32, #tpu.memory_space<vmem>>, %arg33: memref<1x8xf32, #tpu.memory_space<vmem>>, %arg34: memref<1x8xf32, #tpu.memory_space<vmem>>, %arg35: memref<72x8xf32, #tpu.memory_space<vmem>>, %arg36: memref<1x8xf32, #tpu.memory_space<vmem>>, %arg37: memref<1x8xf32, #tpu.memory_space<vmem>>, %arg38: memref<1x8xf32, #tpu.memory_space<vmem>>, %arg39: memref<72x8xf32, #tpu.memory_space<vmem>>, %arg40: memref<1x8xf32, #tpu.memory_space<vmem>>, %arg41: memref<1x8xf32, #tpu.memory_space<vmem>>, %arg42: memref<1x8xf32, #tpu.memory_space<vmem>>, %arg43: memref<8x4xf32, #tpu.memory_space<vmem>>, %arg44: memref<4x8xf32, #tpu.memory_space<vmem>>, %arg45: memref<1x8xf32, #tpu.memory_space<vmem>>, %arg46: memref<1x8xf32, #tpu.memory_space<vmem>>, %arg47: memref<8x48xf32, #tpu.memory_space<vmem>>, %arg48: memref<16x8xf32, #tpu.memory_space<vmem>>, %arg49: memref<1x8xf32, #tpu.memory_space<vmem>>, %arg50: memref<8x16xf32, #tpu.memory_space<vmem>>, %arg51: memref<1x16xf32, #tpu.memory_space<vmem>>, %arg52: memref<1x16x8xf32, #tpu.memory_space<vmem>>) attributes {dimension_semantics = [#tpu.dimension_semantics<parallel>], iteration_bounds = array<i64: 2>, scalar_prefetch = 0 : i64, scratch_operands = 0 : i64, tpu.core_type = #tpu.core_type<tc>, window_params = [{transform_indices = @transform_0, window_bounds = array<i64: 1, 4, 16>}, {pipeline_mode = #tpu.pipeline_mode<synchronous>, transform_indices = @transform_1, window_bounds = array<i64: 36, 4>}, {pipeline_mode = #tpu.pipeline_mode<synchronous>, transform_indices = @transform_2, window_bounds = array<i64: 1, 4>}, {pipeline_mode = #tpu.pipeline_mode<synchronous>, transform_indices = @transform_3, window_bounds = array<i64: 1, 4>}, {pipeline_mode = #tpu.pipeline_mode<synchronous>, transform_indices = @transform_4, window_bounds = array<i64: 1, 4>}, {pipeline_mode = #tpu.pipeline_mode<synchronous>, transform_indices = @transform_5, window_bounds = array<i64: 36, 4>}, {pipeline_mode = #tpu.pipeline_mode<synchronous>, transform_indices = @transform_6, window_bounds = array<i64: 1, 4>}, {pipeline_mode = #tpu.pipeline_mode<synchronous>, transform_indices = @transform_7, window_bounds = array<i64: 1, 4>}, {pipeline_mode = #tpu.pipeline_mode<synchronous>, transform_indices = @transform_8, window_bounds = array<i64: 1, 4>}, {pipeline_mode = #tpu.pipeline_mode<synchronous>, transform_indices = @transform_9, window_bounds = array<i64: 36, 4>}, {pipeline_mode = #tpu.pipeline_mode<synchronous>, transform_indices = @transform_10, window_bounds = array<i64: 1, 4>}, {pipeline_mode = #tpu.pipeline_mode<synchronous>, transform_indices = @transform_11, window_bounds = array<i64: 1, 4>}, {pipeline_mode = #tpu.pipeline_mode<synchronous>, transform_indices = @transform_12, window_bounds = array<i64: 1, 4>}, {pipeline_mode = #tpu.pipeline_mode<synchronous>, transform_indices = @transform_13, window_bounds = array<i64: 36, 4>}, {pipeline_mode = #tpu.pipeline_mode<synchronous>, transform_indices = @transform_14, window_bounds = array<i64: 1, 4>}, {pipeline_mode = #tpu.pipeline_mode<synchronous>, transform_indices = @transform_15, window_bounds = array<i64: 1, 4>}, {pipeline_mode = #tpu.pipeline_mode<synchronous>, transform_indices = @transform_16, window_bounds = array<i64: 1, 4>}, {pipeline_mode = #tpu.pipeline_mode<synchronous>, transform_indices = @transform_17, window_bounds = array<i64: 4, 4>}, {pipeline_mode = #tpu.pipeline_mode<synchronous>, transform_indices = @transform_18, window_bounds = array<i64: 4, 4>}, {pipeline_mode = #tpu.pipeline_mode<synchronous>, transform_indices = @transform_19, window_bounds = array<i64: 1, 4>}, {pipeline_mode = #tpu.pipeline_mode<synchronous>, transform_indices = @transform_20, window_bounds = array<i64: 1, 4>}, {pipeline_mode = #tpu.pipeline_mode<synchronous>, transform_indices = @transform_21, window_bounds = array<i64: 4, 48>}, {pipeline_mode = #tpu.pipeline_mode<synchronous>, transform_indices = @transform_22, window_bounds = array<i64: 16, 4>}, {pipeline_mode = #tpu.pipeline_mode<synchronous>, transform_indices = @transform_23, window_bounds = array<i64: 1, 4>}, {pipeline_mode = #tpu.pipeline_mode<synchronous>, transform_indices = @transform_24, window_bounds = array<i64: 16, 8>}, {pipeline_mode = #tpu.pipeline_mode<synchronous>, transform_indices = @transform_25, window_bounds = array<i64: 1, 8>}, {pipeline_mode = #tpu.pipeline_mode<synchronous>, transform_indices = @transform_26, window_bounds = array<i64: 72, 8>}, {pipeline_mode = #tpu.pipeline_mode<synchronous>, transform_indices = @transform_27, window_bounds = array<i64: 1, 8>}, {pipeline_mode = #tpu.pipeline_mode<synchronous>, transform_indices = @transform_28, window_bounds = array<i64: 1, 8>}, {pipeline_mode = #tpu.pipeline_mode<synchronous>, transform_indices = @transform_29, window_bounds = array<i64: 1, 8>}, {pipeline_mode = #tpu.pipeline_mode<synchronous>, transform_indices = @transform_30, window_bounds = array<i64: 72, 8>}, {pipeline_mode = #tpu.pipeline_mode<synchronous>, transform_indices = @transform_31, window_bounds = array<i64: 1, 8>}, {pipeline_mode = #tpu.pipeline_mode<synchronous>, transform_indices = @transform_32, window_bounds = array<i64: 1, 8>}, {pipeline_mode = #tpu.pipeline_mode<synchronous>, transform_indices = @transform_33, window_bounds = array<i64: 1, 8>}, {pipeline_mode = #tpu.pipeline_mode<synchronous>, transform_indices = @transform_34, window_bounds = array<i64: 72, 8>}, {pipeline_mode = #tpu.pipeline_mode<synchronous>, transform_indices = @transform_35, window_bounds = array<i64: 1, 8>}, {pipeline_mode = #tpu.pipeline_mode<synchronous>, transform_indices = @transform_36, window_bounds = array<i64: 1, 8>}, {pipeline_mode = #tpu.pipeline_mode<synchronous>, transform_indices = @transform_37, window_bounds = array<i64: 1, 8>}, {pipeline_mode = #tpu.pipeline_mode<synchronous>, transform_indices = @transform_38, window_bounds = array<i64: 72, 8>}, {pipeline_mode = #tpu.pipeline_mode<synchronous>, transform_indices = @transform_39, window_bounds = array<i64: 1, 8>}, {pipeline_mode = #tpu.pipeline_mode<synchronous>, transform_indices = @transform_40, window_bounds = array<i64: 1, 8>}, {pipeline_mode = #tpu.pipeline_mode<synchronous>, transform_indices = @transform_41, window_bounds = array<i64: 1, 8>}, {pipeline_mode = #tpu.pipeline_mode<synchronous>, transform_indices = @transform_42, window_bounds = array<i64: 8, 4>}, {pipeline_mode = #tpu.pipeline_mode<synchronous>, transform_indices = @transform_43, window_bounds = array<i64: 4, 8>}, {pipeline_mode = #tpu.pipeline_mode<synchronous>, transform_indices = @transform_44, window_bounds = array<i64: 1, 8>}, {pipeline_mode = #tpu.pipeline_mode<synchronous>, transform_indices = @transform_45, window_bounds = array<i64: 1, 8>}, {pipeline_mode = #tpu.pipeline_mode<synchronous>, transform_indices = @transform_46, window_bounds = array<i64: 8, 48>}, {pipeline_mode = #tpu.pipeline_mode<synchronous>, transform_indices = @transform_47, window_bounds = array<i64: 16, 8>}, {pipeline_mode = #tpu.pipeline_mode<synchronous>, transform_indices = @transform_48, window_bounds = array<i64: 1, 8>}, {pipeline_mode = #tpu.pipeline_mode<synchronous>, transform_indices = @transform_49, window_bounds = array<i64: 8, 16>}, {pipeline_mode = #tpu.pipeline_mode<synchronous>, transform_indices = @transform_50, window_bounds = array<i64: 1, 16>}, {transform_indices = @transform_51, window_bounds = array<i64: 1, 16, 8>}]} {
    %c0 = arith.constant 0 : index
    %c0_0 = arith.constant 0 : index
    %c0_1 = arith.constant 0 : index
    %0 = vector.load %arg1[%c0, %c0_0, %c0_1] : memref<1x4x16xf32, #tpu.memory_space<vmem>>, vector<1x4x16xf32>
    %1 = vector.shape_cast %0 : vector<1x4x16xf32> to vector<4x16xf32>
    %2 = tpu.iota {dimensions = array<i32: 0>} : vector<16x16xi32>
    %3 = tpu.iota {dimensions = array<i32: 1>} : vector<16x16xi32>
    %4 = arith.cmpi eq, %2, %3 : vector<16x16xi32>
    %5 = arith.extui %4 : vector<16x16xi1> to vector<16x16xi32>
    %6 = arith.sitofp %5 : vector<16x16xi32> to vector<16x16xf32>
    %cst = arith.constant dense<0.000000e+00> : vector<16x4xf32>
    %7 = tpu.matmul %6, %1, %cst {dimension_numbers = #tpu.dot_dimension_numbers<[1], [1], [0], [0], [0, 0, 1, 0], [], []>} : vector<16x16xf32>, vector<4x16xf32>, vector<16x4xf32> -> vector<16x4xf32>
    %cst_2 = arith.constant 0.000000e+00 : f32
    %8 = vector.broadcast %cst_2 : f32 to vector<4x4xf32>
    %cst_3 = arith.constant 0.000000e+00 : f32
    %9 = vector.broadcast %cst_3 : f32 to vector<4x4xf32>
    %10 = tpu.concatenate %8, %7, %9 in 0 : vector<4x4xf32>, vector<16x4xf32>, vector<4x4xf32> -> vector<24x4xf32>
    %11 = vector.extract_strided_slice %10 {offsets = [0, 0], sizes = [16, 4], strides = [1, 1]} : vector<24x4xf32> to vector<16x4xf32>
    %c0_4 = arith.constant 0 : index
    %c0_5 = arith.constant 0 : index
    %12 = vector.load %arg2[%c0_4, %c0_5] : memref<36x4xf32, #tpu.memory_space<vmem>>, vector<4x4xf32>
    %13 = arith.truncf %11 : vector<16x4xf32> to vector<16x4xbf16>
    %14 = arith.truncf %12 : vector<4x4xf32> to vector<4x4xbf16>
    %cst_6 = arith.constant dense<0.000000e+00> : vector<16x4xf32>
    %15 = tpu.matmul %13, %14, %cst_6 {dimension_numbers = #tpu.dot_dimension_numbers<[1], [0], [0], [1], [0, 0, 1, 1], [], []>} : vector<16x4xbf16>, vector<4x4xbf16>, vector<16x4xf32> -> vector<16x4xf32>
    %16 = vector.extract_strided_slice %10 {offsets = [1, 0], sizes = [16, 4], strides = [1, 1]} : vector<24x4xf32> to vector<16x4xf32>
    %c4 = arith.constant 4 : index
    %c0_7 = arith.constant 0 : index
    %17 = vector.load %arg2[%c4, %c0_7] : memref<36x4xf32, #tpu.memory_space<vmem>>, vector<4x4xf32>
    %18 = arith.truncf %16 : vector<16x4xf32> to vector<16x4xbf16>
    %19 = arith.truncf %17 : vector<4x4xf32> to vector<4x4xbf16>
    %cst_8 = arith.constant dense<0.000000e+00> : vector<16x4xf32>
    %20 = tpu.matmul %18, %19, %cst_8 {dimension_numbers = #tpu.dot_dimension_numbers<[1], [0], [0], [1], [0, 0, 1, 1], [], []>} : vector<16x4xbf16>, vector<4x4xbf16>, vector<16x4xf32> -> vector<16x4xf32>
    %21 = arith.addf %15, %20 : vector<16x4xf32>
    %22 = vector.extract_strided_slice %10 {offsets = [2, 0], sizes = [16, 4], strides = [1, 1]} : vector<24x4xf32> to vector<16x4xf32>
    %c8 = arith.constant 8 : index
    %c0_9 = arith.constant 0 : index
    %23 = vector.load %arg2[%c8, %c0_9] : memref<36x4xf32, #tpu.memory_space<vmem>>, vector<4x4xf32>
    %24 = arith.truncf %22 : vector<16x4xf32> to vector<16x4xbf16>
    %25 = arith.truncf %23 : vector<4x4xf32> to vector<4x4xbf16>
    %cst_10 = arith.constant dense<0.000000e+00> : vector<16x4xf32>
    %26 = tpu.matmul %24, %25, %cst_10 {dimension_numbers = #tpu.dot_dimension_numbers<[1], [0], [0], [1], [0, 0, 1, 1], [], []>} : vector<16x4xbf16>, vector<4x4xbf16>, vector<16x4xf32> -> vector<16x4xf32>
    %27 = arith.addf %21, %26 : vector<16x4xf32>
    %28 = vector.extract_strided_slice %10 {offsets = [3, 0], sizes = [16, 4], strides = [1, 1]} : vector<24x4xf32> to vector<16x4xf32>
    %c12 = arith.constant 12 : index
    %c0_11 = arith.constant 0 : index
    %29 = vector.load %arg2[%c12, %c0_11] : memref<36x4xf32, #tpu.memory_space<vmem>>, vector<4x4xf32>
    %30 = arith.truncf %28 : vector<16x4xf32> to vector<16x4xbf16>
    %31 = arith.truncf %29 : vector<4x4xf32> to vector<4x4xbf16>
    %cst_12 = arith.constant dense<0.000000e+00> : vector<16x4xf32>
    %32 = tpu.matmul %30, %31, %cst_12 {dimension_numbers = #tpu.dot_dimension_numbers<[1], [0], [0], [1], [0, 0, 1, 1], [], []>} : vector<16x4xbf16>, vector<4x4xbf16>, vector<16x4xf32> -> vector<16x4xf32>
    %33 = arith.addf %27, %32 : vector<16x4xf32>
    %34 = vector.extract_strided_slice %10 {offsets = [4, 0], sizes = [16, 4], strides = [1, 1]} : vector<24x4xf32> to vector<16x4xf32>
    %c16 = arith.constant 16 : index
    %c0_13 = arith.constant 0 : index
    %35 = vector.load %arg2[%c16, %c0_13] : memref<36x4xf32, #tpu.memory_space<vmem>>, vector<4x4xf32>
    %36 = arith.truncf %34 : vector<16x4xf32> to vector<16x4xbf16>
    %37 = arith.truncf %35 : vector<4x4xf32> to vector<4x4xbf16>
    %cst_14 = arith.constant dense<0.000000e+00> : vector<16x4xf32>
    %38 = tpu.matmul %36, %37, %cst_14 {dimension_numbers = #tpu.dot_dimension_numbers<[1], [0], [0], [1], [0, 0, 1, 1], [], []>} : vector<16x4xbf16>, vector<4x4xbf16>, vector<16x4xf32> -> vector<16x4xf32>
    %39 = arith.addf %33, %38 : vector<16x4xf32>
    %40 = vector.extract_strided_slice %10 {offsets = [5, 0], sizes = [16, 4], strides = [1, 1]} : vector<24x4xf32> to vector<16x4xf32>
    %c20 = arith.constant 20 : index
    %c0_15 = arith.constant 0 : index
    %41 = vector.load %arg2[%c20, %c0_15] : memref<36x4xf32, #tpu.memory_space<vmem>>, vector<4x4xf32>
    %42 = arith.truncf %40 : vector<16x4xf32> to vector<16x4xbf16>
    %43 = arith.truncf %41 : vector<4x4xf32> to vector<4x4xbf16>
    %cst_16 = arith.constant dense<0.000000e+00> : vector<16x4xf32>
    %44 = tpu.matmul %42, %43, %cst_16 {dimension_numbers = #tpu.dot_dimension_numbers<[1], [0], [0], [1], [0, 0, 1, 1], [], []>} : vector<16x4xbf16>, vector<4x4xbf16>, vector<16x4xf32> -> vector<16x4xf32>
    %45 = arith.addf %39, %44 : vector<16x4xf32>
    %46 = vector.extract_strided_slice %10 {offsets = [6, 0], sizes = [16, 4], strides = [1, 1]} : vector<24x4xf32> to vector<16x4xf32>
    %c24 = arith.constant 24 : index
    %c0_17 = arith.constant 0 : index
    %47 = vector.load %arg2[%c24, %c0_17] : memref<36x4xf32, #tpu.memory_space<vmem>>, vector<4x4xf32>
    %48 = arith.truncf %46 : vector<16x4xf32> to vector<16x4xbf16>
    %49 = arith.truncf %47 : vector<4x4xf32> to vector<4x4xbf16>
    %cst_18 = arith.constant dense<0.000000e+00> : vector<16x4xf32>
    %50 = tpu.matmul %48, %49, %cst_18 {dimension_numbers = #tpu.dot_dimension_numbers<[1], [0], [0], [1], [0, 0, 1, 1], [], []>} : vector<16x4xbf16>, vector<4x4xbf16>, vector<16x4xf32> -> vector<16x4xf32>
    %51 = arith.addf %45, %50 : vector<16x4xf32>
    %52 = vector.extract_strided_slice %10 {offsets = [7, 0], sizes = [16, 4], strides = [1, 1]} : vector<24x4xf32> to vector<16x4xf32>
    %c28 = arith.constant 28 : index
    %c0_19 = arith.constant 0 : index
    %53 = vector.load %arg2[%c28, %c0_19] : memref<36x4xf32, #tpu.memory_space<vmem>>, vector<4x4xf32>
    %54 = arith.truncf %52 : vector<16x4xf32> to vector<16x4xbf16>
    %55 = arith.truncf %53 : vector<4x4xf32> to vector<4x4xbf16>
    %cst_20 = arith.constant dense<0.000000e+00> : vector<16x4xf32>
    %56 = tpu.matmul %54, %55, %cst_20 {dimension_numbers = #tpu.dot_dimension_numbers<[1], [0], [0], [1], [0, 0, 1, 1], [], []>} : vector<16x4xbf16>, vector<4x4xbf16>, vector<16x4xf32> -> vector<16x4xf32>
    %57 = arith.addf %51, %56 : vector<16x4xf32>
    %58 = vector.extract_strided_slice %10 {offsets = [8, 0], sizes = [16, 4], strides = [1, 1]} : vector<24x4xf32> to vector<16x4xf32>
    %c32 = arith.constant 32 : index
    %c0_21 = arith.constant 0 : index
    %59 = vector.load %arg2[%c32, %c0_21] : memref<36x4xf32, #tpu.memory_space<vmem>>, vector<4x4xf32>
    %60 = arith.truncf %58 : vector<16x4xf32> to vector<16x4xbf16>
    %61 = arith.truncf %59 : vector<4x4xf32> to vector<4x4xbf16>
    %cst_22 = arith.constant dense<0.000000e+00> : vector<16x4xf32>
    %62 = tpu.matmul %60, %61, %cst_22 {dimension_numbers = #tpu.dot_dimension_numbers<[1], [0], [0], [1], [0, 0, 1, 1], [], []>} : vector<16x4xbf16>, vector<4x4xbf16>, vector<16x4xf32> -> vector<16x4xf32>
    %63 = arith.addf %57, %62 : vector<16x4xf32>
    %c0_23 = arith.constant 0 : index
    %c0_24 = arith.constant 0 : index
    %64 = vector.load %arg3[%c0_23, %c0_24] : memref<1x4xf32, #tpu.memory_space<vmem>>, vector<1x4xf32>
    %65 = vector.broadcast %64 : vector<1x4xf32> to vector<16x4xf32>
    %66 = arith.addf %63, %65 : vector<16x4xf32>
    %cst_25 = arith.constant dense<0.000000e+00> : vector<4xf32>
    %67 = vector.multi_reduction <add>, %66, %cst_25 [0] : vector<16x4xf32> to vector<4xf32>
    %68 = vector.shape_cast %67 : vector<4xf32> to vector<1x4xf32>
    %c0_26 = arith.constant 0 : index
    %c0_27 = arith.constant 0 : index
    %69 = vector.load %arg18[%c0_26, %c0_27] : memref<4x4xf32, #tpu.memory_space<vmem>>, vector<4x4xf32>
    %cst_28 = arith.constant dense<0.000000e+00> : vector<1x4xf32>
    %70 = tpu.matmul %68, %69, %cst_28 {dimension_numbers = #tpu.dot_dimension_numbers<[1], [0], [0], [1], [0, 0, 1, 1], [], []>} : vector<1x4xf32>, vector<4x4xf32>, vector<1x4xf32> -> vector<1x4xf32>
    %cst_29 = arith.constant 6.250000e-02 : f32
    %71 = vector.broadcast %cst_29 : f32 to vector<1x4xf32>
    %72 = arith.mulf %70, %71 : vector<1x4xf32>
    %c0_30 = arith.constant 0 : index
    %c0_31 = arith.constant 0 : index
    %73 = vector.load %arg19[%c0_30, %c0_31] : memref<4x4xf32, #tpu.memory_space<vmem>>, vector<4x4xf32>
    %cst_32 = arith.constant dense<0.000000e+00> : vector<1x4xf32>
    %74 = tpu.matmul %72, %73, %cst_32 {dimension_numbers = #tpu.dot_dimension_numbers<[1], [0], [0], [1], [0, 0, 1, 1], [], []>} : vector<1x4xf32>, vector<4x4xf32>, vector<1x4xf32> -> vector<1x4xf32>
    %75 = vector.broadcast %74 : vector<1x4xf32> to vector<16x4xf32>
    %76 = arith.subf %66, %75 : vector<16x4xf32>
    %77 = arith.mulf %76, %76 : vector<16x4xf32>
    %cst_33 = arith.constant dense<0.000000e+00> : vector<4xf32>
    %78 = vector.multi_reduction <add>, %77, %cst_33 [0] : vector<16x4xf32> to vector<4xf32>
    %79 = vector.shape_cast %78 : vector<4xf32> to vector<1x4xf32>
    %c0_34 = arith.constant 0 : index
    %c0_35 = arith.constant 0 : index
    %80 = vector.load %arg18[%c0_34, %c0_35] : memref<4x4xf32, #tpu.memory_space<vmem>>, vector<4x4xf32>
    %cst_36 = arith.constant dense<0.000000e+00> : vector<1x4xf32>
    %81 = tpu.matmul %79, %80, %cst_36 {dimension_numbers = #tpu.dot_dimension_numbers<[1], [0], [0], [1], [0, 0, 1, 1], [], []>} : vector<1x4xf32>, vector<4x4xf32>, vector<1x4xf32> -> vector<1x4xf32>
    %cst_37 = arith.constant 6.250000e-02 : f32
    %82 = vector.broadcast %cst_37 : f32 to vector<1x4xf32>
    %83 = arith.mulf %81, %82 : vector<1x4xf32>
    %cst_38 = arith.constant 9.99999974E-6 : f32
    %84 = vector.broadcast %cst_38 : f32 to vector<1x4xf32>
    %85 = arith.addf %83, %84 : vector<1x4xf32>
    %86 = math.rsqrt %85 : vector<1x4xf32>
    %c0_39 = arith.constant 0 : index
    %c0_40 = arith.constant 0 : index
    %87 = vector.load %arg19[%c0_39, %c0_40] : memref<4x4xf32, #tpu.memory_space<vmem>>, vector<4x4xf32>
    %cst_41 = arith.constant dense<0.000000e+00> : vector<1x4xf32>
    %88 = tpu.matmul %86, %87, %cst_41 {dimension_numbers = #tpu.dot_dimension_numbers<[1], [0], [0], [1], [0, 0, 1, 1], [], []>} : vector<1x4xf32>, vector<4x4xf32>, vector<1x4xf32> -> vector<1x4xf32>
    %89 = vector.broadcast %88 : vector<1x4xf32> to vector<16x4xf32>
    %90 = arith.mulf %76, %89 : vector<16x4xf32>
    %c0_42 = arith.constant 0 : index
    %c0_43 = arith.constant 0 : index
    %91 = vector.load %arg4[%c0_42, %c0_43] : memref<1x4xf32, #tpu.memory_space<vmem>>, vector<1x4xf32>
    %92 = vector.broadcast %91 : vector<1x4xf32> to vector<16x4xf32>
    %93 = arith.mulf %90, %92 : vector<16x4xf32>
    %c0_44 = arith.constant 0 : index
    %c0_45 = arith.constant 0 : index
    %94 = vector.load %arg5[%c0_44, %c0_45] : memref<1x4xf32, #tpu.memory_space<vmem>>, vector<1x4xf32>
    %95 = vector.broadcast %94 : vector<1x4xf32> to vector<16x4xf32>
    %96 = arith.addf %93, %95 : vector<16x4xf32>
    %97 = arith.negf %96 : vector<16x4xf32>
    %98 = math.exp %97 : vector<16x4xf32>
    %cst_46 = arith.constant 1.000000e+00 : f32
    %99 = vector.broadcast %cst_46 : f32 to vector<16x4xf32>
    %100 = arith.addf %99, %98 : vector<16x4xf32>
    %101 = arith.divf %99, %100 : vector<16x4xf32>
    %102 = arith.mulf %96, %101 : vector<16x4xf32>
    %cst_47 = arith.constant 0.000000e+00 : f32
    %103 = vector.broadcast %cst_47 : f32 to vector<4x4xf32>
    %cst_48 = arith.constant 0.000000e+00 : f32
    %104 = vector.broadcast %cst_48 : f32 to vector<4x4xf32>
    %105 = tpu.concatenate %103, %102, %104 in 0 : vector<4x4xf32>, vector<16x4xf32>, vector<4x4xf32> -> vector<24x4xf32>
    %106 = vector.extract_strided_slice %105 {offsets = [0, 0], sizes = [16, 4], strides = [1, 1]} : vector<24x4xf32> to vector<16x4xf32>
    %c0_49 = arith.constant 0 : index
    %c0_50 = arith.constant 0 : index
    %107 = vector.load %arg6[%c0_49, %c0_50] : memref<36x4xf32, #tpu.memory_space<vmem>>, vector<4x4xf32>
    %108 = arith.truncf %106 : vector<16x4xf32> to vector<16x4xbf16>
    %109 = arith.truncf %107 : vector<4x4xf32> to vector<4x4xbf16>
    %cst_51 = arith.constant dense<0.000000e+00> : vector<16x4xf32>
    %110 = tpu.matmul %108, %109, %cst_51 {dimension_numbers = #tpu.dot_dimension_numbers<[1], [0], [0], [1], [0, 0, 1, 1], [], []>} : vector<16x4xbf16>, vector<4x4xbf16>, vector<16x4xf32> -> vector<16x4xf32>
    %111 = vector.extract_strided_slice %105 {offsets = [1, 0], sizes = [16, 4], strides = [1, 1]} : vector<24x4xf32> to vector<16x4xf32>
    %c4_52 = arith.constant 4 : index
    %c0_53 = arith.constant 0 : index
    %112 = vector.load %arg6[%c4_52, %c0_53] : memref<36x4xf32, #tpu.memory_space<vmem>>, vector<4x4xf32>
    %113 = arith.truncf %111 : vector<16x4xf32> to vector<16x4xbf16>
    %114 = arith.truncf %112 : vector<4x4xf32> to vector<4x4xbf16>
    %cst_54 = arith.constant dense<0.000000e+00> : vector<16x4xf32>
    %115 = tpu.matmul %113, %114, %cst_54 {dimension_numbers = #tpu.dot_dimension_numbers<[1], [0], [0], [1], [0, 0, 1, 1], [], []>} : vector<16x4xbf16>, vector<4x4xbf16>, vector<16x4xf32> -> vector<16x4xf32>
    %116 = arith.addf %110, %115 : vector<16x4xf32>
    %117 = vector.extract_strided_slice %105 {offsets = [2, 0], sizes = [16, 4], strides = [1, 1]} : vector<24x4xf32> to vector<16x4xf32>
    %c8_55 = arith.constant 8 : index
    %c0_56 = arith.constant 0 : index
    %118 = vector.load %arg6[%c8_55, %c0_56] : memref<36x4xf32, #tpu.memory_space<vmem>>, vector<4x4xf32>
    %119 = arith.truncf %117 : vector<16x4xf32> to vector<16x4xbf16>
    %120 = arith.truncf %118 : vector<4x4xf32> to vector<4x4xbf16>
    %cst_57 = arith.constant dense<0.000000e+00> : vector<16x4xf32>
    %121 = tpu.matmul %119, %120, %cst_57 {dimension_numbers = #tpu.dot_dimension_numbers<[1], [0], [0], [1], [0, 0, 1, 1], [], []>} : vector<16x4xbf16>, vector<4x4xbf16>, vector<16x4xf32> -> vector<16x4xf32>
    %122 = arith.addf %116, %121 : vector<16x4xf32>
    %123 = vector.extract_strided_slice %105 {offsets = [3, 0], sizes = [16, 4], strides = [1, 1]} : vector<24x4xf32> to vector<16x4xf32>
    %c12_58 = arith.constant 12 : index
    %c0_59 = arith.constant 0 : index
    %124 = vector.load %arg6[%c12_58, %c0_59] : memref<36x4xf32, #tpu.memory_space<vmem>>, vector<4x4xf32>
    %125 = arith.truncf %123 : vector<16x4xf32> to vector<16x4xbf16>
    %126 = arith.truncf %124 : vector<4x4xf32> to vector<4x4xbf16>
    %cst_60 = arith.constant dense<0.000000e+00> : vector<16x4xf32>
    %127 = tpu.matmul %125, %126, %cst_60 {dimension_numbers = #tpu.dot_dimension_numbers<[1], [0], [0], [1], [0, 0, 1, 1], [], []>} : vector<16x4xbf16>, vector<4x4xbf16>, vector<16x4xf32> -> vector<16x4xf32>
    %128 = arith.addf %122, %127 : vector<16x4xf32>
    %129 = vector.extract_strided_slice %105 {offsets = [4, 0], sizes = [16, 4], strides = [1, 1]} : vector<24x4xf32> to vector<16x4xf32>
    %c16_61 = arith.constant 16 : index
    %c0_62 = arith.constant 0 : index
    %130 = vector.load %arg6[%c16_61, %c0_62] : memref<36x4xf32, #tpu.memory_space<vmem>>, vector<4x4xf32>
    %131 = arith.truncf %129 : vector<16x4xf32> to vector<16x4xbf16>
    %132 = arith.truncf %130 : vector<4x4xf32> to vector<4x4xbf16>
    %cst_63 = arith.constant dense<0.000000e+00> : vector<16x4xf32>
    %133 = tpu.matmul %131, %132, %cst_63 {dimension_numbers = #tpu.dot_dimension_numbers<[1], [0], [0], [1], [0, 0, 1, 1], [], []>} : vector<16x4xbf16>, vector<4x4xbf16>, vector<16x4xf32> -> vector<16x4xf32>
    %134 = arith.addf %128, %133 : vector<16x4xf32>
    %135 = vector.extract_strided_slice %105 {offsets = [5, 0], sizes = [16, 4], strides = [1, 1]} : vector<24x4xf32> to vector<16x4xf32>
    %c20_64 = arith.constant 20 : index
    %c0_65 = arith.constant 0 : index
    %136 = vector.load %arg6[%c20_64, %c0_65] : memref<36x4xf32, #tpu.memory_space<vmem>>, vector<4x4xf32>
    %137 = arith.truncf %135 : vector<16x4xf32> to vector<16x4xbf16>
    %138 = arith.truncf %136 : vector<4x4xf32> to vector<4x4xbf16>
    %cst_66 = arith.constant dense<0.000000e+00> : vector<16x4xf32>
    %139 = tpu.matmul %137, %138, %cst_66 {dimension_numbers = #tpu.dot_dimension_numbers<[1], [0], [0], [1], [0, 0, 1, 1], [], []>} : vector<16x4xbf16>, vector<4x4xbf16>, vector<16x4xf32> -> vector<16x4xf32>
    %140 = arith.addf %134, %139 : vector<16x4xf32>
    %141 = vector.extract_strided_slice %105 {offsets = [6, 0], sizes = [16, 4], strides = [1, 1]} : vector<24x4xf32> to vector<16x4xf32>
    %c24_67 = arith.constant 24 : index
    %c0_68 = arith.constant 0 : index
    %142 = vector.load %arg6[%c24_67, %c0_68] : memref<36x4xf32, #tpu.memory_space<vmem>>, vector<4x4xf32>
    %143 = arith.truncf %141 : vector<16x4xf32> to vector<16x4xbf16>
    %144 = arith.truncf %142 : vector<4x4xf32> to vector<4x4xbf16>
    %cst_69 = arith.constant dense<0.000000e+00> : vector<16x4xf32>
    %145 = tpu.matmul %143, %144, %cst_69 {dimension_numbers = #tpu.dot_dimension_numbers<[1], [0], [0], [1], [0, 0, 1, 1], [], []>} : vector<16x4xbf16>, vector<4x4xbf16>, vector<16x4xf32> -> vector<16x4xf32>
    %146 = arith.addf %140, %145 : vector<16x4xf32>
    %147 = vector.extract_strided_slice %105 {offsets = [7, 0], sizes = [16, 4], strides = [1, 1]} : vector<24x4xf32> to vector<16x4xf32>
    %c28_70 = arith.constant 28 : index
    %c0_71 = arith.constant 0 : index
    %148 = vector.load %arg6[%c28_70, %c0_71] : memref<36x4xf32, #tpu.memory_space<vmem>>, vector<4x4xf32>
    %149 = arith.truncf %147 : vector<16x4xf32> to vector<16x4xbf16>
    %150 = arith.truncf %148 : vector<4x4xf32> to vector<4x4xbf16>
    %cst_72 = arith.constant dense<0.000000e+00> : vector<16x4xf32>
    %151 = tpu.matmul %149, %150, %cst_72 {dimension_numbers = #tpu.dot_dimension_numbers<[1], [0], [0], [1], [0, 0, 1, 1], [], []>} : vector<16x4xbf16>, vector<4x4xbf16>, vector<16x4xf32> -> vector<16x4xf32>
    %152 = arith.addf %146, %151 : vector<16x4xf32>
    %153 = vector.extract_strided_slice %105 {offsets = [8, 0], sizes = [16, 4], strides = [1, 1]} : vector<24x4xf32> to vector<16x4xf32>
    %c32_73 = arith.constant 32 : index
    %c0_74 = arith.constant 0 : index
    %154 = vector.load %arg6[%c32_73, %c0_74] : memref<36x4xf32, #tpu.memory_space<vmem>>, vector<4x4xf32>
    %155 = arith.truncf %153 : vector<16x4xf32> to vector<16x4xbf16>
    %156 = arith.truncf %154 : vector<4x4xf32> to vector<4x4xbf16>
    %cst_75 = arith.constant dense<0.000000e+00> : vector<16x4xf32>
    %157 = tpu.matmul %155, %156, %cst_75 {dimension_numbers = #tpu.dot_dimension_numbers<[1], [0], [0], [1], [0, 0, 1, 1], [], []>} : vector<16x4xbf16>, vector<4x4xbf16>, vector<16x4xf32> -> vector<16x4xf32>
    %158 = arith.addf %152, %157 : vector<16x4xf32>
    %c0_76 = arith.constant 0 : index
    %c0_77 = arith.constant 0 : index
    %159 = vector.load %arg7[%c0_76, %c0_77] : memref<1x4xf32, #tpu.memory_space<vmem>>, vector<1x4xf32>
    %160 = vector.broadcast %159 : vector<1x4xf32> to vector<16x4xf32>
    %161 = arith.addf %158, %160 : vector<16x4xf32>
    %cst_78 = arith.constant dense<0.000000e+00> : vector<4xf32>
    %162 = vector.multi_reduction <add>, %161, %cst_78 [0] : vector<16x4xf32> to vector<4xf32>
    %163 = vector.shape_cast %162 : vector<4xf32> to vector<1x4xf32>
    %c0_79 = arith.constant 0 : index
    %c0_80 = arith.constant 0 : index
    %164 = vector.load %arg18[%c0_79, %c0_80] : memref<4x4xf32, #tpu.memory_space<vmem>>, vector<4x4xf32>
    %cst_81 = arith.constant dense<0.000000e+00> : vector<1x4xf32>
    %165 = tpu.matmul %163, %164, %cst_81 {dimension_numbers = #tpu.dot_dimension_numbers<[1], [0], [0], [1], [0, 0, 1, 1], [], []>} : vector<1x4xf32>, vector<4x4xf32>, vector<1x4xf32> -> vector<1x4xf32>
    %cst_82 = arith.constant 6.250000e-02 : f32
    %166 = vector.broadcast %cst_82 : f32 to vector<1x4xf32>
    %167 = arith.mulf %165, %166 : vector<1x4xf32>
    %c0_83 = arith.constant 0 : index
    %c0_84 = arith.constant 0 : index
    %168 = vector.load %arg19[%c0_83, %c0_84] : memref<4x4xf32, #tpu.memory_space<vmem>>, vector<4x4xf32>
    %cst_85 = arith.constant dense<0.000000e+00> : vector<1x4xf32>
    %169 = tpu.matmul %167, %168, %cst_85 {dimension_numbers = #tpu.dot_dimension_numbers<[1], [0], [0], [1], [0, 0, 1, 1], [], []>} : vector<1x4xf32>, vector<4x4xf32>, vector<1x4xf32> -> vector<1x4xf32>
    %170 = vector.broadcast %169 : vector<1x4xf32> to vector<16x4xf32>
    %171 = arith.subf %161, %170 : vector<16x4xf32>
    %172 = arith.mulf %171, %171 : vector<16x4xf32>
    %cst_86 = arith.constant dense<0.000000e+00> : vector<4xf32>
    %173 = vector.multi_reduction <add>, %172, %cst_86 [0] : vector<16x4xf32> to vector<4xf32>
    %174 = vector.shape_cast %173 : vector<4xf32> to vector<1x4xf32>
    %c0_87 = arith.constant 0 : index
    %c0_88 = arith.constant 0 : index
    %175 = vector.load %arg18[%c0_87, %c0_88] : memref<4x4xf32, #tpu.memory_space<vmem>>, vector<4x4xf32>
    %cst_89 = arith.constant dense<0.000000e+00> : vector<1x4xf32>
    %176 = tpu.matmul %174, %175, %cst_89 {dimension_numbers = #tpu.dot_dimension_numbers<[1], [0], [0], [1], [0, 0, 1, 1], [], []>} : vector<1x4xf32>, vector<4x4xf32>, vector<1x4xf32> -> vector<1x4xf32>
    %cst_90 = arith.constant 6.250000e-02 : f32
    %177 = vector.broadcast %cst_90 : f32 to vector<1x4xf32>
    %178 = arith.mulf %176, %177 : vector<1x4xf32>
    %cst_91 = arith.constant 9.99999974E-6 : f32
    %179 = vector.broadcast %cst_91 : f32 to vector<1x4xf32>
    %180 = arith.addf %178, %179 : vector<1x4xf32>
    %181 = math.rsqrt %180 : vector<1x4xf32>
    %c0_92 = arith.constant 0 : index
    %c0_93 = arith.constant 0 : index
    %182 = vector.load %arg19[%c0_92, %c0_93] : memref<4x4xf32, #tpu.memory_space<vmem>>, vector<4x4xf32>
    %cst_94 = arith.constant dense<0.000000e+00> : vector<1x4xf32>
    %183 = tpu.matmul %181, %182, %cst_94 {dimension_numbers = #tpu.dot_dimension_numbers<[1], [0], [0], [1], [0, 0, 1, 1], [], []>} : vector<1x4xf32>, vector<4x4xf32>, vector<1x4xf32> -> vector<1x4xf32>
    %184 = vector.broadcast %183 : vector<1x4xf32> to vector<16x4xf32>
    %185 = arith.mulf %171, %184 : vector<16x4xf32>
    %c0_95 = arith.constant 0 : index
    %c0_96 = arith.constant 0 : index
    %186 = vector.load %arg8[%c0_95, %c0_96] : memref<1x4xf32, #tpu.memory_space<vmem>>, vector<1x4xf32>
    %187 = vector.broadcast %186 : vector<1x4xf32> to vector<16x4xf32>
    %188 = arith.mulf %185, %187 : vector<16x4xf32>
    %c0_97 = arith.constant 0 : index
    %c0_98 = arith.constant 0 : index
    %189 = vector.load %arg9[%c0_97, %c0_98] : memref<1x4xf32, #tpu.memory_space<vmem>>, vector<1x4xf32>
    %190 = vector.broadcast %189 : vector<1x4xf32> to vector<16x4xf32>
    %191 = arith.addf %188, %190 : vector<16x4xf32>
    %192 = arith.negf %191 : vector<16x4xf32>
    %193 = math.exp %192 : vector<16x4xf32>
    %cst_99 = arith.constant 1.000000e+00 : f32
    %194 = vector.broadcast %cst_99 : f32 to vector<16x4xf32>
    %195 = arith.addf %194, %193 : vector<16x4xf32>
    %196 = arith.divf %194, %195 : vector<16x4xf32>
    %197 = arith.mulf %191, %196 : vector<16x4xf32>
    %198 = arith.addf %197, %7 : vector<16x4xf32>
    %cst_100 = arith.constant 0.000000e+00 : f32
    %199 = vector.broadcast %cst_100 : f32 to vector<4x4xf32>
    %cst_101 = arith.constant 0.000000e+00 : f32
    %200 = vector.broadcast %cst_101 : f32 to vector<4x4xf32>
    %201 = tpu.concatenate %199, %198, %200 in 0 : vector<4x4xf32>, vector<16x4xf32>, vector<4x4xf32> -> vector<24x4xf32>
    %202 = vector.extract_strided_slice %201 {offsets = [0, 0], sizes = [16, 4], strides = [1, 1]} : vector<24x4xf32> to vector<16x4xf32>
    %c0_102 = arith.constant 0 : index
    %c0_103 = arith.constant 0 : index
    %203 = vector.load %arg10[%c0_102, %c0_103] : memref<36x4xf32, #tpu.memory_space<vmem>>, vector<4x4xf32>
    %204 = arith.truncf %202 : vector<16x4xf32> to vector<16x4xbf16>
    %205 = arith.truncf %203 : vector<4x4xf32> to vector<4x4xbf16>
    %cst_104 = arith.constant dense<0.000000e+00> : vector<16x4xf32>
    %206 = tpu.matmul %204, %205, %cst_104 {dimension_numbers = #tpu.dot_dimension_numbers<[1], [0], [0], [1], [0, 0, 1, 1], [], []>} : vector<16x4xbf16>, vector<4x4xbf16>, vector<16x4xf32> -> vector<16x4xf32>
    %207 = vector.extract_strided_slice %201 {offsets = [1, 0], sizes = [16, 4], strides = [1, 1]} : vector<24x4xf32> to vector<16x4xf32>
    %c4_105 = arith.constant 4 : index
    %c0_106 = arith.constant 0 : index
    %208 = vector.load %arg10[%c4_105, %c0_106] : memref<36x4xf32, #tpu.memory_space<vmem>>, vector<4x4xf32>
    %209 = arith.truncf %207 : vector<16x4xf32> to vector<16x4xbf16>
    %210 = arith.truncf %208 : vector<4x4xf32> to vector<4x4xbf16>
    %cst_107 = arith.constant dense<0.000000e+00> : vector<16x4xf32>
    %211 = tpu.matmul %209, %210, %cst_107 {dimension_numbers = #tpu.dot_dimension_numbers<[1], [0], [0], [1], [0, 0, 1, 1], [], []>} : vector<16x4xbf16>, vector<4x4xbf16>, vector<16x4xf32> -> vector<16x4xf32>
    %212 = arith.addf %206, %211 : vector<16x4xf32>
    %213 = vector.extract_strided_slice %201 {offsets = [2, 0], sizes = [16, 4], strides = [1, 1]} : vector<24x4xf32> to vector<16x4xf32>
    %c8_108 = arith.constant 8 : index
    %c0_109 = arith.constant 0 : index
    %214 = vector.load %arg10[%c8_108, %c0_109] : memref<36x4xf32, #tpu.memory_space<vmem>>, vector<4x4xf32>
    %215 = arith.truncf %213 : vector<16x4xf32> to vector<16x4xbf16>
    %216 = arith.truncf %214 : vector<4x4xf32> to vector<4x4xbf16>
    %cst_110 = arith.constant dense<0.000000e+00> : vector<16x4xf32>
    %217 = tpu.matmul %215, %216, %cst_110 {dimension_numbers = #tpu.dot_dimension_numbers<[1], [0], [0], [1], [0, 0, 1, 1], [], []>} : vector<16x4xbf16>, vector<4x4xbf16>, vector<16x4xf32> -> vector<16x4xf32>
    %218 = arith.addf %212, %217 : vector<16x4xf32>
    %219 = vector.extract_strided_slice %201 {offsets = [3, 0], sizes = [16, 4], strides = [1, 1]} : vector<24x4xf32> to vector<16x4xf32>
    %c12_111 = arith.constant 12 : index
    %c0_112 = arith.constant 0 : index
    %220 = vector.load %arg10[%c12_111, %c0_112] : memref<36x4xf32, #tpu.memory_space<vmem>>, vector<4x4xf32>
    %221 = arith.truncf %219 : vector<16x4xf32> to vector<16x4xbf16>
    %222 = arith.truncf %220 : vector<4x4xf32> to vector<4x4xbf16>
    %cst_113 = arith.constant dense<0.000000e+00> : vector<16x4xf32>
    %223 = tpu.matmul %221, %222, %cst_113 {dimension_numbers = #tpu.dot_dimension_numbers<[1], [0], [0], [1], [0, 0, 1, 1], [], []>} : vector<16x4xbf16>, vector<4x4xbf16>, vector<16x4xf32> -> vector<16x4xf32>
    %224 = arith.addf %218, %223 : vector<16x4xf32>
    %225 = vector.extract_strided_slice %201 {offsets = [4, 0], sizes = [16, 4], strides = [1, 1]} : vector<24x4xf32> to vector<16x4xf32>
    %c16_114 = arith.constant 16 : index
    %c0_115 = arith.constant 0 : index
    %226 = vector.load %arg10[%c16_114, %c0_115] : memref<36x4xf32, #tpu.memory_space<vmem>>, vector<4x4xf32>
    %227 = arith.truncf %225 : vector<16x4xf32> to vector<16x4xbf16>
    %228 = arith.truncf %226 : vector<4x4xf32> to vector<4x4xbf16>
    %cst_116 = arith.constant dense<0.000000e+00> : vector<16x4xf32>
    %229 = tpu.matmul %227, %228, %cst_116 {dimension_numbers = #tpu.dot_dimension_numbers<[1], [0], [0], [1], [0, 0, 1, 1], [], []>} : vector<16x4xbf16>, vector<4x4xbf16>, vector<16x4xf32> -> vector<16x4xf32>
    %230 = arith.addf %224, %229 : vector<16x4xf32>
    %231 = vector.extract_strided_slice %201 {offsets = [5, 0], sizes = [16, 4], strides = [1, 1]} : vector<24x4xf32> to vector<16x4xf32>
    %c20_117 = arith.constant 20 : index
    %c0_118 = arith.constant 0 : index
    %232 = vector.load %arg10[%c20_117, %c0_118] : memref<36x4xf32, #tpu.memory_space<vmem>>, vector<4x4xf32>
    %233 = arith.truncf %231 : vector<16x4xf32> to vector<16x4xbf16>
    %234 = arith.truncf %232 : vector<4x4xf32> to vector<4x4xbf16>
    %cst_119 = arith.constant dense<0.000000e+00> : vector<16x4xf32>
    %235 = tpu.matmul %233, %234, %cst_119 {dimension_numbers = #tpu.dot_dimension_numbers<[1], [0], [0], [1], [0, 0, 1, 1], [], []>} : vector<16x4xbf16>, vector<4x4xbf16>, vector<16x4xf32> -> vector<16x4xf32>
    %236 = arith.addf %230, %235 : vector<16x4xf32>
    %237 = vector.extract_strided_slice %201 {offsets = [6, 0], sizes = [16, 4], strides = [1, 1]} : vector<24x4xf32> to vector<16x4xf32>
    %c24_120 = arith.constant 24 : index
    %c0_121 = arith.constant 0 : index
    %238 = vector.load %arg10[%c24_120, %c0_121] : memref<36x4xf32, #tpu.memory_space<vmem>>, vector<4x4xf32>
    %239 = arith.truncf %237 : vector<16x4xf32> to vector<16x4xbf16>
    %240 = arith.truncf %238 : vector<4x4xf32> to vector<4x4xbf16>
    %cst_122 = arith.constant dense<0.000000e+00> : vector<16x4xf32>
    %241 = tpu.matmul %239, %240, %cst_122 {dimension_numbers = #tpu.dot_dimension_numbers<[1], [0], [0], [1], [0, 0, 1, 1], [], []>} : vector<16x4xbf16>, vector<4x4xbf16>, vector<16x4xf32> -> vector<16x4xf32>
    %242 = arith.addf %236, %241 : vector<16x4xf32>
    %243 = vector.extract_strided_slice %201 {offsets = [7, 0], sizes = [16, 4], strides = [1, 1]} : vector<24x4xf32> to vector<16x4xf32>
    %c28_123 = arith.constant 28 : index
    %c0_124 = arith.constant 0 : index
    %244 = vector.load %arg10[%c28_123, %c0_124] : memref<36x4xf32, #tpu.memory_space<vmem>>, vector<4x4xf32>
    %245 = arith.truncf %243 : vector<16x4xf32> to vector<16x4xbf16>
    %246 = arith.truncf %244 : vector<4x4xf32> to vector<4x4xbf16>
    %cst_125 = arith.constant dense<0.000000e+00> : vector<16x4xf32>
    %247 = tpu.matmul %245, %246, %cst_125 {dimension_numbers = #tpu.dot_dimension_numbers<[1], [0], [0], [1], [0, 0, 1, 1], [], []>} : vector<16x4xbf16>, vector<4x4xbf16>, vector<16x4xf32> -> vector<16x4xf32>
    %248 = arith.addf %242, %247 : vector<16x4xf32>
    %249 = vector.extract_strided_slice %201 {offsets = [8, 0], sizes = [16, 4], strides = [1, 1]} : vector<24x4xf32> to vector<16x4xf32>
    %c32_126 = arith.constant 32 : index
    %c0_127 = arith.constant 0 : index
    %250 = vector.load %arg10[%c32_126, %c0_127] : memref<36x4xf32, #tpu.memory_space<vmem>>, vector<4x4xf32>
    %251 = arith.truncf %249 : vector<16x4xf32> to vector<16x4xbf16>
    %252 = arith.truncf %250 : vector<4x4xf32> to vector<4x4xbf16>
    %cst_128 = arith.constant dense<0.000000e+00> : vector<16x4xf32>
    %253 = tpu.matmul %251, %252, %cst_128 {dimension_numbers = #tpu.dot_dimension_numbers<[1], [0], [0], [1], [0, 0, 1, 1], [], []>} : vector<16x4xbf16>, vector<4x4xbf16>, vector<16x4xf32> -> vector<16x4xf32>
    %254 = arith.addf %248, %253 : vector<16x4xf32>
    %c0_129 = arith.constant 0 : index
    %c0_130 = arith.constant 0 : index
    %255 = vector.load %arg11[%c0_129, %c0_130] : memref<1x4xf32, #tpu.memory_space<vmem>>, vector<1x4xf32>
    %256 = vector.broadcast %255 : vector<1x4xf32> to vector<16x4xf32>
    %257 = arith.addf %254, %256 : vector<16x4xf32>
    %cst_131 = arith.constant dense<0.000000e+00> : vector<4xf32>
    %258 = vector.multi_reduction <add>, %257, %cst_131 [0] : vector<16x4xf32> to vector<4xf32>
    %259 = vector.shape_cast %258 : vector<4xf32> to vector<1x4xf32>
    %c0_132 = arith.constant 0 : index
    %c0_133 = arith.constant 0 : index
    %260 = vector.load %arg18[%c0_132, %c0_133] : memref<4x4xf32, #tpu.memory_space<vmem>>, vector<4x4xf32>
    %cst_134 = arith.constant dense<0.000000e+00> : vector<1x4xf32>
    %261 = tpu.matmul %259, %260, %cst_134 {dimension_numbers = #tpu.dot_dimension_numbers<[1], [0], [0], [1], [0, 0, 1, 1], [], []>} : vector<1x4xf32>, vector<4x4xf32>, vector<1x4xf32> -> vector<1x4xf32>
    %cst_135 = arith.constant 6.250000e-02 : f32
    %262 = vector.broadcast %cst_135 : f32 to vector<1x4xf32>
    %263 = arith.mulf %261, %262 : vector<1x4xf32>
    %c0_136 = arith.constant 0 : index
    %c0_137 = arith.constant 0 : index
    %264 = vector.load %arg19[%c0_136, %c0_137] : memref<4x4xf32, #tpu.memory_space<vmem>>, vector<4x4xf32>
    %cst_138 = arith.constant dense<0.000000e+00> : vector<1x4xf32>
    %265 = tpu.matmul %263, %264, %cst_138 {dimension_numbers = #tpu.dot_dimension_numbers<[1], [0], [0], [1], [0, 0, 1, 1], [], []>} : vector<1x4xf32>, vector<4x4xf32>, vector<1x4xf32> -> vector<1x4xf32>
    %266 = vector.broadcast %265 : vector<1x4xf32> to vector<16x4xf32>
    %267 = arith.subf %257, %266 : vector<16x4xf32>
    %268 = arith.mulf %267, %267 : vector<16x4xf32>
    %cst_139 = arith.constant dense<0.000000e+00> : vector<4xf32>
    %269 = vector.multi_reduction <add>, %268, %cst_139 [0] : vector<16x4xf32> to vector<4xf32>
    %270 = vector.shape_cast %269 : vector<4xf32> to vector<1x4xf32>
    %c0_140 = arith.constant 0 : index
    %c0_141 = arith.constant 0 : index
    %271 = vector.load %arg18[%c0_140, %c0_141] : memref<4x4xf32, #tpu.memory_space<vmem>>, vector<4x4xf32>
    %cst_142 = arith.constant dense<0.000000e+00> : vector<1x4xf32>
    %272 = tpu.matmul %270, %271, %cst_142 {dimension_numbers = #tpu.dot_dimension_numbers<[1], [0], [0], [1], [0, 0, 1, 1], [], []>} : vector<1x4xf32>, vector<4x4xf32>, vector<1x4xf32> -> vector<1x4xf32>
    %cst_143 = arith.constant 6.250000e-02 : f32
    %273 = vector.broadcast %cst_143 : f32 to vector<1x4xf32>
    %274 = arith.mulf %272, %273 : vector<1x4xf32>
    %cst_144 = arith.constant 9.99999974E-6 : f32
    %275 = vector.broadcast %cst_144 : f32 to vector<1x4xf32>
    %276 = arith.addf %274, %275 : vector<1x4xf32>
    %277 = math.rsqrt %276 : vector<1x4xf32>
    %c0_145 = arith.constant 0 : index
    %c0_146 = arith.constant 0 : index
    %278 = vector.load %arg19[%c0_145, %c0_146] : memref<4x4xf32, #tpu.memory_space<vmem>>, vector<4x4xf32>
    %cst_147 = arith.constant dense<0.000000e+00> : vector<1x4xf32>
    %279 = tpu.matmul %277, %278, %cst_147 {dimension_numbers = #tpu.dot_dimension_numbers<[1], [0], [0], [1], [0, 0, 1, 1], [], []>} : vector<1x4xf32>, vector<4x4xf32>, vector<1x4xf32> -> vector<1x4xf32>
    %280 = vector.broadcast %279 : vector<1x4xf32> to vector<16x4xf32>
    %281 = arith.mulf %267, %280 : vector<16x4xf32>
    %c0_148 = arith.constant 0 : index
    %c0_149 = arith.constant 0 : index
    %282 = vector.load %arg12[%c0_148, %c0_149] : memref<1x4xf32, #tpu.memory_space<vmem>>, vector<1x4xf32>
    %283 = vector.broadcast %282 : vector<1x4xf32> to vector<16x4xf32>
    %284 = arith.mulf %281, %283 : vector<16x4xf32>
    %c0_150 = arith.constant 0 : index
    %c0_151 = arith.constant 0 : index
    %285 = vector.load %arg13[%c0_150, %c0_151] : memref<1x4xf32, #tpu.memory_space<vmem>>, vector<1x4xf32>
    %286 = vector.broadcast %285 : vector<1x4xf32> to vector<16x4xf32>
    %287 = arith.addf %284, %286 : vector<16x4xf32>
    %288 = arith.negf %287 : vector<16x4xf32>
    %289 = math.exp %288 : vector<16x4xf32>
    %cst_152 = arith.constant 1.000000e+00 : f32
    %290 = vector.broadcast %cst_152 : f32 to vector<16x4xf32>
    %291 = arith.addf %290, %289 : vector<16x4xf32>
    %292 = arith.divf %290, %291 : vector<16x4xf32>
    %293 = arith.mulf %287, %292 : vector<16x4xf32>
    %cst_153 = arith.constant 0.000000e+00 : f32
    %294 = vector.broadcast %cst_153 : f32 to vector<4x4xf32>
    %cst_154 = arith.constant 0.000000e+00 : f32
    %295 = vector.broadcast %cst_154 : f32 to vector<4x4xf32>
    %296 = tpu.concatenate %294, %293, %295 in 0 : vector<4x4xf32>, vector<16x4xf32>, vector<4x4xf32> -> vector<24x4xf32>
    %297 = vector.extract_strided_slice %296 {offsets = [0, 0], sizes = [16, 4], strides = [1, 1]} : vector<24x4xf32> to vector<16x4xf32>
    %c0_155 = arith.constant 0 : index
    %c0_156 = arith.constant 0 : index
    %298 = vector.load %arg14[%c0_155, %c0_156] : memref<36x4xf32, #tpu.memory_space<vmem>>, vector<4x4xf32>
    %299 = arith.truncf %297 : vector<16x4xf32> to vector<16x4xbf16>
    %300 = arith.truncf %298 : vector<4x4xf32> to vector<4x4xbf16>
    %cst_157 = arith.constant dense<0.000000e+00> : vector<16x4xf32>
    %301 = tpu.matmul %299, %300, %cst_157 {dimension_numbers = #tpu.dot_dimension_numbers<[1], [0], [0], [1], [0, 0, 1, 1], [], []>} : vector<16x4xbf16>, vector<4x4xbf16>, vector<16x4xf32> -> vector<16x4xf32>
    %302 = vector.extract_strided_slice %296 {offsets = [1, 0], sizes = [16, 4], strides = [1, 1]} : vector<24x4xf32> to vector<16x4xf32>
    %c4_158 = arith.constant 4 : index
    %c0_159 = arith.constant 0 : index
    %303 = vector.load %arg14[%c4_158, %c0_159] : memref<36x4xf32, #tpu.memory_space<vmem>>, vector<4x4xf32>
    %304 = arith.truncf %302 : vector<16x4xf32> to vector<16x4xbf16>
    %305 = arith.truncf %303 : vector<4x4xf32> to vector<4x4xbf16>
    %cst_160 = arith.constant dense<0.000000e+00> : vector<16x4xf32>
    %306 = tpu.matmul %304, %305, %cst_160 {dimension_numbers = #tpu.dot_dimension_numbers<[1], [0], [0], [1], [0, 0, 1, 1], [], []>} : vector<16x4xbf16>, vector<4x4xbf16>, vector<16x4xf32> -> vector<16x4xf32>
    %307 = arith.addf %301, %306 : vector<16x4xf32>
    %308 = vector.extract_strided_slice %296 {offsets = [2, 0], sizes = [16, 4], strides = [1, 1]} : vector<24x4xf32> to vector<16x4xf32>
    %c8_161 = arith.constant 8 : index
    %c0_162 = arith.constant 0 : index
    %309 = vector.load %arg14[%c8_161, %c0_162] : memref<36x4xf32, #tpu.memory_space<vmem>>, vector<4x4xf32>
    %310 = arith.truncf %308 : vector<16x4xf32> to vector<16x4xbf16>
    %311 = arith.truncf %309 : vector<4x4xf32> to vector<4x4xbf16>
    %cst_163 = arith.constant dense<0.000000e+00> : vector<16x4xf32>
    %312 = tpu.matmul %310, %311, %cst_163 {dimension_numbers = #tpu.dot_dimension_numbers<[1], [0], [0], [1], [0, 0, 1, 1], [], []>} : vector<16x4xbf16>, vector<4x4xbf16>, vector<16x4xf32> -> vector<16x4xf32>
    %313 = arith.addf %307, %312 : vector<16x4xf32>
    %314 = vector.extract_strided_slice %296 {offsets = [3, 0], sizes = [16, 4], strides = [1, 1]} : vector<24x4xf32> to vector<16x4xf32>
    %c12_164 = arith.constant 12 : index
    %c0_165 = arith.constant 0 : index
    %315 = vector.load %arg14[%c12_164, %c0_165] : memref<36x4xf32, #tpu.memory_space<vmem>>, vector<4x4xf32>
    %316 = arith.truncf %314 : vector<16x4xf32> to vector<16x4xbf16>
    %317 = arith.truncf %315 : vector<4x4xf32> to vector<4x4xbf16>
    %cst_166 = arith.constant dense<0.000000e+00> : vector<16x4xf32>
    %318 = tpu.matmul %316, %317, %cst_166 {dimension_numbers = #tpu.dot_dimension_numbers<[1], [0], [0], [1], [0, 0, 1, 1], [], []>} : vector<16x4xbf16>, vector<4x4xbf16>, vector<16x4xf32> -> vector<16x4xf32>
    %319 = arith.addf %313, %318 : vector<16x4xf32>
    %320 = vector.extract_strided_slice %296 {offsets = [4, 0], sizes = [16, 4], strides = [1, 1]} : vector<24x4xf32> to vector<16x4xf32>
    %c16_167 = arith.constant 16 : index
    %c0_168 = arith.constant 0 : index
    %321 = vector.load %arg14[%c16_167, %c0_168] : memref<36x4xf32, #tpu.memory_space<vmem>>, vector<4x4xf32>
    %322 = arith.truncf %320 : vector<16x4xf32> to vector<16x4xbf16>
    %323 = arith.truncf %321 : vector<4x4xf32> to vector<4x4xbf16>
    %cst_169 = arith.constant dense<0.000000e+00> : vector<16x4xf32>
    %324 = tpu.matmul %322, %323, %cst_169 {dimension_numbers = #tpu.dot_dimension_numbers<[1], [0], [0], [1], [0, 0, 1, 1], [], []>} : vector<16x4xbf16>, vector<4x4xbf16>, vector<16x4xf32> -> vector<16x4xf32>
    %325 = arith.addf %319, %324 : vector<16x4xf32>
    %326 = vector.extract_strided_slice %296 {offsets = [5, 0], sizes = [16, 4], strides = [1, 1]} : vector<24x4xf32> to vector<16x4xf32>
    %c20_170 = arith.constant 20 : index
    %c0_171 = arith.constant 0 : index
    %327 = vector.load %arg14[%c20_170, %c0_171] : memref<36x4xf32, #tpu.memory_space<vmem>>, vector<4x4xf32>
    %328 = arith.truncf %326 : vector<16x4xf32> to vector<16x4xbf16>
    %329 = arith.truncf %327 : vector<4x4xf32> to vector<4x4xbf16>
    %cst_172 = arith.constant dense<0.000000e+00> : vector<16x4xf32>
    %330 = tpu.matmul %328, %329, %cst_172 {dimension_numbers = #tpu.dot_dimension_numbers<[1], [0], [0], [1], [0, 0, 1, 1], [], []>} : vector<16x4xbf16>, vector<4x4xbf16>, vector<16x4xf32> -> vector<16x4xf32>
    %331 = arith.addf %325, %330 : vector<16x4xf32>
    %332 = vector.extract_strided_slice %296 {offsets = [6, 0], sizes = [16, 4], strides = [1, 1]} : vector<24x4xf32> to vector<16x4xf32>
    %c24_173 = arith.constant 24 : index
    %c0_174 = arith.constant 0 : index
    %333 = vector.load %arg14[%c24_173, %c0_174] : memref<36x4xf32, #tpu.memory_space<vmem>>, vector<4x4xf32>
    %334 = arith.truncf %332 : vector<16x4xf32> to vector<16x4xbf16>
    %335 = arith.truncf %333 : vector<4x4xf32> to vector<4x4xbf16>
    %cst_175 = arith.constant dense<0.000000e+00> : vector<16x4xf32>
    %336 = tpu.matmul %334, %335, %cst_175 {dimension_numbers = #tpu.dot_dimension_numbers<[1], [0], [0], [1], [0, 0, 1, 1], [], []>} : vector<16x4xbf16>, vector<4x4xbf16>, vector<16x4xf32> -> vector<16x4xf32>
    %337 = arith.addf %331, %336 : vector<16x4xf32>
    %338 = vector.extract_strided_slice %296 {offsets = [7, 0], sizes = [16, 4], strides = [1, 1]} : vector<24x4xf32> to vector<16x4xf32>
    %c28_176 = arith.constant 28 : index
    %c0_177 = arith.constant 0 : index
    %339 = vector.load %arg14[%c28_176, %c0_177] : memref<36x4xf32, #tpu.memory_space<vmem>>, vector<4x4xf32>
    %340 = arith.truncf %338 : vector<16x4xf32> to vector<16x4xbf16>
    %341 = arith.truncf %339 : vector<4x4xf32> to vector<4x4xbf16>
    %cst_178 = arith.constant dense<0.000000e+00> : vector<16x4xf32>
    %342 = tpu.matmul %340, %341, %cst_178 {dimension_numbers = #tpu.dot_dimension_numbers<[1], [0], [0], [1], [0, 0, 1, 1], [], []>} : vector<16x4xbf16>, vector<4x4xbf16>, vector<16x4xf32> -> vector<16x4xf32>
    %343 = arith.addf %337, %342 : vector<16x4xf32>
    %344 = vector.extract_strided_slice %296 {offsets = [8, 0], sizes = [16, 4], strides = [1, 1]} : vector<24x4xf32> to vector<16x4xf32>
    %c32_179 = arith.constant 32 : index
    %c0_180 = arith.constant 0 : index
    %345 = vector.load %arg14[%c32_179, %c0_180] : memref<36x4xf32, #tpu.memory_space<vmem>>, vector<4x4xf32>
    %346 = arith.truncf %344 : vector<16x4xf32> to vector<16x4xbf16>
    %347 = arith.truncf %345 : vector<4x4xf32> to vector<4x4xbf16>
    %cst_181 = arith.constant dense<0.000000e+00> : vector<16x4xf32>
    %348 = tpu.matmul %346, %347, %cst_181 {dimension_numbers = #tpu.dot_dimension_numbers<[1], [0], [0], [1], [0, 0, 1, 1], [], []>} : vector<16x4xbf16>, vector<4x4xbf16>, vector<16x4xf32> -> vector<16x4xf32>
    %349 = arith.addf %343, %348 : vector<16x4xf32>
    %c0_182 = arith.constant 0 : index
    %c0_183 = arith.constant 0 : index
    %350 = vector.load %arg15[%c0_182, %c0_183] : memref<1x4xf32, #tpu.memory_space<vmem>>, vector<1x4xf32>
    %351 = vector.broadcast %350 : vector<1x4xf32> to vector<16x4xf32>
    %352 = arith.addf %349, %351 : vector<16x4xf32>
    %cst_184 = arith.constant dense<0.000000e+00> : vector<4xf32>
    %353 = vector.multi_reduction <add>, %352, %cst_184 [0] : vector<16x4xf32> to vector<4xf32>
    %354 = vector.shape_cast %353 : vector<4xf32> to vector<1x4xf32>
    %c0_185 = arith.constant 0 : index
    %c0_186 = arith.constant 0 : index
    %355 = vector.load %arg18[%c0_185, %c0_186] : memref<4x4xf32, #tpu.memory_space<vmem>>, vector<4x4xf32>
    %cst_187 = arith.constant dense<0.000000e+00> : vector<1x4xf32>
    %356 = tpu.matmul %354, %355, %cst_187 {dimension_numbers = #tpu.dot_dimension_numbers<[1], [0], [0], [1], [0, 0, 1, 1], [], []>} : vector<1x4xf32>, vector<4x4xf32>, vector<1x4xf32> -> vector<1x4xf32>
    %cst_188 = arith.constant 6.250000e-02 : f32
    %357 = vector.broadcast %cst_188 : f32 to vector<1x4xf32>
    %358 = arith.mulf %356, %357 : vector<1x4xf32>
    %c0_189 = arith.constant 0 : index
    %c0_190 = arith.constant 0 : index
    %359 = vector.load %arg19[%c0_189, %c0_190] : memref<4x4xf32, #tpu.memory_space<vmem>>, vector<4x4xf32>
    %cst_191 = arith.constant dense<0.000000e+00> : vector<1x4xf32>
    %360 = tpu.matmul %358, %359, %cst_191 {dimension_numbers = #tpu.dot_dimension_numbers<[1], [0], [0], [1], [0, 0, 1, 1], [], []>} : vector<1x4xf32>, vector<4x4xf32>, vector<1x4xf32> -> vector<1x4xf32>
    %361 = vector.broadcast %360 : vector<1x4xf32> to vector<16x4xf32>
    %362 = arith.subf %352, %361 : vector<16x4xf32>
    %363 = arith.mulf %362, %362 : vector<16x4xf32>
    %cst_192 = arith.constant dense<0.000000e+00> : vector<4xf32>
    %364 = vector.multi_reduction <add>, %363, %cst_192 [0] : vector<16x4xf32> to vector<4xf32>
    %365 = vector.shape_cast %364 : vector<4xf32> to vector<1x4xf32>
    %c0_193 = arith.constant 0 : index
    %c0_194 = arith.constant 0 : index
    %366 = vector.load %arg18[%c0_193, %c0_194] : memref<4x4xf32, #tpu.memory_space<vmem>>, vector<4x4xf32>
    %cst_195 = arith.constant dense<0.000000e+00> : vector<1x4xf32>
    %367 = tpu.matmul %365, %366, %cst_195 {dimension_numbers = #tpu.dot_dimension_numbers<[1], [0], [0], [1], [0, 0, 1, 1], [], []>} : vector<1x4xf32>, vector<4x4xf32>, vector<1x4xf32> -> vector<1x4xf32>
    %cst_196 = arith.constant 6.250000e-02 : f32
    %368 = vector.broadcast %cst_196 : f32 to vector<1x4xf32>
    %369 = arith.mulf %367, %368 : vector<1x4xf32>
    %cst_197 = arith.constant 9.99999974E-6 : f32
    %370 = vector.broadcast %cst_197 : f32 to vector<1x4xf32>
    %371 = arith.addf %369, %370 : vector<1x4xf32>
    %372 = math.rsqrt %371 : vector<1x4xf32>
    %c0_198 = arith.constant 0 : index
    %c0_199 = arith.constant 0 : index
    %373 = vector.load %arg19[%c0_198, %c0_199] : memref<4x4xf32, #tpu.memory_space<vmem>>, vector<4x4xf32>
    %cst_200 = arith.constant dense<0.000000e+00> : vector<1x4xf32>
    %374 = tpu.matmul %372, %373, %cst_200 {dimension_numbers = #tpu.dot_dimension_numbers<[1], [0], [0], [1], [0, 0, 1, 1], [], []>} : vector<1x4xf32>, vector<4x4xf32>, vector<1x4xf32> -> vector<1x4xf32>
    %375 = vector.broadcast %374 : vector<1x4xf32> to vector<16x4xf32>
    %376 = arith.mulf %362, %375 : vector<16x4xf32>
    %c0_201 = arith.constant 0 : index
    %c0_202 = arith.constant 0 : index
    %377 = vector.load %arg16[%c0_201, %c0_202] : memref<1x4xf32, #tpu.memory_space<vmem>>, vector<1x4xf32>
    %378 = vector.broadcast %377 : vector<1x4xf32> to vector<16x4xf32>
    %379 = arith.mulf %376, %378 : vector<16x4xf32>
    %c0_203 = arith.constant 0 : index
    %c0_204 = arith.constant 0 : index
    %380 = vector.load %arg17[%c0_203, %c0_204] : memref<1x4xf32, #tpu.memory_space<vmem>>, vector<1x4xf32>
    %381 = vector.broadcast %380 : vector<1x4xf32> to vector<16x4xf32>
    %382 = arith.addf %379, %381 : vector<16x4xf32>
    %383 = arith.negf %382 : vector<16x4xf32>
    %384 = math.exp %383 : vector<16x4xf32>
    %cst_205 = arith.constant 1.000000e+00 : f32
    %385 = vector.broadcast %cst_205 : f32 to vector<16x4xf32>
    %386 = arith.addf %385, %384 : vector<16x4xf32>
    %387 = arith.divf %385, %386 : vector<16x4xf32>
    %388 = arith.mulf %382, %387 : vector<16x4xf32>
    %389 = arith.addf %388, %198 : vector<16x4xf32>
    %cst_206 = arith.constant dense<0.000000e+00> : vector<4xf32>
    %390 = vector.multi_reduction <add>, %389, %cst_206 [0] : vector<16x4xf32> to vector<4xf32>
    %391 = vector.shape_cast %390 : vector<4xf32> to vector<1x4xf32>
    %cst_207 = arith.constant dense<0.000000e+00> : vector<1xf32>
    %392 = vector.multi_reduction <add>, %391, %cst_207 [1] : vector<1x4xf32> to vector<1xf32>
    %393 = vector.shape_cast %392 : vector<1xf32> to vector<1x1xf32>
    %cst_208 = arith.constant 1.562500e-02 : f32
    %394 = vector.broadcast %cst_208 : f32 to vector<1x1xf32>
    %395 = arith.mulf %393, %394 : vector<1x1xf32>
    %396 = vector.broadcast %395 : vector<1x1xf32> to vector<16x4xf32>
    %397 = arith.subf %389, %396 : vector<16x4xf32>
    %398 = arith.mulf %397, %397 : vector<16x4xf32>
    %cst_209 = arith.constant dense<0.000000e+00> : vector<4xf32>
    %399 = vector.multi_reduction <add>, %398, %cst_209 [0] : vector<16x4xf32> to vector<4xf32>
    %400 = vector.shape_cast %399 : vector<4xf32> to vector<1x4xf32>
    %cst_210 = arith.constant dense<0.000000e+00> : vector<1xf32>
    %401 = vector.multi_reduction <add>, %400, %cst_210 [1] : vector<1x4xf32> to vector<1xf32>
    %402 = vector.shape_cast %401 : vector<1xf32> to vector<1x1xf32>
    %cst_211 = arith.constant 1.562500e-02 : f32
    %403 = vector.broadcast %cst_211 : f32 to vector<1x1xf32>
    %404 = arith.mulf %402, %403 : vector<1x1xf32>
    %cst_212 = arith.constant 9.99999974E-6 : f32
    %405 = vector.broadcast %cst_212 : f32 to vector<1x1xf32>
    %406 = arith.addf %404, %405 : vector<1x1xf32>
    %407 = math.rsqrt %406 : vector<1x1xf32>
    %408 = vector.broadcast %407 : vector<1x1xf32> to vector<16x4xf32>
    %409 = arith.mulf %397, %408 : vector<16x4xf32>
    %c0_213 = arith.constant 0 : index
    %c0_214 = arith.constant 0 : index
    %410 = vector.load %arg20[%c0_213, %c0_214] : memref<1x4xf32, #tpu.memory_space<vmem>>, vector<1x4xf32>
    %411 = vector.broadcast %410 : vector<1x4xf32> to vector<16x4xf32>
    %412 = arith.mulf %409, %411 : vector<16x4xf32>
    %c0_215 = arith.constant 0 : index
    %c0_216 = arith.constant 0 : index
    %413 = vector.load %arg21[%c0_215, %c0_216] : memref<1x4xf32, #tpu.memory_space<vmem>>, vector<1x4xf32>
    %414 = vector.broadcast %413 : vector<1x4xf32> to vector<16x4xf32>
    %415 = arith.addf %412, %414 : vector<16x4xf32>
    %416 = arith.truncf %415 : vector<16x4xf32> to vector<16x4xbf16>
    %c0_217 = arith.constant 0 : index
    %c0_218 = arith.constant 0 : index
    %417 = vector.load %arg22[%c0_217, %c0_218] : memref<4x48xf32, #tpu.memory_space<vmem>>, vector<4x48xf32>
    %418 = arith.truncf %417 : vector<4x48xf32> to vector<4x48xbf16>
    %cst_219 = arith.constant dense<0.000000e+00> : vector<16x48xf32>
    %419 = tpu.matmul %416, %418, %cst_219 {dimension_numbers = #tpu.dot_dimension_numbers<[1], [0], [0], [1], [0, 0, 1, 1], [], []>} : vector<16x4xbf16>, vector<4x48xbf16>, vector<16x48xf32> -> vector<16x48xf32>
    %cst_220 = arith.constant 0.000000e+00 : f32
    %420 = vector.broadcast %cst_220 : f32 to vector<16x4xf32>
    %421 = vector.extract_strided_slice %419 {offsets = [0, 0], sizes = [16, 8], strides = [1, 1]} : vector<16x48xf32> to vector<16x8xf32>
    %cst_221 = arith.constant 0.353553385 : f32
    %422 = vector.broadcast %cst_221 : f32 to vector<16x8xf32>
    %423 = arith.mulf %421, %422 : vector<16x8xf32>
    %424 = vector.extract_strided_slice %419 {offsets = [0, 16], sizes = [16, 8], strides = [1, 1]} : vector<16x48xf32> to vector<16x8xf32>
    %425 = vector.extract_strided_slice %419 {offsets = [0, 32], sizes = [16, 8], strides = [1, 1]} : vector<16x48xf32> to vector<16x8xf32>
    %426 = arith.truncf %423 : vector<16x8xf32> to vector<16x8xbf16>
    %427 = arith.truncf %424 : vector<16x8xf32> to vector<16x8xbf16>
    %cst_222 = arith.constant dense<0.000000e+00> : vector<16x16xf32>
    %428 = tpu.matmul %426, %427, %cst_222 {dimension_numbers = #tpu.dot_dimension_numbers<[1], [1], [0], [0], [0, 0, 1, 0], [], []>} : vector<16x8xbf16>, vector<16x8xbf16>, vector<16x16xf32> -> vector<16x16xf32>
    %cst_223 = arith.constant dense<0xFF800000> : vector<16xf32>
    %429 = vector.multi_reduction <maximumf>, %428, %cst_223 [1] : vector<16x16xf32> to vector<16xf32>
    %430 = vector.shape_cast %429 : vector<16xf32> to vector<16x1xf32>
    %431 = vector.broadcast %430 : vector<16x1xf32> to vector<16x16xf32>
    %432 = arith.subf %428, %431 : vector<16x16xf32>
    %433 = math.exp %432 : vector<16x16xf32>
    %cst_224 = arith.constant dense<0.000000e+00> : vector<16xf32>
    %434 = vector.multi_reduction <add>, %433, %cst_224 [1] : vector<16x16xf32> to vector<16xf32>
    %435 = vector.shape_cast %434 : vector<16xf32> to vector<16x1xf32>
    %436 = tpu.reciprocal %435 {approx = true} : vector<16x1xf32> -> vector<16x1xf32>
    %437 = vector.broadcast %436 : vector<16x1xf32> to vector<16x16xf32>
    %438 = arith.mulf %433, %437 : vector<16x16xf32>
    %439 = arith.truncf %438 : vector<16x16xf32> to vector<16x16xbf16>
    %440 = arith.truncf %425 : vector<16x8xf32> to vector<16x8xbf16>
    %cst_225 = arith.constant dense<0.000000e+00> : vector<16x8xf32>
    %441 = tpu.matmul %439, %440, %cst_225 {dimension_numbers = #tpu.dot_dimension_numbers<[1], [0], [0], [1], [0, 0, 1, 1], [], []>} : vector<16x16xbf16>, vector<16x8xbf16>, vector<16x8xf32> -> vector<16x8xf32>
    %c0_226 = arith.constant 0 : index
    %c0_227 = arith.constant 0 : index
    %442 = vector.load %arg23[%c0_226, %c0_227] : memref<16x4xf32, #tpu.memory_space<vmem>>, vector<8x4xf32>
    %443 = arith.truncf %441 : vector<16x8xf32> to vector<16x8xbf16>
    %444 = arith.truncf %442 : vector<8x4xf32> to vector<8x4xbf16>
    %cst_228 = arith.constant dense<0.000000e+00> : vector<16x4xf32>
    %445 = tpu.matmul %443, %444, %cst_228 {dimension_numbers = #tpu.dot_dimension_numbers<[1], [0], [0], [1], [0, 0, 1, 1], [], []>} : vector<16x8xbf16>, vector<8x4xbf16>, vector<16x4xf32> -> vector<16x4xf32>
    %446 = arith.addf %420, %445 : vector<16x4xf32>
    %447 = vector.extract_strided_slice %419 {offsets = [0, 8], sizes = [16, 8], strides = [1, 1]} : vector<16x48xf32> to vector<16x8xf32>
    %cst_229 = arith.constant 0.353553385 : f32
    %448 = vector.broadcast %cst_229 : f32 to vector<16x8xf32>
    %449 = arith.mulf %447, %448 : vector<16x8xf32>
    %450 = vector.extract_strided_slice %419 {offsets = [0, 24], sizes = [16, 8], strides = [1, 1]} : vector<16x48xf32> to vector<16x8xf32>
    %451 = vector.extract_strided_slice %419 {offsets = [0, 40], sizes = [16, 8], strides = [1, 1]} : vector<16x48xf32> to vector<16x8xf32>
    %452 = arith.truncf %449 : vector<16x8xf32> to vector<16x8xbf16>
    %453 = arith.truncf %450 : vector<16x8xf32> to vector<16x8xbf16>
    %cst_230 = arith.constant dense<0.000000e+00> : vector<16x16xf32>
    %454 = tpu.matmul %452, %453, %cst_230 {dimension_numbers = #tpu.dot_dimension_numbers<[1], [1], [0], [0], [0, 0, 1, 0], [], []>} : vector<16x8xbf16>, vector<16x8xbf16>, vector<16x16xf32> -> vector<16x16xf32>
    %cst_231 = arith.constant dense<0xFF800000> : vector<16xf32>
    %455 = vector.multi_reduction <maximumf>, %454, %cst_231 [1] : vector<16x16xf32> to vector<16xf32>
    %456 = vector.shape_cast %455 : vector<16xf32> to vector<16x1xf32>
    %457 = vector.broadcast %456 : vector<16x1xf32> to vector<16x16xf32>
    %458 = arith.subf %454, %457 : vector<16x16xf32>
    %459 = math.exp %458 : vector<16x16xf32>
    %cst_232 = arith.constant dense<0.000000e+00> : vector<16xf32>
    %460 = vector.multi_reduction <add>, %459, %cst_232 [1] : vector<16x16xf32> to vector<16xf32>
    %461 = vector.shape_cast %460 : vector<16xf32> to vector<16x1xf32>
    %462 = tpu.reciprocal %461 {approx = true} : vector<16x1xf32> -> vector<16x1xf32>
    %463 = vector.broadcast %462 : vector<16x1xf32> to vector<16x16xf32>
    %464 = arith.mulf %459, %463 : vector<16x16xf32>
    %465 = arith.truncf %464 : vector<16x16xf32> to vector<16x16xbf16>
    %466 = arith.truncf %451 : vector<16x8xf32> to vector<16x8xbf16>
    %cst_233 = arith.constant dense<0.000000e+00> : vector<16x8xf32>
    %467 = tpu.matmul %465, %466, %cst_233 {dimension_numbers = #tpu.dot_dimension_numbers<[1], [0], [0], [1], [0, 0, 1, 1], [], []>} : vector<16x16xbf16>, vector<16x8xbf16>, vector<16x8xf32> -> vector<16x8xf32>
    %c8_234 = arith.constant 8 : index
    %c0_235 = arith.constant 0 : index
    %468 = vector.load %arg23[%c8_234, %c0_235] : memref<16x4xf32, #tpu.memory_space<vmem>>, vector<8x4xf32>
    %469 = arith.truncf %467 : vector<16x8xf32> to vector<16x8xbf16>
    %470 = arith.truncf %468 : vector<8x4xf32> to vector<8x4xbf16>
    %cst_236 = arith.constant dense<0.000000e+00> : vector<16x4xf32>
    %471 = tpu.matmul %469, %470, %cst_236 {dimension_numbers = #tpu.dot_dimension_numbers<[1], [0], [0], [1], [0, 0, 1, 1], [], []>} : vector<16x8xbf16>, vector<8x4xbf16>, vector<16x4xf32> -> vector<16x4xf32>
    %472 = arith.addf %446, %471 : vector<16x4xf32>
    %473 = arith.addf %389, %472 : vector<16x4xf32>
    %c0_237 = arith.constant 0 : index
    %c0_238 = arith.constant 0 : index
    %474 = vector.load %arg24[%c0_237, %c0_238] : memref<1x4xf32, #tpu.memory_space<vmem>>, vector<1x4xf32>
    %475 = vector.broadcast %474 : vector<1x4xf32> to vector<16x4xf32>
    %476 = arith.addf %473, %475 : vector<16x4xf32>
    %cst_239 = arith.constant 0.000000e+00 : f32
    %477 = vector.broadcast %cst_239 : f32 to vector<1x4xf32>
    %cst_240 = arith.constant 0.000000e+00 : f32
    %478 = vector.broadcast %cst_240 : f32 to vector<1x4xf32>
    %479 = tpu.concatenate %477, %476, %478 in 0 : vector<1x4xf32>, vector<16x4xf32>, vector<1x4xf32> -> vector<18x4xf32>
    %480 = vector.extract_strided_slice %479 {offsets = [0, 0], sizes = [15, 4], strides = [1, 1]} : vector<18x4xf32> to vector<15x4xf32>
    %c0_241 = arith.constant 0 : index
    %c0_242 = arith.constant 0 : index
    %481 = vector.load %arg25[%c0_241, %c0_242] : memref<16x8xf32, #tpu.memory_space<vmem>>, vector<4x8xf32>
    %482 = arith.truncf %480 : vector<15x4xf32> to vector<15x4xbf16>
    %483 = arith.truncf %481 : vector<4x8xf32> to vector<4x8xbf16>
    %cst_243 = arith.constant dense<0.000000e+00> : vector<15x8xf32>
    %484 = tpu.matmul %482, %483, %cst_243 {dimension_numbers = #tpu.dot_dimension_numbers<[1], [0], [0], [1], [0, 0, 1, 1], [], []>} : vector<15x4xbf16>, vector<4x8xbf16>, vector<15x8xf32> -> vector<15x8xf32>
    %485 = vector.extract_strided_slice %479 {offsets = [1, 0], sizes = [15, 4], strides = [1, 1]} : vector<18x4xf32> to vector<15x4xf32>
    %c4_244 = arith.constant 4 : index
    %c0_245 = arith.constant 0 : index
    %486 = vector.load %arg25[%c4_244, %c0_245] : memref<16x8xf32, #tpu.memory_space<vmem>>, vector<4x8xf32>
    %487 = arith.truncf %485 : vector<15x4xf32> to vector<15x4xbf16>
    %488 = arith.truncf %486 : vector<4x8xf32> to vector<4x8xbf16>
    %cst_246 = arith.constant dense<0.000000e+00> : vector<15x8xf32>
    %489 = tpu.matmul %487, %488, %cst_246 {dimension_numbers = #tpu.dot_dimension_numbers<[1], [0], [0], [1], [0, 0, 1, 1], [], []>} : vector<15x4xbf16>, vector<4x8xbf16>, vector<15x8xf32> -> vector<15x8xf32>
    %490 = arith.addf %484, %489 : vector<15x8xf32>
    %491 = vector.extract_strided_slice %479 {offsets = [2, 0], sizes = [15, 4], strides = [1, 1]} : vector<18x4xf32> to vector<15x4xf32>
    %c8_247 = arith.constant 8 : index
    %c0_248 = arith.constant 0 : index
    %492 = vector.load %arg25[%c8_247, %c0_248] : memref<16x8xf32, #tpu.memory_space<vmem>>, vector<4x8xf32>
    %493 = arith.truncf %491 : vector<15x4xf32> to vector<15x4xbf16>
    %494 = arith.truncf %492 : vector<4x8xf32> to vector<4x8xbf16>
    %cst_249 = arith.constant dense<0.000000e+00> : vector<15x8xf32>
    %495 = tpu.matmul %493, %494, %cst_249 {dimension_numbers = #tpu.dot_dimension_numbers<[1], [0], [0], [1], [0, 0, 1, 1], [], []>} : vector<15x4xbf16>, vector<4x8xbf16>, vector<15x8xf32> -> vector<15x8xf32>
    %496 = arith.addf %490, %495 : vector<15x8xf32>
    %497 = vector.extract_strided_slice %479 {offsets = [3, 0], sizes = [15, 4], strides = [1, 1]} : vector<18x4xf32> to vector<15x4xf32>
    %c12_250 = arith.constant 12 : index
    %c0_251 = arith.constant 0 : index
    %498 = vector.load %arg25[%c12_250, %c0_251] : memref<16x8xf32, #tpu.memory_space<vmem>>, vector<4x8xf32>
    %499 = arith.truncf %497 : vector<15x4xf32> to vector<15x4xbf16>
    %500 = arith.truncf %498 : vector<4x8xf32> to vector<4x8xbf16>
    %cst_252 = arith.constant dense<0.000000e+00> : vector<15x8xf32>
    %501 = tpu.matmul %499, %500, %cst_252 {dimension_numbers = #tpu.dot_dimension_numbers<[1], [0], [0], [1], [0, 0, 1, 1], [], []>} : vector<15x4xbf16>, vector<4x8xbf16>, vector<15x8xf32> -> vector<15x8xf32>
    %502 = arith.addf %496, %501 : vector<15x8xf32>
    %503 = tpu.iota {dimensions = array<i32: 0>} : vector<8x15xi32>
    %504 = tpu.iota {dimensions = array<i32: 1>} : vector<8x15xi32>
    %c2_i32 = arith.constant 2 : i32
    %505 = vector.broadcast %c2_i32 : i32 to vector<8x15xi32>
    %506 = arith.muli %505, %503 : vector<8x15xi32>
    %507 = arith.cmpi eq, %504, %506 : vector<8x15xi32>
    %508 = arith.extui %507 : vector<8x15xi1> to vector<8x15xi32>
    %509 = arith.sitofp %508 : vector<8x15xi32> to vector<8x15xf32>
    %cst_253 = arith.constant dense<0.000000e+00> : vector<8x8xf32>
    %510 = tpu.matmul %509, %502, %cst_253 {dimension_numbers = #tpu.dot_dimension_numbers<[1], [0], [0], [1], [0, 0, 1, 1], [], []>} : vector<8x15xf32>, vector<15x8xf32>, vector<8x8xf32> -> vector<8x8xf32>
    %c0_254 = arith.constant 0 : index
    %c0_255 = arith.constant 0 : index
    %511 = vector.load %arg26[%c0_254, %c0_255] : memref<1x8xf32, #tpu.memory_space<vmem>>, vector<1x8xf32>
    %512 = vector.broadcast %511 : vector<1x8xf32> to vector<8x8xf32>
    %513 = arith.addf %510, %512 : vector<8x8xf32>
    %cst_256 = arith.constant 0.000000e+00 : f32
    %514 = vector.broadcast %cst_256 : f32 to vector<4x8xf32>
    %cst_257 = arith.constant 0.000000e+00 : f32
    %515 = vector.broadcast %cst_257 : f32 to vector<4x8xf32>
    %516 = tpu.concatenate %514, %513, %515 in 0 : vector<4x8xf32>, vector<8x8xf32>, vector<4x8xf32> -> vector<16x8xf32>
    %517 = vector.extract_strided_slice %516 {offsets = [0, 0], sizes = [8, 8], strides = [1, 1]} : vector<16x8xf32> to vector<8x8xf32>
    %c0_258 = arith.constant 0 : index
    %c0_259 = arith.constant 0 : index
    %518 = vector.load %arg27[%c0_258, %c0_259] : memref<72x8xf32, #tpu.memory_space<vmem>>, vector<8x8xf32>
    %519 = arith.truncf %517 : vector<8x8xf32> to vector<8x8xbf16>
    %520 = arith.truncf %518 : vector<8x8xf32> to vector<8x8xbf16>
    %cst_260 = arith.constant dense<0.000000e+00> : vector<8x8xf32>
    %521 = tpu.matmul %519, %520, %cst_260 {dimension_numbers = #tpu.dot_dimension_numbers<[1], [0], [0], [1], [0, 0, 1, 1], [], []>} : vector<8x8xbf16>, vector<8x8xbf16>, vector<8x8xf32> -> vector<8x8xf32>
    %522 = vector.extract_strided_slice %516 {offsets = [1, 0], sizes = [8, 8], strides = [1, 1]} : vector<16x8xf32> to vector<8x8xf32>
    %c8_261 = arith.constant 8 : index
    %c0_262 = arith.constant 0 : index
    %523 = vector.load %arg27[%c8_261, %c0_262] : memref<72x8xf32, #tpu.memory_space<vmem>>, vector<8x8xf32>
    %524 = arith.truncf %522 : vector<8x8xf32> to vector<8x8xbf16>
    %525 = arith.truncf %523 : vector<8x8xf32> to vector<8x8xbf16>
    %cst_263 = arith.constant dense<0.000000e+00> : vector<8x8xf32>
    %526 = tpu.matmul %524, %525, %cst_263 {dimension_numbers = #tpu.dot_dimension_numbers<[1], [0], [0], [1], [0, 0, 1, 1], [], []>} : vector<8x8xbf16>, vector<8x8xbf16>, vector<8x8xf32> -> vector<8x8xf32>
    %527 = arith.addf %521, %526 : vector<8x8xf32>
    %528 = vector.extract_strided_slice %516 {offsets = [2, 0], sizes = [8, 8], strides = [1, 1]} : vector<16x8xf32> to vector<8x8xf32>
    %c16_264 = arith.constant 16 : index
    %c0_265 = arith.constant 0 : index
    %529 = vector.load %arg27[%c16_264, %c0_265] : memref<72x8xf32, #tpu.memory_space<vmem>>, vector<8x8xf32>
    %530 = arith.truncf %528 : vector<8x8xf32> to vector<8x8xbf16>
    %531 = arith.truncf %529 : vector<8x8xf32> to vector<8x8xbf16>
    %cst_266 = arith.constant dense<0.000000e+00> : vector<8x8xf32>
    %532 = tpu.matmul %530, %531, %cst_266 {dimension_numbers = #tpu.dot_dimension_numbers<[1], [0], [0], [1], [0, 0, 1, 1], [], []>} : vector<8x8xbf16>, vector<8x8xbf16>, vector<8x8xf32> -> vector<8x8xf32>
    %533 = arith.addf %527, %532 : vector<8x8xf32>
    %534 = vector.extract_strided_slice %516 {offsets = [3, 0], sizes = [8, 8], strides = [1, 1]} : vector<16x8xf32> to vector<8x8xf32>
    %c24_267 = arith.constant 24 : index
    %c0_268 = arith.constant 0 : index
    %535 = vector.load %arg27[%c24_267, %c0_268] : memref<72x8xf32, #tpu.memory_space<vmem>>, vector<8x8xf32>
    %536 = arith.truncf %534 : vector<8x8xf32> to vector<8x8xbf16>
    %537 = arith.truncf %535 : vector<8x8xf32> to vector<8x8xbf16>
    %cst_269 = arith.constant dense<0.000000e+00> : vector<8x8xf32>
    %538 = tpu.matmul %536, %537, %cst_269 {dimension_numbers = #tpu.dot_dimension_numbers<[1], [0], [0], [1], [0, 0, 1, 1], [], []>} : vector<8x8xbf16>, vector<8x8xbf16>, vector<8x8xf32> -> vector<8x8xf32>
    %539 = arith.addf %533, %538 : vector<8x8xf32>
    %540 = vector.extract_strided_slice %516 {offsets = [4, 0], sizes = [8, 8], strides = [1, 1]} : vector<16x8xf32> to vector<8x8xf32>
    %c32_270 = arith.constant 32 : index
    %c0_271 = arith.constant 0 : index
    %541 = vector.load %arg27[%c32_270, %c0_271] : memref<72x8xf32, #tpu.memory_space<vmem>>, vector<8x8xf32>
    %542 = arith.truncf %540 : vector<8x8xf32> to vector<8x8xbf16>
    %543 = arith.truncf %541 : vector<8x8xf32> to vector<8x8xbf16>
    %cst_272 = arith.constant dense<0.000000e+00> : vector<8x8xf32>
    %544 = tpu.matmul %542, %543, %cst_272 {dimension_numbers = #tpu.dot_dimension_numbers<[1], [0], [0], [1], [0, 0, 1, 1], [], []>} : vector<8x8xbf16>, vector<8x8xbf16>, vector<8x8xf32> -> vector<8x8xf32>
    %545 = arith.addf %539, %544 : vector<8x8xf32>
    %546 = vector.extract_strided_slice %516 {offsets = [5, 0], sizes = [8, 8], strides = [1, 1]} : vector<16x8xf32> to vector<8x8xf32>
    %c40 = arith.constant 40 : index
    %c0_273 = arith.constant 0 : index
    %547 = vector.load %arg27[%c40, %c0_273] : memref<72x8xf32, #tpu.memory_space<vmem>>, vector<8x8xf32>
    %548 = arith.truncf %546 : vector<8x8xf32> to vector<8x8xbf16>
    %549 = arith.truncf %547 : vector<8x8xf32> to vector<8x8xbf16>
    %cst_274 = arith.constant dense<0.000000e+00> : vector<8x8xf32>
    %550 = tpu.matmul %548, %549, %cst_274 {dimension_numbers = #tpu.dot_dimension_numbers<[1], [0], [0], [1], [0, 0, 1, 1], [], []>} : vector<8x8xbf16>, vector<8x8xbf16>, vector<8x8xf32> -> vector<8x8xf32>
    %551 = arith.addf %545, %550 : vector<8x8xf32>
    %552 = vector.extract_strided_slice %516 {offsets = [6, 0], sizes = [8, 8], strides = [1, 1]} : vector<16x8xf32> to vector<8x8xf32>
    %c48 = arith.constant 48 : index
    %c0_275 = arith.constant 0 : index
    %553 = vector.load %arg27[%c48, %c0_275] : memref<72x8xf32, #tpu.memory_space<vmem>>, vector<8x8xf32>
    %554 = arith.truncf %552 : vector<8x8xf32> to vector<8x8xbf16>
    %555 = arith.truncf %553 : vector<8x8xf32> to vector<8x8xbf16>
    %cst_276 = arith.constant dense<0.000000e+00> : vector<8x8xf32>
    %556 = tpu.matmul %554, %555, %cst_276 {dimension_numbers = #tpu.dot_dimension_numbers<[1], [0], [0], [1], [0, 0, 1, 1], [], []>} : vector<8x8xbf16>, vector<8x8xbf16>, vector<8x8xf32> -> vector<8x8xf32>
    %557 = arith.addf %551, %556 : vector<8x8xf32>
    %558 = vector.extract_strided_slice %516 {offsets = [7, 0], sizes = [8, 8], strides = [1, 1]} : vector<16x8xf32> to vector<8x8xf32>
    %c56 = arith.constant 56 : index
    %c0_277 = arith.constant 0 : index
    %559 = vector.load %arg27[%c56, %c0_277] : memref<72x8xf32, #tpu.memory_space<vmem>>, vector<8x8xf32>
    %560 = arith.truncf %558 : vector<8x8xf32> to vector<8x8xbf16>
    %561 = arith.truncf %559 : vector<8x8xf32> to vector<8x8xbf16>
    %cst_278 = arith.constant dense<0.000000e+00> : vector<8x8xf32>
    %562 = tpu.matmul %560, %561, %cst_278 {dimension_numbers = #tpu.dot_dimension_numbers<[1], [0], [0], [1], [0, 0, 1, 1], [], []>} : vector<8x8xbf16>, vector<8x8xbf16>, vector<8x8xf32> -> vector<8x8xf32>
    %563 = arith.addf %557, %562 : vector<8x8xf32>
    %564 = vector.extract_strided_slice %516 {offsets = [8, 0], sizes = [8, 8], strides = [1, 1]} : vector<16x8xf32> to vector<8x8xf32>
    %c64 = arith.constant 64 : index
    %c0_279 = arith.constant 0 : index
    %565 = vector.load %arg27[%c64, %c0_279] : memref<72x8xf32, #tpu.memory_space<vmem>>, vector<8x8xf32>
    %566 = arith.truncf %564 : vector<8x8xf32> to vector<8x8xbf16>
    %567 = arith.truncf %565 : vector<8x8xf32> to vector<8x8xbf16>
    %cst_280 = arith.constant dense<0.000000e+00> : vector<8x8xf32>
    %568 = tpu.matmul %566, %567, %cst_280 {dimension_numbers = #tpu.dot_dimension_numbers<[1], [0], [0], [1], [0, 0, 1, 1], [], []>} : vector<8x8xbf16>, vector<8x8xbf16>, vector<8x8xf32> -> vector<8x8xf32>
    %569 = arith.addf %563, %568 : vector<8x8xf32>
    %c0_281 = arith.constant 0 : index
    %c0_282 = arith.constant 0 : index
    %570 = vector.load %arg28[%c0_281, %c0_282] : memref<1x8xf32, #tpu.memory_space<vmem>>, vector<1x8xf32>
    %571 = vector.broadcast %570 : vector<1x8xf32> to vector<8x8xf32>
    %572 = arith.addf %569, %571 : vector<8x8xf32>
    %cst_283 = arith.constant dense<0.000000e+00> : vector<8xf32>
    %573 = vector.multi_reduction <add>, %572, %cst_283 [0] : vector<8x8xf32> to vector<8xf32>
    %574 = vector.shape_cast %573 : vector<8xf32> to vector<1x8xf32>
    %c0_284 = arith.constant 0 : index
    %c0_285 = arith.constant 0 : index
    %575 = vector.load %arg43[%c0_284, %c0_285] : memref<8x4xf32, #tpu.memory_space<vmem>>, vector<8x4xf32>
    %cst_286 = arith.constant dense<0.000000e+00> : vector<1x4xf32>
    %576 = tpu.matmul %574, %575, %cst_286 {dimension_numbers = #tpu.dot_dimension_numbers<[1], [0], [0], [1], [0, 0, 1, 1], [], []>} : vector<1x8xf32>, vector<8x4xf32>, vector<1x4xf32> -> vector<1x4xf32>
    %cst_287 = arith.constant 6.250000e-02 : f32
    %577 = vector.broadcast %cst_287 : f32 to vector<1x4xf32>
    %578 = arith.mulf %576, %577 : vector<1x4xf32>
    %c0_288 = arith.constant 0 : index
    %c0_289 = arith.constant 0 : index
    %579 = vector.load %arg44[%c0_288, %c0_289] : memref<4x8xf32, #tpu.memory_space<vmem>>, vector<4x8xf32>
    %cst_290 = arith.constant dense<0.000000e+00> : vector<1x8xf32>
    %580 = tpu.matmul %578, %579, %cst_290 {dimension_numbers = #tpu.dot_dimension_numbers<[1], [0], [0], [1], [0, 0, 1, 1], [], []>} : vector<1x4xf32>, vector<4x8xf32>, vector<1x8xf32> -> vector<1x8xf32>
    %581 = vector.broadcast %580 : vector<1x8xf32> to vector<8x8xf32>
    %582 = arith.subf %572, %581 : vector<8x8xf32>
    %583 = arith.mulf %582, %582 : vector<8x8xf32>
    %cst_291 = arith.constant dense<0.000000e+00> : vector<8xf32>
    %584 = vector.multi_reduction <add>, %583, %cst_291 [0] : vector<8x8xf32> to vector<8xf32>
    %585 = vector.shape_cast %584 : vector<8xf32> to vector<1x8xf32>
    %c0_292 = arith.constant 0 : index
    %c0_293 = arith.constant 0 : index
    %586 = vector.load %arg43[%c0_292, %c0_293] : memref<8x4xf32, #tpu.memory_space<vmem>>, vector<8x4xf32>
    %cst_294 = arith.constant dense<0.000000e+00> : vector<1x4xf32>
    %587 = tpu.matmul %585, %586, %cst_294 {dimension_numbers = #tpu.dot_dimension_numbers<[1], [0], [0], [1], [0, 0, 1, 1], [], []>} : vector<1x8xf32>, vector<8x4xf32>, vector<1x4xf32> -> vector<1x4xf32>
    %cst_295 = arith.constant 6.250000e-02 : f32
    %588 = vector.broadcast %cst_295 : f32 to vector<1x4xf32>
    %589 = arith.mulf %587, %588 : vector<1x4xf32>
    %cst_296 = arith.constant 9.99999974E-6 : f32
    %590 = vector.broadcast %cst_296 : f32 to vector<1x4xf32>
    %591 = arith.addf %589, %590 : vector<1x4xf32>
    %592 = math.rsqrt %591 : vector<1x4xf32>
    %c0_297 = arith.constant 0 : index
    %c0_298 = arith.constant 0 : index
    %593 = vector.load %arg44[%c0_297, %c0_298] : memref<4x8xf32, #tpu.memory_space<vmem>>, vector<4x8xf32>
    %cst_299 = arith.constant dense<0.000000e+00> : vector<1x8xf32>
    %594 = tpu.matmul %592, %593, %cst_299 {dimension_numbers = #tpu.dot_dimension_numbers<[1], [0], [0], [1], [0, 0, 1, 1], [], []>} : vector<1x4xf32>, vector<4x8xf32>, vector<1x8xf32> -> vector<1x8xf32>
    %595 = vector.broadcast %594 : vector<1x8xf32> to vector<8x8xf32>
    %596 = arith.mulf %582, %595 : vector<8x8xf32>
    %c0_300 = arith.constant 0 : index
    %c0_301 = arith.constant 0 : index
    %597 = vector.load %arg29[%c0_300, %c0_301] : memref<1x8xf32, #tpu.memory_space<vmem>>, vector<1x8xf32>
    %598 = vector.broadcast %597 : vector<1x8xf32> to vector<8x8xf32>
    %599 = arith.mulf %596, %598 : vector<8x8xf32>
    %c0_302 = arith.constant 0 : index
    %c0_303 = arith.constant 0 : index
    %600 = vector.load %arg30[%c0_302, %c0_303] : memref<1x8xf32, #tpu.memory_space<vmem>>, vector<1x8xf32>
    %601 = vector.broadcast %600 : vector<1x8xf32> to vector<8x8xf32>
    %602 = arith.addf %599, %601 : vector<8x8xf32>
    %603 = arith.negf %602 : vector<8x8xf32>
    %604 = math.exp %603 : vector<8x8xf32>
    %cst_304 = arith.constant 1.000000e+00 : f32
    %605 = vector.broadcast %cst_304 : f32 to vector<8x8xf32>
    %606 = arith.addf %605, %604 : vector<8x8xf32>
    %607 = arith.divf %605, %606 : vector<8x8xf32>
    %608 = arith.mulf %602, %607 : vector<8x8xf32>
    %cst_305 = arith.constant 0.000000e+00 : f32
    %609 = vector.broadcast %cst_305 : f32 to vector<4x8xf32>
    %cst_306 = arith.constant 0.000000e+00 : f32
    %610 = vector.broadcast %cst_306 : f32 to vector<4x8xf32>
    %611 = tpu.concatenate %609, %608, %610 in 0 : vector<4x8xf32>, vector<8x8xf32>, vector<4x8xf32> -> vector<16x8xf32>
    %612 = vector.extract_strided_slice %611 {offsets = [0, 0], sizes = [8, 8], strides = [1, 1]} : vector<16x8xf32> to vector<8x8xf32>
    %c0_307 = arith.constant 0 : index
    %c0_308 = arith.constant 0 : index
    %613 = vector.load %arg31[%c0_307, %c0_308] : memref<72x8xf32, #tpu.memory_space<vmem>>, vector<8x8xf32>
    %614 = arith.truncf %612 : vector<8x8xf32> to vector<8x8xbf16>
    %615 = arith.truncf %613 : vector<8x8xf32> to vector<8x8xbf16>
    %cst_309 = arith.constant dense<0.000000e+00> : vector<8x8xf32>
    %616 = tpu.matmul %614, %615, %cst_309 {dimension_numbers = #tpu.dot_dimension_numbers<[1], [0], [0], [1], [0, 0, 1, 1], [], []>} : vector<8x8xbf16>, vector<8x8xbf16>, vector<8x8xf32> -> vector<8x8xf32>
    %617 = vector.extract_strided_slice %611 {offsets = [1, 0], sizes = [8, 8], strides = [1, 1]} : vector<16x8xf32> to vector<8x8xf32>
    %c8_310 = arith.constant 8 : index
    %c0_311 = arith.constant 0 : index
    %618 = vector.load %arg31[%c8_310, %c0_311] : memref<72x8xf32, #tpu.memory_space<vmem>>, vector<8x8xf32>
    %619 = arith.truncf %617 : vector<8x8xf32> to vector<8x8xbf16>
    %620 = arith.truncf %618 : vector<8x8xf32> to vector<8x8xbf16>
    %cst_312 = arith.constant dense<0.000000e+00> : vector<8x8xf32>
    %621 = tpu.matmul %619, %620, %cst_312 {dimension_numbers = #tpu.dot_dimension_numbers<[1], [0], [0], [1], [0, 0, 1, 1], [], []>} : vector<8x8xbf16>, vector<8x8xbf16>, vector<8x8xf32> -> vector<8x8xf32>
    %622 = arith.addf %616, %621 : vector<8x8xf32>
    %623 = vector.extract_strided_slice %611 {offsets = [2, 0], sizes = [8, 8], strides = [1, 1]} : vector<16x8xf32> to vector<8x8xf32>
    %c16_313 = arith.constant 16 : index
    %c0_314 = arith.constant 0 : index
    %624 = vector.load %arg31[%c16_313, %c0_314] : memref<72x8xf32, #tpu.memory_space<vmem>>, vector<8x8xf32>
    %625 = arith.truncf %623 : vector<8x8xf32> to vector<8x8xbf16>
    %626 = arith.truncf %624 : vector<8x8xf32> to vector<8x8xbf16>
    %cst_315 = arith.constant dense<0.000000e+00> : vector<8x8xf32>
    %627 = tpu.matmul %625, %626, %cst_315 {dimension_numbers = #tpu.dot_dimension_numbers<[1], [0], [0], [1], [0, 0, 1, 1], [], []>} : vector<8x8xbf16>, vector<8x8xbf16>, vector<8x8xf32> -> vector<8x8xf32>
    %628 = arith.addf %622, %627 : vector<8x8xf32>
    %629 = vector.extract_strided_slice %611 {offsets = [3, 0], sizes = [8, 8], strides = [1, 1]} : vector<16x8xf32> to vector<8x8xf32>
    %c24_316 = arith.constant 24 : index
    %c0_317 = arith.constant 0 : index
    %630 = vector.load %arg31[%c24_316, %c0_317] : memref<72x8xf32, #tpu.memory_space<vmem>>, vector<8x8xf32>
    %631 = arith.truncf %629 : vector<8x8xf32> to vector<8x8xbf16>
    %632 = arith.truncf %630 : vector<8x8xf32> to vector<8x8xbf16>
    %cst_318 = arith.constant dense<0.000000e+00> : vector<8x8xf32>
    %633 = tpu.matmul %631, %632, %cst_318 {dimension_numbers = #tpu.dot_dimension_numbers<[1], [0], [0], [1], [0, 0, 1, 1], [], []>} : vector<8x8xbf16>, vector<8x8xbf16>, vector<8x8xf32> -> vector<8x8xf32>
    %634 = arith.addf %628, %633 : vector<8x8xf32>
    %635 = vector.extract_strided_slice %611 {offsets = [4, 0], sizes = [8, 8], strides = [1, 1]} : vector<16x8xf32> to vector<8x8xf32>
    %c32_319 = arith.constant 32 : index
    %c0_320 = arith.constant 0 : index
    %636 = vector.load %arg31[%c32_319, %c0_320] : memref<72x8xf32, #tpu.memory_space<vmem>>, vector<8x8xf32>
    %637 = arith.truncf %635 : vector<8x8xf32> to vector<8x8xbf16>
    %638 = arith.truncf %636 : vector<8x8xf32> to vector<8x8xbf16>
    %cst_321 = arith.constant dense<0.000000e+00> : vector<8x8xf32>
    %639 = tpu.matmul %637, %638, %cst_321 {dimension_numbers = #tpu.dot_dimension_numbers<[1], [0], [0], [1], [0, 0, 1, 1], [], []>} : vector<8x8xbf16>, vector<8x8xbf16>, vector<8x8xf32> -> vector<8x8xf32>
    %640 = arith.addf %634, %639 : vector<8x8xf32>
    %641 = vector.extract_strided_slice %611 {offsets = [5, 0], sizes = [8, 8], strides = [1, 1]} : vector<16x8xf32> to vector<8x8xf32>
    %c40_322 = arith.constant 40 : index
    %c0_323 = arith.constant 0 : index
    %642 = vector.load %arg31[%c40_322, %c0_323] : memref<72x8xf32, #tpu.memory_space<vmem>>, vector<8x8xf32>
    %643 = arith.truncf %641 : vector<8x8xf32> to vector<8x8xbf16>
    %644 = arith.truncf %642 : vector<8x8xf32> to vector<8x8xbf16>
    %cst_324 = arith.constant dense<0.000000e+00> : vector<8x8xf32>
    %645 = tpu.matmul %643, %644, %cst_324 {dimension_numbers = #tpu.dot_dimension_numbers<[1], [0], [0], [1], [0, 0, 1, 1], [], []>} : vector<8x8xbf16>, vector<8x8xbf16>, vector<8x8xf32> -> vector<8x8xf32>
    %646 = arith.addf %640, %645 : vector<8x8xf32>
    %647 = vector.extract_strided_slice %611 {offsets = [6, 0], sizes = [8, 8], strides = [1, 1]} : vector<16x8xf32> to vector<8x8xf32>
    %c48_325 = arith.constant 48 : index
    %c0_326 = arith.constant 0 : index
    %648 = vector.load %arg31[%c48_325, %c0_326] : memref<72x8xf32, #tpu.memory_space<vmem>>, vector<8x8xf32>
    %649 = arith.truncf %647 : vector<8x8xf32> to vector<8x8xbf16>
    %650 = arith.truncf %648 : vector<8x8xf32> to vector<8x8xbf16>
    %cst_327 = arith.constant dense<0.000000e+00> : vector<8x8xf32>
    %651 = tpu.matmul %649, %650, %cst_327 {dimension_numbers = #tpu.dot_dimension_numbers<[1], [0], [0], [1], [0, 0, 1, 1], [], []>} : vector<8x8xbf16>, vector<8x8xbf16>, vector<8x8xf32> -> vector<8x8xf32>
    %652 = arith.addf %646, %651 : vector<8x8xf32>
    %653 = vector.extract_strided_slice %611 {offsets = [7, 0], sizes = [8, 8], strides = [1, 1]} : vector<16x8xf32> to vector<8x8xf32>
    %c56_328 = arith.constant 56 : index
    %c0_329 = arith.constant 0 : index
    %654 = vector.load %arg31[%c56_328, %c0_329] : memref<72x8xf32, #tpu.memory_space<vmem>>, vector<8x8xf32>
    %655 = arith.truncf %653 : vector<8x8xf32> to vector<8x8xbf16>
    %656 = arith.truncf %654 : vector<8x8xf32> to vector<8x8xbf16>
    %cst_330 = arith.constant dense<0.000000e+00> : vector<8x8xf32>
    %657 = tpu.matmul %655, %656, %cst_330 {dimension_numbers = #tpu.dot_dimension_numbers<[1], [0], [0], [1], [0, 0, 1, 1], [], []>} : vector<8x8xbf16>, vector<8x8xbf16>, vector<8x8xf32> -> vector<8x8xf32>
    %658 = arith.addf %652, %657 : vector<8x8xf32>
    %659 = vector.extract_strided_slice %611 {offsets = [8, 0], sizes = [8, 8], strides = [1, 1]} : vector<16x8xf32> to vector<8x8xf32>
    %c64_331 = arith.constant 64 : index
    %c0_332 = arith.constant 0 : index
    %660 = vector.load %arg31[%c64_331, %c0_332] : memref<72x8xf32, #tpu.memory_space<vmem>>, vector<8x8xf32>
    %661 = arith.truncf %659 : vector<8x8xf32> to vector<8x8xbf16>
    %662 = arith.truncf %660 : vector<8x8xf32> to vector<8x8xbf16>
    %cst_333 = arith.constant dense<0.000000e+00> : vector<8x8xf32>
    %663 = tpu.matmul %661, %662, %cst_333 {dimension_numbers = #tpu.dot_dimension_numbers<[1], [0], [0], [1], [0, 0, 1, 1], [], []>} : vector<8x8xbf16>, vector<8x8xbf16>, vector<8x8xf32> -> vector<8x8xf32>
    %664 = arith.addf %658, %663 : vector<8x8xf32>
    %c0_334 = arith.constant 0 : index
    %c0_335 = arith.constant 0 : index
    %665 = vector.load %arg32[%c0_334, %c0_335] : memref<1x8xf32, #tpu.memory_space<vmem>>, vector<1x8xf32>
    %666 = vector.broadcast %665 : vector<1x8xf32> to vector<8x8xf32>
    %667 = arith.addf %664, %666 : vector<8x8xf32>
    %cst_336 = arith.constant dense<0.000000e+00> : vector<8xf32>
    %668 = vector.multi_reduction <add>, %667, %cst_336 [0] : vector<8x8xf32> to vector<8xf32>
    %669 = vector.shape_cast %668 : vector<8xf32> to vector<1x8xf32>
    %c0_337 = arith.constant 0 : index
    %c0_338 = arith.constant 0 : index
    %670 = vector.load %arg43[%c0_337, %c0_338] : memref<8x4xf32, #tpu.memory_space<vmem>>, vector<8x4xf32>
    %cst_339 = arith.constant dense<0.000000e+00> : vector<1x4xf32>
    %671 = tpu.matmul %669, %670, %cst_339 {dimension_numbers = #tpu.dot_dimension_numbers<[1], [0], [0], [1], [0, 0, 1, 1], [], []>} : vector<1x8xf32>, vector<8x4xf32>, vector<1x4xf32> -> vector<1x4xf32>
    %cst_340 = arith.constant 6.250000e-02 : f32
    %672 = vector.broadcast %cst_340 : f32 to vector<1x4xf32>
    %673 = arith.mulf %671, %672 : vector<1x4xf32>
    %c0_341 = arith.constant 0 : index
    %c0_342 = arith.constant 0 : index
    %674 = vector.load %arg44[%c0_341, %c0_342] : memref<4x8xf32, #tpu.memory_space<vmem>>, vector<4x8xf32>
    %cst_343 = arith.constant dense<0.000000e+00> : vector<1x8xf32>
    %675 = tpu.matmul %673, %674, %cst_343 {dimension_numbers = #tpu.dot_dimension_numbers<[1], [0], [0], [1], [0, 0, 1, 1], [], []>} : vector<1x4xf32>, vector<4x8xf32>, vector<1x8xf32> -> vector<1x8xf32>
    %676 = vector.broadcast %675 : vector<1x8xf32> to vector<8x8xf32>
    %677 = arith.subf %667, %676 : vector<8x8xf32>
    %678 = arith.mulf %677, %677 : vector<8x8xf32>
    %cst_344 = arith.constant dense<0.000000e+00> : vector<8xf32>
    %679 = vector.multi_reduction <add>, %678, %cst_344 [0] : vector<8x8xf32> to vector<8xf32>
    %680 = vector.shape_cast %679 : vector<8xf32> to vector<1x8xf32>
    %c0_345 = arith.constant 0 : index
    %c0_346 = arith.constant 0 : index
    %681 = vector.load %arg43[%c0_345, %c0_346] : memref<8x4xf32, #tpu.memory_space<vmem>>, vector<8x4xf32>
    %cst_347 = arith.constant dense<0.000000e+00> : vector<1x4xf32>
    %682 = tpu.matmul %680, %681, %cst_347 {dimension_numbers = #tpu.dot_dimension_numbers<[1], [0], [0], [1], [0, 0, 1, 1], [], []>} : vector<1x8xf32>, vector<8x4xf32>, vector<1x4xf32> -> vector<1x4xf32>
    %cst_348 = arith.constant 6.250000e-02 : f32
    %683 = vector.broadcast %cst_348 : f32 to vector<1x4xf32>
    %684 = arith.mulf %682, %683 : vector<1x4xf32>
    %cst_349 = arith.constant 9.99999974E-6 : f32
    %685 = vector.broadcast %cst_349 : f32 to vector<1x4xf32>
    %686 = arith.addf %684, %685 : vector<1x4xf32>
    %687 = math.rsqrt %686 : vector<1x4xf32>
    %c0_350 = arith.constant 0 : index
    %c0_351 = arith.constant 0 : index
    %688 = vector.load %arg44[%c0_350, %c0_351] : memref<4x8xf32, #tpu.memory_space<vmem>>, vector<4x8xf32>
    %cst_352 = arith.constant dense<0.000000e+00> : vector<1x8xf32>
    %689 = tpu.matmul %687, %688, %cst_352 {dimension_numbers = #tpu.dot_dimension_numbers<[1], [0], [0], [1], [0, 0, 1, 1], [], []>} : vector<1x4xf32>, vector<4x8xf32>, vector<1x8xf32> -> vector<1x8xf32>
    %690 = vector.broadcast %689 : vector<1x8xf32> to vector<8x8xf32>
    %691 = arith.mulf %677, %690 : vector<8x8xf32>
    %c0_353 = arith.constant 0 : index
    %c0_354 = arith.constant 0 : index
    %692 = vector.load %arg33[%c0_353, %c0_354] : memref<1x8xf32, #tpu.memory_space<vmem>>, vector<1x8xf32>
    %693 = vector.broadcast %692 : vector<1x8xf32> to vector<8x8xf32>
    %694 = arith.mulf %691, %693 : vector<8x8xf32>
    %c0_355 = arith.constant 0 : index
    %c0_356 = arith.constant 0 : index
    %695 = vector.load %arg34[%c0_355, %c0_356] : memref<1x8xf32, #tpu.memory_space<vmem>>, vector<1x8xf32>
    %696 = vector.broadcast %695 : vector<1x8xf32> to vector<8x8xf32>
    %697 = arith.addf %694, %696 : vector<8x8xf32>
    %698 = arith.negf %697 : vector<8x8xf32>
    %699 = math.exp %698 : vector<8x8xf32>
    %cst_357 = arith.constant 1.000000e+00 : f32
    %700 = vector.broadcast %cst_357 : f32 to vector<8x8xf32>
    %701 = arith.addf %700, %699 : vector<8x8xf32>
    %702 = arith.divf %700, %701 : vector<8x8xf32>
    %703 = arith.mulf %697, %702 : vector<8x8xf32>
    %704 = arith.addf %703, %513 : vector<8x8xf32>
    %cst_358 = arith.constant 0.000000e+00 : f32
    %705 = vector.broadcast %cst_358 : f32 to vector<4x8xf32>
    %cst_359 = arith.constant 0.000000e+00 : f32
    %706 = vector.broadcast %cst_359 : f32 to vector<4x8xf32>
    %707 = tpu.concatenate %705, %704, %706 in 0 : vector<4x8xf32>, vector<8x8xf32>, vector<4x8xf32> -> vector<16x8xf32>
    %708 = vector.extract_strided_slice %707 {offsets = [0, 0], sizes = [8, 8], strides = [1, 1]} : vector<16x8xf32> to vector<8x8xf32>
    %c0_360 = arith.constant 0 : index
    %c0_361 = arith.constant 0 : index
    %709 = vector.load %arg35[%c0_360, %c0_361] : memref<72x8xf32, #tpu.memory_space<vmem>>, vector<8x8xf32>
    %710 = arith.truncf %708 : vector<8x8xf32> to vector<8x8xbf16>
    %711 = arith.truncf %709 : vector<8x8xf32> to vector<8x8xbf16>
    %cst_362 = arith.constant dense<0.000000e+00> : vector<8x8xf32>
    %712 = tpu.matmul %710, %711, %cst_362 {dimension_numbers = #tpu.dot_dimension_numbers<[1], [0], [0], [1], [0, 0, 1, 1], [], []>} : vector<8x8xbf16>, vector<8x8xbf16>, vector<8x8xf32> -> vector<8x8xf32>
    %713 = vector.extract_strided_slice %707 {offsets = [1, 0], sizes = [8, 8], strides = [1, 1]} : vector<16x8xf32> to vector<8x8xf32>
    %c8_363 = arith.constant 8 : index
    %c0_364 = arith.constant 0 : index
    %714 = vector.load %arg35[%c8_363, %c0_364] : memref<72x8xf32, #tpu.memory_space<vmem>>, vector<8x8xf32>
    %715 = arith.truncf %713 : vector<8x8xf32> to vector<8x8xbf16>
    %716 = arith.truncf %714 : vector<8x8xf32> to vector<8x8xbf16>
    %cst_365 = arith.constant dense<0.000000e+00> : vector<8x8xf32>
    %717 = tpu.matmul %715, %716, %cst_365 {dimension_numbers = #tpu.dot_dimension_numbers<[1], [0], [0], [1], [0, 0, 1, 1], [], []>} : vector<8x8xbf16>, vector<8x8xbf16>, vector<8x8xf32> -> vector<8x8xf32>
    %718 = arith.addf %712, %717 : vector<8x8xf32>
    %719 = vector.extract_strided_slice %707 {offsets = [2, 0], sizes = [8, 8], strides = [1, 1]} : vector<16x8xf32> to vector<8x8xf32>
    %c16_366 = arith.constant 16 : index
    %c0_367 = arith.constant 0 : index
    %720 = vector.load %arg35[%c16_366, %c0_367] : memref<72x8xf32, #tpu.memory_space<vmem>>, vector<8x8xf32>
    %721 = arith.truncf %719 : vector<8x8xf32> to vector<8x8xbf16>
    %722 = arith.truncf %720 : vector<8x8xf32> to vector<8x8xbf16>
    %cst_368 = arith.constant dense<0.000000e+00> : vector<8x8xf32>
    %723 = tpu.matmul %721, %722, %cst_368 {dimension_numbers = #tpu.dot_dimension_numbers<[1], [0], [0], [1], [0, 0, 1, 1], [], []>} : vector<8x8xbf16>, vector<8x8xbf16>, vector<8x8xf32> -> vector<8x8xf32>
    %724 = arith.addf %718, %723 : vector<8x8xf32>
    %725 = vector.extract_strided_slice %707 {offsets = [3, 0], sizes = [8, 8], strides = [1, 1]} : vector<16x8xf32> to vector<8x8xf32>
    %c24_369 = arith.constant 24 : index
    %c0_370 = arith.constant 0 : index
    %726 = vector.load %arg35[%c24_369, %c0_370] : memref<72x8xf32, #tpu.memory_space<vmem>>, vector<8x8xf32>
    %727 = arith.truncf %725 : vector<8x8xf32> to vector<8x8xbf16>
    %728 = arith.truncf %726 : vector<8x8xf32> to vector<8x8xbf16>
    %cst_371 = arith.constant dense<0.000000e+00> : vector<8x8xf32>
    %729 = tpu.matmul %727, %728, %cst_371 {dimension_numbers = #tpu.dot_dimension_numbers<[1], [0], [0], [1], [0, 0, 1, 1], [], []>} : vector<8x8xbf16>, vector<8x8xbf16>, vector<8x8xf32> -> vector<8x8xf32>
    %730 = arith.addf %724, %729 : vector<8x8xf32>
    %731 = vector.extract_strided_slice %707 {offsets = [4, 0], sizes = [8, 8], strides = [1, 1]} : vector<16x8xf32> to vector<8x8xf32>
    %c32_372 = arith.constant 32 : index
    %c0_373 = arith.constant 0 : index
    %732 = vector.load %arg35[%c32_372, %c0_373] : memref<72x8xf32, #tpu.memory_space<vmem>>, vector<8x8xf32>
    %733 = arith.truncf %731 : vector<8x8xf32> to vector<8x8xbf16>
    %734 = arith.truncf %732 : vector<8x8xf32> to vector<8x8xbf16>
    %cst_374 = arith.constant dense<0.000000e+00> : vector<8x8xf32>
    %735 = tpu.matmul %733, %734, %cst_374 {dimension_numbers = #tpu.dot_dimension_numbers<[1], [0], [0], [1], [0, 0, 1, 1], [], []>} : vector<8x8xbf16>, vector<8x8xbf16>, vector<8x8xf32> -> vector<8x8xf32>
    %736 = arith.addf %730, %735 : vector<8x8xf32>
    %737 = vector.extract_strided_slice %707 {offsets = [5, 0], sizes = [8, 8], strides = [1, 1]} : vector<16x8xf32> to vector<8x8xf32>
    %c40_375 = arith.constant 40 : index
    %c0_376 = arith.constant 0 : index
    %738 = vector.load %arg35[%c40_375, %c0_376] : memref<72x8xf32, #tpu.memory_space<vmem>>, vector<8x8xf32>
    %739 = arith.truncf %737 : vector<8x8xf32> to vector<8x8xbf16>
    %740 = arith.truncf %738 : vector<8x8xf32> to vector<8x8xbf16>
    %cst_377 = arith.constant dense<0.000000e+00> : vector<8x8xf32>
    %741 = tpu.matmul %739, %740, %cst_377 {dimension_numbers = #tpu.dot_dimension_numbers<[1], [0], [0], [1], [0, 0, 1, 1], [], []>} : vector<8x8xbf16>, vector<8x8xbf16>, vector<8x8xf32> -> vector<8x8xf32>
    %742 = arith.addf %736, %741 : vector<8x8xf32>
    %743 = vector.extract_strided_slice %707 {offsets = [6, 0], sizes = [8, 8], strides = [1, 1]} : vector<16x8xf32> to vector<8x8xf32>
    %c48_378 = arith.constant 48 : index
    %c0_379 = arith.constant 0 : index
    %744 = vector.load %arg35[%c48_378, %c0_379] : memref<72x8xf32, #tpu.memory_space<vmem>>, vector<8x8xf32>
    %745 = arith.truncf %743 : vector<8x8xf32> to vector<8x8xbf16>
    %746 = arith.truncf %744 : vector<8x8xf32> to vector<8x8xbf16>
    %cst_380 = arith.constant dense<0.000000e+00> : vector<8x8xf32>
    %747 = tpu.matmul %745, %746, %cst_380 {dimension_numbers = #tpu.dot_dimension_numbers<[1], [0], [0], [1], [0, 0, 1, 1], [], []>} : vector<8x8xbf16>, vector<8x8xbf16>, vector<8x8xf32> -> vector<8x8xf32>
    %748 = arith.addf %742, %747 : vector<8x8xf32>
    %749 = vector.extract_strided_slice %707 {offsets = [7, 0], sizes = [8, 8], strides = [1, 1]} : vector<16x8xf32> to vector<8x8xf32>
    %c56_381 = arith.constant 56 : index
    %c0_382 = arith.constant 0 : index
    %750 = vector.load %arg35[%c56_381, %c0_382] : memref<72x8xf32, #tpu.memory_space<vmem>>, vector<8x8xf32>
    %751 = arith.truncf %749 : vector<8x8xf32> to vector<8x8xbf16>
    %752 = arith.truncf %750 : vector<8x8xf32> to vector<8x8xbf16>
    %cst_383 = arith.constant dense<0.000000e+00> : vector<8x8xf32>
    %753 = tpu.matmul %751, %752, %cst_383 {dimension_numbers = #tpu.dot_dimension_numbers<[1], [0], [0], [1], [0, 0, 1, 1], [], []>} : vector<8x8xbf16>, vector<8x8xbf16>, vector<8x8xf32> -> vector<8x8xf32>
    %754 = arith.addf %748, %753 : vector<8x8xf32>
    %755 = vector.extract_strided_slice %707 {offsets = [8, 0], sizes = [8, 8], strides = [1, 1]} : vector<16x8xf32> to vector<8x8xf32>
    %c64_384 = arith.constant 64 : index
    %c0_385 = arith.constant 0 : index
    %756 = vector.load %arg35[%c64_384, %c0_385] : memref<72x8xf32, #tpu.memory_space<vmem>>, vector<8x8xf32>
    %757 = arith.truncf %755 : vector<8x8xf32> to vector<8x8xbf16>
    %758 = arith.truncf %756 : vector<8x8xf32> to vector<8x8xbf16>
    %cst_386 = arith.constant dense<0.000000e+00> : vector<8x8xf32>
    %759 = tpu.matmul %757, %758, %cst_386 {dimension_numbers = #tpu.dot_dimension_numbers<[1], [0], [0], [1], [0, 0, 1, 1], [], []>} : vector<8x8xbf16>, vector<8x8xbf16>, vector<8x8xf32> -> vector<8x8xf32>
    %760 = arith.addf %754, %759 : vector<8x8xf32>
    %c0_387 = arith.constant 0 : index
    %c0_388 = arith.constant 0 : index
    %761 = vector.load %arg36[%c0_387, %c0_388] : memref<1x8xf32, #tpu.memory_space<vmem>>, vector<1x8xf32>
    %762 = vector.broadcast %761 : vector<1x8xf32> to vector<8x8xf32>
    %763 = arith.addf %760, %762 : vector<8x8xf32>
    %cst_389 = arith.constant dense<0.000000e+00> : vector<8xf32>
    %764 = vector.multi_reduction <add>, %763, %cst_389 [0] : vector<8x8xf32> to vector<8xf32>
    %765 = vector.shape_cast %764 : vector<8xf32> to vector<1x8xf32>
    %c0_390 = arith.constant 0 : index
    %c0_391 = arith.constant 0 : index
    %766 = vector.load %arg43[%c0_390, %c0_391] : memref<8x4xf32, #tpu.memory_space<vmem>>, vector<8x4xf32>
    %cst_392 = arith.constant dense<0.000000e+00> : vector<1x4xf32>
    %767 = tpu.matmul %765, %766, %cst_392 {dimension_numbers = #tpu.dot_dimension_numbers<[1], [0], [0], [1], [0, 0, 1, 1], [], []>} : vector<1x8xf32>, vector<8x4xf32>, vector<1x4xf32> -> vector<1x4xf32>
    %cst_393 = arith.constant 6.250000e-02 : f32
    %768 = vector.broadcast %cst_393 : f32 to vector<1x4xf32>
    %769 = arith.mulf %767, %768 : vector<1x4xf32>
    %c0_394 = arith.constant 0 : index
    %c0_395 = arith.constant 0 : index
    %770 = vector.load %arg44[%c0_394, %c0_395] : memref<4x8xf32, #tpu.memory_space<vmem>>, vector<4x8xf32>
    %cst_396 = arith.constant dense<0.000000e+00> : vector<1x8xf32>
    %771 = tpu.matmul %769, %770, %cst_396 {dimension_numbers = #tpu.dot_dimension_numbers<[1], [0], [0], [1], [0, 0, 1, 1], [], []>} : vector<1x4xf32>, vector<4x8xf32>, vector<1x8xf32> -> vector<1x8xf32>
    %772 = vector.broadcast %771 : vector<1x8xf32> to vector<8x8xf32>
    %773 = arith.subf %763, %772 : vector<8x8xf32>
    %774 = arith.mulf %773, %773 : vector<8x8xf32>
    %cst_397 = arith.constant dense<0.000000e+00> : vector<8xf32>
    %775 = vector.multi_reduction <add>, %774, %cst_397 [0] : vector<8x8xf32> to vector<8xf32>
    %776 = vector.shape_cast %775 : vector<8xf32> to vector<1x8xf32>
    %c0_398 = arith.constant 0 : index
    %c0_399 = arith.constant 0 : index
    %777 = vector.load %arg43[%c0_398, %c0_399] : memref<8x4xf32, #tpu.memory_space<vmem>>, vector<8x4xf32>
    %cst_400 = arith.constant dense<0.000000e+00> : vector<1x4xf32>
    %778 = tpu.matmul %776, %777, %cst_400 {dimension_numbers = #tpu.dot_dimension_numbers<[1], [0], [0], [1], [0, 0, 1, 1], [], []>} : vector<1x8xf32>, vector<8x4xf32>, vector<1x4xf32> -> vector<1x4xf32>
    %cst_401 = arith.constant 6.250000e-02 : f32
    %779 = vector.broadcast %cst_401 : f32 to vector<1x4xf32>
    %780 = arith.mulf %778, %779 : vector<1x4xf32>
    %cst_402 = arith.constant 9.99999974E-6 : f32
    %781 = vector.broadcast %cst_402 : f32 to vector<1x4xf32>
    %782 = arith.addf %780, %781 : vector<1x4xf32>
    %783 = math.rsqrt %782 : vector<1x4xf32>
    %c0_403 = arith.constant 0 : index
    %c0_404 = arith.constant 0 : index
    %784 = vector.load %arg44[%c0_403, %c0_404] : memref<4x8xf32, #tpu.memory_space<vmem>>, vector<4x8xf32>
    %cst_405 = arith.constant dense<0.000000e+00> : vector<1x8xf32>
    %785 = tpu.matmul %783, %784, %cst_405 {dimension_numbers = #tpu.dot_dimension_numbers<[1], [0], [0], [1], [0, 0, 1, 1], [], []>} : vector<1x4xf32>, vector<4x8xf32>, vector<1x8xf32> -> vector<1x8xf32>
    %786 = vector.broadcast %785 : vector<1x8xf32> to vector<8x8xf32>
    %787 = arith.mulf %773, %786 : vector<8x8xf32>
    %c0_406 = arith.constant 0 : index
    %c0_407 = arith.constant 0 : index
    %788 = vector.load %arg37[%c0_406, %c0_407] : memref<1x8xf32, #tpu.memory_space<vmem>>, vector<1x8xf32>
    %789 = vector.broadcast %788 : vector<1x8xf32> to vector<8x8xf32>
    %790 = arith.mulf %787, %789 : vector<8x8xf32>
    %c0_408 = arith.constant 0 : index
    %c0_409 = arith.constant 0 : index
    %791 = vector.load %arg38[%c0_408, %c0_409] : memref<1x8xf32, #tpu.memory_space<vmem>>, vector<1x8xf32>
    %792 = vector.broadcast %791 : vector<1x8xf32> to vector<8x8xf32>
    %793 = arith.addf %790, %792 : vector<8x8xf32>
    %794 = arith.negf %793 : vector<8x8xf32>
    %795 = math.exp %794 : vector<8x8xf32>
    %cst_410 = arith.constant 1.000000e+00 : f32
    %796 = vector.broadcast %cst_410 : f32 to vector<8x8xf32>
    %797 = arith.addf %796, %795 : vector<8x8xf32>
    %798 = arith.divf %796, %797 : vector<8x8xf32>
    %799 = arith.mulf %793, %798 : vector<8x8xf32>
    %cst_411 = arith.constant 0.000000e+00 : f32
    %800 = vector.broadcast %cst_411 : f32 to vector<4x8xf32>
    %cst_412 = arith.constant 0.000000e+00 : f32
    %801 = vector.broadcast %cst_412 : f32 to vector<4x8xf32>
    %802 = tpu.concatenate %800, %799, %801 in 0 : vector<4x8xf32>, vector<8x8xf32>, vector<4x8xf32> -> vector<16x8xf32>
    %803 = vector.extract_strided_slice %802 {offsets = [0, 0], sizes = [8, 8], strides = [1, 1]} : vector<16x8xf32> to vector<8x8xf32>
    %c0_413 = arith.constant 0 : index
    %c0_414 = arith.constant 0 : index
    %804 = vector.load %arg39[%c0_413, %c0_414] : memref<72x8xf32, #tpu.memory_space<vmem>>, vector<8x8xf32>
    %805 = arith.truncf %803 : vector<8x8xf32> to vector<8x8xbf16>
    %806 = arith.truncf %804 : vector<8x8xf32> to vector<8x8xbf16>
    %cst_415 = arith.constant dense<0.000000e+00> : vector<8x8xf32>
    %807 = tpu.matmul %805, %806, %cst_415 {dimension_numbers = #tpu.dot_dimension_numbers<[1], [0], [0], [1], [0, 0, 1, 1], [], []>} : vector<8x8xbf16>, vector<8x8xbf16>, vector<8x8xf32> -> vector<8x8xf32>
    %808 = vector.extract_strided_slice %802 {offsets = [1, 0], sizes = [8, 8], strides = [1, 1]} : vector<16x8xf32> to vector<8x8xf32>
    %c8_416 = arith.constant 8 : index
    %c0_417 = arith.constant 0 : index
    %809 = vector.load %arg39[%c8_416, %c0_417] : memref<72x8xf32, #tpu.memory_space<vmem>>, vector<8x8xf32>
    %810 = arith.truncf %808 : vector<8x8xf32> to vector<8x8xbf16>
    %811 = arith.truncf %809 : vector<8x8xf32> to vector<8x8xbf16>
    %cst_418 = arith.constant dense<0.000000e+00> : vector<8x8xf32>
    %812 = tpu.matmul %810, %811, %cst_418 {dimension_numbers = #tpu.dot_dimension_numbers<[1], [0], [0], [1], [0, 0, 1, 1], [], []>} : vector<8x8xbf16>, vector<8x8xbf16>, vector<8x8xf32> -> vector<8x8xf32>
    %813 = arith.addf %807, %812 : vector<8x8xf32>
    %814 = vector.extract_strided_slice %802 {offsets = [2, 0], sizes = [8, 8], strides = [1, 1]} : vector<16x8xf32> to vector<8x8xf32>
    %c16_419 = arith.constant 16 : index
    %c0_420 = arith.constant 0 : index
    %815 = vector.load %arg39[%c16_419, %c0_420] : memref<72x8xf32, #tpu.memory_space<vmem>>, vector<8x8xf32>
    %816 = arith.truncf %814 : vector<8x8xf32> to vector<8x8xbf16>
    %817 = arith.truncf %815 : vector<8x8xf32> to vector<8x8xbf16>
    %cst_421 = arith.constant dense<0.000000e+00> : vector<8x8xf32>
    %818 = tpu.matmul %816, %817, %cst_421 {dimension_numbers = #tpu.dot_dimension_numbers<[1], [0], [0], [1], [0, 0, 1, 1], [], []>} : vector<8x8xbf16>, vector<8x8xbf16>, vector<8x8xf32> -> vector<8x8xf32>
    %819 = arith.addf %813, %818 : vector<8x8xf32>
    %820 = vector.extract_strided_slice %802 {offsets = [3, 0], sizes = [8, 8], strides = [1, 1]} : vector<16x8xf32> to vector<8x8xf32>
    %c24_422 = arith.constant 24 : index
    %c0_423 = arith.constant 0 : index
    %821 = vector.load %arg39[%c24_422, %c0_423] : memref<72x8xf32, #tpu.memory_space<vmem>>, vector<8x8xf32>
    %822 = arith.truncf %820 : vector<8x8xf32> to vector<8x8xbf16>
    %823 = arith.truncf %821 : vector<8x8xf32> to vector<8x8xbf16>
    %cst_424 = arith.constant dense<0.000000e+00> : vector<8x8xf32>
    %824 = tpu.matmul %822, %823, %cst_424 {dimension_numbers = #tpu.dot_dimension_numbers<[1], [0], [0], [1], [0, 0, 1, 1], [], []>} : vector<8x8xbf16>, vector<8x8xbf16>, vector<8x8xf32> -> vector<8x8xf32>
    %825 = arith.addf %819, %824 : vector<8x8xf32>
    %826 = vector.extract_strided_slice %802 {offsets = [4, 0], sizes = [8, 8], strides = [1, 1]} : vector<16x8xf32> to vector<8x8xf32>
    %c32_425 = arith.constant 32 : index
    %c0_426 = arith.constant 0 : index
    %827 = vector.load %arg39[%c32_425, %c0_426] : memref<72x8xf32, #tpu.memory_space<vmem>>, vector<8x8xf32>
    %828 = arith.truncf %826 : vector<8x8xf32> to vector<8x8xbf16>
    %829 = arith.truncf %827 : vector<8x8xf32> to vector<8x8xbf16>
    %cst_427 = arith.constant dense<0.000000e+00> : vector<8x8xf32>
    %830 = tpu.matmul %828, %829, %cst_427 {dimension_numbers = #tpu.dot_dimension_numbers<[1], [0], [0], [1], [0, 0, 1, 1], [], []>} : vector<8x8xbf16>, vector<8x8xbf16>, vector<8x8xf32> -> vector<8x8xf32>
    %831 = arith.addf %825, %830 : vector<8x8xf32>
    %832 = vector.extract_strided_slice %802 {offsets = [5, 0], sizes = [8, 8], strides = [1, 1]} : vector<16x8xf32> to vector<8x8xf32>
    %c40_428 = arith.constant 40 : index
    %c0_429 = arith.constant 0 : index
    %833 = vector.load %arg39[%c40_428, %c0_429] : memref<72x8xf32, #tpu.memory_space<vmem>>, vector<8x8xf32>
    %834 = arith.truncf %832 : vector<8x8xf32> to vector<8x8xbf16>
    %835 = arith.truncf %833 : vector<8x8xf32> to vector<8x8xbf16>
    %cst_430 = arith.constant dense<0.000000e+00> : vector<8x8xf32>
    %836 = tpu.matmul %834, %835, %cst_430 {dimension_numbers = #tpu.dot_dimension_numbers<[1], [0], [0], [1], [0, 0, 1, 1], [], []>} : vector<8x8xbf16>, vector<8x8xbf16>, vector<8x8xf32> -> vector<8x8xf32>
    %837 = arith.addf %831, %836 : vector<8x8xf32>
    %838 = vector.extract_strided_slice %802 {offsets = [6, 0], sizes = [8, 8], strides = [1, 1]} : vector<16x8xf32> to vector<8x8xf32>
    %c48_431 = arith.constant 48 : index
    %c0_432 = arith.constant 0 : index
    %839 = vector.load %arg39[%c48_431, %c0_432] : memref<72x8xf32, #tpu.memory_space<vmem>>, vector<8x8xf32>
    %840 = arith.truncf %838 : vector<8x8xf32> to vector<8x8xbf16>
    %841 = arith.truncf %839 : vector<8x8xf32> to vector<8x8xbf16>
    %cst_433 = arith.constant dense<0.000000e+00> : vector<8x8xf32>
    %842 = tpu.matmul %840, %841, %cst_433 {dimension_numbers = #tpu.dot_dimension_numbers<[1], [0], [0], [1], [0, 0, 1, 1], [], []>} : vector<8x8xbf16>, vector<8x8xbf16>, vector<8x8xf32> -> vector<8x8xf32>
    %843 = arith.addf %837, %842 : vector<8x8xf32>
    %844 = vector.extract_strided_slice %802 {offsets = [7, 0], sizes = [8, 8], strides = [1, 1]} : vector<16x8xf32> to vector<8x8xf32>
    %c56_434 = arith.constant 56 : index
    %c0_435 = arith.constant 0 : index
    %845 = vector.load %arg39[%c56_434, %c0_435] : memref<72x8xf32, #tpu.memory_space<vmem>>, vector<8x8xf32>
    %846 = arith.truncf %844 : vector<8x8xf32> to vector<8x8xbf16>
    %847 = arith.truncf %845 : vector<8x8xf32> to vector<8x8xbf16>
    %cst_436 = arith.constant dense<0.000000e+00> : vector<8x8xf32>
    %848 = tpu.matmul %846, %847, %cst_436 {dimension_numbers = #tpu.dot_dimension_numbers<[1], [0], [0], [1], [0, 0, 1, 1], [], []>} : vector<8x8xbf16>, vector<8x8xbf16>, vector<8x8xf32> -> vector<8x8xf32>
    %849 = arith.addf %843, %848 : vector<8x8xf32>
    %850 = vector.extract_strided_slice %802 {offsets = [8, 0], sizes = [8, 8], strides = [1, 1]} : vector<16x8xf32> to vector<8x8xf32>
    %c64_437 = arith.constant 64 : index
    %c0_438 = arith.constant 0 : index
    %851 = vector.load %arg39[%c64_437, %c0_438] : memref<72x8xf32, #tpu.memory_space<vmem>>, vector<8x8xf32>
    %852 = arith.truncf %850 : vector<8x8xf32> to vector<8x8xbf16>
    %853 = arith.truncf %851 : vector<8x8xf32> to vector<8x8xbf16>
    %cst_439 = arith.constant dense<0.000000e+00> : vector<8x8xf32>
    %854 = tpu.matmul %852, %853, %cst_439 {dimension_numbers = #tpu.dot_dimension_numbers<[1], [0], [0], [1], [0, 0, 1, 1], [], []>} : vector<8x8xbf16>, vector<8x8xbf16>, vector<8x8xf32> -> vector<8x8xf32>
    %855 = arith.addf %849, %854 : vector<8x8xf32>
    %c0_440 = arith.constant 0 : index
    %c0_441 = arith.constant 0 : index
    %856 = vector.load %arg40[%c0_440, %c0_441] : memref<1x8xf32, #tpu.memory_space<vmem>>, vector<1x8xf32>
    %857 = vector.broadcast %856 : vector<1x8xf32> to vector<8x8xf32>
    %858 = arith.addf %855, %857 : vector<8x8xf32>
    %cst_442 = arith.constant dense<0.000000e+00> : vector<8xf32>
    %859 = vector.multi_reduction <add>, %858, %cst_442 [0] : vector<8x8xf32> to vector<8xf32>
    %860 = vector.shape_cast %859 : vector<8xf32> to vector<1x8xf32>
    %c0_443 = arith.constant 0 : index
    %c0_444 = arith.constant 0 : index
    %861 = vector.load %arg43[%c0_443, %c0_444] : memref<8x4xf32, #tpu.memory_space<vmem>>, vector<8x4xf32>
    %cst_445 = arith.constant dense<0.000000e+00> : vector<1x4xf32>
    %862 = tpu.matmul %860, %861, %cst_445 {dimension_numbers = #tpu.dot_dimension_numbers<[1], [0], [0], [1], [0, 0, 1, 1], [], []>} : vector<1x8xf32>, vector<8x4xf32>, vector<1x4xf32> -> vector<1x4xf32>
    %cst_446 = arith.constant 6.250000e-02 : f32
    %863 = vector.broadcast %cst_446 : f32 to vector<1x4xf32>
    %864 = arith.mulf %862, %863 : vector<1x4xf32>
    %c0_447 = arith.constant 0 : index
    %c0_448 = arith.constant 0 : index
    %865 = vector.load %arg44[%c0_447, %c0_448] : memref<4x8xf32, #tpu.memory_space<vmem>>, vector<4x8xf32>
    %cst_449 = arith.constant dense<0.000000e+00> : vector<1x8xf32>
    %866 = tpu.matmul %864, %865, %cst_449 {dimension_numbers = #tpu.dot_dimension_numbers<[1], [0], [0], [1], [0, 0, 1, 1], [], []>} : vector<1x4xf32>, vector<4x8xf32>, vector<1x8xf32> -> vector<1x8xf32>
    %867 = vector.broadcast %866 : vector<1x8xf32> to vector<8x8xf32>
    %868 = arith.subf %858, %867 : vector<8x8xf32>
    %869 = arith.mulf %868, %868 : vector<8x8xf32>
    %cst_450 = arith.constant dense<0.000000e+00> : vector<8xf32>
    %870 = vector.multi_reduction <add>, %869, %cst_450 [0] : vector<8x8xf32> to vector<8xf32>
    %871 = vector.shape_cast %870 : vector<8xf32> to vector<1x8xf32>
    %c0_451 = arith.constant 0 : index
    %c0_452 = arith.constant 0 : index
    %872 = vector.load %arg43[%c0_451, %c0_452] : memref<8x4xf32, #tpu.memory_space<vmem>>, vector<8x4xf32>
    %cst_453 = arith.constant dense<0.000000e+00> : vector<1x4xf32>
    %873 = tpu.matmul %871, %872, %cst_453 {dimension_numbers = #tpu.dot_dimension_numbers<[1], [0], [0], [1], [0, 0, 1, 1], [], []>} : vector<1x8xf32>, vector<8x4xf32>, vector<1x4xf32> -> vector<1x4xf32>
    %cst_454 = arith.constant 6.250000e-02 : f32
    %874 = vector.broadcast %cst_454 : f32 to vector<1x4xf32>
    %875 = arith.mulf %873, %874 : vector<1x4xf32>
    %cst_455 = arith.constant 9.99999974E-6 : f32
    %876 = vector.broadcast %cst_455 : f32 to vector<1x4xf32>
    %877 = arith.addf %875, %876 : vector<1x4xf32>
    %878 = math.rsqrt %877 : vector<1x4xf32>
    %c0_456 = arith.constant 0 : index
    %c0_457 = arith.constant 0 : index
    %879 = vector.load %arg44[%c0_456, %c0_457] : memref<4x8xf32, #tpu.memory_space<vmem>>, vector<4x8xf32>
    %cst_458 = arith.constant dense<0.000000e+00> : vector<1x8xf32>
    %880 = tpu.matmul %878, %879, %cst_458 {dimension_numbers = #tpu.dot_dimension_numbers<[1], [0], [0], [1], [0, 0, 1, 1], [], []>} : vector<1x4xf32>, vector<4x8xf32>, vector<1x8xf32> -> vector<1x8xf32>
    %881 = vector.broadcast %880 : vector<1x8xf32> to vector<8x8xf32>
    %882 = arith.mulf %868, %881 : vector<8x8xf32>
    %c0_459 = arith.constant 0 : index
    %c0_460 = arith.constant 0 : index
    %883 = vector.load %arg41[%c0_459, %c0_460] : memref<1x8xf32, #tpu.memory_space<vmem>>, vector<1x8xf32>
    %884 = vector.broadcast %883 : vector<1x8xf32> to vector<8x8xf32>
    %885 = arith.mulf %882, %884 : vector<8x8xf32>
    %c0_461 = arith.constant 0 : index
    %c0_462 = arith.constant 0 : index
    %886 = vector.load %arg42[%c0_461, %c0_462] : memref<1x8xf32, #tpu.memory_space<vmem>>, vector<1x8xf32>
    %887 = vector.broadcast %886 : vector<1x8xf32> to vector<8x8xf32>
    %888 = arith.addf %885, %887 : vector<8x8xf32>
    %889 = arith.negf %888 : vector<8x8xf32>
    %890 = math.exp %889 : vector<8x8xf32>
    %cst_463 = arith.constant 1.000000e+00 : f32
    %891 = vector.broadcast %cst_463 : f32 to vector<8x8xf32>
    %892 = arith.addf %891, %890 : vector<8x8xf32>
    %893 = arith.divf %891, %892 : vector<8x8xf32>
    %894 = arith.mulf %888, %893 : vector<8x8xf32>
    %895 = arith.addf %894, %704 : vector<8x8xf32>
    %cst_464 = arith.constant dense<0.000000e+00> : vector<8xf32>
    %896 = vector.multi_reduction <add>, %895, %cst_464 [0] : vector<8x8xf32> to vector<8xf32>
    %897 = vector.shape_cast %896 : vector<8xf32> to vector<1x8xf32>
    %cst_465 = arith.constant dense<0.000000e+00> : vector<1xf32>
    %898 = vector.multi_reduction <add>, %897, %cst_465 [1] : vector<1x8xf32> to vector<1xf32>
    %899 = vector.shape_cast %898 : vector<1xf32> to vector<1x1xf32>
    %cst_466 = arith.constant 1.562500e-02 : f32
    %900 = vector.broadcast %cst_466 : f32 to vector<1x1xf32>
    %901 = arith.mulf %899, %900 : vector<1x1xf32>
    %902 = vector.broadcast %901 : vector<1x1xf32> to vector<8x8xf32>
    %903 = arith.subf %895, %902 : vector<8x8xf32>
    %904 = arith.mulf %903, %903 : vector<8x8xf32>
    %cst_467 = arith.constant dense<0.000000e+00> : vector<8xf32>
    %905 = vector.multi_reduction <add>, %904, %cst_467 [0] : vector<8x8xf32> to vector<8xf32>
    %906 = vector.shape_cast %905 : vector<8xf32> to vector<1x8xf32>
    %cst_468 = arith.constant dense<0.000000e+00> : vector<1xf32>
    %907 = vector.multi_reduction <add>, %906, %cst_468 [1] : vector<1x8xf32> to vector<1xf32>
    %908 = vector.shape_cast %907 : vector<1xf32> to vector<1x1xf32>
    %cst_469 = arith.constant 1.562500e-02 : f32
    %909 = vector.broadcast %cst_469 : f32 to vector<1x1xf32>
    %910 = arith.mulf %908, %909 : vector<1x1xf32>
    %cst_470 = arith.constant 9.99999974E-6 : f32
    %911 = vector.broadcast %cst_470 : f32 to vector<1x1xf32>
    %912 = arith.addf %910, %911 : vector<1x1xf32>
    %913 = math.rsqrt %912 : vector<1x1xf32>
    %914 = vector.broadcast %913 : vector<1x1xf32> to vector<8x8xf32>
    %915 = arith.mulf %903, %914 : vector<8x8xf32>
    %c0_471 = arith.constant 0 : index
    %c0_472 = arith.constant 0 : index
    %916 = vector.load %arg45[%c0_471, %c0_472] : memref<1x8xf32, #tpu.memory_space<vmem>>, vector<1x8xf32>
    %917 = vector.broadcast %916 : vector<1x8xf32> to vector<8x8xf32>
    %918 = arith.mulf %915, %917 : vector<8x8xf32>
    %c0_473 = arith.constant 0 : index
    %c0_474 = arith.constant 0 : index
    %919 = vector.load %arg46[%c0_473, %c0_474] : memref<1x8xf32, #tpu.memory_space<vmem>>, vector<1x8xf32>
    %920 = vector.broadcast %919 : vector<1x8xf32> to vector<8x8xf32>
    %921 = arith.addf %918, %920 : vector<8x8xf32>
    %922 = arith.truncf %921 : vector<8x8xf32> to vector<8x8xbf16>
    %c0_475 = arith.constant 0 : index
    %c0_476 = arith.constant 0 : index
    %923 = vector.load %arg47[%c0_475, %c0_476] : memref<8x48xf32, #tpu.memory_space<vmem>>, vector<8x48xf32>
    %924 = arith.truncf %923 : vector<8x48xf32> to vector<8x48xbf16>
    %cst_477 = arith.constant dense<0.000000e+00> : vector<8x48xf32>
    %925 = tpu.matmul %922, %924, %cst_477 {dimension_numbers = #tpu.dot_dimension_numbers<[1], [0], [0], [1], [0, 0, 1, 1], [], []>} : vector<8x8xbf16>, vector<8x48xbf16>, vector<8x48xf32> -> vector<8x48xf32>
    %cst_478 = arith.constant 0.000000e+00 : f32
    %926 = vector.broadcast %cst_478 : f32 to vector<8x8xf32>
    %927 = vector.extract_strided_slice %925 {offsets = [0, 0], sizes = [8, 8], strides = [1, 1]} : vector<8x48xf32> to vector<8x8xf32>
    %cst_479 = arith.constant 0.353553385 : f32
    %928 = vector.broadcast %cst_479 : f32 to vector<8x8xf32>
    %929 = arith.mulf %927, %928 : vector<8x8xf32>
    %930 = vector.extract_strided_slice %925 {offsets = [0, 16], sizes = [8, 8], strides = [1, 1]} : vector<8x48xf32> to vector<8x8xf32>
    %931 = vector.extract_strided_slice %925 {offsets = [0, 32], sizes = [8, 8], strides = [1, 1]} : vector<8x48xf32> to vector<8x8xf32>
    %932 = arith.truncf %929 : vector<8x8xf32> to vector<8x8xbf16>
    %933 = arith.truncf %930 : vector<8x8xf32> to vector<8x8xbf16>
    %cst_480 = arith.constant dense<0.000000e+00> : vector<8x8xf32>
    %934 = tpu.matmul %932, %933, %cst_480 {dimension_numbers = #tpu.dot_dimension_numbers<[1], [1], [0], [0], [0, 0, 1, 0], [], []>} : vector<8x8xbf16>, vector<8x8xbf16>, vector<8x8xf32> -> vector<8x8xf32>
    %cst_481 = arith.constant dense<0xFF800000> : vector<8xf32>
    %935 = vector.multi_reduction <maximumf>, %934, %cst_481 [1] : vector<8x8xf32> to vector<8xf32>
    %936 = vector.shape_cast %935 : vector<8xf32> to vector<8x1xf32>
    %937 = vector.broadcast %936 : vector<8x1xf32> to vector<8x8xf32>
    %938 = arith.subf %934, %937 : vector<8x8xf32>
    %939 = math.exp %938 : vector<8x8xf32>
    %cst_482 = arith.constant dense<0.000000e+00> : vector<8xf32>
    %940 = vector.multi_reduction <add>, %939, %cst_482 [1] : vector<8x8xf32> to vector<8xf32>
    %941 = vector.shape_cast %940 : vector<8xf32> to vector<8x1xf32>
    %942 = tpu.reciprocal %941 {approx = true} : vector<8x1xf32> -> vector<8x1xf32>
    %943 = vector.broadcast %942 : vector<8x1xf32> to vector<8x8xf32>
    %944 = arith.mulf %939, %943 : vector<8x8xf32>
    %945 = arith.truncf %944 : vector<8x8xf32> to vector<8x8xbf16>
    %946 = arith.truncf %931 : vector<8x8xf32> to vector<8x8xbf16>
    %cst_483 = arith.constant dense<0.000000e+00> : vector<8x8xf32>
    %947 = tpu.matmul %945, %946, %cst_483 {dimension_numbers = #tpu.dot_dimension_numbers<[1], [0], [0], [1], [0, 0, 1, 1], [], []>} : vector<8x8xbf16>, vector<8x8xbf16>, vector<8x8xf32> -> vector<8x8xf32>
    %c0_484 = arith.constant 0 : index
    %c0_485 = arith.constant 0 : index
    %948 = vector.load %arg48[%c0_484, %c0_485] : memref<16x8xf32, #tpu.memory_space<vmem>>, vector<8x8xf32>
    %949 = arith.truncf %947 : vector<8x8xf32> to vector<8x8xbf16>
    %950 = arith.truncf %948 : vector<8x8xf32> to vector<8x8xbf16>
    %cst_486 = arith.constant dense<0.000000e+00> : vector<8x8xf32>
    %951 = tpu.matmul %949, %950, %cst_486 {dimension_numbers = #tpu.dot_dimension_numbers<[1], [0], [0], [1], [0, 0, 1, 1], [], []>} : vector<8x8xbf16>, vector<8x8xbf16>, vector<8x8xf32> -> vector<8x8xf32>
    %952 = arith.addf %926, %951 : vector<8x8xf32>
    %953 = vector.extract_strided_slice %925 {offsets = [0, 8], sizes = [8, 8], strides = [1, 1]} : vector<8x48xf32> to vector<8x8xf32>
    %cst_487 = arith.constant 0.353553385 : f32
    %954 = vector.broadcast %cst_487 : f32 to vector<8x8xf32>
    %955 = arith.mulf %953, %954 : vector<8x8xf32>
    %956 = vector.extract_strided_slice %925 {offsets = [0, 24], sizes = [8, 8], strides = [1, 1]} : vector<8x48xf32> to vector<8x8xf32>
    %957 = vector.extract_strided_slice %925 {offsets = [0, 40], sizes = [8, 8], strides = [1, 1]} : vector<8x48xf32> to vector<8x8xf32>
    %958 = arith.truncf %955 : vector<8x8xf32> to vector<8x8xbf16>
    %959 = arith.truncf %956 : vector<8x8xf32> to vector<8x8xbf16>
    %cst_488 = arith.constant dense<0.000000e+00> : vector<8x8xf32>
    %960 = tpu.matmul %958, %959, %cst_488 {dimension_numbers = #tpu.dot_dimension_numbers<[1], [1], [0], [0], [0, 0, 1, 0], [], []>} : vector<8x8xbf16>, vector<8x8xbf16>, vector<8x8xf32> -> vector<8x8xf32>
    %cst_489 = arith.constant dense<0xFF800000> : vector<8xf32>
    %961 = vector.multi_reduction <maximumf>, %960, %cst_489 [1] : vector<8x8xf32> to vector<8xf32>
    %962 = vector.shape_cast %961 : vector<8xf32> to vector<8x1xf32>
    %963 = vector.broadcast %962 : vector<8x1xf32> to vector<8x8xf32>
    %964 = arith.subf %960, %963 : vector<8x8xf32>
    %965 = math.exp %964 : vector<8x8xf32>
    %cst_490 = arith.constant dense<0.000000e+00> : vector<8xf32>
    %966 = vector.multi_reduction <add>, %965, %cst_490 [1] : vector<8x8xf32> to vector<8xf32>
    %967 = vector.shape_cast %966 : vector<8xf32> to vector<8x1xf32>
    %968 = tpu.reciprocal %967 {approx = true} : vector<8x1xf32> -> vector<8x1xf32>
    %969 = vector.broadcast %968 : vector<8x1xf32> to vector<8x8xf32>
    %970 = arith.mulf %965, %969 : vector<8x8xf32>
    %971 = arith.truncf %970 : vector<8x8xf32> to vector<8x8xbf16>
    %972 = arith.truncf %957 : vector<8x8xf32> to vector<8x8xbf16>
    %cst_491 = arith.constant dense<0.000000e+00> : vector<8x8xf32>
    %973 = tpu.matmul %971, %972, %cst_491 {dimension_numbers = #tpu.dot_dimension_numbers<[1], [0], [0], [1], [0, 0, 1, 1], [], []>} : vector<8x8xbf16>, vector<8x8xbf16>, vector<8x8xf32> -> vector<8x8xf32>
    %c8_492 = arith.constant 8 : index
    %c0_493 = arith.constant 0 : index
    %974 = vector.load %arg48[%c8_492, %c0_493] : memref<16x8xf32, #tpu.memory_space<vmem>>, vector<8x8xf32>
    %975 = arith.truncf %973 : vector<8x8xf32> to vector<8x8xbf16>
    %976 = arith.truncf %974 : vector<8x8xf32> to vector<8x8xbf16>
    %cst_494 = arith.constant dense<0.000000e+00> : vector<8x8xf32>
    %977 = tpu.matmul %975, %976, %cst_494 {dimension_numbers = #tpu.dot_dimension_numbers<[1], [0], [0], [1], [0, 0, 1, 1], [], []>} : vector<8x8xbf16>, vector<8x8xbf16>, vector<8x8xf32> -> vector<8x8xf32>
    %978 = arith.addf %952, %977 : vector<8x8xf32>
    %979 = arith.addf %895, %978 : vector<8x8xf32>
    %c0_495 = arith.constant 0 : index
    %c0_496 = arith.constant 0 : index
    %980 = vector.load %arg49[%c0_495, %c0_496] : memref<1x8xf32, #tpu.memory_space<vmem>>, vector<1x8xf32>
    %981 = vector.broadcast %980 : vector<1x8xf32> to vector<8x8xf32>
    %982 = arith.addf %979, %981 : vector<8x8xf32>
    %983 = arith.truncf %982 : vector<8x8xf32> to vector<8x8xbf16>
    %c0_497 = arith.constant 0 : index
    %c0_498 = arith.constant 0 : index
    %984 = vector.load %arg50[%c0_497, %c0_498] : memref<8x16xf32, #tpu.memory_space<vmem>>, vector<8x16xf32>
    %985 = arith.truncf %984 : vector<8x16xf32> to vector<8x16xbf16>
    %cst_499 = arith.constant dense<0.000000e+00> : vector<8x16xf32>
    %986 = tpu.matmul %983, %985, %cst_499 {dimension_numbers = #tpu.dot_dimension_numbers<[1], [0], [0], [1], [0, 0, 1, 1], [], []>} : vector<8x8xbf16>, vector<8x16xbf16>, vector<8x16xf32> -> vector<8x16xf32>
    %c0_500 = arith.constant 0 : index
    %c0_501 = arith.constant 0 : index
    %987 = vector.load %arg51[%c0_500, %c0_501] : memref<1x16xf32, #tpu.memory_space<vmem>>, vector<1x16xf32>
    %988 = vector.broadcast %987 : vector<1x16xf32> to vector<8x16xf32>
    %989 = arith.addf %986, %988 : vector<8x16xf32>
    %990 = tpu.iota {dimensions = array<i32: 0>} : vector<16x16xi32>
    %991 = tpu.iota {dimensions = array<i32: 1>} : vector<16x16xi32>
    %992 = arith.cmpi eq, %990, %991 : vector<16x16xi32>
    %993 = arith.extui %992 : vector<16x16xi1> to vector<16x16xi32>
    %994 = arith.sitofp %993 : vector<16x16xi32> to vector<16x16xf32>
    %cst_502 = arith.constant dense<0.000000e+00> : vector<16x8xf32>
    %995 = tpu.matmul %994, %989, %cst_502 {dimension_numbers = #tpu.dot_dimension_numbers<[1], [1], [0], [0], [0, 0, 1, 0], [], []>} : vector<16x16xf32>, vector<8x16xf32>, vector<16x8xf32> -> vector<16x8xf32>
    %c0_503 = arith.constant 0 : index
    %c0_504 = arith.constant 0 : index
    %c0_505 = arith.constant 0 : index
    %996 = vector.load %arg52[%c0_503, %c0_504, %c0_505] : memref<1x16x8xf32, #tpu.memory_space<vmem>>, vector<1x16x8xf32>
    %997 = vector.shape_cast %996 : vector<1x16x8xf32> to vector<16x8xf32>
    %998 = vector.shape_cast %995 : vector<16x8xf32> to vector<1x16x8xf32>
    tpu.vector_store %arg52[%c0_503, %c0_504, %c0_505], %998 {strides = array<i32>} : memref<1x16x8xf32, #tpu.memory_space<vmem>>, vector<1x16x8xf32>,
    return
  }
  func.func @transform_0(%arg0: i32) -> (i32, i32, i32) {
    %c0_i32 = arith.constant 0 : i32
    %c0_i32_0 = arith.constant 0 : i32
    %c0_i32_1 = arith.constant 0 : i32
    return %arg0, %c0_i32, %c0_i32_0 : i32, i32, i32
  }
  func.func @transform_1(%arg0: i32) -> (i32, i32) {
    %c0_i32 = arith.constant 0 : i32
    %c0_i32_0 = arith.constant 0 : i32
    %c0_i32_1 = arith.constant 0 : i32
    return %c0_i32, %c0_i32_0 : i32, i32
  }
  func.func @transform_2(%arg0: i32) -> (i32, i32) {
    %c0_i32 = arith.constant 0 : i32
    %c0_i32_0 = arith.constant 0 : i32
    %c0_i32_1 = arith.constant 0 : i32
    return %c0_i32, %c0_i32_0 : i32, i32
  }
  func.func @transform_3(%arg0: i32) -> (i32, i32) {
    %c0_i32 = arith.constant 0 : i32
    %c0_i32_0 = arith.constant 0 : i32
    %c0_i32_1 = arith.constant 0 : i32
    return %c0_i32, %c0_i32_0 : i32, i32
  }
  func.func @transform_4(%arg0: i32) -> (i32, i32) {
    %c0_i32 = arith.constant 0 : i32
    %c0_i32_0 = arith.constant 0 : i32
    %c0_i32_1 = arith.constant 0 : i32
    return %c0_i32, %c0_i32_0 : i32, i32
  }
  func.func @transform_5(%arg0: i32) -> (i32, i32) {
    %c0_i32 = arith.constant 0 : i32
    %c0_i32_0 = arith.constant 0 : i32
    %c0_i32_1 = arith.constant 0 : i32
    return %c0_i32, %c0_i32_0 : i32, i32
  }
  func.func @transform_6(%arg0: i32) -> (i32, i32) {
    %c0_i32 = arith.constant 0 : i32
    %c0_i32_0 = arith.constant 0 : i32
    %c0_i32_1 = arith.constant 0 : i32
    return %c0_i32, %c0_i32_0 : i32, i32
  }
  func.func @transform_7(%arg0: i32) -> (i32, i32) {
    %c0_i32 = arith.constant 0 : i32
    %c0_i32_0 = arith.constant 0 : i32
    %c0_i32_1 = arith.constant 0 : i32
    return %c0_i32, %c0_i32_0 : i32, i32
  }
  func.func @transform_8(%arg0: i32) -> (i32, i32) {
    %c0_i32 = arith.constant 0 : i32
    %c0_i32_0 = arith.constant 0 : i32
    %c0_i32_1 = arith.constant 0 : i32
    return %c0_i32, %c0_i32_0 : i32, i32
  }
  func.func @transform_9(%arg0: i32) -> (i32, i32) {
    %c0_i32 = arith.constant 0 : i32
    %c0_i32_0 = arith.constant 0 : i32
    %c0_i32_1 = arith.constant 0 : i32
    return %c0_i32, %c0_i32_0 : i32, i32
  }
  func.func @transform_10(%arg0: i32) -> (i32, i32) {
    %c0_i32 = arith.constant 0 : i32
    %c0_i32_0 = arith.constant 0 : i32
    %c0_i32_1 = arith.constant 0 : i32
    return %c0_i32, %c0_i32_0 : i32, i32
  }
  func.func @transform_11(%arg0: i32) -> (i32, i32) {
    %c0_i32 = arith.constant 0 : i32
    %c0_i32_0 = arith.constant 0 : i32
    %c0_i32_1 = arith.constant 0 : i32
    return %c0_i32, %c0_i32_0 : i32, i32
  }
  func.func @transform_12(%arg0: i32) -> (i32, i32) {
    %c0_i32 = arith.constant 0 : i32
    %c0_i32_0 = arith.constant 0 : i32
    %c0_i32_1 = arith.constant 0 : i32
    return %c0_i32, %c0_i32_0 : i32, i32
  }
  func.func @transform_13(%arg0: i32) -> (i32, i32) {
    %c0_i32 = arith.constant 0 : i32
    %c0_i32_0 = arith.constant 0 : i32
    %c0_i32_1 = arith.constant 0 : i32
    return %c0_i32, %c0_i32_0 : i32, i32
  }
  func.func @transform_14(%arg0: i32) -> (i32, i32) {
    %c0_i32 = arith.constant 0 : i32
    %c0_i32_0 = arith.constant 0 : i32
    %c0_i32_1 = arith.constant 0 : i32
    return %c0_i32, %c0_i32_0 : i32, i32
  }
  func.func @transform_15(%arg0: i32) -> (i32, i32) {
    %c0_i32 = arith.constant 0 : i32
    %c0_i32_0 = arith.constant 0 : i32
    %c0_i32_1 = arith.constant 0 : i32
    return %c0_i32, %c0_i32_0 : i32, i32
  }
  func.func @transform_16(%arg0: i32) -> (i32, i32) {
    %c0_i32 = arith.constant 0 : i32
    %c0_i32_0 = arith.constant 0 : i32
    %c0_i32_1 = arith.constant 0 : i32
    return %c0_i32, %c0_i32_0 : i32, i32
  }
  func.func @transform_17(%arg0: i32) -> (i32, i32) {
    %c0_i32 = arith.constant 0 : i32
    %c0_i32_0 = arith.constant 0 : i32
    %c0_i32_1 = arith.constant 0 : i32
    return %c0_i32, %c0_i32_0 : i32, i32
  }
  func.func @transform_18(%arg0: i32) -> (i32, i32) {
    %c0_i32 = arith.constant 0 : i32
    %c0_i32_0 = arith.constant 0 : i32
    %c0_i32_1 = arith.constant 0 : i32
    return %c0_i32, %c0_i32_0 : i32, i32
  }
  func.func @transform_19(%arg0: i32) -> (i32, i32) {
    %c0_i32 = arith.constant 0 : i32
    %c0_i32_0 = arith.constant 0 : i32
    %c0_i32_1 = arith.constant 0 : i32
    return %c0_i32, %c0_i32_0 : i32, i32
  }
  func.func @transform_20(%arg0: i32) -> (i32, i32) {
    %c0_i32 = arith.constant 0 : i32
    %c0_i32_0 = arith.constant 0 : i32
    %c0_i32_1 = arith.constant 0 : i32
    return %c0_i32, %c0_i32_0 : i32, i32
  }
  func.func @transform_21(%arg0: i32) -> (i32, i32) {
    %c0_i32 = arith.constant 0 : i32
    %c0_i32_0 = arith.constant 0 : i32
    %c0_i32_1 = arith.constant 0 : i32
    return %c0_i32, %c0_i32_0 : i32, i32
  }
  func.func @transform_22(%arg0: i32) -> (i32, i32) {
    %c0_i32 = arith.constant 0 : i32
    %c0_i32_0 = arith.constant 0 : i32
    %c0_i32_1 = arith.constant 0 : i32
    return %c0_i32, %c0_i32_0 : i32, i32
  }
  func.func @transform_23(%arg0: i32) -> (i32, i32) {
    %c0_i32 = arith.constant 0 : i32
    %c0_i32_0 = arith.constant 0 : i32
    %c0_i32_1 = arith.constant 0 : i32
    return %c0_i32, %c0_i32_0 : i32, i32
  }
  func.func @transform_24(%arg0: i32) -> (i32, i32) {
    %c0_i32 = arith.constant 0 : i32
    %c0_i32_0 = arith.constant 0 : i32
    %c0_i32_1 = arith.constant 0 : i32
    return %c0_i32, %c0_i32_0 : i32, i32
  }
  func.func @transform_25(%arg0: i32) -> (i32, i32) {
    %c0_i32 = arith.constant 0 : i32
    %c0_i32_0 = arith.constant 0 : i32
    %c0_i32_1 = arith.constant 0 : i32
    return %c0_i32, %c0_i32_0 : i32, i32
  }
  func.func @transform_26(%arg0: i32) -> (i32, i32) {
    %c0_i32 = arith.constant 0 : i32
    %c0_i32_0 = arith.constant 0 : i32
    %c0_i32_1 = arith.constant 0 : i32
    return %c0_i32, %c0_i32_0 : i32, i32
  }
  func.func @transform_27(%arg0: i32) -> (i32, i32) {
    %c0_i32 = arith.constant 0 : i32
    %c0_i32_0 = arith.constant 0 : i32
    %c0_i32_1 = arith.constant 0 : i32
    return %c0_i32, %c0_i32_0 : i32, i32
  }
  func.func @transform_28(%arg0: i32) -> (i32, i32) {
    %c0_i32 = arith.constant 0 : i32
    %c0_i32_0 = arith.constant 0 : i32
    %c0_i32_1 = arith.constant 0 : i32
    return %c0_i32, %c0_i32_0 : i32, i32
  }
  func.func @transform_29(%arg0: i32) -> (i32, i32) {
    %c0_i32 = arith.constant 0 : i32
    %c0_i32_0 = arith.constant 0 : i32
    %c0_i32_1 = arith.constant 0 : i32
    return %c0_i32, %c0_i32_0 : i32, i32
  }
  func.func @transform_30(%arg0: i32) -> (i32, i32) {
    %c0_i32 = arith.constant 0 : i32
    %c0_i32_0 = arith.constant 0 : i32
    %c0_i32_1 = arith.constant 0 : i32
    return %c0_i32, %c0_i32_0 : i32, i32
  }
  func.func @transform_31(%arg0: i32) -> (i32, i32) {
    %c0_i32 = arith.constant 0 : i32
    %c0_i32_0 = arith.constant 0 : i32
    %c0_i32_1 = arith.constant 0 : i32
    return %c0_i32, %c0_i32_0 : i32, i32
  }
  func.func @transform_32(%arg0: i32) -> (i32, i32) {
    %c0_i32 = arith.constant 0 : i32
    %c0_i32_0 = arith.constant 0 : i32
    %c0_i32_1 = arith.constant 0 : i32
    return %c0_i32, %c0_i32_0 : i32, i32
  }
  func.func @transform_33(%arg0: i32) -> (i32, i32) {
    %c0_i32 = arith.constant 0 : i32
    %c0_i32_0 = arith.constant 0 : i32
    %c0_i32_1 = arith.constant 0 : i32
    return %c0_i32, %c0_i32_0 : i32, i32
  }
  func.func @transform_34(%arg0: i32) -> (i32, i32) {
    %c0_i32 = arith.constant 0 : i32
    %c0_i32_0 = arith.constant 0 : i32
    %c0_i32_1 = arith.constant 0 : i32
    return %c0_i32, %c0_i32_0 : i32, i32
  }
  func.func @transform_35(%arg0: i32) -> (i32, i32) {
    %c0_i32 = arith.constant 0 : i32
    %c0_i32_0 = arith.constant 0 : i32
    %c0_i32_1 = arith.constant 0 : i32
    return %c0_i32, %c0_i32_0 : i32, i32
  }
  func.func @transform_36(%arg0: i32) -> (i32, i32) {
    %c0_i32 = arith.constant 0 : i32
    %c0_i32_0 = arith.constant 0 : i32
    %c0_i32_1 = arith.constant 0 : i32
    return %c0_i32, %c0_i32_0 : i32, i32
  }
  func.func @transform_37(%arg0: i32) -> (i32, i32) {
    %c0_i32 = arith.constant 0 : i32
    %c0_i32_0 = arith.constant 0 : i32
    %c0_i32_1 = arith.constant 0 : i32
    return %c0_i32, %c0_i32_0 : i32, i32
  }
  func.func @transform_38(%arg0: i32) -> (i32, i32) {
    %c0_i32 = arith.constant 0 : i32
    %c0_i32_0 = arith.constant 0 : i32
    %c0_i32_1 = arith.constant 0 : i32
    return %c0_i32, %c0_i32_0 : i32, i32
  }
  func.func @transform_39(%arg0: i32) -> (i32, i32) {
    %c0_i32 = arith.constant 0 : i32
    %c0_i32_0 = arith.constant 0 : i32
    %c0_i32_1 = arith.constant 0 : i32
    return %c0_i32, %c0_i32_0 : i32, i32
  }
  func.func @transform_40(%arg0: i32) -> (i32, i32) {
    %c0_i32 = arith.constant 0 : i32
    %c0_i32_0 = arith.constant 0 : i32
    %c0_i32_1 = arith.constant 0 : i32
    return %c0_i32, %c0_i32_0 : i32, i32
  }
  func.func @transform_41(%arg0: i32) -> (i32, i32) {
    %c0_i32 = arith.constant 0 : i32
    %c0_i32_0 = arith.constant 0 : i32
    %c0_i32_1 = arith.constant 0 : i32
    return %c0_i32, %c0_i32_0 : i32, i32
  }
  func.func @transform_42(%arg0: i32) -> (i32, i32) {
    %c0_i32 = arith.constant 0 : i32
    %c0_i32_0 = arith.constant 0 : i32
    %c0_i32_1 = arith.constant 0 : i32
    return %c0_i32, %c0_i32_0 : i32, i32
  }
  func.func @transform_43(%arg0: i32) -> (i32, i32) {
    %c0_i32 = arith.constant 0 : i32
    %c0_i32_0 = arith.constant 0 : i32
    %c0_i32_1 = arith.constant 0 : i32
    return %c0_i32, %c0_i32_0 : i32, i32
  }
  func.func @transform_44(%arg0: i32) -> (i32, i32) {
    %c0_i32 = arith.constant 0 : i32
    %c0_i32_0 = arith.constant 0 : i32
    %c0_i32_1 = arith.constant 0 : i32
    return %c0_i32, %c0_i32_0 : i32, i32
  }
  func.func @transform_45(%arg0: i32) -> (i32, i32) {
    %c0_i32 = arith.constant 0 : i32
    %c0_i32_0 = arith.constant 0 : i32
    %c0_i32_1 = arith.constant 0 : i32
    return %c0_i32, %c0_i32_0 : i32, i32
  }
  func.func @transform_46(%arg0: i32) -> (i32, i32) {
    %c0_i32 = arith.constant 0 : i32
    %c0_i32_0 = arith.constant 0 : i32
    %c0_i32_1 = arith.constant 0 : i32
    return %c0_i32, %c0_i32_0 : i32, i32
  }
  func.func @transform_47(%arg0: i32) -> (i32, i32) {
    %c0_i32 = arith.constant 0 : i32
    %c0_i32_0 = arith.constant 0 : i32
    %c0_i32_1 = arith.constant 0 : i32
    return %c0_i32, %c0_i32_0 : i32, i32
  }
  func.func @transform_48(%arg0: i32) -> (i32, i32) {
    %c0_i32 = arith.constant 0 : i32
    %c0_i32_0 = arith.constant 0 : i32
    %c0_i32_1 = arith.constant 0 : i32
    return %c0_i32, %c0_i32_0 : i32, i32
  }
  func.func @transform_49(%arg0: i32) -> (i32, i32) {
    %c0_i32 = arith.constant 0 : i32
    %c0_i32_0 = arith.constant 0 : i32
    %c0_i32_1 = arith.constant 0 : i32
    return %c0_i32, %c0_i32_0 : i32, i32
  }
  func.func @transform_50(%arg0: i32) -> (i32, i32) {
    %c0_i32 = arith.constant 0 : i32
    %c0_i32_0 = arith.constant 0 : i32
    %c0_i32_1 = arith.constant 0 : i32
    return %c0_i32, %c0_i32_0 : i32, i32
  }
  func.func @transform_51(%arg0: i32) -> (i32, i32, i32) {
    %c0_i32 = arith.constant 0 : i32
    %c0_i32_0 = arith.constant 0 : i32
    %c0_i32_1 = arith.constant 0 : i32
    return %arg0, %c0_i32, %c0_i32_0 : i32, i32, i32
  }
}

</mosaic_0001>

<bundles_post_ra>
// kernel: encoder_forward.1
= control target key start
LH: loop header
LB: loop body
LE: loop exit
PB: predicated region body
PF: predicated region fallthrough
CT: control target
= control target key end

     0   :  { %s6241_s6 = smov 1   ;;  %s6242_s10 = smov 2   ;;  %s7209_s0 = inlined_call_operand.smem [shape: u32[52], index: -1, kind: input, shape index: {}] }
   0x1   :  { %s6307_s5 = sld [smem:[%s7209_s0]]   ;;  %s6243_s14 = smov 3  }
   0x2   :  { %s6312_s9 = sld [smem:[%s7209_s0 + %s6241_s6]]   ;;  %s6244_s18 = smov 4  }
   0x3   :  { %s6317_s13 = sld [smem:[%s7209_s0 + %s6242_s10]]   ;;  %s6245_s22 = smov 5  }
   0x4   :  { %s6322_s17 = sld [smem:[%s7209_s0 + %s6243_s14]]   ;;  %s6246_s26 = smov 6  }
   0x5   :  { %s6327_s21 = sld [smem:[%s7209_s0 + %s6244_s18]]   ;;  %s6247_s30 = smov 7  }
   0x6   :  { %s6332_s25 = sld [smem:[%s7209_s0 + %s6245_s22]]   ;;  %s6248_s4 = smov 8  }
   0x7   :  { %s6337_s29 = sld [smem:[%s7209_s0 + %s6246_s26]]   ;;  %s6249_s10 = smov 9  }
   0x8   :  { %s6342_s3 = sld [smem:[%s7209_s0 + %s6247_s30]]   ;;  %s6250_s15 = smov 10  }
   0x9   :  { %s6347_s8 = sld [smem:[%s7209_s0 + %s6248_s4]]   ;;  %s6251_s20 = smov 11  }
   0xa   :  { %s6352_s14 = sld [smem:[%s7209_s0 + %s6249_s10]]   ;;  %s6252_s26 = smov 12  }
   0xb   :  { %s6357_s19 = sld [smem:[%s7209_s0 + %s6250_s15]]   ;;  %s6253_s1 = smov 13  }
   0xc   :  { %s6362_s24 = sld [smem:[%s7209_s0 + %s6251_s20]]   ;;  %s6254_s7 = smov 14  }
   0xd   :  { %s6367_s30 = sld [smem:[%s7209_s0 + %s6252_s26]]   ;;  %s6255_s15 = smov 15  }
   0xe   :  { %s6372_s6 = sld [smem:[%s7209_s0 + %s6253_s1]]   ;;  %s6256_s22 = smov 16  }
   0xf   :  { %s6377_s12 = sld [smem:[%s7209_s0 + %s6254_s7]]   ;;  %s6257_s28 = smov 17  }
  0x10   :  { %s6382_s20 = sld [smem:[%s7209_s0 + %s6255_s15]]   ;;  %s6258_s7 = smov 18  }
  0x11   :  { %s6387_s27 = sld [smem:[%s7209_s0 + %s6256_s22]]   ;;  %s6259_s15 = smov 19  }
  0x12   :  { %s6392_s4 = sld [smem:[%s7209_s0 + %s6257_s28]]   ;;  %s6260_s22 = smov 20  }
  0x13   :  { %7226 = sst [smem:[#allocation5_spill]] %s6367_s30  ;;  %s6261_s28 = smov 21  }
  0x14   :  { %7227 = sst [smem:[#allocation6_spill]] %s6372_s6 }
  0x15   :  { %7228 = sst [smem:[#allocation7_spill]] %s6377_s12 }
  0x16   :  { %7229 = sst [smem:[#allocation8_spill]] %s6382_s20 }
  0x17   :  { %7230 = sst [smem:[#allocation9_spill]] %s6387_s27 }
  0x18   :  { %s6397_s12 = sld [smem:[%s7209_s0 + %s6258_s7]]   ;;  %s6262_s7 = smov 22  }
  0x19   :  { %s6402_s20 = sld [smem:[%s7209_s0 + %s6259_s15]]   ;;  %s6263_s15 = smov 23  }
  0x1a   :  { %s6407_s27 = sld [smem:[%s7209_s0 + %s6260_s22]]   ;;  %s6264_s22 = smov 24  }
  0x1b   :  { %s6412_s6 = sld [smem:[%s7209_s0 + %s6261_s28]]   ;;  %s6265_s28 = smov 25  }
  0x1c   :  { %s6417_s30 = sld [smem:[%s7209_s0 + %s6262_s7]]   ;;  %s6266_s7 = smov 26  }
  0x1f   :  { %7231 = sst [smem:[#allocation10_spill]] %s6402_s20 }
  0x20   :  { %7232 = sst [smem:[#allocation11_spill]] %s6407_s27 }
  0x21   :  { %7233 = sst [smem:[#allocation12_spill]] %s6412_s6 }
  0x22   :  { %7234 = sst [smem:[#allocation13_spill]] %s6417_s30 }
  0x23   :  { %s6422_s20 = sld [smem:[%s7209_s0 + %s6263_s15]]   ;;  %s6267_s15 = smov 27  }
  0x24   :  { %s6427_s27 = sld [smem:[%s7209_s0 + %s6264_s22]]   ;;  %s6268_s22 = smov 28  }
  0x25   :  { %s6432_s6 = sld [smem:[%s7209_s0 + %s6265_s28]]   ;;  %s6269_s28 = smov 29  }
  0x26   :  { %s6437_s30 = sld [smem:[%s7209_s0 + %s6266_s7]]   ;;  %s6270_s7 = smov 30  }
  0x29   :  { %7235 = sst [smem:[#allocation14_spill]] %s6422_s20 }
  0x2a   :  { %7236 = sst [smem:[#allocation15_spill]] %s6427_s27 }
  0x2b   :  { %7237 = sst [smem:[#allocation16_spill]] %s6432_s6 }
  0x2c   :  { %7238 = sst [smem:[#allocation17_spill]] %s6437_s30 }
  0x2d   :  { %s6442_s20 = sld [smem:[%s7209_s0 + %s6267_s15]]   ;;  %s6271_s15 = smov 31  }
  0x2e   :  { %s6447_s27 = sld [smem:[%s7209_s0 + %s6268_s22]]   ;;  %s6272_s22 = smov 32  }
  0x2f   :  { %s6452_s6 = sld [smem:[%s7209_s0 + %s6269_s28]]   ;;  %s6273_s28 = smov 33  }
  0x30   :  { %s6457_s30 = sld [smem:[%s7209_s0 + %s6270_s7]]   ;;  %s6274_s7 = smov 34  }
  0x33   :  { %7239 = sst [smem:[#allocation18_spill]] %s6442_s20 }
  0x34   :  { %7240 = sst [smem:[#allocation19_spill]] %s6447_s27 }
  0x35   :  { %7241 = sst [smem:[#allocation20_spill]] %s6452_s6 }
  0x36   :  { %7242 = sst [smem:[#allocation21_spill]] %s6457_s30 }
  0x37   :  { %s6462_s20 = sld [smem:[%s7209_s0 + %s6271_s15]]   ;;  %s6275_s15 = smov 35  }
  0x38   :  { %s6467_s27 = sld [smem:[%s7209_s0 + %s6272_s22]]   ;;  %s6276_s22 = smov 36  }
  0x39   :  { %s6472_s6 = sld [smem:[%s7209_s0 + %s6273_s28]]   ;;  %s6277_s28 = smov 37  }
  0x3a   :  { %s6477_s30 = sld [smem:[%s7209_s0 + %s6274_s7]]   ;;  %s6278_s7 = smov 38  }
  0x3d   :  { %7243 = sst [smem:[#allocation22_spill]] %s6462_s20 }
  0x3e   :  { %7244 = sst [smem:[#allocation23_spill]] %s6467_s27 }
  0x3f   :  { %7245 = sst [smem:[#allocation24_spill]] %s6472_s6 }
  0x40   :  { %7246 = sst [smem:[#allocation25_spill]] %s6477_s30 }
  0x41   :  { %s6482_s20 = sld [smem:[%s7209_s0 + %s6275_s15]]   ;;  %s6279_s15 = smov 39  }
  0x42   :  { %s6487_s27 = sld [smem:[%s7209_s0 + %s6276_s22]]   ;;  %s6280_s22 = smov 40  }
  0x43   :  { %s6492_s6 = sld [smem:[%s7209_s0 + %s6277_s28]]   ;;  %s6281_s28 = smov 41  }
  0x44   :  { %s6497_s30 = sld [smem:[%s7209_s0 + %s6278_s7]]   ;;  %s6282_s7 = smov 42  }
  0x47   :  { %7247 = sst [smem:[#allocation26_spill]] %s6482_s20 }
  0x48   :  { %7248 = sst [smem:[#allocation27_spill]] %s6487_s27 }
  0x49   :  { %7249 = sst [smem:[#allocation28_spill]] %s6492_s6 }
  0x4a   :  { %7250 = sst [smem:[#allocation29_spill]] %s6497_s30 }
  0x4b   :  { %s6502_s20 = sld [smem:[%s7209_s0 + %s6279_s15]]   ;;  %s6283_s15 = smov 43  }
  0x4c   :  { %s6507_s27 = sld [smem:[%s7209_s0 + %s6280_s22]]   ;;  %s6284_s22 = smov 44  }
  0x4d   :  { %s6512_s6 = sld [smem:[%s7209_s0 + %s6281_s28]]   ;;  %s6285_s28 = smov 45  }
  0x4e   :  { %s6517_s30 = sld [smem:[%s7209_s0 + %s6282_s7]]   ;;  %s6286_s7 = smov 46  }
  0x51   :  { %7251 = sst [smem:[#allocation30_spill]] %s6502_s20 }
  0x52   :  { %7252 = sst [smem:[#allocation31_spill]] %s6507_s27 }
  0x53   :  { %7253 = sst [smem:[#allocation32_spill]] %s6512_s6 }
  0x54   :  { %7254 = sst [smem:[#allocation33_spill]] %s6517_s30 }
  0x55   :  { %s6522_s20 = sld [smem:[%s7209_s0 + %s6283_s15]]   ;;  %s6287_s15 = smov 47  }
  0x56   :  { %s6527_s27 = sld [smem:[%s7209_s0 + %s6284_s22]]   ;;  %s6288_s22 = smov 48  }
  0x57   :  { %s6532_s6 = sld [smem:[%s7209_s0 + %s6285_s28]]   ;;  %s6289_s28 = smov 49  }
  0x58   :  { %s6537_s30 = sld [smem:[%s7209_s0 + %s6286_s7]]   ;;  %s6290_s7 = smov 50  }
  0x5b   :  { %7255 = sst [smem:[#allocation34_spill]] %s6522_s20 }
  0x5c   :  { %7256 = sst [smem:[#allocation35_spill]] %s6527_s27 }
  0x5d   :  { %7257 = sst [smem:[#allocation36_spill]] %s6532_s6 }
  0x5e   :  { %7258 = sst [smem:[#allocation37_spill]] %s6537_s30 }
  0x5f   :  { %s6542_s20 = sld [smem:[%s7209_s0 + %s6287_s15]]   ;;  %s6291_s15 = smov 51  }
  0x60   :  { %s6547_s27 = sld [smem:[%s7209_s0 + %s6288_s22]]  }
  0x61   :  { %s6552_s6 = sld [smem:[%s7209_s0 + %s6289_s28]]  }
  0x62   :  { %s6557_s30 = sld [smem:[%s7209_s0 + %s6290_s7]]  }
  0x65   :  { %7259 = sst [smem:[#allocation38_spill]] %s6542_s20 }
  0x66   :  { %s6562_s20 = sld [smem:[%s7209_s0 + %s6291_s15]]  }
  0x67   :  { %108 = vsyncpa [#allocation3], 0  ;;  %s6564_s22 = smov 0  }
  0x68 LB: > { %s6570_s23 = sadd.s32 4294967295, %s6239_s22   ;;  %p5816_p0 = scmp.ge.s32.totalorder %s6239_s22, 1  ;;  %s6239_s22 = sphi %s6564_s22, %s114_s22  }
  0x69   : > { %p1221_p1 = scmp.lt.s32.totalorder %s6239_s22, 3  ;;  %s1380_s0 = sshll.u32 %s6557_s30, 4  ;;  %s1381_s0 = int_to_ptr.hbm [resolvable:$true] %s1380_s0 }
  0x6a   : > { %p6005_p3 = scmp.eq.s32.totalorder %s6570_s23, 0  ;;  %s6292_s28 = smov [#allocation2]  }
  0x6b   : > { %p6575_p2 = pnand %p5816_p0, %p1221_p1  ;;  %s1382_s1 = sshll.u32 %s6292_s28, 4  ;;  %s1383_s1 = int_to_ptr.vmem [resolvable:$true] %s1382_s1 }
  0x6c   : > { %s6199_s7 = sshra.s32 %s1381_s0, 4  ;;  %s6206_s11 = scalar_lea.hbm %s6557_s30, 1  ;;  %s6200_s7 = int_to_ptr.hbm [resolvable:$true] %s6199_s7 }
  0x6d   : > { %p6001_p4 = pneg %p6575_p2  ;;  %s6201_s10 = scalar_lea.hbm %s6200_s7, 1 }
  0x6e   : > { %p6202_p6 = scmp.ne.s32.totalorder %s6200_s7, %s6201_s10  ;;  %p6207_p10 = scmp.lt.s32.totalorder %s6200_s7, %s6557_s30 }
  0x6f   : > { %p6584_p5 = pnand %p6005_p3, %p6001_p4  ;;  %p6208_p11 = scmp.lt.s32.totalorder %s6206_s11, %s6201_s10 }
  0x71   : > { %p6203_p7 = pneg %p6584_p5  ;;  %p6209_p12 = por %p6208_p11, %p6207_p10 }
  0x73   : > { %p6204_p8 = pnand %p6203_p7, %p6202_p6 }
  0x75   : > { %p6205_p9 = pneg %p6204_p8 }
  0x77   : > { %p6210_p13 = pnand %p6209_p12, %p6205_p9 }
  0x79   : > { %6213 = shalt.err (!%p6210_p13)
}
  0x7a   : > { %6004 = dma.hbm_to_vmem [thread:$0]  (!%p6584_p5), %s1381_s0, 16, %s1383_s1, [#allocation3]  }
  0x7b   : > { %1402 = sbr.rel (%p6575_p2) target bundleno = 9663 (0x25bf), region = 224 }
  0x80   : > { %6234 = dma.done.wait (%p6005_p3), [#allocation3], 16  }
  0x81   : > { %6236 = vsyncadd (%p6005_p3), [#allocation3], 4294967280  ;;  %p1522_p0 = scmp.lt.s32.totalorder %s6570_s23, 1  ;;  %v1533_v0 = vlaneseq  ;;  %vm7218_vm1 = vcmask 130048   ;;  %v6293_v5 = vmov 0.0   ;;  %vm1611_vm4 = vcmask 1041408  }
  0x82   : > { %v1588_v10 = vld [vmem:[%s6312_s9] sm:$0xf]  ;;  %v1648_v13 = vld [vmem:[%s6312_s9 + $0x8] sm:$0xf]  ;;  %v1591_v16 = vld [vmem:[%s6312_s9 + $0x4] sm:$0xf] }
  0x83   : > { %s7320_s23 = smov (!%p1522_p0, %s6570_s23), 1  ;;  %v1534_v1 = vshrl.u32 %v1533_v0, 7  ;;  %v1537_v2 = vand.u32 127, %v1533_v0  ;;  %v1590_v11 = vpack.c.bf16 %v1588_v10, %v1588_v10  ;;  %v1649_v14 = vpack.c.bf16 %v1648_v13, %v1648_v13  ;;  %v1678_v17 = vld [vmem:[%s6312_s9 + $0xc] sm:$0xf]  ;;  %s7266_s18 = sld [smem:[#allocation5_spill]] }
  0x84   : > { %s5821_s15 = sshll.u32 %s7320_s23, 2  ;;  %v1593_v18 = vpack.c.bf16 %v1591_v16, %v1591_v16  ;;  %v1679_v19 = vpack.c.bf16 %v1678_v17, %v1678_v17  ;;  %v1740_v22 = vld [vmem:[%s6312_s9 + $0x14] sm:$0xf]  ;;  %v1772_v25 = vld [vmem:[%s6312_s9 + $0x18] sm:$0xf]  ;;  %vm1579_vm5 = vcmask 1043456  }
  0x85   : > { %vm1538_vm0 = vcmp.eq.s32.totalorder %v1534_v1, %v1537_v2  ;;  %v3834_v3 = vmul.u32 2, %v1534_v1  ;;  %v1535_v4 = vadd.s32 8, %v1534_v1  ;;  %s1525_s16 = scalar_lea.vmem %s6307_s5, %s5821_s15  ;;  %v1632_v12 = vsel %vm1611_vm4, %v1590_v11, 0  ;;  %v1712_v29 = vld [vmem:[%s6312_s9 + $0x10] sm:$0xf]  ;;  %s7267_s0 = sld [smem:[#allocation6_spill]] }
  0x86   : > { %v6606_v6 = vsel %vm1538_vm0, 1.0, %v6293_v5  ;;  %v1532_v7 = vld [vmem:[%s1525_s16] sm:$0xf]  ;;  %1641 = vmatpush.bf16.msra.mxu2 %v1632_v12  ;;  %v1660_v15 = vsel %vm1611_vm4, %v1649_v14, 0  ;;  %v1613_v20 = vsel %vm1611_vm4, %v1593_v18, 0  ;;  %v1694_v21 = vsel %vm1611_vm4, %v1679_v19, 0 }
  0x87   : > { %vm3835_vm2 = vcmp.eq.s32.totalorder %v1537_v2, %v3834_v3  ;;  %vm1539_vm3 = vcmp.eq.s32.totalorder %v1535_v4, %v1537_v2  ;;  %5826 = vmatpush.xpose.msk.msra.mxu0 %vm7218_vm1, %v1532_v7  ;;  %1669 = vmatpush.bf16.msra.mxu3 %v1660_v15  ;;  %v1741_v23 = vpack.c.bf16 %v1740_v22, %v1740_v22  ;;  %v1800_v30 = vld [vmem:[%s6312_s9 + $0x1c] sm:$0xf]  ;;  %vm1607_vm6 = vcmask 31744   ;;  %v1832_v43 = vld [vmem:[%s6312_s9 + $0x20] sm:$0xf]  ;;  %s7270_s26 = sld [smem:[#allocation7_spill]] }
  0x88   : > { %v6608_v8 = vsel %vm3835_vm2, 1.0, %v6293_v5  ;;  %v6610_v9 = vsel %vm1539_vm3, 1.0, %v6293_v5  ;;  %1622 = vmatpush.bf16.msra.mxu1 %v1613_v20  ;;  %v1773_v26 = vpack.c.bf16 %v1772_v25, %v1772_v25  ;;  %v1713_v31 = vpack.c.bf16 %v1712_v29, %v1712_v29  ;;  %s7271_s28 = sld [smem:[#allocation8_spill]]  ;;  %s6294_s11 = smov 104  }
  0x89   : > { %v1754_v24 = vsel %vm1611_vm4, %v1741_v23, 0  ;;  %v1801_v32 = vpack.c.bf16 %v1800_v30, %v1800_v30  ;;  %vm1652_vm7 = vcmask 1046528   ;;  %v1834_v50 = vpack.c.bf16 %v1832_v43, %v1832_v43  ;;  %s7272_s1 = sld [smem:[#allocation9_spill]]  ;;  %s7223_s15 = smov 120  }
  0x8a   : > { %5827 = vmatmul.msk.f32.vlgmr.msra.gmra.mxu0 %vm7218_vm1, %v6606_v6  ;;  %1763 = vmatpush.bf16.msrb.mxu2 %v1754_v24  ;;  %v1782_v28 = vsel %vm1611_vm4, %v1773_v26, 0  ;;  %v1722_v33 = vsel %vm1611_vm4, %v1713_v31, 0  ;;  %vm1594_vm8 = vsmask.f32 7424  ;;  %vm1680_vm9 = vsmask.f32 6400 }
  0x8b   : > { %1703 = vmatpush.bf16.msrb.mxu0 %v1694_v21  ;;  %1791 = vmatpush.bf16.msrb.mxu3 %v1782_v28  ;;  %v1814_v34 = vsel %vm1611_vm4, %v1801_v32, 0  ;;  %v1839_v61 = vsel %vm1611_vm4, %v1834_v50, 0  ;;  %vm1742_vm10 = vsmask.f32 5376  ;;  %vm1774_vm11 = vcmask 1044480   ;;  %s7273_s2 = sld [smem:[#allocation12_spill]] }
  0x8c   : > { %1731 = vmatpush.bf16.msrb.mxu1 %v1722_v33  ;;  %vm7220_vm12 = vcmask 1045504   ;;  %vm7219_vm13 = vsmask.f32 4352  ;;  %s7274_s7 = sld [smem:[#allocation10_spill]]  ;;  %s7224_s16 = smov 112  }
  0x8d   : > { %s7275_s10 = sld [smem:[#allocation11_spill]] }
  0x8f   : > { %1823 = vmatpush.bf16.msra.mxu0 %v1814_v34 }
  0x92   : > { %5828 = vmatmul.msk.f32.gmra.mxu0 %vm7218_vm1, %v6610_v9 }
 0x107   : > { %v6628_v27 = vpop.f32.mrf.mxu0 }
 0x108   : > { %v1580_v35 = vrot.slane %v6628_v27, 4 }
 0x10a   : > { %v1586_v38 = vsel %vm1579_vm5, 0.0, %v1580_v35 }
 0x10f   : > { %v6636_v36 = vpop.f32.mrf.mxu0 }
 0x110   : > { %v1581_v37 = vrot.slane %v6636_v36, 4 }
 0x112   : > { %v6641_v39 = vsel %vm1579_vm5, %v1580_v35, %v1581_v37  ;;  %v6644_v40 = vsel %vm1579_vm5, %v1581_v37, 0.0 }
 0x113   : > { %v1589_v41 = vpack.c.bf16 %v6641_v39, %v1586_v38  ;;  %v1592_v42 = vpack.c.bf16 %v6644_v40, %v6644_v40  ;;  %v1833_v23 = vpack.c.bf16 %v6644_v40, %v6641_v39 }
 0x115   : > { %5830 = vmatmul.msk.bf16.vlgmr.msra.gmra.mxu2 %vm1607_vm6, %v1589_v41  ;;  %v1653_v44 = vrot.slane %v1589_v41, 1  ;;  %v1654_v45 = vrot.slane %v1592_v42, 1  ;;  %v1596_v46 = vshrl.u32 %v1589_v41, 16  ;;  %v1598_v47 = vshll.u32 %v1589_v41, 16 }
 0x116   : > { %v1603_v48 = vshll.u32 %v1592_v42, 16  ;;  %v1684_v49 = vshrl.u32 %v1592_v42, 16  ;;  %v1775_v7 = vrot.slane %v1589_v41, 3  ;;  %v1776_v10 = vrot.slane %v1592_v42, 3 }
 0x117   : > { %v1655_v51 = vsel %vm1652_vm7, %v1653_v44, %v1654_v45  ;;  %v1600_v52 = vrot.slane %v1598_v47, 1  ;;  %v1681_v53 = vrot.slane %v1596_v46, 1  ;;  %v1682_v54 = vrot.slane %v1598_v47, 2  ;;  %v6670_v45 = vld [vmem:[%s6392_s4] sm:$0xf] }
 0x118   : > { %5831 = vmatmul.msk.bf16.vlgmr.msra.gmra.mxu3 %vm1607_vm6, %v1655_v51  ;;  %v1686_v55 = vrot.slane %v1684_v49, 1  ;;  %v1687_v56 = vrot.slane %v1603_v48, 2  ;;  %v1605_v58 = vrot.slane %v1603_v48, 1  ;;  %v1743_v63 = vrot.slane %v1596_v46, 2  ;;  %5838 = vmatpush.msk.msra.mxu2 %vm1579_vm5, %v6670_v45 }
 0x119   : > { %v1601_v57 = vor.u32 %v1600_v52, %v1596_v46  ;;  %v1683_v59 = vor.u32 %v1682_v54, %v1681_v53  ;;  %v1744_v1 = vrot.slane %v1598_v47, 3  ;;  %v1746_v2 = vrot.slane %v1684_v49, 2 }
 0x11a   : > { %v1688_v60 = vor.u32 %v1687_v56, %v1686_v55  ;;  %v1747_v3 = vrot.slane %v1603_v48, 3  ;;  %v1803_v11 = vrot.slane %v1596_v46, 3  ;;  %v1804_v13 = vrot.slane %v1598_v47, 4 }
 0x11b   : > { %v1606_v62 = vsel %vm1594_vm8, %v1601_v57, %v1605_v58  ;;  %v1745_v4 = vor.u32 %v1744_v1, %v1743_v63  ;;  %v1806_v14 = vrot.slane %v1684_v49, 3  ;;  %v1807_v15 = vrot.slane %v1603_v48, 4  ;;  %v6073_v57 = vld [vmem:[%s6317_s13] ss:$0 sm:$0xff] }
 0x11c   : > { %5829 = vmatmul.msk.bf16.vlgmr.msra.gmra.mxu1 %vm1607_vm6, %v1606_v62  ;;  %v1689_v0 = vsel %vm1680_vm9, %v1683_v59, %v1688_v60  ;;  %v1748_v5 = vor.u32 %v1747_v3, %v1746_v2  ;;  %v1777_v16 = vsel %vm1774_vm11, %v1775_v7, %v1776_v10  ;;  %v1715_v17 = vrot.slane %v1589_v41, 2 }
 0x11d   : > { %5832 = vmatmul.msk.bf16.vlgmr.msrb.gmra.mxu0 %vm1607_vm6, %v1689_v0  ;;  %1848 = vmatpush.bf16.msra.mxu1 %v1839_v61  ;;  %v1716_v18 = vrot.slane %v1592_v42, 2  ;;  %v1805_v19 = vor.u32 %v1804_v13, %v1803_v11  ;;  %v1808_v20 = vor.u32 %v1807_v15, %v1806_v14 }
 0x11e   : > { %v1749_v12 = vsel %vm1742_vm10, %v1745_v4, %v1748_v5 }
 0x11f   : > { %v1717_v21 = vsel %vm7220_vm12, %v1715_v17, %v1716_v18  ;;  %v1809_v22 = vsel %vm7219_vm13, %v1805_v19, %v1808_v20 }
 0x125   : > { %5834 = vmatmul.msk.bf16.vlgmr.msrb.gmra.mxu2 %vm1607_vm6, %v1749_v12  ;;  %v6681_v12 = vld [vmem:[%s6397_s12] sm:$0xf] }
 0x126   : > { %5842 = vmatpush.msk.msrb.mxu2 %vm1579_vm5, %v6670_v45  ;;  %5840 = vmatpush.msk.msra.mxu3 %vm1579_vm5, %v6681_v12 }
 0x128   : > { %5835 = vmatmul.msk.bf16.vlgmr.msrb.gmra.mxu3 %vm1607_vm6, %v1777_v16 }
 0x129   : > { %5844 = vmatpush.msk.msrb.mxu3 %vm1579_vm5, %v6681_v12 }
 0x12c   : > { %5833 = vmatmul.msk.bf16.vlgmr.msrb.gmra.mxu1 %vm1607_vm6, %v1717_v21 }
 0x12d   : > { %5836 = vmatmul.msk.bf16.vlgmr.msra.gmra.mxu0 %vm1607_vm6, %v1809_v22 }
 0x13c   : > { %5837 = vmatmul.msk.bf16.vlgmr.msra.gmra.mxu1 %vm1607_vm6, %v1833_v23 }
 0x198   : > { %v1643_v24 = vpop.f32.mrf.mxu2 }
 0x199   : > { %v1624_v25 = vpop.f32.mrf.mxu1 }
 0x19a   : > { %v1705_v28 = vpop.f32.mrf.mxu0  ;;  %v1644_v31 = vadd.f32 %v1643_v24, %v1624_v25 }
 0x19b   : > { %v1671_v26 = vpop.f32.mrf.mxu3 }
 0x19c   : > { %v1676_v34 = vadd.f32 %v1671_v26, %v1644_v31 }
 0x19e   : > { %v1710_v41 = vadd.f32 %v1705_v28, %v1676_v34 }
 0x1a0   : > { %v1645_v30 = vpop.f32.mrf.mxu2 }
 0x1a1   : > { %v1626_v29 = vpop.f32.mrf.mxu1 }
 0x1a2   : > { %v1646_v35 = vadd.f32 %v1645_v30, %v1626_v29  ;;  %v1707_v37 = vpop.f32.mrf.mxu0 }
 0x1a3   : > { %v1673_v32 = vpop.f32.mrf.mxu3 }
 0x1a4   : > { %v1677_v42 = vadd.f32 %v1673_v32, %v1646_v35 }
 0x1a6   : > { %v1711_v44 = vadd.f32 %v1707_v37, %v1677_v42 }
 0x1a8   : > { %v1765_v38 = vpop.f32.mrf.mxu2 }
 0x1a9   : > { %v1733_v33 = vpop.f32.mrf.mxu1 }
 0x1aa   : > { %v1738_v43 = vadd.f32 %v1733_v33, %v1710_v41  ;;  %v1825_v48 = vpop.f32.mrf.mxu0 }
 0x1ab   : > { %v1793_v39 = vpop.f32.mrf.mxu3 }
 0x1ac   : > { %v1770_v46 = vadd.f32 %v1765_v38, %v1738_v43 }
 0x1ae   : > { %v1798_v50 = vadd.f32 %v1793_v39, %v1770_v46 }
 0x1b0   : > { %v1767_v49 = vpop.f32.mrf.mxu2  ;;  %v1830_v54 = vadd.f32 %v1825_v48, %v1798_v50  ;;  %v6075_v48 = vld [vmem:[%s6327_s21] ss:$0 sm:$0xff] }
 0x1b1   : > { %v1735_v40 = vpop.f32.mrf.mxu1 }
 0x1b2   : > { %v1739_v47 = vadd.f32 %v1735_v40, %v1711_v44  ;;  %v1827_v58 = vpop.f32.mrf.mxu0  ;;  %v6074_v44 = vld [vmem:[%s6322_s17] ss:$0 sm:$0xff] }
 0x1b3   : > { %v1795_v53 = vpop.f32.mrf.mxu3 }
 0x1b4   : > { %v1771_v51 = vadd.f32 %v1767_v49, %v1739_v47 }
 0x1b6   : > { %v1799_v55 = vadd.f32 %v1795_v53, %v1771_v51 }
 0x1b8   : > { %v1831_v59 = vadd.f32 %v1827_v58, %v1799_v55  ;;  %v2064_v55 = vld [vmem:[%s6332_s25] sm:$0xf] }
 0x1b9   : > { %v1850_v52 = vpop.f32.mrf.mxu1 }
 0x1ba   : > { %v1855_v56 = vadd.f32 %v1850_v52, %v1830_v54 }
 0x1bc   : > { %v1861_v61 = vadd.f32 %v6073_v57, %v1855_v56  ;;  %v2066_v56 = vpack.c.bf16 %v2064_v55, %v2064_v55 }
 0x1be   : > { %v1863_v0 = vsel %vm1607_vm6, %v1861_v61, 0.0  ;;  %v2105_v58 = vsel %vm1611_vm4, %v2066_v56, 0 }
 0x1bf   : > { %2114 = vmatpush.bf16.msrb.mxu1 %v2105_v58 }
 0x1c1   : > { %v1852_v60 = vpop.f32.mrf.mxu1 }
 0x1c2   : > { %v1856_v62 = vadd.f32 %v1852_v60, %v1831_v59 }
 0x1c4   : > { %v1862_v63 = vadd.f32 %v6073_v57, %v1856_v62  ;;  %v2121_v57 = vld [vmem:[%s6332_s25 + $0x8] sm:$0xf]  ;;  %v2150_v62 = vld [vmem:[%s6332_s25 + $0xc] sm:$0xf] }
 0x1c5   : > { %v2122_v59 = vpack.c.bf16 %v2121_v57, %v2121_v57  ;;  %v2299_v57 = vld [vmem:[%s6332_s25 + $0x20] sm:$0xf] }
 0x1c6   : > { %v1864_v1 = vsel %vm1607_vm6, %v1862_v63, 0.0 }
 0x1c7   : > { %v1865_v2 = vadd.f32 %v1864_v1, %v1863_v0  ;;  %v2132_v60 = vsel %vm1611_vm4, %v2122_v59, 0  ;;  %v2151_v1 = vpack.c.bf16 %v2150_v62, %v2150_v62 }
 0x1c9   : > { %v1866_v3 = vrot.slane %v1865_v2, 4 }
 0x1cb   : > { %v1867_v4 = vadd.f32 %v1866_v3, %v1865_v2 }
 0x1cd   : > { %v1868_v5 = vrot.slane %v1867_v4, 2 }
 0x1cf   : > { %v1869_v7 = vadd.f32 %v1868_v5, %v1867_v4 }
 0x1d1   : > { %v1870_v10 = vrot.slane %v1869_v7, 1 }
 0x1d3   : > { %v1871_v11 = vadd.f32 %v1870_v10, %v1869_v7  ;;  %v2165_v7 = vsel %vm1611_vm4, %v2151_v1, 0  ;;  %v2210_v10 = vld [vmem:[%s6332_s25 + $0x14] sm:$0xf] }
 0x1d5   : > { %5839 = vmatmul.msk.f32.vlgmr.msra.gmra.mxu2 %vm1607_vm6, %v1871_v11  ;;  %v2211_v11 = vpack.c.bf16 %v2210_v10, %v2210_v10 }
 0x1d6   : > { %2141 = vmatpush.bf16.msra.mxu2 %v2132_v60 }
 0x258   : > { %v1896_v13 = vpop.f32.mrf.mxu2 }
 0x259   : > { %v1899_v14 = vmul.f32 0.0625, %v1896_v13  ;;  %v2223_v13 = vsel %vm1611_vm4, %v2211_v11, 0 }
 0x25a   : > { %2232 = vmatpush.bf16.msra.mxu1 %v2223_v13 }
 0x25b   : > { %5841 = vmatmul.msk.f32.vlgmr.msra.gmra.mxu3 %vm1607_vm6, %v1899_v14 }
 0x25c   : > { %2174 = vmatpush.bf16.msra.mxu3 %v2165_v7 }
 0x2de   : > { %v1924_v15 = vpop.f32.mrf.mxu3 }
 0x2df   : > { %v1927_v16 = vperm.slane %v1924_v15, 0 }
 0x2e1   : > { %v1928_v17 = vsub.f32 %v1861_v61, %v1927_v16  ;;  %v1929_v18 = vsub.f32 %v1862_v63, %v1927_v16  ;;  %v2067_v61 = vld [vmem:[%s6332_s25 + $0x4] sm:$0xf] }
 0x2e2   : > { %v2069_v0 = vpack.c.bf16 %v2067_v61, %v2067_v61 }
 0x2e3   : > { %v1930_v19 = vmul.f32 %v1928_v17, %v1928_v17  ;;  %v1931_v20 = vmul.f32 %v1929_v18, %v1929_v18 }
 0x2e4   : > { %v2086_v5 = vsel %vm1611_vm4, %v2069_v0, 0 }
 0x2e5   : > { %v1932_v21 = vsel %vm1607_vm6, %v1930_v19, 0.0  ;;  %v1933_v22 = vsel %vm1607_vm6, %v1931_v20, 0.0  ;;  %2095 = vmatpush.bf16.msrb.mxu0 %v2086_v5  ;;  %v2241_v19 = vld [vmem:[%s6332_s25 + $0x18] sm:$0xf] }
 0x2e6   : > { %v1934_v23 = vadd.f32 %v1933_v22, %v1932_v21 }
 0x2e8   : > { %v1935_v24 = vrot.slane %v1934_v23, 4 }
 0x2ea   : > { %v1936_v25 = vadd.f32 %v1935_v24, %v1934_v23  ;;  %v2242_v23 = vpack.c.bf16 %v2241_v19, %v2241_v19 }
 0x2ec   : > { %v1937_v26 = vrot.slane %v1936_v25, 2 }
 0x2ee   : > { %v1938_v28 = vadd.f32 %v1937_v26, %v1936_v25 }
 0x2f0   : > { %v1939_v29 = vrot.slane %v1938_v28, 1 }
 0x2f2   : > { %v1940_v30 = vadd.f32 %v1939_v29, %v1938_v28  ;;  %v2250_v29 = vsel %vm1611_vm4, %v2242_v23, 0 }
 0x2f4   : > { %5843 = vmatmul.msk.f32.vlgmr.msrb.gmra.mxu2 %vm1607_vm6, %v1940_v30  ;;  %v2183_v30 = vld [vmem:[%s6332_s25 + $0x10] sm:$0xf] }
 0x2f5   : > { %2259 = vmatpush.bf16.msrb.mxu2 %v2250_v29 }
 0x377   : > { %v1961_v31 = vpop.f32.mrf.mxu2 }
 0x378   : > { %v1964_v32 = vmul.f32 0.0625, %v1961_v31  ;;  %v2268_v31 = vld [vmem:[%s6332_s25 + $0x1c] sm:$0xf] }
 0x37a   : > { %v1965_v33 = vadd.f32 1e-05, %v1964_v32 }
 0x37c   : > { %6105 = vrsqrt.f32 %v1965_v33  ;;  %vm1972_vm15 = vweird.f32 %v1965_v33 }
 0x382   : > { %v6106_v34 = vpop.eup %6105 }
 0x383   : > { %v1967_v35 = vmul.f32 %v6106_v34, %v1965_v33  ;;  %vm1973_vm14 = vweird.f32 %v6106_v34  ;;  %v2184_v33 = vpack.c.bf16 %v2183_v30, %v2183_v30 }
 0x384   : > { %vm1974_vm0 = vmor %vm1972_vm15, %vm1973_vm14 }
 0x385   : > { %v1968_v37 = vmul.f32 %v6106_v34, %v1967_v35 }
 0x387   : > { %v1969_v38 = vmul.f32 0.5, %v1968_v37 }
 0x389   : > { %v1970_v41 = vsub.f32 1.5, %v1969_v38 }
 0x38b   : > { %v1971_v42 = vmul.f32 %v6106_v34, %v1970_v41 }
 0x38d   : > { %v1975_v43 = vsel %vm1974_vm0, %v6106_v34, %v1971_v42  ;;  %v2269_v34 = vpack.c.bf16 %v2268_v31, %v2268_v31  ;;  %v2192_v42 = vsel %vm1611_vm4, %v2184_v33, 0 }
 0x38e   : > { %5845 = vmatmul.msk.f32.vlgmr.msrb.gmra.mxu3 %vm1607_vm6, %v1975_v43  ;;  %2201 = vmatpush.bf16.msra.mxu0 %v2192_v42 }
 0x38f   : > { %v2281_v43 = vsel %vm1611_vm4, %v2269_v34, 0 }
 0x390   : > { %2290 = vmatpush.bf16.msrb.mxu3 %v2281_v43 }
 0x411   : > { %v1996_v39 = vpop.f32.mrf.mxu3 }
 0x412   : > { %v1999_v40 = vperm.slane %v1996_v39, 0 }
 0x414   : > { %v2000_v46 = vmul.f32 %v1999_v40, %v1928_v17  ;;  %v2001_v47 = vmul.f32 %v1999_v40, %v1929_v18 }
 0x416   : > { %v2006_v49 = vmul.f32 %v6074_v44, %v2000_v46  ;;  %v2007_v50 = vmul.f32 %v6074_v44, %v2001_v47 }
 0x418   : > { %v6694_v51 = vadd.f32 %v6075_v48, %v2006_v49  ;;  %v6696_v52 = vadd.f32 %v6075_v48, %v2007_v50 }
 0x41a   : > { %v5846_v53 = vmul.f32 -1.442695, %v6694_v51  ;;  %v5847_v54 = vmul.f32 -1.442695, %v6696_v52 }
 0x41c   : > { %6107 = vpow2.f32 %v5846_v53 }
 0x41d   : > { %6109 = vpow2.f32 %v5847_v54 }
 0x422   : > { %v6108_v63 = vpop.eup %6107 }
 0x423   : > { %v6110_v2 = vpop.eup %6109  ;;  %v2020_v3 = vadd.f32 1.0, %v6108_v63 }
 0x424   : > { %v2021_v4 = vadd.f32 1.0, %v6110_v2 }
 0x425   : > { %6111 = vrcp.f32 %v2020_v3  ;;  %v2031_v20 = vand.u32 2147483647, %v2020_v3  ;;  %v2033_v21 = vand.u32 2147483648, %v2020_v3  ;;  %vm2027_vm14 = vweird.f32 %v2020_v3 }
 0x426   : > { %6113 = vrcp.f32 %v2021_v4  ;;  %v2046_v25 = vand.u32 2147483647, %v2021_v4  ;;  %v2048_v26 = vand.u32 2147483648, %v2021_v4  ;;  %vm2042_vm1 = vweird.f32 %v2021_v4 }
 0x427   : > { %vm2032_vm0 = vcmp.eq.f32.partialorder %v2031_v20, 8.507059e+37  ;;  %v2034_v35 = vor.u32 1.1754944e-38, %v2033_v21 }
 0x428   : > { %v2049_v41 = vor.u32 1.1754944e-38, %v2048_v26  ;;  %vm2047_vm12 = vcmp.eq.f32.partialorder %v2046_v25, 8.507059e+37 }
 0x42b   : > { %v6112_v14 = vpop.eup %6111 }
 0x42c   : > { %v6114_v15 = vpop.eup %6113  ;;  %v2023_v16 = vmul.f32 %v6112_v14, %v2020_v3  ;;  %vm2028_vm2 = vweird.f32 %v6112_v14 }
 0x42d   : > { %v2038_v17 = vmul.f32 %v6114_v15, %v2021_v4  ;;  %vm2043_vm3 = vweird.f32 %v6114_v15  ;;  %vm2029_vm15 = vmor %vm2027_vm14, %vm2028_vm2 }
 0x42e   : > { %v2024_v18 = vsub.f32 1.0, %v2023_v16  ;;  %vm2044_vm13 = vmor %vm2042_vm1, %vm2043_vm3  ;;  %vm7262_vm1 = vcmask 1045504  }
 0x42f   : > { %v2039_v22 = vsub.f32 1.0, %v2038_v17 }
 0x430   : > { %v2025_v24 = vmul.f32 %v6112_v14, %v2024_v18 }
 0x431   : > { %v2040_v28 = vmul.f32 %v6114_v15, %v2039_v22 }
 0x432   : > { %v2026_v32 = vadd.f32 %v6112_v14, %v2025_v24 }
 0x433   : > { %v2041_v37 = vadd.f32 %v6114_v15, %v2040_v28 }
 0x434   : > { %v2030_v38 = vsel %vm2029_vm15, %v6112_v14, %v2026_v32 }
 0x435   : > { %v2035_v39 = vsel %vm2032_vm0, %v2034_v35, %v2030_v38  ;;  %v2045_v40 = vsel %vm2044_vm13, %v6114_v15, %v2041_v37 }
 0x436   : > { %v2050_v44 = vsel %vm2047_vm12, %v2049_v41, %v2045_v40  ;;  %v2052_v46 = vmul.f32 %v2035_v39, %v6694_v51  ;;  %vm7263_vm12 = vsmask.f32 4352 }
 0x437   : > { %v2053_v47 = vmul.f32 %v2050_v44, %v6696_v52  ;;  %v2301_v52 = vpack.c.bf16 %v2299_v57, %v2299_v57 }
 0x438   : > { %v2056_v48 = vrot.slane %v2052_v46, 4 }
 0x439   : > { %v2057_v49 = vrot.slane %v2053_v47, 4  ;;  %v2306_v13 = vsel %vm1611_vm4, %v2301_v52, 0 }
 0x43a   : > { %v2062_v50 = vsel %vm1579_vm5, 0.0, %v2056_v48 }
 0x43b   : > { %v2058_v53 = vsel %vm1579_vm5, %v2056_v48, %v2057_v49  ;;  %v2063_v54 = vsel %vm1579_vm5, %v2057_v49, 0.0 }
 0x43c   : > { %v2065_v55 = vpack.c.bf16 %v2058_v53, %v2062_v50  ;;  %v2068_v56 = vpack.c.bf16 %v2063_v54, %v2063_v54  ;;  %v2300_v38 = vpack.c.bf16 %v2063_v54, %v2058_v53 }
 0x43e   : > { %5849 = vmatmul.msk.bf16.vlgmr.msrb.gmra.mxu1 %vm1607_vm6, %v2065_v55  ;;  %v2125_v58 = vrot.slane %v2065_v55, 1  ;;  %v2126_v59 = vrot.slane %v2068_v56, 1  ;;  %v2071_v60 = vshrl.u32 %v2065_v55, 16  ;;  %v2073_v61 = vshll.u32 %v2065_v55, 16 }
 0x43f   : > { %v2078_v51 = vshll.u32 %v2068_v56, 16  ;;  %v2155_v62 = vshrl.u32 %v2068_v56, 16  ;;  %5863 = vmatpush.msk.msrb.mxu1 %vm1579_vm5, %v6681_v12  ;;  %v2243_v22 = vrot.slane %v2065_v55, 3  ;;  %v2244_v23 = vrot.slane %v2068_v56, 3 }
 0x440   : > { %v2127_v63 = vsel %vm1652_vm7, %v2125_v58, %v2126_v59  ;;  %v2075_v0 = vrot.slane %v2073_v61, 1  ;;  %v2152_v1 = vrot.slane %v2071_v60, 1  ;;  %v2153_v2 = vrot.slane %v2073_v61, 2 }
 0x441   : > { %5850 = vmatmul.msk.bf16.vlgmr.msra.gmra.mxu2 %vm1607_vm6, %v2127_v63  ;;  %v2157_v3 = vrot.slane %v2155_v62, 1  ;;  %v2158_v4 = vrot.slane %v2078_v51, 2  ;;  %v2080_v7 = vrot.slane %v2078_v51, 1  ;;  %v2212_v15 = vrot.slane %v2071_v60, 2 }
 0x442   : > { %v2076_v5 = vor.u32 %v2075_v0, %v2071_v60  ;;  %v2154_v10 = vor.u32 %v2153_v2, %v2152_v1  ;;  %5857 = vmatpush.msk.msra.mxu2 %vm1579_vm5, %v6670_v45  ;;  %v2213_v17 = vrot.slane %v2073_v61, 3  ;;  %v2215_v18 = vrot.slane %v2155_v62, 2 }
 0x443   : > { %v2159_v11 = vor.u32 %v2158_v4, %v2157_v3  ;;  %v2216_v19 = vrot.slane %v2078_v51, 3  ;;  %v2270_v24 = vrot.slane %v2071_v60, 3  ;;  %v2271_v26 = vrot.slane %v2073_v61, 4 }
 0x444   : > { %v2081_v14 = vsel %vm1594_vm8, %v2076_v5, %v2080_v7  ;;  %v2214_v20 = vor.u32 %v2213_v17, %v2212_v15  ;;  %v2273_v28 = vrot.slane %v2155_v62, 3  ;;  %v2274_v29 = vrot.slane %v2078_v51, 4 }
 0x445   : > { %5848 = vmatmul.msk.bf16.vlgmr.msrb.gmra.mxu0 %vm1607_vm6, %v2081_v14  ;;  %v2160_v16 = vsel %vm1680_vm9, %v2154_v10, %v2159_v11  ;;  %v2217_v21 = vor.u32 %v2216_v19, %v2215_v18  ;;  %v2245_v30 = vsel %vm1774_vm11, %v2243_v22, %v2244_v23  ;;  %v2185_v31 = vrot.slane %v2065_v55, 2  ;;  %v6076_v10 = vld [vmem:[%s6337_s29] ss:$0 sm:$0xff] }
 0x446   : > { %5851 = vmatmul.msk.bf16.vlgmr.msra.gmra.mxu3 %vm1607_vm6, %v2160_v16  ;;  %2315 = vmatpush.bf16.msrb.mxu0 %v2306_v13  ;;  %v2186_v32 = vrot.slane %v2068_v56, 2  ;;  %v2272_v33 = vor.u32 %v2271_v26, %v2270_v24  ;;  %v2275_v34 = vor.u32 %v2274_v29, %v2273_v28 }
 0x447   : > { %5861 = vmatpush.msk.msra.mxu3 %vm1579_vm5, %v6670_v45  ;;  %v2218_v25 = vsel %vm1742_vm10, %v2214_v20, %v2217_v21 }
 0x448   : > { %v2187_v35 = vsel %vm7262_vm1, %v2185_v31, %v2186_v32  ;;  %v2276_v37 = vsel %vm7263_vm12, %v2272_v33, %v2275_v34 }
 0x44e   : > { %5853 = vmatmul.msk.bf16.vlgmr.msra.gmra.mxu1 %vm1607_vm6, %v2218_v25 }
 0x451   : > { %5854 = vmatmul.msk.bf16.vlgmr.msrb.gmra.mxu2 %vm1607_vm6, %v2245_v30 }
 0x452   : > { %5859 = vmatpush.msk.msrb.mxu2 %vm1579_vm5, %v6681_v12 }
 0x455   : > { %5852 = vmatmul.msk.bf16.vlgmr.msra.gmra.mxu0 %vm1607_vm6, %v2187_v35 }
 0x456   : > { %5855 = vmatmul.msk.bf16.vlgmr.msrb.gmra.mxu3 %vm1607_vm6, %v2276_v37 }
 0x465   : > { %5856 = vmatmul.msk.bf16.vlgmr.msrb.gmra.mxu0 %vm1607_vm6, %v2300_v38 }
 0x4bb   : > { %v2116_v41 = vpop.f32.mrf.mxu1 }
 0x4c2   : > { %v2097_v42 = vpop.f32.mrf.mxu0 }
 0x4c3   : > { %v2118_v44 = vpop.f32.mrf.mxu1  ;;  %v2117_v47 = vadd.f32 %v2116_v41, %v2097_v42 }
 0x4c4   : > { %v2143_v43 = vpop.f32.mrf.mxu2 }
 0x4c5   : > { %v2148_v50 = vadd.f32 %v2143_v43, %v2117_v47 }
 0x4c9   : > { %v2176_v39 = vpop.f32.mrf.mxu3 }
 0x4ca   : > { %v2099_v40 = vpop.f32.mrf.mxu0  ;;  %v2181_v57 = vadd.f32 %v2176_v39, %v2148_v50 }
 0x4cb   : > { %v2119_v55 = vadd.f32 %v2118_v44, %v2099_v40  ;;  %v2234_v56 = vpop.f32.mrf.mxu1 }
 0x4cc   : > { %v2145_v46 = vpop.f32.mrf.mxu2 }
 0x4cd   : > { %v2149_v58 = vadd.f32 %v2145_v46, %v2119_v55 }
 0x4d1   : > { %v2178_v48 = vpop.f32.mrf.mxu3 }
 0x4d2   : > { %v2203_v49 = vpop.f32.mrf.mxu0  ;;  %v2182_v60 = vadd.f32 %v2178_v48, %v2149_v58 }
 0x4d3   : > { %v2208_v59 = vadd.f32 %v2203_v49, %v2181_v57  ;;  %v2236_v52 = vpop.f32.mrf.mxu1 }
 0x4d4   : > { %v2261_v53 = vpop.f32.mrf.mxu2 }
 0x4d5   : > { %v2239_v51 = vadd.f32 %v2234_v56, %v2208_v59 }
 0x4d7   : > { %v2266_v63 = vadd.f32 %v2261_v53, %v2239_v51 }
 0x4d9   : > { %v2292_v61 = vpop.f32.mrf.mxu3 }
 0x4da   : > { %v2205_v54 = vpop.f32.mrf.mxu0  ;;  %v2297_v3 = vadd.f32 %v2292_v61, %v2266_v63 }
 0x4db   : > { %v2209_v62 = vadd.f32 %v2205_v54, %v2182_v60  ;;  %v6077_v60 = vld [vmem:[%s6342_s3] ss:$0 sm:$0xff] }
 0x4dc   : > { %v2263_v2 = vpop.f32.mrf.mxu2 }
 0x4dd   : > { %v2240_v0 = vadd.f32 %v2236_v52, %v2209_v62  ;;  %v6078_v62 = vld [vmem:[%s6347_s8] ss:$0 sm:$0xff] }
 0x4df   : > { %v2267_v4 = vadd.f32 %v2263_v2, %v2240_v0 }
 0x4e1   : > { %v2294_v5 = vpop.f32.mrf.mxu3 }
 0x4e2   : > { %v2317_v1 = vpop.f32.mrf.mxu0  ;;  %v2298_v11 = vadd.f32 %v2294_v5, %v2267_v4  ;;  %v2525_v4 = vld [vmem:[%s6352_s14] sm:$0xf] }
 0x4e3   : > { %v2322_v7 = vadd.f32 %v2317_v1, %v2297_v3  ;;  %v2527_v5 = vpack.c.bf16 %v2525_v4, %v2525_v4 }
 0x4e5   : > { %v2328_v14 = vadd.f32 %v6076_v10, %v2322_v7  ;;  %v2582_v7 = vld [vmem:[%s6352_s14 + $0x8] sm:$0xf] }
 0x4e7   : > { %v2330_v17 = vsel %vm1607_vm6, %v2328_v14, 0.0 }
 0x4ea   : > { %v2319_v13 = vpop.f32.mrf.mxu0 }
 0x4eb   : > { %v2323_v15 = vadd.f32 %v2319_v13, %v2298_v11  ;;  %v2583_v11 = vpack.c.bf16 %v2582_v7, %v2582_v7  ;;  %v2760_v7 = vld [vmem:[%s6352_s14 + $0x20] sm:$0xf] }
 0x4ed   : > { %v2329_v16 = vadd.f32 %v6076_v10, %v2323_v15  ;;  %v2566_v10 = vsel %vm1611_vm4, %v2527_v5, 0 }
 0x4ee   : > { %2575 = vmatpush.bf16.msrb.mxu3 %v2566_v10 }
 0x4ef   : > { %v2331_v18 = vsel %vm1607_vm6, %v2329_v16, 0.0 }
 0x4f0   : > { %v2332_v19 = vadd.f32 %v2331_v18, %v2330_v17  ;;  %v2528_v17 = vld [vmem:[%s6352_s14 + $0x4] sm:$0xf]  ;;  %v2611_v18 = vld [vmem:[%s6352_s14 + $0xc] sm:$0xf] }
 0x4f2   : > { %v2333_v20 = vrot.slane %v2332_v19, 4 }
 0x4f4   : > { %v2334_v21 = vadd.f32 %v2333_v20, %v2332_v19  ;;  %v2530_v20 = vpack.c.bf16 %v2528_v17, %v2528_v17 }
 0x4f6   : > { %v2335_v22 = vrot.slane %v2334_v21, 2 }
 0x4f8   : > { %v2336_v23 = vadd.f32 %v2335_v22, %v2334_v21  ;;  %v2612_v21 = vpack.c.bf16 %v2611_v18, %v2611_v18  ;;  %v2547_v22 = vsel %vm1611_vm4, %v2530_v20, 0 }
 0x4fa   : > { %v2337_v24 = vrot.slane %v2336_v23, 1 }
 0x4fc   : > { %v2338_v25 = vadd.f32 %v2337_v24, %v2336_v23  ;;  %v2626_v23 = vsel %vm1611_vm4, %v2612_v21, 0  ;;  %v2671_v24 = vld [vmem:[%s6352_s14 + $0x14] sm:$0xf] }
 0x4fd   : > { %2635 = vmatpush.bf16.msra.mxu1 %v2626_v23 }
 0x4fe   : > { %5858 = vmatmul.msk.f32.vlgmr.msra.gmra.mxu2 %vm1607_vm6, %v2338_v25  ;;  %v2672_v25 = vpack.c.bf16 %v2671_v24, %v2671_v24 }
 0x4ff   : > { %2556 = vmatpush.bf16.msra.mxu2 %v2547_v22 }
 0x581   : > { %v2359_v26 = vpop.f32.mrf.mxu2 }
 0x582   : > { %v2362_v28 = vmul.f32 0.0625, %v2359_v26 }
 0x584   : > { %5860 = vmatmul.msk.f32.vlgmr.msrb.gmra.mxu2 %vm1607_vm6, %v2362_v28  ;;  %v2684_v28 = vsel %vm1611_vm4, %v2672_v25, 0 }
 0x607   : > { %v2383_v29 = vpop.f32.mrf.mxu2 }
 0x608   : > { %v2386_v30 = vperm.slane %v2383_v29, 0 }
 0x60a   : > { %v2387_v31 = vsub.f32 %v2328_v14, %v2386_v30  ;;  %v2388_v32 = vsub.f32 %v2329_v16, %v2386_v30  ;;  %v2593_v16 = vsel %vm1611_vm4, %v2583_v11, 0 }
 0x60b   : > { %2602 = vmatpush.bf16.msra.mxu0 %v2593_v16 }
 0x60c   : > { %v2389_v33 = vmul.f32 %v2387_v31, %v2387_v31  ;;  %v2390_v34 = vmul.f32 %v2388_v32, %v2388_v32 }
 0x60e   : > { %v2391_v35 = vsel %vm1607_vm6, %v2389_v33, 0.0  ;;  %v2392_v37 = vsel %vm1607_vm6, %v2390_v34, 0.0 }
 0x60f   : > { %v2393_v38 = vadd.f32 %v2392_v37, %v2391_v35 }
 0x611   : > { %v2394_v41 = vrot.slane %v2393_v38, 4 }
 0x613   : > { %v2395_v42 = vadd.f32 %v2394_v41, %v2393_v38  ;;  %v2702_v41 = vld [vmem:[%s6352_s14 + $0x18] sm:$0xf] }
 0x615   : > { %v2396_v43 = vrot.slane %v2395_v42, 2 }
 0x617   : > { %v2397_v39 = vadd.f32 %v2396_v43, %v2395_v42 }
 0x619   : > { %v2398_v40 = vrot.slane %v2397_v39, 1 }
 0x61b   : > { %v2399_v44 = vadd.f32 %v2398_v40, %v2397_v39  ;;  %v2703_v39 = vpack.c.bf16 %v2702_v41, %v2702_v41 }
 0x61d   : > { %5862 = vmatmul.msk.f32.vlgmr.msra.gmra.mxu3 %vm1607_vm6, %v2399_v44 }
 0x61e   : > { %2693 = vmatpush.bf16.msra.mxu3 %v2684_v28 }
 0x6a0   : > { %v2420_v46 = vpop.f32.mrf.mxu3 }
 0x6a1   : > { %v2423_v47 = vmul.f32 0.0625, %v2420_v46 }
 0x6a3   : > { %v2424_v48 = vadd.f32 1e-05, %v2423_v47  ;;  %v2711_v47 = vsel %vm1611_vm4, %v2703_v39, 0 }
 0x6a4   : > { %2720 = vmatpush.bf16.msrb.mxu0 %v2711_v47 }
 0x6a5   : > { %6115 = vrsqrt.f32 %v2424_v48  ;;  %vm2431_vm2 = vweird.f32 %v2424_v48 }
 0x6ab   : > { %v6116_v49 = vpop.eup %6115 }
 0x6ac   : > { %v2426_v50 = vmul.f32 %v6116_v49, %v2424_v48  ;;  %vm2432_vm13 = vweird.f32 %v6116_v49  ;;  %v2644_v48 = vld [vmem:[%s6352_s14 + $0x10] sm:$0xf] }
 0x6ad   : > { %vm2433_vm3 = vmor %vm2431_vm2, %vm2432_vm13 }
 0x6ae   : > { %v2427_v55 = vmul.f32 %v6116_v49, %v2426_v50 }
 0x6b0   : > { %v2428_v56 = vmul.f32 0.5, %v2427_v55 }
 0x6b2   : > { %v2429_v57 = vsub.f32 1.5, %v2428_v56  ;;  %v2645_v56 = vpack.c.bf16 %v2644_v48, %v2644_v48 }
 0x6b4   : > { %v2430_v58 = vmul.f32 %v6116_v49, %v2429_v57 }
 0x6b6   : > { %v2434_v59 = vsel %vm2433_vm3, %v6116_v49, %v2430_v58  ;;  %v2729_v49 = vld [vmem:[%s6352_s14 + $0x1c] sm:$0xf] }
 0x6b7   : > { %5864 = vmatmul.msk.f32.vlgmr.msrb.gmra.mxu1 %vm1607_vm6, %v2434_v59  ;;  %v2730_v57 = vpack.c.bf16 %v2729_v49, %v2729_v49 }
 0x734   : > { %v2455_v53 = vpop.f32.mrf.mxu1 }
 0x735   : > { %v2458_v54 = vperm.slane %v2455_v53, 0 }
 0x737   : > { %v2459_v61 = vmul.f32 %v2458_v54, %v2387_v31  ;;  %v2460_v51 = vmul.f32 %v2458_v54, %v2388_v32 }
 0x739   : > { %v2465_v52 = vmul.f32 %v6077_v60, %v2459_v61  ;;  %v2466_v63 = vmul.f32 %v6077_v60, %v2460_v51  ;;  %v2653_v60 = vsel %vm1611_vm4, %v2645_v56, 0  ;;  %v2742_v61 = vsel %vm1611_vm4, %v2730_v57, 0 }
 0x73a   : > { %2662 = vmatpush.bf16.msrb.mxu2 %v2653_v60  ;;  %2751 = vmatpush.bf16.msrb.mxu1 %v2742_v61 }
 0x73b   : > { %v6759_v0 = vadd.f32 %v6078_v62, %v2465_v52  ;;  %v6761_v1 = vadd.f32 %v6078_v62, %v2466_v63 }
 0x73d   : > { %v5865_v2 = vmul.f32 -1.442695, %v6759_v0  ;;  %v5866_v3 = vmul.f32 -1.442695, %v6761_v1 }
 0x73f   : > { %6117 = vpow2.f32 %v5865_v2 }
 0x740   : > { %6119 = vpow2.f32 %v5866_v3 }
 0x745   : > { %v6118_v13 = vpop.eup %6117 }
 0x746   : > { %v6120_v14 = vpop.eup %6119  ;;  %v2479_v15 = vadd.f32 1.0, %v6118_v13 }
 0x747   : > { %v2480_v19 = vadd.f32 1.0, %v6120_v14 }
 0x748   : > { %6121 = vrcp.f32 %v2479_v15  ;;  %v2490_v33 = vand.u32 2147483647, %v2479_v15  ;;  %v2492_v34 = vand.u32 2147483648, %v2479_v15  ;;  %vm2486_vm0 = vweird.f32 %v2479_v15 }
 0x749   : > { %6123 = vrcp.f32 %v2480_v19  ;;  %v2507_v38 = vand.u32 2147483648, %v2480_v19  ;;  %v2505_v43 = vand.u32 2147483647, %v2480_v19  ;;  %vm2501_vm13 = vweird.f32 %v2480_v19 }
 0x74a   : > { %vm2491_vm1 = vcmp.eq.f32.partialorder %v2490_v33, 8.507059e+37  ;;  %v2493_v44 = vor.u32 1.1754944e-38, %v2492_v34 }
 0x74b   : > { %v2508_v55 = vor.u32 1.1754944e-38, %v2507_v38  ;;  %vm2506_vm3 = vcmp.eq.f32.partialorder %v2505_v43, 8.507059e+37 }
 0x74e   : > { %v6122_v26 = vpop.eup %6121 }
 0x74f   : > { %v6124_v29 = vpop.eup %6123  ;;  %v2482_v30 = vmul.f32 %v6122_v26, %v2479_v15  ;;  %vm2487_vm14 = vweird.f32 %v6122_v26  ;;  %v2762_v15 = vpack.c.bf16 %v2760_v7, %v2760_v7 }
 0x750   : > { %v2497_v31 = vmul.f32 %v6124_v29, %v2480_v19  ;;  %vm2502_vm15 = vweird.f32 %v6124_v29  ;;  %vm2488_vm12 = vmor %vm2486_vm0, %vm2487_vm14  ;;  %vm7264_vm14 = vcmask 1045504  }
 0x751   : > { %v2483_v32 = vsub.f32 1.0, %v2482_v30  ;;  %vm2503_vm2 = vmor %vm2501_vm13, %vm2502_vm15  ;;  %vm7265_vm15 = vsmask.f32 4352 }
 0x752   : > { %v2498_v35 = vsub.f32 1.0, %v2497_v31 }
 0x753   : > { %v2484_v37 = vmul.f32 %v6122_v26, %v2483_v32 }
 0x754   : > { %v2499_v42 = vmul.f32 %v6124_v29, %v2498_v35 }
 0x755   : > { %v2485_v40 = vadd.f32 %v6122_v26, %v2484_v37 }
 0x756   : > { %v2500_v46 = vadd.f32 %v6124_v29, %v2499_v42 }
 0x757   : > { %v2489_v50 = vsel %vm2488_vm12, %v6122_v26, %v2485_v40  ;;  %v2767_v26 = vsel %vm1611_vm4, %v2762_v15, 0 }
 0x758   : > { %v2494_v58 = vsel %vm2491_vm1, %v2493_v44, %v2489_v50  ;;  %v2504_v59 = vsel %vm2503_vm2, %v6124_v29, %v2500_v46 }
 0x759   : > { %v2509_v53 = vsel %vm2506_vm3, %v2508_v55, %v2504_v59  ;;  %v2511_v54 = vmul.f32 %v2494_v58, %v6759_v0 }
 0x75a   : > { %v2512_v51 = vmul.f32 %v2509_v53, %v6761_v1 }
 0x75b   : > { %v6784_v62 = vadd.f32 %v2511_v54, %v6628_v27 }
 0x75c   : > { %v6787_v52 = vadd.f32 %v2512_v51, %v6636_v36 }
 0x75d   : > { %v2517_v63 = vrot.slane %v6784_v62, 4 }
 0x75e   : > { %v2518_v2 = vrot.slane %v6787_v52, 4 }
 0x75f   : > { %v2523_v0 = vsel %vm1579_vm5, 0.0, %v2517_v63 }
 0x760   : > { %v2519_v3 = vsel %vm1579_vm5, %v2517_v63, %v2518_v2  ;;  %v2524_v4 = vsel %vm1579_vm5, %v2518_v2, 0.0 }
 0x761   : > { %v2526_v5 = vpack.c.bf16 %v2519_v3, %v2523_v0  ;;  %v2529_v1 = vpack.c.bf16 %v2524_v4, %v2524_v4  ;;  %v2761_v55 = vpack.c.bf16 %v2524_v4, %v2519_v3 }
 0x763   : > { %5868 = vmatmul.msk.bf16.vlgmr.msrb.gmra.mxu3 %vm1607_vm6, %v2526_v5  ;;  %v2586_v27 = vrot.slane %v2526_v5, 1  ;;  %v2587_v10 = vrot.slane %v2529_v1, 1  ;;  %v2532_v11 = vshrl.u32 %v2526_v5, 16  ;;  %v2534_v36 = vshll.u32 %v2526_v5, 16 }
 0x764   : > { %v2539_v13 = vshll.u32 %v2529_v1, 16  ;;  %v2616_v14 = vshrl.u32 %v2529_v1, 16  ;;  %5876 = vmatpush.msk.msrb.mxu3 %vm1579_vm5, %v6670_v45  ;;  %v2704_v37 = vrot.slane %v2526_v5, 3  ;;  %v2705_v38 = vrot.slane %v2529_v1, 3 }
 0x765   : > { %v2588_v16 = vsel %vm1652_vm7, %v2586_v27, %v2587_v10  ;;  %v2536_v17 = vrot.slane %v2534_v36, 1  ;;  %v2613_v18 = vrot.slane %v2532_v11, 1  ;;  %v2614_v19 = vrot.slane %v2534_v36, 2 }
 0x766   : > { %5869 = vmatmul.msk.bf16.vlgmr.msra.gmra.mxu0 %vm1607_vm6, %v2588_v16  ;;  %v2618_v20 = vrot.slane %v2616_v14, 1  ;;  %v2619_v21 = vrot.slane %v2539_v13, 2  ;;  %v2541_v23 = vrot.slane %v2539_v13, 1  ;;  %v2673_v29 = vrot.slane %v2532_v11, 2 }
 0x767   : > { %v2537_v22 = vor.u32 %v2536_v17, %v2532_v11  ;;  %v2615_v24 = vor.u32 %v2614_v19, %v2613_v18  ;;  %5878 = vmatpush.msk.msra.mxu0 %vm1579_vm5, %v6681_v12  ;;  %v2674_v31 = vrot.slane %v2534_v36, 3  ;;  %v2676_v32 = vrot.slane %v2616_v14, 2 }
 0x768   : > { %v2620_v25 = vor.u32 %v2619_v21, %v2618_v20  ;;  %v2677_v33 = vrot.slane %v2539_v13, 3  ;;  %v2731_v41 = vrot.slane %v2532_v11, 3  ;;  %v2732_v43 = vrot.slane %v2534_v36, 4  ;;  %v6079_v21 = vld [vmem:[%s6357_s19] ss:$0 sm:$0xff] }
 0x769   : > { %v2542_v28 = vsel %vm1594_vm8, %v2537_v22, %v2541_v23  ;;  %v2675_v34 = vor.u32 %v2674_v31, %v2673_v29  ;;  %v2734_v39 = vrot.slane %v2616_v14, 3  ;;  %v2735_v40 = vrot.slane %v2539_v13, 4 }
 0x76a   : > { %5867 = vmatmul.msk.bf16.vlgmr.msra.gmra.mxu2 %vm1607_vm6, %v2542_v28  ;;  %v2621_v30 = vsel %vm1680_vm9, %v2615_v24, %v2620_v25  ;;  %v2678_v35 = vor.u32 %v2677_v33, %v2676_v32  ;;  %v2706_v44 = vsel %vm1774_vm11, %v2704_v37, %v2705_v38  ;;  %v2646_v46 = vrot.slane %v2526_v5, 2 }
 0x76b   : > { %5870 = vmatmul.msk.bf16.vlgmr.msra.gmra.mxu1 %vm1607_vm6, %v2621_v30  ;;  %2776 = vmatpush.bf16.msra.mxu2 %v2767_v26  ;;  %v2647_v47 = vrot.slane %v2529_v1, 2  ;;  %v2736_v48 = vor.u32 %v2735_v40, %v2734_v39 }
 0x76c   : > { %5880 = vmatpush.msk.msra.mxu1 %vm1579_vm5, %v6670_v45  ;;  %v2679_v42 = vsel %vm1742_vm10, %v2675_v34, %v2678_v35  ;;  %v2733_v45 = vor.u32 %v2732_v43, %v2731_v41 }
 0x76d   : > { %v2648_v49 = vsel %vm7264_vm14, %v2646_v46, %v2647_v47 }
 0x76e   : > { %v2737_v50 = vsel %vm7265_vm15, %v2733_v45, %v2736_v48 }
 0x773   : > { %5872 = vmatmul.msk.bf16.vlgmr.msra.gmra.mxu3 %vm1607_vm6, %v2679_v42 }
 0x774   : > { %5882 = vmatpush.msk.msra.mxu3 %vm1579_vm5, %v6681_v12 }
 0x776   : > { %5873 = vmatmul.msk.bf16.vlgmr.msrb.gmra.mxu0 %vm1607_vm6, %v2706_v44 }
 0x77a   : > { %5871 = vmatmul.msk.bf16.vlgmr.msrb.gmra.mxu2 %vm1607_vm6, %v2648_v49 }
 0x77b   : > { %5874 = vmatmul.msk.bf16.vlgmr.msrb.gmra.mxu1 %vm1607_vm6, %v2737_v50 }
 0x78a   : > { %5875 = vmatmul.msk.bf16.vlgmr.msra.gmra.mxu2 %vm1607_vm6, %v2761_v55 }
 0x7e3   : > { %v2604_v57 = vpop.f32.mrf.mxu0 }
 0x7e6   : > { %v2577_v12 = vpop.f32.mrf.mxu3 }
 0x7e8   : > { %v2637_v58 = vpop.f32.mrf.mxu1 }
 0x7eb   : > { %v2606_v60 = vpop.f32.mrf.mxu0 }
 0x7ed   : > { %v2558_v56 = vpop.f32.mrf.mxu2 }
 0x7ee   : > { %v2579_v53 = vpop.f32.mrf.mxu3  ;;  %v2578_v54 = vadd.f32 %v2577_v12, %v2558_v56 }
 0x7f0   : > { %v2609_v51 = vadd.f32 %v2604_v57, %v2578_v54  ;;  %v2639_v2 = vpop.f32.mrf.mxu1 }
 0x7f2   : > { %v2642_v1 = vadd.f32 %v2637_v58, %v2609_v51 }
 0x7f3   : > { %v2722_v3 = vpop.f32.mrf.mxu0 }
 0x7f5   : > { %v2560_v59 = vpop.f32.mrf.mxu2 }
 0x7f6   : > { %v2580_v63 = vadd.f32 %v2579_v53, %v2560_v59  ;;  %v2695_v0 = vpop.f32.mrf.mxu3 }
 0x7f8   : > { %v2610_v5 = vadd.f32 %v2606_v60, %v2580_v63  ;;  %v2753_v36 = vpop.f32.mrf.mxu1 }
 0x7fa   : > { %v2643_v27 = vadd.f32 %v2639_v2, %v2610_v5 }
 0x7fb   : > { %v2724_v17 = vpop.f32.mrf.mxu0 }
 0x7fd   : > { %v2664_v61 = vpop.f32.mrf.mxu2 }
 0x7fe   : > { %v2669_v7 = vadd.f32 %v2664_v61, %v2642_v1  ;;  %v2697_v13 = vpop.f32.mrf.mxu3 }
 0x800   : > { %v2700_v10 = vadd.f32 %v2695_v0, %v2669_v7  ;;  %v2755_v22 = vpop.f32.mrf.mxu1 }
 0x802   : > { %v2727_v15 = vadd.f32 %v2722_v3, %v2700_v10  ;;  %v6080_v3 = vld [vmem:[%s6362_s24] ss:$0 sm:$0xff] }
 0x803   : > { %v6081_v10 = vld [vmem:[%s7266_s18] ss:$0 sm:$0xff]  ;;  %s7221_s18 = smov 96  }
 0x804   : > { %v2758_v18 = vadd.f32 %v2753_v36, %v2727_v15 }
 0x805   : > { %v2666_v4 = vpop.f32.mrf.mxu2 }
 0x806   : > { %v2670_v11 = vadd.f32 %v2666_v4, %v2643_v27 }
 0x808   : > { %v2701_v14 = vadd.f32 %v2697_v13, %v2670_v11 }
 0x80a   : > { %v2728_v19 = vadd.f32 %v2724_v17, %v2701_v14  ;;  %v2984_v17 = vld [vmem:[%s7267_s0] sm:$0xf] }
 0x80c   : > { %v2759_v23 = vadd.f32 %v2755_v22, %v2728_v19  ;;  %v3041_v19 = vld [vmem:[%s7267_s0 + $0x8] sm:$0xf] }
 0x80d   : > { %v2778_v16 = vpop.f32.mrf.mxu2 }
 0x80e   : > { %v2783_v20 = vadd.f32 %v2778_v16, %v2758_v18  ;;  %v2986_v18 = vpack.c.bf16 %v2984_v17, %v2984_v17  ;;  %v3219_v17 = vld [vmem:[%s7267_s0 + $0x20] sm:$0xf] }
 0x810   : > { %v2789_v25 = vadd.f32 %v6079_v21, %v2783_v20  ;;  %v3025_v20 = vsel %vm1611_vm4, %v2986_v18, 0 }
 0x811   : > { %3034 = vmatpush.bf16.msrb.mxu1 %v3025_v20 }
 0x812   : > { %v2791_v29 = vsel %vm1607_vm6, %v2789_v25, 0.0 }
 0x815   : > { %v2780_v24 = vpop.f32.mrf.mxu2 }
 0x816   : > { %v2784_v26 = vadd.f32 %v2780_v24, %v2759_v23  ;;  %v2987_v23 = vld [vmem:[%s7267_s0 + $0x4] sm:$0xf]  ;;  %v3070_v24 = vld [vmem:[%s7267_s0 + $0xc] sm:$0xf] }
 0x818   : > { %v2790_v28 = vadd.f32 %v6079_v21, %v2784_v26  ;;  %v3042_v21 = vpack.c.bf16 %v3041_v19, %v3041_v19  ;;  %v2989_v26 = vpack.c.bf16 %v2987_v23, %v2987_v23  ;;  %v6197_v23 = vld [vmem:[%s6392_s4] sm:$0xf] }
 0x81a   : > { %v2792_v30 = vsel %vm1607_vm6, %v2790_v28, 0.0  ;;  %v3052_v22 = vsel %vm1611_vm4, %v3042_v21, 0 }
 0x81b   : > { %v2793_v31 = vadd.f32 %v2792_v30, %v2791_v29  ;;  %3061 = vmatpush.bf16.msrb.mxu2 %v3052_v22  ;;  %v3221_v22 = vpack.c.bf16 %v3219_v17, %v3219_v17 }
 0x81d   : > { %v2794_v32 = vrot.slane %v2793_v31, 4 }
 0x81f   : > { %v2795_v33 = vadd.f32 %v2794_v32, %v2793_v31  ;;  %v3006_v32 = vsel %vm1611_vm4, %v2989_v26, 0 }
 0x820   : > { %3015 = vmatpush.bf16.msrb.mxu0 %v3006_v32 }
 0x821   : > { %v2796_v34 = vrot.slane %v2795_v33, 2 }
 0x823   : > { %v2797_v35 = vadd.f32 %v2796_v34, %v2795_v33  ;;  %v3130_v34 = vld [vmem:[%s7267_s0 + $0x14] sm:$0xf] }
 0x825   : > { %v2798_v37 = vrot.slane %v2797_v35, 1 }
 0x827   : > { %v2799_v38 = vadd.f32 %v2798_v37, %v2797_v35  ;;  %v3131_v35 = vpack.c.bf16 %v3130_v34, %v3130_v34  ;;  %v6198_v34 = vld [vmem:[%s6397_s12] sm:$0xf] }
 0x829   : > { %5877 = vmatmul.msk.f32.vlgmr.msrb.gmra.mxu3 %vm1607_vm6, %v2799_v38  ;;  %v3143_v37 = vsel %vm1611_vm4, %v3131_v35, 0 }
 0x8ac   : > { %v2820_v41 = vpop.f32.mrf.mxu3 }
 0x8ad   : > { %v2823_v42 = vmul.f32 0.0625, %v2820_v41 }
 0x8af   : > { %5879 = vmatmul.msk.f32.vlgmr.msra.gmra.mxu0 %vm1607_vm6, %v2823_v42 }
 0x92c   : > { %v2844_v43 = vpop.f32.mrf.mxu0 }
 0x92d   : > { %v2847_v39 = vperm.slane %v2844_v43, 0 }
 0x92f   : > { %v2848_v40 = vsub.f32 %v2789_v25, %v2847_v39  ;;  %v2849_v44 = vsub.f32 %v2790_v28, %v2847_v39  ;;  %v3071_v28 = vpack.c.bf16 %v3070_v24, %v3070_v24 }
 0x931   : > { %v2850_v46 = vmul.f32 %v2848_v40, %v2848_v40  ;;  %v2851_v47 = vmul.f32 %v2849_v44, %v2849_v44  ;;  %v3085_v33 = vsel %vm1611_vm4, %v3071_v28, 0 }
 0x932   : > { %3094 = vmatpush.bf16.msrb.mxu3 %v3085_v33 }
 0x933   : > { %v2852_v45 = vsel %vm1607_vm6, %v2850_v46, 0.0  ;;  %v2853_v48 = vsel %vm1607_vm6, %v2851_v47, 0.0 }
 0x934   : > { %v2854_v49 = vadd.f32 %v2853_v48, %v2852_v45 }
 0x936   : > { %v2855_v50 = vrot.slane %v2854_v49, 4 }
 0x938   : > { %v2856_v55 = vadd.f32 %v2855_v50, %v2854_v49 }
 0x93a   : > { %v2857_v12 = vrot.slane %v2856_v55, 2 }
 0x93c   : > { %v2858_v56 = vadd.f32 %v2857_v12, %v2856_v55 }
 0x93e   : > { %v2859_v57 = vrot.slane %v2858_v56, 1 }
 0x940   : > { %v2860_v58 = vadd.f32 %v2859_v57, %v2858_v56  ;;  %v3103_v56 = vld [vmem:[%s7267_s0 + $0x10] sm:$0xf]  ;;  %v3188_v57 = vld [vmem:[%s7267_s0 + $0x1c] sm:$0xf] }
 0x942   : > { %5881 = vmatmul.msk.f32.vlgmr.msra.gmra.mxu1 %vm1607_vm6, %v2860_v58 }
 0x943   : > { %3152 = vmatpush.bf16.msra.mxu1 %v3143_v37  ;;  %v3226_v37 = vsel %vm1611_vm4, %v3221_v22, 0 }
 0x9bf   : > { %v2881_v59 = vpop.f32.mrf.mxu1 }
 0x9c0   : > { %v2884_v53 = vmul.f32 0.0625, %v2881_v59  ;;  %v3104_v59 = vpack.c.bf16 %v3103_v56, %v3103_v56 }
 0x9c2   : > { %v2885_v54 = vadd.f32 1e-05, %v2884_v53  ;;  %v3189_v53 = vpack.c.bf16 %v3188_v57, %v3188_v57 }
 0x9c4   : > { %6125 = vrsqrt.f32 %v2885_v54  ;;  %vm2892_vm1 = vweird.f32 %v2885_v54 }
 0x9ca   : > { %v6126_v60 = vpop.eup %6125 }
 0x9cb   : > { %v2887_v61 = vmul.f32 %v6126_v60, %v2885_v54  ;;  %vm2893_vm0 = vweird.f32 %v6126_v60 }
 0x9cc   : > { %vm2894_vm12 = vmor %vm2892_vm1, %vm2893_vm0 }
 0x9cd   : > { %v2888_v51 = vmul.f32 %v6126_v60, %v2887_v61 }
 0x9cf   : > { %v2889_v63 = vmul.f32 0.5, %v2888_v51 }
 0x9d1   : > { %v2890_v2 = vsub.f32 1.5, %v2889_v63  ;;  %v3112_v63 = vsel %vm1611_vm4, %v3104_v59, 0 }
 0x9d2   : > { %3121 = vmatpush.bf16.msra.mxu0 %v3112_v63 }
 0x9d3   : > { %v2891_v0 = vmul.f32 %v6126_v60, %v2890_v2  ;;  %v3201_v2 = vsel %vm1611_vm4, %v3189_v53, 0 }
 0x9d5   : > { %v2895_v5 = vsel %vm2894_vm12, %v6126_v60, %v2891_v0 }
 0x9d6   : > { %5883 = vmatmul.msk.f32.vlgmr.msra.gmra.mxu3 %vm1607_vm6, %v2895_v5 }
 0x9d7   : > { %3210 = vmatpush.bf16.msra.mxu3 %v3201_v2 }
 0xa59   : > { %v2916_v1 = vpop.f32.mrf.mxu3 }
 0xa5a   : > { %v2919_v7 = vperm.slane %v2916_v1, 0 }
 0xa5c   : > { %v2920_v4 = vmul.f32 %v2919_v7, %v2848_v40  ;;  %v2921_v27 = vmul.f32 %v2919_v7, %v2849_v44  ;;  %v3161_v40 = vld [vmem:[%s7267_s0 + $0x18] sm:$0xf]  ;;  %s7312_s0 = smov 120  }
 0xa5d   : > { %v3162_v45 = vpack.c.bf16 %v3161_v40, %v3161_v40 }
 0xa5e   : > { %v2926_v11 = vmul.f32 %v6080_v3, %v2920_v4  ;;  %v2927_v36 = vmul.f32 %v6080_v3, %v2921_v27 }
 0xa5f   : > { %v3170_v12 = vsel %vm1611_vm4, %v3162_v45, 0 }
 0xa60   : > { %v6831_v13 = vadd.f32 %v6081_v10, %v2926_v11  ;;  %v6833_v14 = vadd.f32 %v6081_v10, %v2927_v36  ;;  %3179 = vmatpush.bf16.msra.mxu2 %v3170_v12 }
 0xa62   : > { %v5884_v15 = vmul.f32 -1.442695, %v6831_v13  ;;  %v5885_v16 = vmul.f32 -1.442695, %v6833_v14 }
 0xa64   : > { %6127 = vpow2.f32 %v5884_v15 }
 0xa65   : > { %6129 = vpow2.f32 %v5885_v16 }
 0xa6a   : > { %v6128_v25 = vpop.eup %6127 }
 0xa6b   : > { %v6130_v29 = vpop.eup %6129  ;;  %v2940_v30 = vadd.f32 1.0, %v6128_v25 }
 0xa6c   : > { %v2941_v31 = vadd.f32 1.0, %v6130_v29 }
 0xa6d   : > { %6131 = vrcp.f32 %v2940_v30  ;;  %v2951_v44 = vand.u32 2147483647, %v2940_v30  ;;  %v2953_v46 = vand.u32 2147483648, %v2940_v30  ;;  %vm2947_vm3 = vweird.f32 %v2940_v30 }
 0xa6e   : > { %6133 = vrcp.f32 %v2941_v31  ;;  %v2966_v49 = vand.u32 2147483647, %v2941_v31  ;;  %v2968_v50 = vand.u32 2147483648, %v2941_v31  ;;  %vm2962_vm0 = vweird.f32 %v2941_v31 }
 0xa6f   : > { %vm2952_vm15 = vcmp.eq.f32.partialorder %v2951_v44, 8.507059e+37  ;;  %v2954_v54 = vor.u32 1.1754944e-38, %v2953_v46 }
 0xa70   : > { %v2969_v51 = vor.u32 1.1754944e-38, %v2968_v50  ;;  %vm2967_vm12 = vcmp.eq.f32.partialorder %v2966_v49, 8.507059e+37 }
 0xa73   : > { %v6132_v38 = vpop.eup %6131 }
 0xa74   : > { %v6134_v41 = vpop.eup %6133  ;;  %v2943_v42 = vmul.f32 %v6132_v38, %v2940_v30  ;;  %vm2948_vm13 = vweird.f32 %v6132_v38 }
 0xa75   : > { %v2958_v43 = vmul.f32 %v6134_v41, %v2941_v31  ;;  %vm2963_vm2 = vweird.f32 %v6134_v41  ;;  %vm2949_vm14 = vmor %vm2947_vm3, %vm2948_vm13 }
 0xa76   : > { %v2944_v39 = vsub.f32 1.0, %v2943_v42  ;;  %vm2964_vm1 = vmor %vm2962_vm0, %vm2963_vm2 }
 0xa77   : > { %v2959_v47 = vsub.f32 1.0, %v2958_v43 }
 0xa78   : > { %v2945_v48 = vmul.f32 %v6132_v38, %v2944_v39 }
 0xa79   : > { %v2960_v55 = vmul.f32 %v6134_v41, %v2959_v47 }
 0xa7a   : > { %v2946_v58 = vadd.f32 %v6132_v38, %v2945_v48 }
 0xa7b   : > { %v2961_v60 = vadd.f32 %v6134_v41, %v2960_v55 }
 0xa7c   : > { %v2950_v61 = vsel %vm2949_vm14, %v6132_v38, %v2946_v58 }
 0xa7d   : > { %v2955_v0 = vsel %vm2952_vm15, %v2954_v54, %v2950_v61  ;;  %v2965_v5 = vsel %vm2964_vm1, %v6134_v41, %v2961_v60 }
 0xa7e   : > { %v2970_v1 = vsel %vm2967_vm12, %v2969_v51, %v2965_v5  ;;  %v2972_v7 = vmul.f32 %v2955_v0, %v6831_v13 }
 0xa7f   : > { %v2973_v3 = vmul.f32 %v2970_v1, %v6833_v14 }
 0xa80   : > { %v2976_v4 = vrot.slane %v2972_v7, 4 }
 0xa81   : > { %v2977_v27 = vrot.slane %v2973_v3, 4 }
 0xa82   : > { %v2982_v10 = vsel %vm1579_vm5, 0.0, %v2976_v4 }
 0xa83   : > { %v2978_v11 = vsel %vm1579_vm5, %v2976_v4, %v2977_v27  ;;  %v2983_v36 = vsel %vm1579_vm5, %v2977_v27, 0.0 }
 0xa84   : > { %v2985_v15 = vpack.c.bf16 %v2978_v11, %v2982_v10  ;;  %v2988_v16 = vpack.c.bf16 %v2983_v36, %v2983_v36  ;;  %v3220_v61 = vpack.c.bf16 %v2983_v36, %v2978_v11 }
 0xa86   : > { %5887 = vmatmul.msk.bf16.vlgmr.msrb.gmra.mxu1 %vm1607_vm6, %v2985_v15  ;;  %v3045_v18 = vrot.slane %v2985_v15, 1  ;;  %v3046_v19 = vrot.slane %v2988_v16, 1  ;;  %v2991_v20 = vshrl.u32 %v2985_v15, 16  ;;  %v2993_v13 = vshll.u32 %v2985_v15, 16 }
 0xa87   : > { %v2998_v14 = vshll.u32 %v2988_v16, 16  ;;  %v3075_v21 = vshrl.u32 %v2988_v16, 16  ;;  %5895 = vmatpush.msk.msrb.mxu1 %vm1579_vm5, %v6197_v23  ;;  %v3163_v47 = vrot.slane %v2985_v15, 3  ;;  %v3164_v45 = vrot.slane %v2988_v16, 3 }
 0xa88   : > { %v3047_v24 = vsel %vm1652_vm7, %v3045_v18, %v3046_v19  ;;  %v2995_v25 = vrot.slane %v2993_v13, 1  ;;  %v3072_v26 = vrot.slane %v2991_v20, 1  ;;  %v3073_v28 = vrot.slane %v2993_v13, 2 }
 0xa89   : > { %5888 = vmatmul.msk.bf16.vlgmr.msrb.gmra.mxu2 %vm1607_vm6, %v3047_v24  ;;  %v3077_v29 = vrot.slane %v3075_v21, 1  ;;  %v3078_v30 = vrot.slane %v2998_v14, 2  ;;  %v3000_v32 = vrot.slane %v2998_v14, 1  ;;  %v3132_v41 = vrot.slane %v2991_v20, 2 }
 0xa8a   : > { %v2996_v31 = vor.u32 %v2995_v25, %v2991_v20  ;;  %v3074_v33 = vor.u32 %v3073_v28, %v3072_v26  ;;  %5897 = vmatpush.msk.msrb.mxu2 %vm1579_vm5, %v6198_v34  ;;  %v3133_v43 = vrot.slane %v2993_v13, 3  ;;  %v3135_v39 = vrot.slane %v3075_v21, 2 }
 0xa8b   : > { %v3079_v35 = vor.u32 %v3078_v30, %v3077_v29  ;;  %v3136_v40 = vrot.slane %v2998_v14, 3  ;;  %v3190_v48 = vrot.slane %v2991_v20, 3  ;;  %v3191_v50 = vrot.slane %v2993_v13, 4 }
 0xa8c   : > { %v3001_v38 = vsel %vm1594_vm8, %v2996_v31, %v3000_v32  ;;  %v3134_v44 = vor.u32 %v3133_v43, %v3132_v41  ;;  %v3193_v55 = vrot.slane %v3075_v21, 3  ;;  %v3194_v12 = vrot.slane %v2998_v14, 4  ;;  %v6082_v32 = vld [vmem:[%s7270_s26] ss:$0 sm:$0xff]  ;;  %s7222_s26 = smov 88  }
 0xa8d   : > { %5886 = vmatmul.msk.bf16.vlgmr.msrb.gmra.mxu0 %vm1607_vm6, %v3001_v38  ;;  %v3080_v42 = vsel %vm1680_vm9, %v3074_v33, %v3079_v35  ;;  %v3137_v46 = vor.u32 %v3136_v40, %v3135_v39  ;;  %v3165_v56 = vsel %vm1774_vm11, %v3163_v47, %v3164_v45  ;;  %v3105_v57 = vrot.slane %v2985_v15, 2 }
 0xa8e   : > { %5889 = vmatmul.msk.bf16.vlgmr.msrb.gmra.mxu3 %vm1607_vm6, %v3080_v42  ;;  %3235 = vmatpush.bf16.msrb.mxu0 %v3226_v37  ;;  %v3106_v58 = vrot.slane %v2988_v16, 2  ;;  %v3192_v59 = vor.u32 %v3191_v50, %v3190_v48  ;;  %v3195_v53 = vor.u32 %v3194_v12, %v3193_v55  ;;  %vm7268_vm8 = vcmask 1045504  }
 0xa8f   : > { %5899 = vmatpush.msk.msrb.mxu3 %vm1579_vm5, %v6197_v23  ;;  %v3138_v49 = vsel %vm1742_vm10, %v3134_v44, %v3137_v46  ;;  %vm7269_vm10 = vsmask.f32 4352 }
 0xa90   : > { %v3107_v54 = vsel %vm7268_vm8, %v3105_v57, %v3106_v58  ;;  %v3196_v60 = vsel %vm7269_vm10, %v3192_v59, %v3195_v53 }
 0xa96   : > { %5891 = vmatmul.msk.bf16.vlgmr.msra.gmra.mxu1 %vm1607_vm6, %v3138_v49 }
 0xa97   : > { %5901 = vmatpush.msk.msra.mxu1 %vm1579_vm5, %v6198_v34 }
 0xa99   : > { %5892 = vmatmul.msk.bf16.vlgmr.msra.gmra.mxu2 %vm1607_vm6, %v3165_v56 }
 0xa9d   : > { %5890 = vmatmul.msk.bf16.vlgmr.msra.gmra.mxu0 %vm1607_vm6, %v3107_v54 }
 0xa9e   : > { %5893 = vmatmul.msk.bf16.vlgmr.msra.gmra.mxu3 %vm1607_vm6, %v3196_v60 }
 0xaad   : > { %5894 = vmatmul.msk.bf16.vlgmr.msrb.gmra.mxu0 %vm1607_vm6, %v3220_v61 }
 0xb03   : > { %v3036_v51 = vpop.f32.mrf.mxu1 }
 0xb0a   : > { %v3017_v63 = vpop.f32.mrf.mxu0 }
 0xb0b   : > { %v3038_v1 = vpop.f32.mrf.mxu1  ;;  %v3037_v3 = vadd.f32 %v3036_v51, %v3017_v63 }
 0xb0c   : > { %v3063_v2 = vpop.f32.mrf.mxu2 }
 0xb0d   : > { %v3068_v10 = vadd.f32 %v3063_v2, %v3037_v3 }
 0xb11   : > { %v3096_v0 = vpop.f32.mrf.mxu3 }
 0xb12   : > { %v3019_v5 = vpop.f32.mrf.mxu0  ;;  %v3101_v17 = vadd.f32 %v3096_v0, %v3068_v10 }
 0xb13   : > { %v3039_v15 = vadd.f32 %v3038_v1, %v3019_v5  ;;  %v3154_v16 = vpop.f32.mrf.mxu1 }
 0xb14   : > { %v3065_v7 = vpop.f32.mrf.mxu2 }
 0xb15   : > { %v3069_v18 = vadd.f32 %v3065_v7, %v3039_v15 }
 0xb19   : > { %v3098_v4 = vpop.f32.mrf.mxu3 }
 0xb1a   : > { %v3123_v27 = vpop.f32.mrf.mxu0  ;;  %v3102_v20 = vadd.f32 %v3098_v4, %v3069_v18 }
 0xb1b   : > { %v3128_v19 = vadd.f32 %v3123_v27, %v3101_v17  ;;  %v3156_v22 = vpop.f32.mrf.mxu1 }
 0xb1c   : > { %v3181_v11 = vpop.f32.mrf.mxu2 }
 0xb1d   : > { %v3159_v14 = vadd.f32 %v3154_v16, %v3128_v19 }
 0xb1f   : > { %v3186_v23 = vadd.f32 %v3181_v11, %v3159_v14  ;;  %v6083_v11 = vld [vmem:[%s7271_s28] ss:$0 sm:$0xff]  ;;  %s7284_s28 = sld [smem:[#allocation13_spill]] }
 0xb21   : > { %v3212_v13 = vpop.f32.mrf.mxu3 }
 0xb22   : > { %v3125_v36 = vpop.f32.mrf.mxu0  ;;  %v3217_v28 = vadd.f32 %v3212_v13, %v3186_v23  ;;  %v6084_v13 = vld [vmem:[%s7272_s1] ss:$0 sm:$0xff]  ;;  %s7287_s1 = sld [smem:[#allocation15_spill]] }
 0xb23   : > { %v3129_v21 = vadd.f32 %v3125_v36, %v3102_v20 }
 0xb24   : > { %v3183_v26 = vpop.f32.mrf.mxu2 }
 0xb25   : > { %v3160_v24 = vadd.f32 %v3156_v22, %v3129_v21 }
 0xb27   : > { %v3187_v29 = vadd.f32 %v3183_v26, %v3160_v24 }
 0xb29   : > { %v3214_v30 = vpop.f32.mrf.mxu3 }
 0xb2a   : > { %v3237_v25 = vpop.f32.mrf.mxu0  ;;  %v3218_v33 = vadd.f32 %v3214_v30, %v3187_v29 }
 0xb2b   : > { %v3242_v31 = vadd.f32 %v3237_v25, %v3217_v28 }
 0xb2d   : > { %v3248_v35 = vadd.f32 %v6082_v32, %v3242_v31 }
 0xb2f   : > { %v3250_v41 = vsel %vm1607_vm6, %v3248_v35, 0.0 }
 0xb32   : > { %v3239_v34 = vpop.f32.mrf.mxu0 }
 0xb33   : > { %v3243_v37 = vadd.f32 %v3239_v34, %v3218_v33 }
 0xb35   : > { %v3249_v38 = vadd.f32 %v6082_v32, %v3243_v37 }
 0xb37   : > { %v3251_v42 = vsel %vm1607_vm6, %v3249_v38, 0.0 }
 0xb38   : > { %v3252_v43 = vadd.f32 %v3251_v42, %v3250_v41 }
 0xb3a   : > { %v3253_v39 = vrot.slane %v3252_v43, 4 }
 0xb3c   : > { %v3254_v40 = vadd.f32 %v3253_v39, %v3252_v43 }
 0xb3e   : > { %v3255_v44 = vrot.slane %v3254_v40, 2 }
 0xb40   : > { %v3256_v46 = vadd.f32 %v3255_v44, %v3254_v40 }
 0xb42   : > { %v3257_v47 = vrot.slane %v3256_v46, 1 }
 0xb44   : > { %v3258_v45 = vadd.f32 %v3257_v47, %v3256_v46 }
 0xb46   : > { %5896 = vmatmul.msk.f32.vlgmr.msrb.gmra.mxu1 %vm1607_vm6, %v3258_v45 }
 0xbc3   : > { %v3279_v48 = vpop.f32.mrf.mxu1 }
 0xbc4   : > { %v3282_v49 = vmul.f32 0.0625, %v3279_v48 }
 0xbc6   : > { %5898 = vmatmul.msk.f32.vlgmr.msrb.gmra.mxu2 %vm1607_vm6, %v3282_v49 }
 0xc49   : > { %v3303_v50 = vpop.f32.mrf.mxu2 }
 0xc4a   : > { %v3306_v55 = vperm.slane %v3303_v50, 0 }
 0xc4c   : > { %v3307_v12 = vsub.f32 %v3248_v35, %v3306_v55  ;;  %v3308_v56 = vsub.f32 %v3249_v38, %v3306_v55 }
 0xc4e   : > { %v3309_v57 = vmul.f32 %v3307_v12, %v3307_v12  ;;  %v3310_v58 = vmul.f32 %v3308_v56, %v3308_v56 }
 0xc50   : > { %v3311_v59 = vsel %vm1607_vm6, %v3309_v57, 0.0  ;;  %v3312_v53 = vsel %vm1607_vm6, %v3310_v58, 0.0 }
 0xc51   : > { %v3313_v54 = vadd.f32 %v3312_v53, %v3311_v59 }
 0xc53   : > { %v3314_v60 = vrot.slane %v3313_v54, 4 }
 0xc55   : > { %v3315_v61 = vadd.f32 %v3314_v60, %v3313_v54 }
 0xc57   : > { %v3316_v51 = vrot.slane %v3315_v61, 2 }
 0xc59   : > { %v3317_v63 = vadd.f32 %v3316_v51, %v3315_v61 }
 0xc5b   : > { %v3318_v2 = vrot.slane %v3317_v63, 1 }
 0xc5d   : > { %v3319_v0 = vadd.f32 %v3318_v2, %v3317_v63 }
 0xc5f   : > { %5900 = vmatmul.msk.f32.vlgmr.msrb.gmra.mxu3 %vm1607_vm6, %v3319_v0 }
 0xce2   : > { %v3340_v5 = vpop.f32.mrf.mxu3 }
 0xce3   : > { %v3343_v1 = vmul.f32 0.0625, %v3340_v5 }
 0xce5   : > { %v3344_v7 = vadd.f32 1e-05, %v3343_v1 }
 0xce7   : > { %6135 = vrsqrt.f32 %v3344_v7  ;;  %vm3351_vm13 = vweird.f32 %v3344_v7 }
 0xced   : > { %v6136_v3 = vpop.eup %6135 }
 0xcee   : > { %v3346_v4 = vmul.f32 %v6136_v3, %v3344_v7  ;;  %vm3352_vm11 = vweird.f32 %v6136_v3 }
 0xcef   : > { %vm3353_vm2 = vmor %vm3351_vm13, %vm3352_vm11 }
 0xcf0   : > { %v3347_v27 = vmul.f32 %v6136_v3, %v3346_v4 }
 0xcf2   : > { %v3348_v10 = vmul.f32 0.5, %v3347_v27 }
 0xcf4   : > { %v3349_v15 = vsub.f32 1.5, %v3348_v10 }
 0xcf6   : > { %v3350_v16 = vmul.f32 %v6136_v3, %v3349_v15 }
 0xcf8   : > { %v3354_v17 = vsel %vm3353_vm2, %v6136_v3, %v3350_v16 }
 0xcf9   : > { %5902 = vmatmul.msk.f32.vlgmr.msra.gmra.mxu1 %vm1607_vm6, %v3354_v17 }
 0xd76   : > { %v3375_v18 = vpop.f32.mrf.mxu1 }
 0xd77   : > { %v3378_v19 = vperm.slane %v3375_v18, 0 }
 0xd79   : > { %v3379_v36 = vmul.f32 %v3378_v19, %v3307_v12  ;;  %v3380_v20 = vmul.f32 %v3378_v19, %v3308_v56 }
 0xd7b   : > { %v3385_v14 = vmul.f32 %v6083_v11, %v3379_v36  ;;  %v3386_v21 = vmul.f32 %v6083_v11, %v3380_v20 }
 0xd7d   : > { %v3391_v22 = vadd.f32 %v6084_v13, %v3385_v14  ;;  %v3392_v23 = vadd.f32 %v6084_v13, %v3386_v21  ;;  %v3491_v13 = vld [vmem:[%s7273_s2] sm:$0xf]  ;;  %s7288_s2 = sld [smem:[#allocation14_spill]] }
 0xd7e   : > { %v3492_v14 = vpack.c.bf16 %v3491_v13, %v3491_v13 }
 0xd7f   : > { %v5903_v24 = vmul.f32 -1.442695, %v3391_v22  ;;  %v5904_v25 = vmul.f32 -1.442695, %v3392_v23 }
 0xd81   : > { %6137 = vpow2.f32 %v5903_v24 }
 0xd82   : > { %6139 = vpow2.f32 %v5904_v25 }
 0xd87   : > { %v6138_v26 = vpop.eup %6137 }
 0xd88   : > { %v6140_v28 = vpop.eup %6139  ;;  %v3399_v29 = vadd.f32 1.0, %v6138_v26 }
 0xd89   : > { %v3400_v30 = vadd.f32 1.0, %v6140_v28 }
 0xd8a   : > { %6141 = vrcp.f32 %v3399_v29  ;;  %v3412_v37 = vand.u32 2147483648, %v3399_v29  ;;  %v3410_v42 = vand.u32 2147483647, %v3399_v29  ;;  %vm3406_vm15 = vweird.f32 %v3399_v29 }
 0xd8b   : > { %6143 = vrcp.f32 %v3400_v30  ;;  %v3427_v43 = vand.u32 2147483648, %v3400_v30  ;;  %v3425_v40 = vand.u32 2147483647, %v3400_v30  ;;  %vm3421_vm1 = vweird.f32 %v3400_v30 }
 0xd8c   : > { %v3413_v46 = vor.u32 1.1754944e-38, %v3412_v37  ;;  %vm3411_vm12 = vcmp.eq.f32.partialorder %v3410_v42, 8.507059e+37 }
 0xd8d   : > { %v3428_v48 = vor.u32 1.1754944e-38, %v3427_v43  ;;  %vm3426_vm10 = vcmp.eq.f32.partialorder %v3425_v40, 8.507059e+37 }
 0xd90   : > { %v6142_v31 = vpop.eup %6141 }
 0xd91   : > { %v6144_v32 = vpop.eup %6143  ;;  %v3402_v33 = vmul.f32 %v6142_v31, %v3399_v29  ;;  %vm3407_vm3 = vweird.f32 %v6142_v31 }
 0xd92   : > { %v3417_v34 = vmul.f32 %v6144_v32, %v3400_v30  ;;  %vm3422_vm14 = vweird.f32 %v6144_v32  ;;  %vm3408_vm0 = vmor %vm3406_vm15, %vm3407_vm3  ;;  %vm3520_vm3 = vcmask 64512  }
 0xd93   : > { %v3403_v35 = vsub.f32 1.0, %v3402_v33  ;;  %vm3423_vm8 = vmor %vm3421_vm1, %vm3422_vm14  ;;  %vm7276_vm14 = vcmask 130048  }
 0xd94   : > { %v3418_v38 = vsub.f32 1.0, %v3417_v34  ;;  %v6086_v34 = vld [vmem:[%s7275_s10] ss:$0 sm:$0xff]  ;;  %vm7277_vm15 = vmmov %vm7276_vm14  ;;  %s7290_s10 = sld [smem:[#allocation16_spill]] }
 0xd95   : > { %v3404_v41 = vmul.f32 %v6142_v31, %v3403_v35 }
 0xd96   : > { %v3419_v39 = vmul.f32 %v6144_v32, %v3418_v38 }
 0xd97   : > { %v3405_v44 = vadd.f32 %v6142_v31, %v3404_v41 }
 0xd98   : > { %v3420_v47 = vadd.f32 %v6144_v32, %v3419_v39 }
 0xd99   : > { %v3409_v45 = vsel %vm3408_vm0, %v6142_v31, %v3405_v44  ;;  %vm7278_vm0 = vmmov %vm7276_vm14 }
 0xd9a   : > { %v3414_v49 = vsel %vm3411_vm12, %v3413_v46, %v3409_v45  ;;  %v3424_v50 = vsel %vm3423_vm8, %v6144_v32, %v3420_v47  ;;  %v6085_v32 = vld [vmem:[%s7274_s7] ss:$0 sm:$0xff]  ;;  %vm7279_vm1 = vmmov %vm7278_vm0  ;;  %s7289_s7 = sld [smem:[#allocation17_spill]] }
 0xd9b   : > { %v3429_v55 = vsel %vm3426_vm10, %v3428_v48, %v3424_v50  ;;  %v3431_v12 = vmul.f32 %v3414_v49, %v3391_v22  ;;  %v3497_v22 = vsel %vm1611_vm4, %v3492_v14, 0  ;;  %vm7280_vm12 = vmmov %vm7278_vm0 }
 0xd9c   : > { %v3432_v56 = vmul.f32 %v3429_v55, %v3392_v23  ;;  %3506 = vmatpush.bf16.msra.mxu2 %v3497_v22  ;;  %vm7281_vm8 = vmmov %vm7278_vm0 }
 0xd9d   : > { %v6895_v57 = vadd.f32 %v3431_v12, %v6784_v62  ;;  %vm7282_vm10 = vmmov %vm7278_vm0 }
 0xd9e   : > { %v6898_v58 = vadd.f32 %v3432_v56, %v6787_v52 }
 0xd9f   : > { %v3435_v59 = vsel %vm1607_vm6, %v6895_v57, 0.0 }
 0xda0   : > { %v3436_v53 = vsel %vm1607_vm6, %v6898_v58, 0.0 }
 0xda1   : > { %v3437_v54 = vadd.f32 %v3436_v53, %v3435_v59 }
 0xda3   : > { %v3438_v60 = vrot.slane %v3437_v54, 4 }
 0xda5   : > { %v3439_v61 = vadd.f32 %v3438_v60, %v3437_v54 }
 0xda7   : > { %v3440_v51 = vrot.slane %v3439_v61, 2 }
 0xda9   : > { %v3441_v63 = vadd.f32 %v3440_v51, %v3439_v61 }
 0xdab   : > { %v3442_v2 = vrot.slane %v3441_v63, 1 }
 0xdad   : > { %v3443_v0 = vadd.f32 %v3442_v2, %v3441_v63 }
 0xdaf   : > { %v3444_v5 = vsel %vm1607_vm6, %v3443_v0, 0.0 }
 0xdb0   : > { %3445 = vadd.xlane.f32.xlu0 %v3444_v5 }
 0xe23   : > { %v3446_v62 = vpop.xlane.xlu0 %3445 }
 0xe24   : > { %v3447_v1 = vmul.f32 0.015625, %v3446_v62 }
 0xe26   : > { %v3448_v52 = vsub.f32 %v6895_v57, %v3447_v1  ;;  %v3449_v7 = vsub.f32 %v6898_v58, %v3447_v1 }
 0xe28   : > { %v3450_v3 = vmul.f32 %v3448_v52, %v3448_v52  ;;  %v3451_v4 = vmul.f32 %v3449_v7, %v3449_v7 }
 0xe2a   : > { %v3452_v27 = vsel %vm1607_vm6, %v3450_v3, 0.0  ;;  %v3453_v10 = vsel %vm1607_vm6, %v3451_v4, 0.0 }
 0xe2b   : > { %v3454_v15 = vadd.f32 %v3453_v10, %v3452_v27 }
 0xe2d   : > { %v3455_v16 = vrot.slane %v3454_v15, 4 }
 0xe2f   : > { %v3456_v17 = vadd.f32 %v3455_v16, %v3454_v15 }
 0xe31   : > { %v3457_v18 = vrot.slane %v3456_v17, 2 }
 0xe33   : > { %v3458_v19 = vadd.f32 %v3457_v18, %v3456_v17 }
 0xe35   : > { %v3459_v11 = vrot.slane %v3458_v19, 1 }
 0xe37   : > { %v3460_v36 = vadd.f32 %v3459_v11, %v3458_v19 }
 0xe39   : > { %v3461_v20 = vsel %vm1607_vm6, %v3460_v36, 0.0 }
 0xe3a   : > { %3462 = vadd.xlane.f32.xlu0 %v3461_v20 }
 0xead   : > { %v3463_v21 = vpop.xlane.xlu0 %3462 }
 0xeae   : > { %v3464_v23 = vmul.f32 0.015625, %v3463_v21 }
 0xeb0   : > { %v3465_v24 = vadd.f32 1e-05, %v3464_v23 }
 0xeb2   : > { %6145 = vrsqrt.f32 %v3465_v24  ;;  %vm3472_vm13 = vweird.f32 %v3465_v24 }
 0xeb8   : > { %v6146_v25 = vpop.eup %6145 }
 0xeb9   : > { %v3467_v26 = vmul.f32 %v6146_v25, %v3465_v24  ;;  %vm3473_vm11 = vweird.f32 %v6146_v25 }
 0xeba   : > { %vm3474_vm2 = vmor %vm3472_vm13, %vm3473_vm11 }
 0xebb   : > { %v3468_v28 = vmul.f32 %v6146_v25, %v3467_v26  ;;  %vm7283_vm11 = vmmov %vm7278_vm0 }
 0xebc   : > { %vm7285_vm13 = vmmov %vm7278_vm0 }
 0xebd   : > { %v3469_v29 = vmul.f32 0.5, %v3468_v28 }
 0xebf   : > { %v3470_v30 = vsub.f32 1.5, %v3469_v29 }
 0xec1   : > { %v3471_v31 = vmul.f32 %v6146_v25, %v3470_v30 }
 0xec3   : > { %v3475_v33 = vsel %vm3474_vm2, %v6146_v25, %v3471_v31  ;;  %vm7286_vm2 = vmmov %vm7278_vm0 }
 0xec4   : > { %v3476_v35 = vmul.f32 %v3475_v33, %v3448_v52  ;;  %v3477_v37 = vmul.f32 %v3475_v33, %v3449_v7 }
 0xec6   : > { %v3482_v38 = vmul.f32 %v6085_v32, %v3476_v35  ;;  %v3483_v41 = vmul.f32 %v6085_v32, %v3477_v37 }
 0xec8   : > { %v3488_v42 = vadd.f32 %v6086_v34, %v3482_v38  ;;  %v3489_v43 = vadd.f32 %v6086_v34, %v3483_v41  ;;  %v3584_v41 = vld [vmem:[%s7284_s28] sm:$0xff] }
 0xeca   : > { %v3490_v39 = vpack.c.bf16 %v3489_v43, %v3488_v42  ;;  %v3586_v42 = vpack.c.bf16 %v3584_v41, %v3584_v41 }
 0xecc   : > { %5905 = vmatmul.msk.bf16.vlgmr.msra.gmra.mxu2 %vm1607_vm6, %v3490_v39  ;;  %v3682_v43 = vsel %vm1579_vm5, %v3586_v42, 0  ;;  %v3655_v39 = vld [vmem:[%s7284_s28 + $0x8] sm:$0xff] }
 0xf4f   : > { %v3508_v40 = vpop.f32.mrf.mxu2 }
 0xf50   : > { %v3513_v45 = vmul.f32 0.35355338, %v3508_v40 }
 0xf57   : > { %v3510_v44 = vpop.f32.mrf.mxu2 }
 0xf58   : > { %v3514_v46 = vmul.f32 0.35355338, %v3510_v44  ;;  %v6915_v47 = vpack.c.bf16 %v3510_v44, %v3508_v40  ;;  %v3657_v40 = vpack.c.bf16 %v3655_v39, %v3655_v39 }
 0xf5a   : > { %3590 = vrot.lane.b32.xlu1 %v6915_v47, %s6294_s11  ;;  %v3515_v48 = vpack.c.bf16 %v3514_v46, %v3513_v45  ;;  %v3662_v44 = vsel %vm1579_vm5, %v3657_v40, 0 }
 0xf5c   : > { %3588 = vrot.lane.b32.xlu2 %v3515_v48, %s7223_s15  ;;  %s7304_s15 = sld [smem:[#allocation29_spill]] }
 0xf62   : > { %3518 = vrot.lane.b32.xlu1 %v6915_v47, %s7224_s16  ;;  %s7310_s16 = sld [smem:[#allocation36_spill]] }
 0xfb6   : > { %v3589_v55 = vpop.permute.xlu2 %3588 }
 0xfcc   : > { %v3591_v49 = vpop.permute.xlu1 %3590 }
 0xfcd   : > { %v3596_v50 = vsel %vm3520_vm3, %v3591_v49, 0 }
 0xfce   : > { %3605 = vmatpush.bf16.xpose.msrb.mxu1 %v3596_v50 }
 0xfd4   : > { %v3519_v12 = vpop.permute.xlu1 %3518 }
 0xfd5   : > { %v3525_v56 = vsel %vm3520_vm3, %v3519_v12, 0  ;;  %5908 = vmatmul.msk.bf16.vlgmr.msrb.gmra.mxu1 %vm3520_vm3, %v3589_v55  ;;  %v3717_v55 = vld [vmem:[%s7287_s1] sm:$0xf] }
 0xfd6   : > { %3534 = vmatpush.bf16.xpose.msra.mxu3 %v3525_v56  ;;  %v3719_v12 = vpack.c.bf16 %v3717_v55, %v3717_v55 }
 0xfd8   : > { %v3752_v56 = vsel %vm1611_vm4, %v3719_v12, 0  ;;  %v3926_v12 = vld [vmem:[%s7289_s7 + $0x10] sm:$0xff] }
 0xfdd   : > { %5906 = vmatmul.msk.bf16.vlgmr.msra.gmra.mxu3 %vm3520_vm3, %v3515_v48 }
 0xfde   : > { %3671 = vmatpush.bf16.msrb.mxu3 %v3662_v44 }
0x1052   : > { %v3607_v59 = vpop.f32.mrf.mxu1 }
0x1053   : > { %v3612_v53 = vsel %vm7276_vm14, %v3607_v59, -inf  ;;  %vm3708_vm14 = vcmask 1040384  }
0x1054   : > { %3613 = vmax.xlane.f32.xlu2 %v3612_v53 }
0x105a   : > { %v3609_v54 = vpop.f32.mrf.mxu1 }
0x105b   : > { %v3615_v60 = vsel %vm7277_vm15, %v3609_v54, -inf }
0x105c   : > { %3616 = vmax.xlane.f32.xlu0 %v3615_v60 }
0x1060   : > { %v3536_v61 = vpop.f32.mrf.mxu3 }
0x1061   : > { %v3541_v51 = vsel %vm7278_vm0, %v3536_v61, -inf }
0x1062   : > { %3542 = vmax.xlane.f32.xlu1 %v3541_v51  ;;  %v3798_v51 = vld [vmem:[%s7287_s1 + $0xc] sm:$0xf] }
0x1068   : > { %v3538_v63 = vpop.f32.mrf.mxu3 }
0x1069   : > { %v3544_v2 = vsel %vm7279_vm1, %v3538_v63, -inf }
0x106a   : > { %3545 = vmax.xlane.f32.xlu0 %v3544_v2  ;;  %v3799_v2 = vpack.c.bf16 %v3798_v51, %v3798_v51 }
0x107b   : > { %3564 = vrot.lane.b32.xlu1 %v6915_v47, %s7221_s18  ;;  %s7293_s18 = sld [smem:[#allocation34_spill]] }
0x10c7   : > { %v3614_v0 = vpop.xlane.xlu2 %3613 }
0x10c8   : > { %v3618_v5 = vsub.f32 %v3607_v59, %v3614_v0  ;;  %v3768_v59 = vld [vmem:[%s7287_s1 + $0x8] sm:$0xf]  ;;  %v3816_v0 = vsel %vm1611_vm4, %v3799_v2, 0 }
0x10c9   : > { %v3770_v53 = vpack.c.bf16 %v3768_v59, %v3768_v59  ;;  %v3927_v59 = vpack.c.bf16 %v3926_v12, %v3926_v12  ;;  %v3998_v2 = vld [vmem:[%s7289_s7 + $0x28] sm:$0xff] }
0x10ca   : > { %v3620_v62 = vmul.f32 1.442695, %v3618_v5 }
0x10cc   : > { %6147 = vpow2.f32 %v3620_v62 }
0x10cf   : > { %v3617_v1 = vpop.xlane.xlu0 %3616 }
0x10d0   : > { %v3619_v52 = vsub.f32 %v3609_v54, %v3617_v1  ;;  %v3720_v54 = vld [vmem:[%s7287_s1 + $0x4] sm:$0xf] }
0x10d1   : > { %v3721_v60 = vpack.c.bf16 %v3720_v54, %v3720_v54  ;;  %v3878_v54 = vld [vmem:[%s7289_s7 + $0x8] sm:$0xff] }
0x10d2   : > { %v6148_v7 = vpop.eup %6147  ;;  %v3622_v3 = vmul.f32 1.442695, %v3619_v52 }
0x10d3   : > { %v3624_v4 = vsel %vm7280_vm12, %v6148_v7, 0.0 }
0x10d4   : > { %6149 = vpow2.f32 %v3622_v3  ;;  %3625 = vadd.xlane.f32.xlu0 %v3624_v4 }
0x10d5   : > { %v3543_v27 = vpop.xlane.xlu1 %3542 }
0x10d6   : > { %v3547_v10 = vsub.f32 %v3536_v61, %v3543_v27  ;;  %v3780_v61 = vsel %vm1611_vm4, %v3770_v53, 0  ;;  %v3934_v53 = vsel %vm1579_vm5, %v3927_v59, 0 }
0x10d7   : > { %3789 = vmatpush.bf16.msra.mxu3 %v3780_v61  ;;  %v3880_v61 = vpack.c.bf16 %v3878_v54, %v3878_v54 }
0x10d8   : > { %v3549_v15 = vmul.f32 1.442695, %v3547_v10 }
0x10da   : > { %v6150_v16 = vpop.eup %6149  ;;  %6151 = vpow2.f32 %v3549_v15 }
0x10db   : > { %v3627_v17 = vsel %vm7281_vm8, %v6150_v16, 0.0 }
0x10dc   : > { %3628 = vadd.xlane.f32.xlu0 %v3627_v17 }
0x10dd   : > { %v3546_v18 = vpop.xlane.xlu0 %3545 }
0x10de   : > { %v3548_v19 = vsub.f32 %v3538_v63, %v3546_v18  ;;  %v3733_v63 = vsel %vm1611_vm4, %v3721_v60, 0  ;;  %vm3842_vm4 = vcmask 121856   ;;  %v3950_v60 = vld [vmem:[%s7289_s7 + $0x18] sm:$0xff] }
0x10df   : > { %3742 = vmatpush.bf16.msra.mxu1 %v3733_v63  ;;  %v3951_v51 = vpack.c.bf16 %v3950_v60, %v3950_v60 }
0x10e0   : > { %v6152_v11 = vpop.eup %6151  ;;  %v3551_v36 = vmul.f32 1.442695, %v3548_v19 }
0x10e1   : > { %v3553_v20 = vsel %vm7282_vm10, %v6152_v11, 0.0  ;;  %v3959_v63 = vsel %vm1579_vm5, %v3951_v51, 0 }
0x10e2   : > { %6153 = vpow2.f32 %v3551_v36  ;;  %3554 = vadd.xlane.f32.xlu2 %v3553_v20 }
0x10e8   : > { %v6154_v13 = vpop.eup %6153 }
0x10e9   : > { %v3556_v14 = vsel %vm7283_vm11, %v6154_v13, 0.0 }
0x10ea   : > { %3557 = vadd.xlane.f32.xlu2 %v3556_v14 }
0x10ed   : > { %v3565_v21 = vpop.permute.xlu1 %3564 }
0x10ee   : > { %3577 = vmatpush.bf16.msra.mxu0 %v3565_v21 }
0x10f0   : > { %3635 = vrot.lane.b32.xlu0 %v6915_v47, %s7222_s26  ;;  %s7300_s26 = sld [smem:[#allocation25_spill]] }
0x10f2   : > { %3691 = vmatpush.bf16.msrb.mxu0 %v3682_v43 }
0x1147   : > { %v3626_v22 = vpop.xlane.xlu0 %3625 }
0x114f   : > { %v3629_v23 = vpop.xlane.xlu0 %3628 }
0x1150   : > { %6155 = vrcp.f32 %v3629_v23 }
0x1151   : > { %6157 = vrcp.f32 %v3626_v22 }
0x1155   : > { %v3555_v24 = vpop.xlane.xlu2 %3554 }
0x1156   : > { %6159 = vrcp.f32 %v3555_v24  ;;  %v6156_v25 = vpop.eup %6155 }
0x1157   : > { %v6158_v28 = vpop.eup %6157  ;;  %v3633_v29 = vmul.f32 %v6156_v25, %v6150_v16 }
0x1158   : > { %v3632_v31 = vmul.f32 %v6158_v28, %v6148_v7  ;;  %v6087_v7 = vld [vmem:[%s7288_s2] ss:$0 sm:$0xff]  ;;  %s7291_s2 = sld [smem:[#allocation33_spill]] }
0x115a   : > { %v3634_v34 = vpack.c.bf16 %v3633_v29, %v3632_v31 }
0x115c   : > { %v6160_v30 = vpop.eup %6159 }
0x115d   : > { %v3558_v26 = vpop.xlane.xlu2 %3557  ;;  %v3561_v35 = vmul.f32 %v6160_v30, %v6152_v11 }
0x115e   : > { %6161 = vrcp.f32 %v3558_v26  ;;  %v6999_v12 = vld [vmem:[%s7291_s2] sm:$0xff]  ;;  %s7295_s2 = sld [smem:[#allocation20_spill]] }
0x1162   : > { %v3636_v32 = vpop.permute.xlu0 %3635 }
0x1163   : > { %3648 = vmatpush.bf16.msrb.mxu2 %v3636_v32 }
0x1164   : > { %v6162_v33 = vpop.eup %6161 }
0x1165   : > { %v3562_v37 = vmul.f32 %v6162_v33, %v6154_v13 }
0x1166   : > { %5909 = vmatmul.msk.bf16.vlgmr.msrb.gmra.mxu2 %vm7285_vm13, %v3634_v34 }
0x1167   : > { %v3563_v38 = vpack.c.bf16 %v3562_v37, %v3561_v35  ;;  %3761 = vmatpush.bf16.msra.mxu2 %v3752_v56 }
0x1169   : > { %5907 = vmatmul.msk.bf16.vlgmr.msra.gmra.mxu0 %vm7286_vm2, %v3563_v38 }
0x116a   : > { %3825 = vmatpush.bf16.msra.mxu0 %v3816_v0  ;;  %v4023_v0 = vld [vmem:[%s7289_s7 + $0x30] sm:$0xff] }
0x11e6   : > { %v3579_v46 = vpop.f32.mrf.mxu0 }
0x11e9   : > { %v3650_v47 = vpop.f32.mrf.mxu2 }
0x11ee   : > { %v3581_v45 = vpop.f32.mrf.mxu0 }
0x11ef   : > { %v3585_v48 = vpack.c.bf16 %v3581_v45, %v3579_v46 }
0x11f1   : > { %v3652_v49 = vpop.f32.mrf.mxu2  ;;  %5911 = vmatmul.msk.bf16.vlgmr.msrb.gmra.mxu0 %vm3520_vm3, %v3585_v48 }
0x11f2   : > { %v3656_v50 = vpack.c.bf16 %v3652_v49, %v3650_v47  ;;  %3968 = vmatpush.bf16.msrb.mxu0 %v3959_v63 }
0x11f4   : > { %5910 = vmatmul.msk.bf16.vlgmr.msrb.gmra.mxu3 %vm3520_vm3, %v3656_v50  ;;  %v3875_v50 = vld [vmem:[%s7289_s7] sm:$0xff] }
0x11f5   : > { %v3877_v55 = vpack.c.bf16 %v3875_v50, %v3875_v50  ;;  %3943 = vmatpush.bf16.msrb.mxu3 %v3934_v53 }
0x11f7   : > { %v3911_v56 = vsel %vm1579_vm5, %v3877_v55, 0 }
0x11f8   : > { %3920 = vmatpush.bf16.msrb.mxu2 %v3911_v56 }
0x126e   : > { %v3693_v5 = vpop.f32.mrf.mxu0 }
0x1276   : > { %v3695_v3 = vpop.f32.mrf.mxu0 }
0x1277   : > { %v3673_v62 = vpop.f32.mrf.mxu3 }
0x1278   : > { %v3694_v1 = vadd.f32 %v3693_v5, %v3673_v62  ;;  %v3999_v5 = vpack.c.bf16 %v3998_v2, %v3998_v2  ;;  %v4024_v62 = vpack.c.bf16 %v4023_v0, %v4023_v0 }
0x127a   : > { %v3698_v52 = vadd.f32 %v3694_v1, %v6895_v57  ;;  %v4007_v1 = vsel %vm1579_vm5, %v3999_v5, 0 }
0x127c   : > { %v3704_v27 = vadd.f32 %v6087_v7, %v3698_v52  ;;  %v4030_v52 = vsel %vm1579_vm5, %v4024_v62, 0 }
0x127e   : > { %v3709_v16 = vrot.slane %v3704_v27, 7 }
0x127f   : > { %v3675_v4 = vpop.f32.mrf.mxu3 }
0x1280   : > { %v3696_v10 = vadd.f32 %v3695_v3, %v3675_v4  ;;  %v3715_v19 = vsel %vm3708_vm14, 0.0, %v3709_v16  ;;  %v4046_v3 = vld [vmem:[%s7289_s7 + $0x38] sm:$0xff] }
0x1281   : > { %v4047_v27 = vpack.c.bf16 %v4046_v3, %v4046_v3 }
0x1282   : > { %v3699_v15 = vadd.f32 %v3696_v10, %v6898_v58  ;;  %v6088_v10 = vld [vmem:[%s7290_s10] ss:$0 sm:$0xff]  ;;  %s7292_s10 = sld [smem:[#allocation18_spill]] }
0x1284   : > { %v3705_v17 = vadd.f32 %v6087_v7, %v3699_v15  ;;  %v3975_v7 = vld [vmem:[%s7289_s7 + $0x20] sm:$0xff] }
0x1285   : > { %v3976_v4 = vpack.c.bf16 %v3975_v7, %v3975_v7 }
0x1286   : > { %v3710_v18 = vrot.slane %v3705_v17, 7 }
0x1287   : > { %v3982_v15 = vsel %vm1579_vm5, %v3976_v4, 0 }
0x1288   : > { %v3711_v11 = vsel %vm3708_vm14, %v3709_v16, %v3710_v18  ;;  %v3716_v36 = vsel %vm3708_vm14, %v3710_v18, 0.0  ;;  %v4055_v16 = vsel %vm1579_vm5, %v4047_v27, 0  ;;  %v6089_v5 = vld [vmem:[%s7292_s10] ss:$0 sm:$0xff]  ;;  %s7296_s10 = sld [smem:[#allocation21_spill]] }
0x1289   : > { %v3718_v20 = vpack.c.bf16 %v3711_v11, %v3715_v19  ;;  %v3769_v13 = vpack.c.bf16 %v3716_v36, %v3716_v36 }
0x128b   : > { %v3725_v14 = vshll.u32 %v3718_v20, 16  ;;  %v3804_v21 = vshrl.u32 %v3769_v13, 16  ;;  %v3807_v22 = vshll.u32 %v3769_v13, 16  ;;  %5913 = vmatmul.msk.bf16.vlgmr.msra.gmra.mxu2 %vm1607_vm6, %v3718_v20  ;;  %v3773_v57 = vrot.slane %v3718_v20, 1 }
0x128c   : > { %v3774_v23 = vrot.slane %v3769_v13, 1  ;;  %v3723_v24 = vshrl.u32 %v3718_v20, 16  ;;  %4016 = vmatpush.bf16.msra.mxu2 %v4007_v1  ;;  %v4071_v20 = vld [vmem:[%s7289_s7 + $0x40] sm:$0xff] }
0x128d   : > { %v3806_v25 = vrot.slane %v3804_v21, 1  ;;  %v3809_v26 = vrot.slane %v3807_v22, 2  ;;  %v3727_v58 = vrot.slane %v3725_v14, 1  ;;  %v3801_v28 = vrot.slane %v3725_v14, 2 }
0x128e   : > { %v3775_v29 = vsel %vm1652_vm7, %v3773_v57, %v3774_v23  ;;  %v3800_v30 = vrot.slane %v3723_v24, 1  ;;  %v4073_v23 = vpack.c.bf16 %v4071_v20, %v4071_v20 }
0x128f   : > { %5914 = vmatmul.msk.bf16.vlgmr.msra.gmra.mxu3 %vm1607_vm6, %v3775_v29  ;;  %v3728_v31 = vor.u32 %v3727_v58, %v3723_v24  ;;  %v3810_v32 = vor.u32 %v3809_v26, %v3806_v25 }
0x1290   : > { %v3802_v33 = vor.u32 %v3801_v28, %v3800_v30  ;;  %4039 = vmatpush.bf16.msra.mxu3 %v4030_v52  ;;  %v4078_v29 = vsel %vm1579_vm5, %v4073_v23, 0 }
0x1291   : > { %5912 = vmatmul.msk.bf16.vlgmr.msra.gmra.mxu1 %vm1607_vm6, %v3728_v31 }
0x1292   : > { %v3811_v34 = vsel %vm1680_vm9, %v3802_v33, %v3810_v32 }
0x1293   : > { %5915 = vmatmul.msk.bf16.vlgmr.msra.gmra.mxu0 %vm1607_vm6, %v3811_v34 }
0x1294   : > { %4064 = vmatpush.bf16.msra.mxu0 %v4055_v16 }
0x130e   : > { %v3744_v35 = vpop.f32.mrf.mxu1  ;;  %v3763_v37 = vpop.f32.mrf.mxu2 }
0x130f   : > { %v3764_v39 = vadd.f32 %v3763_v37, %v3744_v35 }
0x1310   : > { %v3827_v38 = vpop.f32.mrf.mxu0 }
0x1312   : > { %v3791_v41 = vpop.f32.mrf.mxu3 }
0x1313   : > { %v3796_v46 = vadd.f32 %v3791_v41, %v3764_v39 }
0x1315   : > { %v3832_v49 = vadd.f32 %v3827_v38, %v3796_v46 }
0x1316   : > { %v3746_v42 = vpop.f32.mrf.mxu1  ;;  %v3765_v43 = vpop.f32.mrf.mxu2 }
0x1317   : > { %v3766_v40 = vadd.f32 %v3765_v43, %v3746_v42 }
0x1318   : > { %v3829_v45 = vpop.f32.mrf.mxu0 }
0x131a   : > { %v3793_v44 = vpop.f32.mrf.mxu3 }
0x131b   : > { %v3797_v47 = vadd.f32 %v3793_v44, %v3766_v40 }
0x131d   : > { %v3833_v48 = vadd.f32 %v3829_v45, %v3797_v47 }
0x131f   : > { %5917 = vmatpush.msk.msrb.mxu1 %vm1652_vm7, %v3833_v48 }
0x1321   : > { %3865 = vmatpush.msrb.mxu1 %v3832_v49 }
0x1322   : > { %5918 = vmatmul.msk.f32.vlgmr.msrb.gmra.mxu1 %vm3842_vm4, %v6608_v8  ;;  %v3892_v8 = vsel %vm1579_vm5, %v3880_v61, 0 }
0x1323   : > { %3901 = vmatpush.bf16.msra.mxu1 %v3892_v8 }
0x1327   : > { %3991 = vmatpush.bf16.msrb.mxu1 %v3982_v15 }
0x139f   : > { %v3867_v17 = vpop.f32.mrf.mxu1 }
0x13a0   : > { %v6982_v18 = vadd.f32 %v6088_v10, %v3867_v17 }
0x13a2   : > { %v3871_v19 = vrot.slane %v6982_v18, 4 }
0x13a4   : > { %v3873_v11 = vsel %vm1579_vm5, 0.0, %v3871_v19  ;;  %v3874_v36 = vsel %vm1579_vm5, %v3871_v19, 0.0  ;;  %v7007_v19 = vld [vmem:[%s7293_s18] sm:$0xf]  ;;  %s7294_s18 = sld [smem:[#allocation19_spill]] }
0x13a5   : > { %v3876_v13 = vpack.c.bf16 %v3873_v11, %v3873_v11  ;;  %v3879_v14 = vpack.c.bf16 %v3874_v36, %v3873_v11  ;;  %v4072_v41 = vpack.c.bf16 %v3874_v36, %v3874_v36 }
0x13a7   : > { %v3882_v21 = vshrl.u32 %v3879_v14, 16  ;;  %v3884_v22 = vshll.u32 %v3879_v14, 16  ;;  %5920 = vmatmul.msk.bf16.vlgmr.msrb.gmra.mxu2 %vm3520_vm3, %v3876_v13  ;;  %v3929_v57 = vrot.slane %v3879_v14, 1  ;;  %v4025_v33 = vrot.slane %v3879_v14, 3 }
0x13a8   : > { %v3977_v37 = vrot.slane %v3879_v14, 2  ;;  %4125 = vmatpush.msrb.mxu2 %v6999_v12 }
0x13a9   : > { %5921 = vmatmul.msk.bf16.vlgmr.msrb.gmra.mxu3 %vm3520_vm3, %v3929_v57  ;;  %v3886_v24 = vrot.slane %v3884_v22, 1  ;;  %v3952_v25 = vrot.slane %v3882_v21, 1  ;;  %v3953_v26 = vrot.slane %v3884_v22, 2  ;;  %v4000_v30 = vrot.slane %v3882_v21, 2 }
0x13aa   : > { %v4001_v31 = vrot.slane %v3884_v22, 3  ;;  %v4048_v34 = vrot.slane %v3882_v21, 3  ;;  %v4049_v35 = vrot.slane %v3884_v22, 4  ;;  %5929 = vmatpush.msk.msrb.mxu3 %vm1579_vm5, %v7007_v19 }
0x13ab   : > { %v3887_v58 = vor.u32 %v3886_v24, %v3882_v21  ;;  %v3954_v28 = vor.u32 %v3953_v26, %v3952_v25 }
0x13ac   : > { %v4002_v32 = vor.u32 %v4001_v31, %v4000_v30  ;;  %v4050_v38 = vor.u32 %v4049_v35, %v4048_v34 }
0x13ad   : > { %5919 = vmatmul.msk.bf16.vlgmr.msra.gmra.mxu1 %vm3520_vm3, %v3887_v58  ;;  %5922 = vmatmul.msk.bf16.vlgmr.msrb.gmra.mxu0 %vm3520_vm3, %v3954_v28 }
0x13ae   : > { %4087 = vmatpush.bf16.msra.mxu1 %v4078_v29  ;;  %4186 = vmatpush.msrb.mxu0 %v6999_v12 }
0x13b7   : > { %5924 = vmatmul.msk.bf16.vlgmr.msra.gmra.mxu2 %vm3520_vm3, %v4002_v32 }
0x13b8   : > { %5932 = vmatpush.msk.msra.mxu2 %vm1579_vm5, %v7007_v19 }
0x13b9   : > { %5925 = vmatmul.msk.bf16.vlgmr.msra.gmra.mxu3 %vm3520_vm3, %v4025_v33 }
0x13bd   : > { %5923 = vmatmul.msk.bf16.vlgmr.msrb.gmra.mxu1 %vm3520_vm3, %v3977_v37  ;;  %5926 = vmatmul.msk.bf16.vlgmr.msra.gmra.mxu0 %vm3520_vm3, %v4050_v38 }
0x13cd   : > { %5927 = vmatmul.msk.bf16.vlgmr.msra.gmra.mxu1 %vm3520_vm3, %v4072_v41 }
0x142a   : > { %v3903_v42 = vpop.f32.mrf.mxu1  ;;  %v3922_v43 = vpop.f32.mrf.mxu2 }
0x142b   : > { %v3970_v39 = vpop.f32.mrf.mxu0  ;;  %v3923_v47 = vadd.f32 %v3922_v43, %v3903_v42  ;;  %v6090_v43 = vld [vmem:[%s7294_s18] ss:$0 sm:$0xff]  ;;  %s7297_s18 = sld [smem:[#allocation22_spill]] }
0x142c   : > { %v3945_v40 = vpop.f32.mrf.mxu3 }
0x142d   : > { %v3949_v49 = vadd.f32 %v3945_v40, %v3923_v47  ;;  %v6091_v40 = vld [vmem:[%s7295_s2] ss:$0 sm:$0xff]  ;;  %s7298_s2 = sld [smem:[#allocation23_spill]] }
0x142f   : > { %v3974_v56 = vadd.f32 %v3970_v39, %v3949_v49  ;;  %v4314_v49 = vld [vmem:[%s7296_s10 + $0x10] sm:$0xff] }
0x1432   : > { %v3905_v44 = vpop.f32.mrf.mxu1  ;;  %v3924_v46 = vpop.f32.mrf.mxu2 }
0x1433   : > { %v3972_v45 = vpop.f32.mrf.mxu0 }
0x1434   : > { %v3947_v48 = vpop.f32.mrf.mxu3  ;;  %v4263_v45 = vld [vmem:[%s7296_s10] sm:$0xff] }
0x1435   : > { %v4265_v48 = vpack.c.bf16 %v4263_v45, %v4263_v45 }
0x143a   : > { %v3993_v50 = vpop.f32.mrf.mxu1  ;;  %v4018_v55 = vpop.f32.mrf.mxu2 }
0x143b   : > { %v4066_v59 = vpop.f32.mrf.mxu0  ;;  %v3997_v54 = vadd.f32 %v3993_v50, %v3974_v56  ;;  %v4299_v50 = vsel %vm1579_vm5, %v4265_v48, 0 }
0x143c   : > { %v4041_v53 = vpop.f32.mrf.mxu3  ;;  %4308 = vmatpush.bf16.msra.mxu0 %v4299_v50 }
0x143d   : > { %v4022_v60 = vadd.f32 %v4018_v55, %v3997_v54  ;;  %v4315_v55 = vpack.c.bf16 %v4314_v49, %v4314_v49 }
0x143f   : > { %v4045_v2 = vadd.f32 %v4041_v53, %v4022_v60  ;;  %v4322_v56 = vsel %vm1579_vm5, %v4315_v55, 0  ;;  %v4338_v53 = vld [vmem:[%s7296_s10 + $0x18] sm:$0xff] }
0x1440   : > { %4331 = vmatpush.bf16.msrb.mxu1 %v4322_v56  ;;  %v4339_v60 = vpack.c.bf16 %v4338_v53, %v4338_v53 }
0x1441   : > { %v4070_v0 = vadd.f32 %v4066_v59, %v4045_v2  ;;  %v4266_v59 = vld [vmem:[%s7296_s10 + $0x8] sm:$0xff] }
0x1442   : > { %v3995_v61 = vpop.f32.mrf.mxu1  ;;  %v4020_v51 = vpop.f32.mrf.mxu2  ;;  %v4268_v54 = vpack.c.bf16 %v4266_v59, %v4266_v59  ;;  %v4386_v2 = vld [vmem:[%s7296_s10 + $0x28] sm:$0xff] }
0x1443   : > { %v4068_v8 = vpop.f32.mrf.mxu0 }
0x1444   : > { %v4043_v63 = vpop.f32.mrf.mxu3  ;;  %v4280_v51 = vsel %vm1579_vm5, %v4268_v54, 0  ;;  %v4347_v8 = vsel %vm1579_vm5, %v4339_v60, 0 }
0x1445   : > { %4289 = vmatpush.bf16.msra.mxu3 %v4280_v51 }
0x144a   : > { %v4089_v62 = vpop.f32.mrf.mxu1 }
0x144b   : > { %v4093_v1 = vadd.f32 %v4089_v62, %v4070_v0  ;;  %v4411_v0 = vld [vmem:[%s7296_s10 + $0x30] sm:$0xff] }
0x144c   : > { %v4412_v62 = vpack.c.bf16 %v4411_v0, %v4411_v0 }
0x144d   : > { %v4098_v52 = vadd.f32 %v6089_v5, %v4093_v1  ;;  %v4387_v5 = vpack.c.bf16 %v4386_v2, %v4386_v2 }
0x144f   : > { %v4099_v7 = vsel %vm3520_vm3, %v4098_v52, 0.0  ;;  %v4395_v1 = vsel %vm1579_vm5, %v4387_v5, 0 }
0x1450   : > { %v4100_v3 = vrot.slane %v4099_v7, 4 }
0x1452   : > { %v4101_v4 = vadd.f32 %v4100_v3, %v4099_v7  ;;  %v4091_v27 = vpop.f32.mrf.mxu1 }
0x1454   : > { %v4102_v10 = vrot.slane %v4101_v4, 2 }
0x1456   : > { %v4103_v15 = vadd.f32 %v4102_v10, %v4101_v4 }
0x1458   : > { %v4104_v16 = vrot.slane %v4103_v15, 1 }
0x145a   : > { %v4105_v17 = vadd.f32 %v4104_v16, %v4103_v15  ;;  %v4363_v15 = vld [vmem:[%s7296_s10 + $0x20] sm:$0xff]  ;;  %v4434_v16 = vld [vmem:[%s7296_s10 + $0x38] sm:$0xff] }
0x145c   : > { %5928 = vmatmul.msk.f32.vlgmr.msrb.gmra.mxu2 %vm3520_vm3, %v4105_v17 }
0x145d   : > { %4356 = vmatpush.bf16.msrb.mxu2 %v4347_v8 }
0x14df   : > { %v4127_v11 = vpop.f32.mrf.mxu2 }
0x14e0   : > { %v4130_v36 = vmul.f32 0.0625, %v4127_v11  ;;  %v4364_v11 = vpack.c.bf16 %v4363_v15, %v4363_v15 }
0x14e2   : > { %5930 = vmatmul.msk.f32.vlgmr.msrb.gmra.mxu3 %vm1607_vm6, %v4130_v36  ;;  %v4435_v36 = vpack.c.bf16 %v4434_v16, %v4434_v16  ;;  %v6092_v16 = vld [vmem:[%s7297_s18] ss:$0 sm:$0xff]  ;;  %s7299_s18 = sld [smem:[#allocation24_spill]] }
0x1565   : > { %v4155_v20 = vpop.f32.mrf.mxu3 }
0x1566   : > { %v4158_v13 = vperm.slane %v4155_v20, 0 }
0x1568   : > { %v4159_v14 = vsub.f32 %v4098_v52, %v4158_v13  ;;  %v4418_v52 = vsel %vm1579_vm5, %v4412_v62, 0  ;;  %v4370_v13 = vsel %vm1579_vm5, %v4364_v11, 0 }
0x1569   : > { %4427 = vmatpush.bf16.msra.mxu1 %v4418_v52  ;;  %4379 = vmatpush.bf16.msrb.mxu3 %v4370_v13 }
0x156a   : > { %v4160_v21 = vmul.f32 %v4159_v14, %v4159_v14 }
0x156c   : > { %v4161_v22 = vsel %vm3520_vm3, %v4160_v21, 0.0 }
0x156d   : > { %v4162_v57 = vrot.slane %v4161_v22, 4 }
0x156f   : > { %v4163_v23 = vadd.f32 %v4162_v57, %v4161_v22 }
0x1571   : > { %v4164_v24 = vrot.slane %v4163_v23, 2 }
0x1573   : > { %v4165_v25 = vadd.f32 %v4164_v24, %v4163_v23 }
0x1575   : > { %v4166_v26 = vrot.slane %v4165_v25, 1 }
0x1577   : > { %v4167_v58 = vadd.f32 %v4166_v26, %v4165_v25 }
0x1579   : > { %5931 = vmatmul.msk.f32.vlgmr.msrb.gmra.mxu0 %vm3520_vm3, %v4167_v58  ;;  %v4459_v58 = vld [vmem:[%s7296_s10 + $0x40] sm:$0xff] }
0x157a   : > { %4404 = vmatpush.bf16.msrb.mxu0 %v4395_v1 }
0x15f6   : > { %v4188_v28 = vpop.f32.mrf.mxu0 }
0x15f7   : > { %v4191_v29 = vmul.f32 0.0625, %v4188_v28 }
0x15f9   : > { %v4192_v30 = vadd.f32 1e-05, %v4191_v29 }
0x15fb   : > { %6163 = vrsqrt.f32 %v4192_v30  ;;  %vm4199_vm9 = vweird.f32 %v4192_v30 }
0x1601   : > { %v6164_v31 = vpop.eup %6163 }
0x1602   : > { %v4194_v32 = vmul.f32 %v6164_v31, %v4192_v30  ;;  %vm4200_vm7 = vweird.f32 %v6164_v31 }
0x1603   : > { %vm4201_vm15 = vmor %vm4199_vm9, %vm4200_vm7 }
0x1604   : > { %v4195_v33 = vmul.f32 %v6164_v31, %v4194_v32 }
0x1606   : > { %v4196_v34 = vmul.f32 0.5, %v4195_v33  ;;  %v4461_v33 = vpack.c.bf16 %v4459_v58, %v4459_v58 }
0x1608   : > { %v4197_v35 = vsub.f32 1.5, %v4196_v34 }
0x160a   : > { %v4198_v37 = vmul.f32 %v6164_v31, %v4197_v35 }
0x160c   : > { %v4202_v38 = vsel %vm4201_vm15, %v6164_v31, %v4198_v37 }
0x160d   : > { %5933 = vmatmul.msk.f32.vlgmr.msra.gmra.mxu2 %vm1607_vm6, %v4202_v38 }
0x1690   : > { %v4223_v41 = vpop.f32.mrf.mxu2 }
0x1691   : > { %v4226_v42 = vperm.slane %v4223_v41, 0 }
0x1693   : > { %v4227_v39 = vmul.f32 %v4226_v42, %v4159_v14  ;;  %v4443_v14 = vsel %vm1579_vm5, %v4435_v36, 0  ;;  %v4466_v42 = vsel %vm1579_vm5, %v4461_v33, 0 }
0x1694   : > { %4452 = vmatpush.bf16.msra.mxu2 %v4443_v14 }
0x1695   : > { %v4232_v44 = vmul.f32 %v6090_v43, %v4227_v39 }
0x1697   : > { %v4237_v46 = vadd.f32 %v6091_v40, %v4232_v44 }
0x1699   : > { %v5934_v47 = vmul.f32 -1.442695, %v4237_v46 }
0x169b   : > { %6165 = vpow2.f32 %v5934_v47 }
0x16a1   : > { %v6166_v61 = vpop.eup %6165 }
0x16a2   : > { %v4241_v63 = vadd.f32 1.0, %v6166_v61 }
0x16a4   : > { %6167 = vrcp.f32 %v4241_v63  ;;  %v4251_v27 = vand.u32 2147483647, %v4241_v63  ;;  %v4253_v10 = vand.u32 2147483648, %v4241_v63  ;;  %vm4247_vm1 = vweird.f32 %v4241_v63 }
0x16a6   : > { %v4254_v21 = vor.u32 1.1754944e-38, %v4253_v10  ;;  %vm4252_vm8 = vcmp.eq.f32.partialorder %v4251_v27, 8.507059e+37 }
0x16aa   : > { %v6168_v7 = vpop.eup %6167 }
0x16ab   : > { %v4243_v3 = vmul.f32 %v6168_v7, %v4241_v63  ;;  %vm4248_vm0 = vweird.f32 %v6168_v7 }
0x16ac   : > { %vm4249_vm12 = vmor %vm4247_vm1, %vm4248_vm0 }
0x16ad   : > { %v4244_v4 = vsub.f32 1.0, %v4243_v3 }
0x16af   : > { %v4245_v17 = vmul.f32 %v6168_v7, %v4244_v4 }
0x16b1   : > { %v4246_v20 = vadd.f32 %v6168_v7, %v4245_v17 }
0x16b3   : > { %v4250_v22 = vsel %vm4249_vm12, %v6168_v7, %v4246_v20 }
0x16b4   : > { %v4255_v57 = vsel %vm4252_vm8, %v4254_v21, %v4250_v22 }
0x16b5   : > { %v4257_v23 = vmul.f32 %v4255_v57, %v4237_v46 }
0x16b7   : > { %v4259_v24 = vrot.slane %v4257_v23, 4 }
0x16b9   : > { %v4261_v25 = vsel %vm1579_vm5, 0.0, %v4259_v24  ;;  %v4262_v26 = vsel %vm1579_vm5, %v4259_v24, 0.0 }
0x16ba   : > { %v4264_v28 = vpack.c.bf16 %v4261_v25, %v4261_v25  ;;  %v4267_v29 = vpack.c.bf16 %v4262_v26, %v4261_v25  ;;  %v4460_v49 = vpack.c.bf16 %v4262_v26, %v4262_v26 }
0x16bc   : > { %v4270_v30 = vshrl.u32 %v4267_v29, 16  ;;  %v4272_v31 = vshll.u32 %v4267_v29, 16  ;;  %5936 = vmatmul.msk.bf16.vlgmr.msra.gmra.mxu0 %vm3520_vm3, %v4264_v28  ;;  %v4317_v32 = vrot.slane %v4267_v29, 1  ;;  %v4413_v44 = vrot.slane %v4267_v29, 3 }
0x16bd   : > { %4512 = vmatpush.msra.mxu0 %v6999_v12  ;;  %v4365_v45 = vrot.slane %v4267_v29, 2 }
0x16be   : > { %5937 = vmatmul.msk.bf16.vlgmr.msrb.gmra.mxu1 %vm3520_vm3, %v4317_v32  ;;  %v4274_v34 = vrot.slane %v4272_v31, 1  ;;  %v4340_v35 = vrot.slane %v4270_v30, 1  ;;  %v4341_v37 = vrot.slane %v4272_v31, 2  ;;  %v4388_v43 = vrot.slane %v4270_v30, 2 }
0x16bf   : > { %5945 = vmatpush.msk.msrb.mxu1 %vm1579_vm5, %v7007_v19  ;;  %v4389_v39 = vrot.slane %v4272_v31, 3  ;;  %v4436_v46 = vrot.slane %v4270_v30, 3  ;;  %v4437_v47 = vrot.slane %v4272_v31, 4 }
0x16c0   : > { %v4275_v38 = vor.u32 %v4274_v34, %v4270_v30  ;;  %v4342_v41 = vor.u32 %v4341_v37, %v4340_v35 }
0x16c1   : > { %v4390_v40 = vor.u32 %v4389_v39, %v4388_v43  ;;  %v4438_v48 = vor.u32 %v4437_v47, %v4436_v46 }
0x16c2   : > { %5935 = vmatmul.msk.bf16.vlgmr.msra.gmra.mxu3 %vm3520_vm3, %v4275_v38  ;;  %5938 = vmatmul.msk.bf16.vlgmr.msrb.gmra.mxu2 %vm3520_vm3, %v4342_v41 }
0x16c3   : > { %4475 = vmatpush.bf16.msra.mxu3 %v4466_v42  ;;  %4569 = vmatpush.msrb.mxu2 %v6999_v12 }
0x16cc   : > { %5940 = vmatmul.msk.bf16.vlgmr.msrb.gmra.mxu0 %vm3520_vm3, %v4390_v40 }
0x16cd   : > { %5948 = vmatpush.msk.msrb.mxu0 %vm1579_vm5, %v7007_v19 }
0x16ce   : > { %5941 = vmatmul.msk.bf16.vlgmr.msra.gmra.mxu1 %vm3520_vm3, %v4413_v44 }
0x16d2   : > { %5939 = vmatmul.msk.bf16.vlgmr.msrb.gmra.mxu3 %vm3520_vm3, %v4365_v45  ;;  %5942 = vmatmul.msk.bf16.vlgmr.msra.gmra.mxu2 %vm3520_vm3, %v4438_v48 }
0x16e2   : > { %5943 = vmatmul.msk.bf16.vlgmr.msra.gmra.mxu3 %vm3520_vm3, %v4460_v49 }
0x1739   : > { %v4310_v50 = vpop.f32.mrf.mxu0 }
0x173b   : > { %v4333_v55 = vpop.f32.mrf.mxu1 }
0x1741   : > { %v4312_v56 = vpop.f32.mrf.mxu0 }
0x1743   : > { %v4335_v59 = vpop.f32.mrf.mxu1 }
0x1744   : > { %v6094_v59 = vld [vmem:[%s7299_s18] ss:$0 sm:$0xff]  ;;  %s7302_s18 = sld [smem:[#allocation27_spill]] }
0x1745   : > { %v4291_v53 = vpop.f32.mrf.mxu3  ;;  %v4358_v54 = vpop.f32.mrf.mxu2 }
0x1746   : > { %v4311_v63 = vadd.f32 %v4310_v50, %v4291_v53 }
0x1748   : > { %v4337_v0 = vadd.f32 %v4333_v55, %v4311_v63  ;;  %v6093_v55 = vld [vmem:[%s7298_s2] ss:$0 sm:$0xff]  ;;  %s7301_s2 = sld [smem:[#allocation26_spill]] }
0x1749   : > { %v4406_v60 = vpop.f32.mrf.mxu0 }
0x174a   : > { %v4362_v52 = vadd.f32 %v4358_v54, %v4337_v0 }
0x174b   : > { %v4429_v61 = vpop.f32.mrf.mxu1 }
0x174d   : > { %v4293_v51 = vpop.f32.mrf.mxu3  ;;  %v4360_v8 = vpop.f32.mrf.mxu2 }
0x174e   : > { %v4698_v8 = vld [vmem:[%s7300_s26 + $0x10] sm:$0xff] }
0x174f   : > { %v4699_v63 = vpack.c.bf16 %v4698_v8, %v4698_v8 }
0x1751   : > { %v4408_v2 = vpop.f32.mrf.mxu0  ;;  %v4706_v0 = vsel %vm1579_vm5, %v4699_v63, 0 }
0x1752   : > { %4715 = vmatpush.bf16.msrb.mxu3 %v4706_v0 }
0x1753   : > { %v4431_v5 = vpop.f32.mrf.mxu1 }
0x1754   : > { %v4650_v5 = vld [vmem:[%s7300_s26 + $0x8] sm:$0xff] }
0x1755   : > { %v4381_v62 = vpop.f32.mrf.mxu3  ;;  %v4454_v1 = vpop.f32.mrf.mxu2 }
0x1756   : > { %v4385_v7 = vadd.f32 %v4381_v62, %v4362_v52  ;;  %v4722_v62 = vld [vmem:[%s7300_s26 + $0x18] sm:$0xff]  ;;  %v4652_v52 = vpack.c.bf16 %v4650_v5, %v4650_v5 }
0x1758   : > { %v4410_v3 = vadd.f32 %v4406_v60, %v4385_v7  ;;  %v4723_v7 = vpack.c.bf16 %v4722_v62, %v4722_v62 }
0x175a   : > { %v4433_v10 = vadd.f32 %v4429_v61, %v4410_v3  ;;  %v4647_v61 = vld [vmem:[%s7300_s26] sm:$0xff] }
0x175b   : > { %v4649_v51 = vpack.c.bf16 %v4647_v61, %v4647_v61 }
0x175c   : > { %v4458_v15 = vadd.f32 %v4454_v1, %v4433_v10  ;;  %v4770_v10 = vld [vmem:[%s7300_s26 + $0x28] sm:$0xff] }
0x175d   : > { %v4383_v4 = vpop.f32.mrf.mxu3  ;;  %v4456_v27 = vpop.f32.mrf.mxu2  ;;  %v4683_v2 = vsel %vm1579_vm5, %v4649_v51, 0 }
0x175e   : > { %4692 = vmatpush.bf16.msra.mxu2 %v4683_v2  ;;  %v4664_v4 = vsel %vm1579_vm5, %v4652_v52, 0  ;;  %v4731_v27 = vsel %vm1579_vm5, %v4723_v7, 0 }
0x175f   : > { %4673 = vmatpush.bf16.msra.mxu1 %v4664_v4 }
0x1765   : > { %v4477_v17 = vpop.f32.mrf.mxu3 }
0x1766   : > { %v4481_v11 = vadd.f32 %v4477_v17, %v4458_v15  ;;  %v4795_v15 = vld [vmem:[%s7300_s26 + $0x30] sm:$0xff] }
0x1767   : > { %v4796_v17 = vpack.c.bf16 %v4795_v15, %v4795_v15 }
0x1768   : > { %v4486_v36 = vadd.f32 %v6092_v16, %v4481_v11  ;;  %v4771_v16 = vpack.c.bf16 %v4770_v10, %v4770_v10 }
0x176a   : > { %v4487_v20 = vsel %vm3520_vm3, %v4486_v36, 0.0  ;;  %v4779_v11 = vsel %vm1579_vm5, %v4771_v16, 0 }
0x176b   : > { %v4488_v13 = vrot.slane %v4487_v20, 4 }
0x176d   : > { %v4489_v14 = vadd.f32 %v4488_v13, %v4487_v20  ;;  %v4479_v21 = vpop.f32.mrf.mxu3 }
0x176f   : > { %v4490_v22 = vrot.slane %v4489_v14, 2 }
0x1771   : > { %v4491_v57 = vadd.f32 %v4490_v22, %v4489_v14 }
0x1773   : > { %v4492_v23 = vrot.slane %v4491_v57, 1 }
0x1775   : > { %v4493_v24 = vadd.f32 %v4492_v23, %v4491_v57  ;;  %v4747_v23 = vld [vmem:[%s7300_s26 + $0x20] sm:$0xff] }
0x1777   : > { %5944 = vmatmul.msk.f32.vlgmr.msra.gmra.mxu0 %vm3520_vm3, %v4493_v24  ;;  %v4818_v24 = vld [vmem:[%s7300_s26 + $0x38] sm:$0xff] }
0x1778   : > { %4740 = vmatpush.bf16.msra.mxu0 %v4731_v27 }
0x17f4   : > { %v4514_v25 = vpop.f32.mrf.mxu0 }
0x17f5   : > { %v4517_v26 = vmul.f32 0.0625, %v4514_v25 }
0x17f7   : > { %5946 = vmatmul.msk.f32.vlgmr.msrb.gmra.mxu1 %vm1607_vm6, %v4517_v26  ;;  %v4748_v26 = vpack.c.bf16 %v4747_v23, %v4747_v23  ;;  %v6095_v23 = vld [vmem:[%s7301_s2] ss:$0 sm:$0xff]  ;;  %s7303_s2 = sld [smem:[#allocation28_spill]] }
0x1874   : > { %v4538_v58 = vpop.f32.mrf.mxu1 }
0x1875   : > { %v4541_v28 = vperm.slane %v4538_v58, 0  ;;  %v4819_v58 = vpack.c.bf16 %v4818_v24, %v4818_v24 }
0x1877   : > { %v4542_v29 = vsub.f32 %v4486_v36, %v4541_v28  ;;  %v4802_v36 = vsel %vm1579_vm5, %v4796_v17, 0 }
0x1878   : > { %4811 = vmatpush.bf16.msra.mxu3 %v4802_v36 }
0x1879   : > { %v4543_v30 = vmul.f32 %v4542_v29, %v4542_v29 }
0x187b   : > { %v4544_v31 = vsel %vm3520_vm3, %v4543_v30, 0.0  ;;  %v4754_v30 = vsel %vm1579_vm5, %v4748_v26, 0 }
0x187c   : > { %v4545_v32 = vrot.slane %v4544_v31, 4  ;;  %4763 = vmatpush.bf16.msrb.mxu1 %v4754_v30 }
0x187e   : > { %v4546_v33 = vadd.f32 %v4545_v32, %v4544_v31  ;;  %v4827_v31 = vsel %vm1579_vm5, %v4819_v58, 0 }
0x1880   : > { %v4547_v34 = vrot.slane %v4546_v33, 2 }
0x1882   : > { %v4548_v35 = vadd.f32 %v4547_v34, %v4546_v33 }
0x1884   : > { %v4549_v37 = vrot.slane %v4548_v35, 1 }
0x1886   : > { %v4550_v38 = vadd.f32 %v4549_v37, %v4548_v35 }
0x1888   : > { %5947 = vmatmul.msk.f32.vlgmr.msrb.gmra.mxu2 %vm3520_vm3, %v4550_v38 }
0x1889   : > { %4788 = vmatpush.bf16.msrb.mxu2 %v4779_v11 }
0x190b   : > { %v4571_v41 = vpop.f32.mrf.mxu2 }
0x190c   : > { %v4574_v42 = vmul.f32 0.0625, %v4571_v41  ;;  %v4843_v41 = vld [vmem:[%s7300_s26 + $0x40] sm:$0xff] }
0x190e   : > { %v4575_v43 = vadd.f32 1e-05, %v4574_v42 }
0x1910   : > { %6169 = vrsqrt.f32 %v4575_v43  ;;  %vm4582_vm11 = vweird.f32 %v4575_v43 }
0x1916   : > { %v6170_v39 = vpop.eup %6169 }
0x1917   : > { %v4577_v40 = vmul.f32 %v6170_v39, %v4575_v43  ;;  %vm4583_vm10 = vweird.f32 %v6170_v39 }
0x1918   : > { %vm4584_vm13 = vmor %vm4582_vm11, %vm4583_vm10 }
0x1919   : > { %v4578_v44 = vmul.f32 %v6170_v39, %v4577_v40 }
0x191b   : > { %v4579_v46 = vmul.f32 0.5, %v4578_v44 }
0x191d   : > { %v4580_v47 = vsub.f32 1.5, %v4579_v46  ;;  %v4845_v46 = vpack.c.bf16 %v4843_v41, %v4843_v41 }
0x191f   : > { %v4581_v45 = vmul.f32 %v6170_v39, %v4580_v47 }
0x1921   : > { %v4585_v48 = vsel %vm4584_vm13, %v6170_v39, %v4581_v45 }
0x1922   : > { %5949 = vmatmul.msk.f32.vlgmr.msrb.gmra.mxu0 %vm1607_vm6, %v4585_v48 }
0x1923   : > { %4836 = vmatpush.bf16.msrb.mxu0 %v4827_v31 }
0x199f   : > { %v4606_v49 = vpop.f32.mrf.mxu0 }
0x19a0   : > { %v4609_v50 = vperm.slane %v4606_v49, 0 }
0x19a2   : > { %v4610_v56 = vmul.f32 %v4609_v50, %v4542_v29  ;;  %v4850_v50 = vsel %vm1579_vm5, %v4845_v46, 0 }
0x19a4   : > { %v4615_v53 = vmul.f32 %v6093_v55, %v4610_v56 }
0x19a6   : > { %v4620_v54 = vadd.f32 %v6094_v59, %v4615_v53 }
0x19a8   : > { %v5950_v60 = vmul.f32 -1.442695, %v4620_v54 }
0x19aa   : > { %6171 = vpow2.f32 %v5950_v60 }
0x19b0   : > { %v6172_v1 = vpop.eup %6171 }
0x19b1   : > { %v4624_v3 = vadd.f32 1.0, %v6172_v1 }
0x19b3   : > { %6173 = vrcp.f32 %v4624_v3  ;;  %v4636_v21 = vand.u32 2147483648, %v4624_v3  ;;  %v4634_v57 = vand.u32 2147483647, %v4624_v3  ;;  %vm4630_vm14 = vweird.f32 %v4624_v3 }
0x19b5   : > { %v4637_v28 = vor.u32 1.1754944e-38, %v4636_v21  ;;  %vm4635_vm7 = vcmp.eq.f32.partialorder %v4634_v57, 8.507059e+37 }
0x19b9   : > { %v6174_v20 = vpop.eup %6173 }
0x19ba   : > { %v4626_v13 = vmul.f32 %v6174_v20, %v4624_v3  ;;  %vm4631_vm2 = vweird.f32 %v6174_v20 }
0x19bb   : > { %vm4632_vm4 = vmor %vm4630_vm14, %vm4631_vm2 }
0x19bc   : > { %v4627_v14 = vsub.f32 1.0, %v4626_v13 }
0x19be   : > { %v4628_v22 = vmul.f32 %v6174_v20, %v4627_v14 }
0x19c0   : > { %v4629_v25 = vadd.f32 %v6174_v20, %v4628_v22 }
0x19c2   : > { %v4633_v29 = vsel %vm4632_vm4, %v6174_v20, %v4629_v25 }
0x19c3   : > { %v4638_v32 = vsel %vm4635_vm7, %v4637_v28, %v4633_v29 }
0x19c4   : > { %v4640_v33 = vmul.f32 %v4638_v32, %v4620_v54 }
0x19c6   : > { %v7080_v34 = vadd.f32 %v4640_v33, %v6982_v18 }
0x19c8   : > { %v4643_v35 = vrot.slane %v7080_v34, 4 }
0x19ca   : > { %v4645_v37 = vsel %vm1579_vm5, 0.0, %v4643_v35  ;;  %v4646_v38 = vsel %vm1579_vm5, %v4643_v35, 0.0 }
0x19cb   : > { %v4648_v42 = vpack.c.bf16 %v4645_v37, %v4645_v37  ;;  %v4651_v43 = vpack.c.bf16 %v4646_v38, %v4645_v37  ;;  %v4844_v8 = vpack.c.bf16 %v4646_v38, %v4646_v38 }
0x19cd   : > { %5952 = vmatmul.msk.bf16.vlgmr.msra.gmra.mxu2 %vm3520_vm3, %v4648_v42  ;;  %v4701_v39 = vrot.slane %v4651_v43, 1  ;;  %v4654_v40 = vshrl.u32 %v4651_v43, 16  ;;  %v4656_v44 = vshll.u32 %v4651_v43, 16  ;;  %v4797_v53 = vrot.slane %v4651_v43, 3 }
0x19ce   : > { %4896 = vmatpush.msra.mxu2 %v6999_v12  ;;  %v4749_v61 = vrot.slane %v4651_v43, 2 }
0x19cf   : > { %5953 = vmatmul.msk.bf16.vlgmr.msrb.gmra.mxu3 %vm3520_vm3, %v4701_v39  ;;  %v4658_v18 = vrot.slane %v4656_v44, 1  ;;  %v4724_v47 = vrot.slane %v4654_v40, 1  ;;  %v4725_v45 = vrot.slane %v4656_v44, 2  ;;  %v4772_v55 = vrot.slane %v4654_v40, 2 }
0x19d0   : > { %5961 = vmatpush.msk.msrb.mxu3 %vm1579_vm5, %v7007_v19  ;;  %v4773_v56 = vrot.slane %v4656_v44, 3  ;;  %v4820_v54 = vrot.slane %v4654_v40, 3  ;;  %v4821_v60 = vrot.slane %v4656_v44, 4 }
0x19d1   : > { %v4659_v48 = vor.u32 %v4658_v18, %v4654_v40  ;;  %v4726_v49 = vor.u32 %v4725_v45, %v4724_v47 }
0x19d2   : > { %v4774_v59 = vor.u32 %v4773_v56, %v4772_v55  ;;  %v4822_v51 = vor.u32 %v4821_v60, %v4820_v54 }
0x19d3   : > { %5951 = vmatmul.msk.bf16.vlgmr.msra.gmra.mxu1 %vm3520_vm3, %v4659_v48  ;;  %5954 = vmatmul.msk.bf16.vlgmr.msra.gmra.mxu0 %vm3520_vm3, %v4726_v49 }
0x19d4   : > { %4859 = vmatpush.bf16.msra.mxu1 %v4850_v50  ;;  %4953 = vmatpush.msra.mxu0 %v6999_v12 }
0x19dd   : > { %5956 = vmatmul.msk.bf16.vlgmr.msrb.gmra.mxu2 %vm3520_vm3, %v4774_v59 }
0x19de   : > { %5964 = vmatpush.msk.msrb.mxu2 %vm1579_vm5, %v7007_v19 }
0x19df   : > { %5957 = vmatmul.msk.bf16.vlgmr.msra.gmra.mxu3 %vm3520_vm3, %v4797_v53 }
0x19e3   : > { %5955 = vmatmul.msk.bf16.vlgmr.msrb.gmra.mxu1 %vm3520_vm3, %v4749_v61  ;;  %5958 = vmatmul.msk.bf16.vlgmr.msrb.gmra.mxu0 %vm3520_vm3, %v4822_v51 }
0x19f3   : > { %5959 = vmatmul.msk.bf16.vlgmr.msra.gmra.mxu1 %vm3520_vm3, %v4844_v8 }
0x1a50   : > { %v4675_v63 = vpop.f32.mrf.mxu1  ;;  %v4694_v2 = vpop.f32.mrf.mxu2 }
0x1a51   : > { %v4742_v0 = vpop.f32.mrf.mxu0  ;;  %v4695_v52 = vadd.f32 %v4694_v2, %v4675_v63  ;;  %v6096_v2 = vld [vmem:[%s7302_s18] ss:$0 sm:$0xff]  ;;  %s7305_s18 = sld [smem:[#allocation30_spill]] }
0x1a52   : > { %v4717_v5 = vpop.f32.mrf.mxu3 }
0x1a53   : > { %v4721_v4 = vadd.f32 %v4717_v5, %v4695_v52  ;;  %v6097_v5 = vld [vmem:[%s7303_s2] ss:$0 sm:$0xff]  ;;  %s7306_s2 = sld [smem:[#allocation31_spill]] }
0x1a55   : > { %v4746_v15 = vadd.f32 %v4742_v0, %v4721_v4  ;;  %v5081_v4 = vld [vmem:[%s7304_s15 + $0x10] sm:$0xff] }
0x1a58   : > { %v4677_v62 = vpop.f32.mrf.mxu1  ;;  %v4696_v1 = vpop.f32.mrf.mxu2 }
0x1a59   : > { %v4744_v7 = vpop.f32.mrf.mxu0 }
0x1a5a   : > { %v4719_v3 = vpop.f32.mrf.mxu3  ;;  %v5030_v7 = vld [vmem:[%s7304_s15] sm:$0xff] }
0x1a5b   : > { %v5032_v3 = vpack.c.bf16 %v5030_v7, %v5030_v7 }
0x1a60   : > { %v4765_v27 = vpop.f32.mrf.mxu1  ;;  %v4790_v10 = vpop.f32.mrf.mxu2 }
0x1a61   : > { %v4838_v16 = vpop.f32.mrf.mxu0  ;;  %v4769_v11 = vadd.f32 %v4765_v27, %v4746_v15  ;;  %v5066_v27 = vsel %vm1579_vm5, %v5032_v3, 0 }
0x1a62   : > { %v4813_v17 = vpop.f32.mrf.mxu3  ;;  %5075 = vmatpush.bf16.msrb.mxu0 %v5066_v27 }
0x1a63   : > { %v4794_v36 = vadd.f32 %v4790_v10, %v4769_v11  ;;  %v5082_v10 = vpack.c.bf16 %v5081_v4, %v5081_v4 }
0x1a65   : > { %v4817_v22 = vadd.f32 %v4813_v17, %v4794_v36  ;;  %v5089_v15 = vsel %vm1579_vm5, %v5082_v10, 0  ;;  %v5105_v17 = vld [vmem:[%s7304_s15 + $0x18] sm:$0xff] }
0x1a66   : > { %5098 = vmatpush.bf16.msrb.mxu1 %v5089_v15  ;;  %v5106_v36 = vpack.c.bf16 %v5105_v17, %v5105_v17 }
0x1a67   : > { %v4842_v57 = vadd.f32 %v4838_v16, %v4817_v22  ;;  %v5033_v16 = vld [vmem:[%s7304_s15 + $0x8] sm:$0xff] }
0x1a68   : > { %v4767_v20 = vpop.f32.mrf.mxu1  ;;  %v4792_v13 = vpop.f32.mrf.mxu2  ;;  %v5035_v11 = vpack.c.bf16 %v5033_v16, %v5033_v16  ;;  %v5153_v22 = vld [vmem:[%s7304_s15 + $0x28] sm:$0xff] }
0x1a69   : > { %v4840_v14 = vpop.f32.mrf.mxu0 }
0x1a6a   : > { %v4815_v21 = vpop.f32.mrf.mxu3  ;;  %v5047_v13 = vsel %vm1579_vm5, %v5035_v11, 0  ;;  %v5114_v14 = vsel %vm1579_vm5, %v5106_v36, 0 }
0x1a6b   : > { %5056 = vmatpush.bf16.msra.mxu3 %v5047_v13 }
0x1a70   : > { %v4861_v24 = vpop.f32.mrf.mxu1 }
0x1a71   : > { %v4865_v25 = vadd.f32 %v4861_v24, %v4842_v57  ;;  %v5178_v57 = vld [vmem:[%s7304_s15 + $0x30] sm:$0xff] }
0x1a72   : > { %v5179_v24 = vpack.c.bf16 %v5178_v57, %v5178_v57 }
0x1a73   : > { %v4870_v26 = vadd.f32 %v6095_v23, %v4865_v25  ;;  %v5154_v23 = vpack.c.bf16 %v5153_v22, %v5153_v22 }
0x1a75   : > { %v4871_v58 = vsel %vm3520_vm3, %v4870_v26, 0.0  ;;  %v5162_v25 = vsel %vm1579_vm5, %v5154_v23, 0 }
0x1a76   : > { %v4872_v28 = vrot.slane %v4871_v58, 4 }
0x1a78   : > { %v4873_v29 = vadd.f32 %v4872_v28, %v4871_v58  ;;  %v4863_v30 = vpop.f32.mrf.mxu1 }
0x1a7a   : > { %v4874_v31 = vrot.slane %v4873_v29, 2 }
0x1a7c   : > { %v4875_v32 = vadd.f32 %v4874_v31, %v4873_v29 }
0x1a7e   : > { %v4876_v33 = vrot.slane %v4875_v32, 1 }
0x1a80   : > { %v4877_v35 = vadd.f32 %v4876_v33, %v4875_v32  ;;  %v5130_v32 = vld [vmem:[%s7304_s15 + $0x20] sm:$0xff]  ;;  %v5201_v33 = vld [vmem:[%s7304_s15 + $0x38] sm:$0xff] }
0x1a82   : > { %5960 = vmatmul.msk.f32.vlgmr.msra.gmra.mxu2 %vm3520_vm3, %v4877_v35 }
0x1a83   : > { %5123 = vmatpush.bf16.msra.mxu2 %v5114_v14 }
0x1b05   : > { %v4898_v37 = vpop.f32.mrf.mxu2 }
0x1b06   : > { %v4901_v38 = vmul.f32 0.0625, %v4898_v37  ;;  %v5131_v37 = vpack.c.bf16 %v5130_v32, %v5130_v32 }
0x1b08   : > { %5962 = vmatmul.msk.f32.vlgmr.msrb.gmra.mxu3 %vm1607_vm6, %v4901_v38  ;;  %v5202_v38 = vpack.c.bf16 %v5201_v33, %v5201_v33 }
0x1b8b   : > { %v4922_v41 = vpop.f32.mrf.mxu3 }
0x1b8c   : > { %v4925_v42 = vperm.slane %v4922_v41, 0 }
0x1b8e   : > { %v4926_v43 = vsub.f32 %v4870_v26, %v4925_v42  ;;  %v5185_v26 = vsel %vm1579_vm5, %v5179_v24, 0  ;;  %v5137_v42 = vsel %vm1579_vm5, %v5131_v37, 0 }
0x1b8f   : > { %5194 = vmatpush.bf16.msra.mxu1 %v5185_v26  ;;  %5146 = vmatpush.bf16.msrb.mxu3 %v5137_v42 }
0x1b90   : > { %v4927_v39 = vmul.f32 %v4926_v43, %v4926_v43 }
0x1b92   : > { %v4928_v40 = vsel %vm3520_vm3, %v4927_v39, 0.0 }
0x1b93   : > { %v4929_v44 = vrot.slane %v4928_v40, 4 }
0x1b95   : > { %v4930_v46 = vadd.f32 %v4929_v44, %v4928_v40 }
0x1b97   : > { %v4931_v18 = vrot.slane %v4930_v46, 2 }
0x1b99   : > { %v4932_v47 = vadd.f32 %v4931_v18, %v4930_v46 }
0x1b9b   : > { %v4933_v45 = vrot.slane %v4932_v47, 1 }
0x1b9d   : > { %v4934_v48 = vadd.f32 %v4933_v45, %v4932_v47 }
0x1b9f   : > { %5963 = vmatmul.msk.f32.vlgmr.msra.gmra.mxu0 %vm3520_vm3, %v4934_v48  ;;  %v5226_v48 = vld [vmem:[%s7304_s15 + $0x40] sm:$0xff] }
0x1ba0   : > { %5171 = vmatpush.bf16.msra.mxu0 %v5162_v25 }
0x1c1c   : > { %v4955_v49 = vpop.f32.mrf.mxu0 }
0x1c1d   : > { %v4958_v50 = vmul.f32 0.0625, %v4955_v49 }
0x1c1f   : > { %v4959_v55 = vadd.f32 1e-05, %v4958_v50 }
0x1c21   : > { %6175 = vrsqrt.f32 %v4959_v55  ;;  %vm4966_vm15 = vweird.f32 %v4959_v55 }
0x1c27   : > { %v6176_v56 = vpop.eup %6175 }
0x1c28   : > { %v4961_v59 = vmul.f32 %v6176_v56, %v4959_v55  ;;  %vm4967_vm9 = vweird.f32 %v6176_v56 }
0x1c29   : > { %vm4968_vm0 = vmor %vm4966_vm15, %vm4967_vm9 }
0x1c2a   : > { %v4962_v53 = vmul.f32 %v6176_v56, %v4961_v59 }
0x1c2c   : > { %v4963_v54 = vmul.f32 0.5, %v4962_v53  ;;  %v5228_v53 = vpack.c.bf16 %v5226_v48, %v5226_v48 }
0x1c2e   : > { %v4964_v60 = vsub.f32 1.5, %v4963_v54 }
0x1c30   : > { %v4965_v61 = vmul.f32 %v6176_v56, %v4964_v60 }
0x1c32   : > { %v4969_v51 = vsel %vm4968_vm0, %v6176_v56, %v4965_v61 }
0x1c33   : > { %5965 = vmatmul.msk.f32.vlgmr.msrb.gmra.mxu2 %vm1607_vm6, %v4969_v51 }
0x1cb6   : > { %v4990_v8 = vpop.f32.mrf.mxu2 }
0x1cb7   : > { %v4993_v63 = vperm.slane %v4990_v8, 0 }
0x1cb9   : > { %v4994_v0 = vmul.f32 %v4993_v63, %v4926_v43  ;;  %v5210_v43 = vsel %vm1579_vm5, %v5202_v38, 0  ;;  %v5233_v63 = vsel %vm1579_vm5, %v5228_v53, 0 }
0x1cba   : > { %5219 = vmatpush.bf16.msrb.mxu2 %v5210_v43 }
0x1cbb   : > { %v4999_v62 = vmul.f32 %v6096_v2, %v4994_v0 }
0x1cbd   : > { %v5004_v1 = vadd.f32 %v6097_v5, %v4999_v62 }
0x1cbf   : > { %v5966_v52 = vmul.f32 -1.442695, %v5004_v1 }
0x1cc1   : > { %6177 = vpow2.f32 %v5966_v52 }
0x1cc7   : > { %v6178_v20 = vpop.eup %6177 }
0x1cc8   : > { %v5008_v21 = vadd.f32 1.0, %v6178_v20 }
0x1cca   : > { %6179 = vrcp.f32 %v5008_v21  ;;  %v5018_v30 = vand.u32 2147483647, %v5008_v21  ;;  %v5020_v31 = vand.u32 2147483648, %v5008_v21  ;;  %vm5014_vm12 = vweird.f32 %v5008_v21 }
0x1ccc   : > { %v5021_v39 = vor.u32 1.1754944e-38, %v5020_v31  ;;  %vm5019_vm10 = vcmp.eq.f32.partialorder %v5018_v30, 8.507059e+37  ;;  %v6098_v31 = vld [vmem:[%s7305_s18] ss:$0 sm:$0xff]  ;;  %s7307_s18 = sld [smem:[#allocation32_spill]] }
0x1cd0   : > { %v6180_v58 = vpop.eup %6179 }
0x1cd1   : > { %v5010_v28 = vmul.f32 %v6180_v58, %v5008_v21  ;;  %vm5015_vm1 = vweird.f32 %v6180_v58 }
0x1cd2   : > { %vm5016_vm8 = vmor %vm5014_vm12, %vm5015_vm1  ;;  %vm7316_vm1 = vcmask 130048  }
0x1cd3   : > { %v5011_v29 = vsub.f32 1.0, %v5010_v28  ;;  %vm7318_vm12 = vmmov %vm7316_vm1 }
0x1cd5   : > { %v5012_v35 = vmul.f32 %v6180_v58, %v5011_v29 }
0x1cd7   : > { %v5013_v41 = vadd.f32 %v6180_v58, %v5012_v35 }
0x1cd9   : > { %v5017_v40 = vsel %vm5016_vm8, %v6180_v58, %v5013_v41 }
0x1cda   : > { %v5022_v44 = vsel %vm5019_vm10, %v5021_v39, %v5017_v40 }
0x1cdb   : > { %v5024_v46 = vmul.f32 %v5022_v44, %v5004_v1 }
0x1cdd   : > { %v5026_v18 = vrot.slane %v5024_v46, 4 }
0x1cdf   : > { %v5028_v47 = vsel %vm1579_vm5, 0.0, %v5026_v18  ;;  %v5029_v45 = vsel %vm1579_vm5, %v5026_v18, 0.0 }
0x1ce0   : > { %v5031_v49 = vpack.c.bf16 %v5028_v47, %v5028_v47  ;;  %v5034_v50 = vpack.c.bf16 %v5029_v45, %v5028_v47 }
0x1ce2   : > { %v5037_v55 = vshrl.u32 %v5034_v50, 16  ;;  %v5039_v56 = vshll.u32 %v5034_v50, 16  ;;  %5968 = vmatmul.msk.bf16.vlgmr.msrb.gmra.mxu0 %vm3520_vm3, %v5031_v49  ;;  %v5084_v59 = vrot.slane %v5034_v50, 1  ;;  %v5180_v62 = vrot.slane %v5034_v50, 3 }
0x1ce3   : > { %5279 = vmatpush.msrb.mxu0 %v6999_v12  ;;  %v5132_v7 = vrot.slane %v5034_v50, 2 }
0x1ce4   : > { %5969 = vmatmul.msk.bf16.vlgmr.msrb.gmra.mxu1 %vm3520_vm3, %v5084_v59  ;;  %v5041_v54 = vrot.slane %v5039_v56, 1  ;;  %v5107_v60 = vrot.slane %v5037_v55, 1  ;;  %v5108_v61 = vrot.slane %v5039_v56, 2  ;;  %v5155_v2 = vrot.slane %v5037_v55, 2 }
0x1ce5   : > { %5977 = vmatpush.msk.msrb.mxu1 %vm1579_vm5, %v7007_v19  ;;  %v5156_v0 = vrot.slane %v5039_v56, 3  ;;  %v5203_v1 = vrot.slane %v5037_v55, 3  ;;  %v5204_v52 = vrot.slane %v5039_v56, 4 }
0x1ce6   : > { %v5042_v51 = vor.u32 %v5041_v54, %v5037_v55  ;;  %v5109_v8 = vor.u32 %v5108_v61, %v5107_v60 }
0x1ce7   : > { %v5157_v5 = vor.u32 %v5156_v0, %v5155_v2  ;;  %v5205_v3 = vor.u32 %v5204_v52, %v5203_v1 }
0x1ce8   : > { %5967 = vmatmul.msk.bf16.vlgmr.msra.gmra.mxu3 %vm3520_vm3, %v5042_v51  ;;  %5970 = vmatmul.msk.bf16.vlgmr.msra.gmra.mxu2 %vm3520_vm3, %v5109_v8 }
0x1ce9   : > { %5242 = vmatpush.bf16.msra.mxu3 %v5233_v63  ;;  %5336 = vmatpush.msra.mxu2 %v6999_v12  ;;  %v5227_v12 = vpack.c.bf16 %v5029_v45, %v5029_v45 }
0x1cf2   : > { %5972 = vmatmul.msk.bf16.vlgmr.msra.gmra.mxu0 %vm3520_vm3, %v5157_v5 }
0x1cf3   : > { %5980 = vmatpush.msk.msra.mxu0 %vm1579_vm5, %v7007_v19 }
0x1cf4   : > { %5973 = vmatmul.msk.bf16.vlgmr.msra.gmra.mxu1 %vm3520_vm3, %v5180_v62 }
0x1cf8   : > { %5971 = vmatmul.msk.bf16.vlgmr.msrb.gmra.mxu3 %vm3520_vm3, %v5132_v7  ;;  %5974 = vmatmul.msk.bf16.vlgmr.msrb.gmra.mxu2 %vm3520_vm3, %v5205_v3 }
0x1d08   : > { %5975 = vmatmul.msk.bf16.vlgmr.msra.gmra.mxu3 %vm3520_vm3, %v5227_v12  ;;  %v6099_v12 = vld [vmem:[%s7306_s2] ss:$0 sm:$0xff]  ;;  %s7308_s2 = sld [smem:[#allocation37_spill]] }
0x1d5f   : > { %v5077_v4 = vpop.f32.mrf.mxu0 }
0x1d61   : > { %v5100_v27 = vpop.f32.mrf.mxu1 }
0x1d67   : > { %v5079_v10 = vpop.f32.mrf.mxu0 }
0x1d69   : > { %v5102_v15 = vpop.f32.mrf.mxu1 }
0x1d6b   : > { %v5058_v16 = vpop.f32.mrf.mxu3  ;;  %v5125_v17 = vpop.f32.mrf.mxu2 }
0x1d6c   : > { %v5078_v13 = vadd.f32 %v5077_v4, %v5058_v16 }
0x1d6e   : > { %v5104_v21 = vadd.f32 %v5100_v27, %v5078_v13  ;;  %v6100_v27 = vld [vmem:[%s7307_s18] ss:$0 sm:$0xff]  ;;  %s7309_s18 = sld [smem:[#allocation35_spill]] }
0x1d6f   : > { %v5173_v11 = vpop.f32.mrf.mxu0 }
0x1d70   : > { %v5129_v24 = vadd.f32 %v5125_v17, %v5104_v21 }
0x1d71   : > { %v5196_v36 = vpop.f32.mrf.mxu1 }
0x1d73   : > { %v5060_v19 = vpop.f32.mrf.mxu3  ;;  %v5127_v20 = vpop.f32.mrf.mxu2 }
0x1d77   : > { %v5175_v14 = vpop.f32.mrf.mxu0 }
0x1d79   : > { %v5198_v22 = vpop.f32.mrf.mxu1 }
0x1d7b   : > { %v5148_v57 = vpop.f32.mrf.mxu3  ;;  %v5221_v23 = vpop.f32.mrf.mxu2 }
0x1d7c   : > { %v5152_v25 = vadd.f32 %v5148_v57, %v5129_v24 }
0x1d7e   : > { %v5177_v26 = vadd.f32 %v5173_v11, %v5152_v25 }
0x1d80   : > { %v5200_v29 = vadd.f32 %v5196_v36, %v5177_v26 }
0x1d82   : > { %v5225_v30 = vadd.f32 %v5221_v23, %v5200_v29 }
0x1d83   : > { %v5150_v58 = vpop.f32.mrf.mxu3  ;;  %v5223_v28 = vpop.f32.mrf.mxu2 }
0x1d8b   : > { %v5244_v32 = vpop.f32.mrf.mxu3 }
0x1d8c   : > { %v5248_v33 = vadd.f32 %v5244_v32, %v5225_v30 }
0x1d8e   : > { %v5253_v35 = vadd.f32 %v6098_v31, %v5248_v33 }
0x1d90   : > { %v5254_v37 = vsel %vm3520_vm3, %v5253_v35, 0.0 }
0x1d91   : > { %v5255_v38 = vrot.slane %v5254_v37, 4 }
0x1d93   : > { %v5256_v41 = vadd.f32 %v5255_v38, %v5254_v37  ;;  %v5246_v42 = vpop.f32.mrf.mxu3 }
0x1d95   : > { %v5257_v43 = vrot.slane %v5256_v41, 2 }
0x1d97   : > { %v5258_v39 = vadd.f32 %v5257_v43, %v5256_v41 }
0x1d99   : > { %v5259_v40 = vrot.slane %v5258_v39, 1 }
0x1d9b   : > { %v5260_v44 = vadd.f32 %v5259_v40, %v5258_v39 }
0x1d9d   : > { %5976 = vmatmul.msk.f32.vlgmr.msrb.gmra.mxu0 %vm3520_vm3, %v5260_v44 }
0x1e1a   : > { %v5281_v46 = vpop.f32.mrf.mxu0 }
0x1e1b   : > { %v5284_v18 = vmul.f32 0.0625, %v5281_v46 }
0x1e1d   : > { %5978 = vmatmul.msk.f32.vlgmr.msrb.gmra.mxu1 %vm1607_vm6, %v5284_v18 }
0x1e9a   : > { %v5305_v47 = vpop.f32.mrf.mxu1 }
0x1e9b   : > { %v5308_v45 = vperm.slane %v5305_v47, 0 }
0x1e9d   : > { %v5309_v48 = vsub.f32 %v5253_v35, %v5308_v45  ;;  %v5456_v45 = vld [vmem:[%s7308_s2] sm:$0xff]  ;;  %s7311_s2 = smov 112  }
0x1e9f   : > { %v5310_v49 = vmul.f32 %v5309_v48, %v5309_v48 }
0x1ea1   : > { %v5311_v50 = vsel %vm3520_vm3, %v5310_v49, 0.0 }
0x1ea2   : > { %v5312_v55 = vrot.slane %v5311_v50, 4 }
0x1ea4   : > { %v5313_v56 = vadd.f32 %v5312_v55, %v5311_v50 }
0x1ea6   : > { %v5314_v59 = vrot.slane %v5313_v56, 2 }
0x1ea8   : > { %v5315_v53 = vadd.f32 %v5314_v59, %v5313_v56 }
0x1eaa   : > { %v5316_v54 = vrot.slane %v5315_v53, 1 }
0x1eac   : > { %v5317_v60 = vadd.f32 %v5316_v54, %v5315_v53 }
0x1eae   : > { %5979 = vmatmul.msk.f32.vlgmr.msra.gmra.mxu2 %vm3520_vm3, %v5317_v60 }
0x1f31   : > { %v5338_v61 = vpop.f32.mrf.mxu2 }
0x1f32   : > { %v5341_v51 = vmul.f32 0.0625, %v5338_v61 }
0x1f34   : > { %v5342_v8 = vadd.f32 1e-05, %v5341_v51 }
0x1f36   : > { %6181 = vrsqrt.f32 %v5342_v8  ;;  %vm5349_vm13 = vweird.f32 %v5342_v8 }
0x1f3c   : > { %v6182_v63 = vpop.eup %6181 }
0x1f3d   : > { %v5344_v2 = vmul.f32 %v6182_v63, %v5342_v8  ;;  %vm5350_vm11 = vweird.f32 %v6182_v63  ;;  %v6101_v8 = vld [vmem:[%s7309_s18] ss:$0 sm:$0xff]  ;;  %s5996_s18 = sshll.u32 %s7320_s23, 4 }
0x1f3e   : > { %vm5351_vm2 = vmor %vm5349_vm13, %vm5350_vm11 }
0x1f3f   : > { %v5345_v0 = vmul.f32 %v6182_v63, %v5344_v2  ;;  %v6102_v2 = vld [vmem:[%s7310_s16] ss:$0 sm:$0xff]  ;;  %s7315_s16 = sld [smem:[#allocation38_spill]] }
0x1f41   : > { %v5346_v5 = vmul.f32 0.5, %v5345_v0 }
0x1f43   : > { %v5347_v62 = vsub.f32 1.5, %v5346_v5 }
0x1f45   : > { %v5348_v1 = vmul.f32 %v6182_v63, %v5347_v62 }
0x1f47   : > { %v5352_v52 = vsel %vm5351_vm2, %v6182_v63, %v5348_v1 }
0x1f48   : > { %5981 = vmatmul.msk.f32.vlgmr.msra.gmra.mxu0 %vm1607_vm6, %v5352_v52 }
0x1fc5   : > { %v5373_v7 = vpop.f32.mrf.mxu0 }
0x1fc6   : > { %v5376_v3 = vperm.slane %v5373_v7, 0 }
0x1fc8   : > { %v5377_v4 = vmul.f32 %v5376_v3, %v5309_v48  ;;  %v5457_v48 = vpack.c.bf16 %v5456_v45, %v5456_v45 }
0x1fca   : > { %v5382_v10 = vmul.f32 %v6099_v12, %v5377_v4  ;;  %v5462_v49 = vsel %vm1579_vm5, %v5457_v48, 0 }
0x1fcb   : > { %5471 = vmatpush.bf16.msra.mxu1 %v5462_v49 }
0x1fcc   : > { %v5387_v15 = vadd.f32 %v6100_v27, %v5382_v10 }
0x1fce   : > { %v5982_v16 = vmul.f32 -1.442695, %v5387_v15 }
0x1fd0   : > { %6183 = vpow2.f32 %v5982_v16 }
0x1fd6   : > { %v6184_v17 = vpop.eup %6183 }
0x1fd7   : > { %v5391_v11 = vadd.f32 1.0, %v6184_v17 }
0x1fd9   : > { %6185 = vrcp.f32 %v5391_v11  ;;  %v5403_v13 = vand.u32 2147483648, %v5391_v11  ;;  %v5401_v21 = vand.u32 2147483647, %v5391_v11  ;;  %vm5397_vm6 = vweird.f32 %v5391_v11 }
0x1fdb   : > { %v5404_v57 = vor.u32 1.1754944e-38, %v5403_v13  ;;  %vm5402_vm7 = vcmp.eq.f32.partialorder %v5401_v21, 8.507059e+37 }
0x1fdf   : > { %v6186_v36 = vpop.eup %6185 }
0x1fe0   : > { %v5393_v19 = vmul.f32 %v6186_v36, %v5391_v11  ;;  %vm5398_vm14 = vweird.f32 %v6186_v36 }
0x1fe1   : > { %vm5399_vm4 = vmor %vm5397_vm6, %vm5398_vm14 }
0x1fe2   : > { %v5394_v20 = vsub.f32 1.0, %v5393_v19 }
0x1fe4   : > { %v5395_v14 = vmul.f32 %v6186_v36, %v5394_v20 }
0x1fe6   : > { %v5396_v22 = vadd.f32 %v6186_v36, %v5395_v14 }
0x1fe8   : > { %v5400_v23 = vsel %vm5399_vm4, %v6186_v36, %v5396_v22 }
0x1fe9   : > { %v5405_v24 = vsel %vm5402_vm7, %v5404_v57, %v5400_v23 }
0x1fea   : > { %v5407_v25 = vmul.f32 %v5405_v24, %v5387_v15 }
0x1fec   : > { %v7156_v26 = vadd.f32 %v5407_v25, %v7080_v34 }
0x1fee   : > { %v5409_v58 = vsel %vm3520_vm3, %v7156_v26, 0.0 }
0x1fef   : > { %v5410_v28 = vrot.slane %v5409_v58, 4 }
0x1ff1   : > { %v5411_v29 = vadd.f32 %v5410_v28, %v5409_v58 }
0x1ff3   : > { %v5412_v30 = vrot.slane %v5411_v29, 2 }
0x1ff5   : > { %v5413_v31 = vadd.f32 %v5412_v30, %v5411_v29 }
0x1ff7   : > { %v5414_v32 = vrot.slane %v5413_v31, 1 }
0x1ff9   : > { %v5415_v33 = vadd.f32 %v5414_v32, %v5413_v31 }
0x1ffb   : > { %v5416_v35 = vsel %vm3520_vm3, %v5415_v33, 0.0 }
0x1ffc   : > { %5417 = vadd.xlane.f32.xlu2 %v5416_v35 }
0x206f   : > { %v5418_v37 = vpop.xlane.xlu2 %5417 }
0x2070   : > { %v5419_v38 = vmul.f32 0.015625, %v5418_v37 }
0x2072   : > { %v5420_v41 = vsub.f32 %v7156_v26, %v5419_v38 }
0x2074   : > { %v5421_v42 = vmul.f32 %v5420_v41, %v5420_v41 }
0x2076   : > { %v5422_v34 = vsel %vm3520_vm3, %v5421_v42, 0.0 }
0x2077   : > { %v5423_v43 = vrot.slane %v5422_v34, 4 }
0x2079   : > { %v5424_v39 = vadd.f32 %v5423_v43, %v5422_v34 }
0x207b   : > { %v5425_v40 = vrot.slane %v5424_v39, 2 }
0x207d   : > { %v5426_v44 = vadd.f32 %v5425_v40, %v5424_v39 }
0x207f   : > { %v5427_v46 = vrot.slane %v5426_v44, 1 }
0x2081   : > { %v5428_v18 = vadd.f32 %v5427_v46, %v5426_v44  ;;  %v5595_v44 = vld [vmem:[%s7315_s16 + $0x8] sm:$0xff] }
0x2082   : > { %v5597_v46 = vpack.c.bf16 %v5595_v44, %v5595_v44 }
0x2083   : > { %v5429_v47 = vsel %vm3520_vm3, %v5428_v18, 0.0 }
0x2084   : > { %5430 = vadd.xlane.f32.xlu0 %v5429_v47  ;;  %v5602_v18 = vsel %vm1579_vm5, %v5597_v46, 0  ;;  %v5535_v47 = vld [vmem:[%s7315_s16] sm:$0xff] }
0x2085   : > { %v5537_v45 = vpack.c.bf16 %v5535_v47, %v5535_v47 }
0x2087   : > { %v5621_v48 = vsel %vm1579_vm5, %v5537_v45, 0 }
0x20f7   : > { %v5431_v50 = vpop.xlane.xlu0 %5430 }
0x20f8   : > { %v5432_v55 = vmul.f32 0.015625, %v5431_v50 }
0x20fa   : > { %v5433_v56 = vadd.f32 1e-05, %v5432_v55 }
0x20fc   : > { %6187 = vrsqrt.f32 %v5433_v56  ;;  %vm5440_vm15 = vweird.f32 %v5433_v56 }
0x2102   : > { %v6188_v59 = vpop.eup %6187 }
0x2103   : > { %v5435_v53 = vmul.f32 %v6188_v59, %v5433_v56  ;;  %vm5441_vm9 = vweird.f32 %v6188_v59 }
0x2104   : > { %vm5442_vm0 = vmor %vm5440_vm15, %vm5441_vm9 }
0x2105   : > { %v5436_v54 = vmul.f32 %v6188_v59, %v5435_v53 }
0x2107   : > { %v5437_v60 = vmul.f32 0.5, %v5436_v54 }
0x2109   : > { %v5438_v61 = vsub.f32 1.5, %v5437_v60  ;;  %v5643_v60 = vld [vmem:[%s6552_s6] sm:$0xff] }
0x210b   : > { %v5439_v51 = vmul.f32 %v6188_v59, %v5438_v61  ;;  %v5644_v61 = vpack.c.bf16 %v5643_v60, %v5643_v60 }
0x210d   : > { %v5443_v63 = vsel %vm5442_vm0, %v6188_v59, %v5439_v51  ;;  %v5653_v51 = vsel %vm1579_vm5, %v5644_v61, 0 }
0x210e   : > { %v5444_v0 = vmul.f32 %v5443_v63, %v5420_v41 }
0x2110   : > { %v5449_v5 = vmul.f32 %v6101_v8, %v5444_v0  ;;  %v6103_v0 = vld [vmem:[%s6547_s27] ss:$0 sm:$0xff] }
0x2112   : > { %v5454_v62 = vadd.f32 %v6102_v2, %v5449_v5 }
0x2114   : > { %v5455_v1 = vpack.c.bf16 %v5454_v62, %v5454_v62 }
0x2116   : > { %5983 = vmatmul.msk.bf16.vlgmr.msra.gmra.mxu1 %vm3520_vm3, %v5455_v1 }
0x2193   : > { %v5473_v52 = vpop.f32.mrf.mxu1 }
0x2194   : > { %v5479_v7 = vpack.c.bf16 %v5473_v52, %v5473_v52  ;;  %v5477_v3 = vmul.f32 0.35355338, %v5473_v52 }
0x2196   : > { %5541 = vrot.lane.b32.xlu1 %v5479_v7, %s6294_s11  ;;  %5481 = vrot.lane.b32.xlu2 %v5479_v7, %s7311_s2  ;;  %v5478_v4 = vpack.c.bf16 %v5477_v3, %v5477_v3  ;;  %s7314_s11 = smov 96   ;;  %s1530_s2 = scalar_lea.vmem %s6562_s20, %s5996_s18 }
0x219b   : > { %v5475_v12 = vpop.f32.mrf.mxu1 }
0x219e   : > { %5539 = vrot.lane.b32.xlu1 %v5478_v4, %s7312_s0  ;;  %s7313_s0 = smov 88  }
0x21f0   : > { %v5482_v27 = vpop.permute.xlu2 %5481 }
0x21f1   : > { %v5487_v10 = vsel %vm3520_vm3, %v5482_v27, 0 }
0x21f2   : > { %5496 = vmatpush.bf16.xpose.msrb.mxu2 %v5487_v10 }
0x21f9   : > { %5984 = vmatmul.msk.bf16.vlgmr.msrb.gmra.mxu2 %vm3520_vm3, %v5478_v4 }
0x21fa   : > { %5611 = vmatpush.bf16.msra.mxu2 %v5602_v18 }
0x2208   : > { %v5542_v15 = vpop.permute.xlu1 %5541 }
0x2209   : > { %v5547_v16 = vsel %vm3520_vm3, %v5542_v15, 0 }
0x220a   : > { %5556 = vmatpush.bf16.xpose.msrb.mxu0 %v5547_v16 }
0x2210   : > { %v5540_v17 = vpop.permute.xlu1 %5539 }
0x2211   : > { %5986 = vmatmul.msk.bf16.vlgmr.msrb.gmra.mxu0 %vm3520_vm3, %v5540_v17 }
0x2212   : > { %5662 = vmatpush.bf16.msra.mxu0 %v5653_v51 }
0x227c   : > { %v5498_v11 = vpop.f32.mrf.mxu2 }
0x227d   : > { %v5502_v36 = vsel %vm3520_vm3, %v5498_v11, -inf }
0x227e   : > { %5503 = vmax.xlane.f32.xlu2 %v5502_v36 }
0x2284   : > { %v5500_v19 = vpop.f32.mrf.mxu2 }
0x228e   : > { %v5558_v20 = vpop.f32.mrf.mxu0 }
0x228f   : > { %v5562_v13 = vsel %vm3520_vm3, %v5558_v20, -inf }
0x2290   : > { %5563 = vmax.xlane.f32.xlu1 %v5562_v13 }
0x2296   : > { %v5560_v14 = vpop.f32.mrf.mxu0  ;;  %5574 = vrot.lane.b32.xlu2 %v5479_v7, %s7313_s0 }
0x22f1   : > { %v5504_v21 = vpop.xlane.xlu2 %5503 }
0x22f2   : > { %v5505_v25 = vsub.f32 %v5498_v11, %v5504_v21 }
0x22f4   : > { %v5506_v28 = vmul.f32 1.442695, %v5505_v25 }
0x22f9   : > { %v5575_v22 = vpop.permute.xlu2 %5574 }
0x22fa   : > { %v5580_v57 = vsel %vm1579_vm5, %v5575_v22, 0 }
0x22fb   : > { %5589 = vmatpush.bf16.msrb.mxu1 %v5580_v57 }
0x2303   : > { %v5564_v23 = vpop.xlane.xlu1 %5563 }
0x2304   : > { %v5565_v24 = vsub.f32 %v5558_v20, %v5564_v23 }
0x2306   : > { %v5566_v58 = vmul.f32 1.442695, %v5565_v24 }
0x2308   : > { %6189 = vpow2.f32 %v5566_v58 }
0x2309   : > { %6191 = vpow2.f32 %v5506_v28 }
0x230e   : > { %v6190_v29 = vpop.eup %6189 }
0x230f   : > { %v5568_v30 = vsel %vm3520_vm3, %v6190_v29, 0.0  ;;  %v6192_v31 = vpop.eup %6191 }
0x2310   : > { %5569 = vadd.xlane.f32.xlu0 %v5568_v30  ;;  %v5508_v32 = vsel %vm3520_vm3, %v6192_v31, 0.0 }
0x2318   : > { %5509 = vadd.xlane.f32.xlu0 %v5508_v32 }
0x232c   : > { %5514 = vrot.lane.b32.xlu0 %v5479_v7, %s7314_s11  ;;  %v6104_v7 = vld [vmem:[#allocation2] ss:$0 sm:$0xff] }
0x2383   : > { %v5570_v33 = vpop.xlane.xlu0 %5569 }
0x2384   : > { %6193 = vrcp.f32 %v5570_v33 }
0x238a   : > { %v6194_v35 = vpop.eup %6193 }
0x238b   : > { %v5572_v37 = vmul.f32 %v6194_v35, %v6190_v29  ;;  %v5510_v41 = vpop.xlane.xlu0 %5509 }
0x238c   : > { %6195 = vrcp.f32 %v5510_v41 }
0x238d   : > { %v5573_v38 = vpack.c.bf16 %v5572_v37, %v5572_v37 }
0x238f   : > { %5987 = vmatmul.msk.bf16.vlgmr.msrb.gmra.mxu1 %vm3520_vm3, %v5573_v38 }
0x2392   : > { %v6196_v42 = vpop.eup %6195 }
0x2393   : > { %v5512_v34 = vmul.f32 %v6196_v42, %v6192_v31 }
0x2395   : > { %v5513_v40 = vpack.c.bf16 %v5512_v34, %v5512_v34 }
0x239e   : > { %v5515_v43 = vpop.permute.xlu0 %5514 }
0x239f   : > { %v5520_v39 = vsel %vm1579_vm5, %v5515_v43, 0  ;;  %vm7317_vm5 = vmmov %vm7316_vm1 }
0x23a0   : > { %5529 = vmatpush.bf16.msrb.mxu3 %v5520_v39 }
0x23a3   : > { %5985 = vmatmul.msk.bf16.vlgmr.msrb.gmra.mxu3 %vm3520_vm3, %v5513_v40 }
0x23a4   : > { %5630 = vmatpush.bf16.msra.mxu3 %v5621_v48 }
0x240c   : > { %v5591_v49 = vpop.f32.mrf.mxu1 }
0x240d   : > { %v5596_v50 = vpack.c.bf16 %v5591_v49, %v5591_v49 }
0x240f   : > { %5988 = vmatmul.msk.bf16.vlgmr.msra.gmra.mxu2 %vm3520_vm3, %v5596_v50 }
0x2414   : > { %v5593_v55 = vpop.f32.mrf.mxu1 }
0x2426   : > { %v5531_v56 = vpop.f32.mrf.mxu3 }
0x2427   : > { %v5536_v59 = vpack.c.bf16 %v5531_v56, %v5531_v56 }
0x2429   : > { %5989 = vmatmul.msk.bf16.vlgmr.msra.gmra.mxu3 %vm3520_vm3, %v5536_v59 }
0x242e   : > { %v5533_v53 = vpop.f32.mrf.mxu3 }
0x2492   : > { %v5613_v54 = vpop.f32.mrf.mxu2 }
0x249a   : > { %v5615_v8 = vpop.f32.mrf.mxu2 }
0x24ac   : > { %v5632_v63 = vpop.f32.mrf.mxu3 }
0x24ad   : > { %v5633_v2 = vadd.f32 %v5632_v63, %v5613_v54 }
0x24af   : > { %v5636_v5 = vadd.f32 %v5633_v2, %v7156_v26 }
0x24b1   : > { %v5641_v62 = vadd.f32 %v6103_v0, %v5636_v5 }
0x24b3   : > { %v5642_v1 = vpack.c.bf16 %v5641_v62, %v5641_v62 }
0x24b4   : > { %v5634_v52 = vpop.f32.mrf.mxu3 }
0x24b5   : > { %5990 = vmatmul.msk.bf16.vlgmr.msra.gmra.mxu0 %vm3520_vm3, %v5642_v1 }
0x2532   : > { %v5664_v3 = vpop.f32.mrf.mxu0 }
0x2533   : > { %v5665_v12 = vadd.f32 %v6104_v7, %v5664_v3 }
0x2535   : > { %5991 = vmatpush.xpose.msk.msra.mxu1 %vm7316_vm1, %v5665_v12 }
0x2538   : > { %5992 = vmatmul.msk.f32.vlgmr.msra.gmra.mxu1 %vm7317_vm5, %v6606_v6 }
0x253a   : > { %v5666_v4 = vpop.f32.mrf.mxu0 }
0x2540   : > { %5993 = vmatmul.msk.f32.gmra.mxu1 %vm7318_vm12, %v6610_v9 }
0x25b5   : > { %v5688_v26 = vpop.f32.mrf.mxu1 }
0x25b6   : > { %5694 = vst.msk [vmem:[%s1530_s2] sm:$0xff] %vm3520_vm3, %v5688_v26 }
0x25bd   : > { %v5691_v27 = vpop.f32.mrf.mxu1 }
0x25be   : > { %5695 = vst.msk [vmem:[%s1530_s2 + $0x8] sm:$0xff] %vm3520_vm3, %v5691_v27 }
0x25bf PF: > { %s114_s22 = sadd.s32 1, %s6239_s22  }
0x25c0   : > { %p111_p1 = scmp.ge.s32.totalorder %s114_s22, 4  }
0x25c2   :  { %113 = sbr.rel (!%p111_p1) target bundleno = 104 (0x68), region = 310 }
0x25c7   :  { %5717 = vsyncpa [#allocation3], 1 }
0x25c8   :  { %5719 = vsyncpa [#allocation3 + $0x1], 1 }

</bundles_post_ra>
